<compile_context>
chip_gen: v6e
topology: v6e:2x2x1
jax: 0.10.0
libtpu: 0.0.40
codegen_flags: <defaults>
</compile_context>

<pallas_src>
import functools

import jax
import jax.numpy as jnp
import numpy as np
from jax.experimental import pallas as pl
from jax.experimental.pallas import tpu as pltpu

B_TILE = 8  # images per grid step (keep modest for v7x's 64 MiB VMEM)


# ----------------------------------------------------------------------------
# Fused kernel: one grid step == B_TILE batch elements, everything VMEM-resident.
# ----------------------------------------------------------------------------
def _fused_cnn_kernel(
    taps0_ref,                               # (B*256, 27) bf16 conv0 im2col taps
    w0_ref, s0_ref, b0_ref,                  # (27, 32) bf16, (1, 32) f32, (1, 32) f32
    w1_ref, s1_ref, b1_ref,                  # (288, 64) bf16, (1, 64), (1, 64)
    w2_ref, s2_ref, b2_ref,                  # (576, 128) bf16, (1, 128), (1, 128)
    fc1w_ref, fc1b_ref,                      # (128, 64) bf16, (1, 64)
    fc2w_ref, fc2b_ref,                      # (64, 2) bf16, (1, 2)
    o_ref,                                   # (B, 2) logits block
    hp0_ref,                                 # (B*8, 16, 32)  H-pooled conv0 output
    p1_ref,                                  # (B, 10, 10, 32) zero-padded conv1 input
    hp1_ref,                                 # (B*4, 8, 64)   H-pooled conv1 output
    p2_ref,                                  # (B, 6, 10, 64) zero-padded conv2 input
    *, B,
):
    f32 = jnp.float32
    bf16 = jnp.bfloat16

    def conv_from_padded(p_ref, h, w, cin, w_ref, s_ref, b_ref):
        # im2col from the zero-padded VMEM activation: 9 statically shifted
        # slices concatenated along the channel (lane) axis -> one fused-K
        # MXU matmul (K = 9*cin), bf16 operands, f32 accumulation.
        pieces = [
            p_ref[:, dy:dy + h, dx:dx + w, :].reshape(B * h * w, cin)
            for dy in range(3) for dx in range(3)
        ]
        taps = jnp.concatenate(pieces, axis=-1).astype(bf16)          # (B*h*w, 9*cin)
        acc = jnp.dot(taps, w_ref[...], preferred_element_type=f32)   # (B*h*w, cout)
        # Folded Conv-bias + BatchNorm(eval) affine, then ReLU (f32).
        return jnp.maximum(acc * s_ref[...] + b_ref[...], 0.0)

    # ---- conv block 0: 3 -> 32, 16x16 (taps precomputed in XLA) -------------
    a0 = jnp.dot(taps0_ref[...], w0_ref[...], preferred_element_type=f32)
    a0 = jnp.maximum(a0 * s0_ref[...] + b0_ref[...], 0.0)             # (B*256, 32)

    # ---- maxpool 2x2: 16x16 -> 8x8 -------------------------------------------
    # H-direction: free leading-dim split + slab max; W-direction: stride-2
    # sublane loads from a VMEM scratch.
    a0r = a0.reshape(B * 8, 2, 16, 32)
    hp0_ref[...] = jnp.maximum(a0r[:, 0], a0r[:, 1])                  # (B*8, 16, 32)
    wp0 = jnp.maximum(hp0_ref[:, pl.ds(0, 8, 2), :],
                      hp0_ref[:, pl.ds(1, 8, 2), :]).reshape(B, 8, 8, 32)

    # ---- pad for conv1: halo-only zeroing (interior fully overwritten) ------
    p1_ref[:, 0:1, :, :] = jnp.zeros((B, 1, 10, 32), f32)
    p1_ref[:, 9:10, :, :] = jnp.zeros((B, 1, 10, 32), f32)
    p1_ref[:, 1:9, 0:1, :] = jnp.zeros((B, 8, 1, 32), f32)
    p1_ref[:, 1:9, 9:10, :] = jnp.zeros((B, 8, 1, 32), f32)
    p1_ref[:, 1:9, 1:9, :] = wp0

    # ---- conv block 1: 32 -> 64, 8x8 ----------------------------------------
    a1 = conv_from_padded(p1_ref, 8, 8, 32, w1_ref, s1_ref, b1_ref)   # (B*64, 64)

    # ---- maxpool 2x2: 8x8 -> 4x4 ---------------------------------------------
    a1r = a1.reshape(B * 4, 2, 8, 64)
    hp1_ref[...] = jnp.maximum(a1r[:, 0], a1r[:, 1])                  # (B*4, 8, 64)
    wp1 = jnp.maximum(hp1_ref[:, pl.ds(0, 4, 2), :],
                      hp1_ref[:, pl.ds(1, 4, 2), :]).reshape(B, 4, 4, 64)

    # ---- pad for conv2 --------------------------------------------------------
    # Width is padded to 10 (8 computed columns) so every row collapse stays
    # aligned to the 8-sublane tile; output columns x>=4 are junk and are
    # excluded from the adaptive-average below. Column 5 is the true right halo.
    p2_ref[:, 0:1, :, :] = jnp.zeros((B, 1, 10, 64), f32)
    p2_ref[:, 5:6, :, :] = jnp.zeros((B, 1, 10, 64), f32)
    p2_ref[:, 1:5, 0:1, :] = jnp.zeros((B, 4, 1, 64), f32)
    p2_ref[:, 1:5, 5:10, :] = jnp.zeros((B, 4, 5, 64), f32)
    p2_ref[:, 1:5, 1:5, :] = wp1

    # ---- conv block 2: 64 -> 128, 4x4 (computed 4x8 wide) --------------------
    a2 = conv_from_padded(p2_ref, 4, 8, 64, w2_ref, s2_ref, b2_ref)   # (B*32, 128)

    # ---- AdaptiveAvgPool2d((1,1)) + Flatten: mean over the 16 valid pixels ---
    a2r = a2.reshape(B, 4, 8, 128)
    rows = a2r[:, 0] + a2r[:, 1] + a2r[:, 2] + a2r[:, 3]              # (B, 8, 128)
    feat = jnp.sum(rows[:, 0:4, :], axis=1) * (1.0 / 16.0)            # (B, 128)

    # ---- classifier head: Linear(128,64)+ReLU, Dropout=identity, Linear(64,2)
    h = jnp.maximum(
        jnp.dot(feat.astype(bf16), fc1w_ref[...], preferred_element_type=f32)
        + fc1b_ref[...], 0.0)
    logits = (jnp.dot(h.astype(bf16), fc2w_ref[...], preferred_element_type=f32)
              + fc2b_ref[...])
    o_ref[...] = logits.astype(o_ref.dtype)


# ----------------------------------------------------------------------------
# Wrapper: NCHW->NHWC transpose, conv0 im2col and one-time weight prep in XLA.
# ----------------------------------------------------------------------------
def _broadcast_spec(shape):
    zeros = (0,) * len(shape)
    return pl.BlockSpec(shape, lambda n: zeros)


@jax.jit
def cnn_binary_classifier_forward(x_nchw, params):
    f32, bf16 = jnp.float32, jnp.bfloat16
    x = jnp.transpose(x_nchw, (0, 2, 3, 1)).astype(f32)               # (N,16,16,3)
    N, H, W, Cin = x.shape

    # conv0 im2col hoisted to XLA: keeps the lane-sparse C=3 layout (and its
    # 3-lane-offset relayouts) out of the kernel; ~27 KB/image extra HBM traffic.
    xp = jnp.pad(x, ((0, 0), (1, 1), (1, 1), (0, 0)))
    taps0 = jnp.concatenate(
        [xp[:, dy:dy + H, dx:dx + W, :].reshape(N, H * W, Cin)
         for dy in range(3) for dx in range(3)], axis=-1)             # (N,256,27)

    B = B_TILE
    n_steps = -(-N // B)
    N_pad = n_steps * B
    if N_pad != N:
        taps0 = jnp.pad(taps0, ((0, N_pad - N), (0, 0), (0, 0)))
    taps0 = taps0.reshape(N_pad * H * W, 9 * Cin).astype(bf16)        # (N_pad*256, 27)

    w0 = params["conv0_w"].reshape(9 * 3, 32).astype(bf16)
    w1 = params["conv1_w"].reshape(9 * 32, 64).astype(bf16)
    w2 = params["conv2_w"].reshape(9 * 64, 128).astype(bf16)
    weight_args = (
        w0, params["conv0_scale"].reshape(1, 32).astype(f32),
        params["conv0_bias"].reshape(1, 32).astype(f32),
        w1, params["conv1_scale"].reshape(1, 64).astype(f32),
        params["conv1_bias"].reshape(1, 64).astype(f32),
        w2, params["conv2_scale"].reshape(1, 128).astype(f32),
        params["conv2_bias"].reshape(1, 128).astype(f32),
        params["fc1_w"].astype(bf16), params["fc1_b"].reshape(1, 64).astype(f32),
        params["fc2_w"].astype(bf16), params["fc2_b"].reshape(1, 2).astype(f32),
    )

    in_specs = [pl.BlockSpec((B * H * W, 9 * Cin), lambda n: (n, 0))]
    in_specs += [_broadcast_spec(a.shape) for a in weight_args]

    out = pl.pallas_call(
        functools.partial(_fused_cnn_kernel, B=B),
        out_shape=jax.ShapeDtypeStruct((N_pad, 2), f32),
        grid=(n_steps,),
        in_specs=in_specs,
        out_specs=pl.BlockSpec((B, 2), lambda n: (n, 0)),
        scratch_shapes=[
            pltpu.VMEM((B * 8, 16, 32), f32),    # H-pooled conv0 output
            pltpu.VMEM((B, 10, 10, 32), f32),    # padded conv1 input
            pltpu.VMEM((B * 4, 8, 64), f32),     # H-pooled conv1 output
            pltpu.VMEM((B, 6, 10, 64), f32),     # padded conv2 input (W->10)
        ],
        compiler_params=pltpu.CompilerParams(
            dimension_semantics=("parallel",),
            vmem_limit_bytes=32 * 1024 * 1024,
        ),
    )(taps0, *weight_args)
    return out[:N]


# ----------------------------------------------------------------------------
# Deterministic synthetic parameters (BN folded into per-channel scale/bias)
# ----------------------------------------------------------------------------
def _fold_bn(conv_bias, gamma, beta, run_mean, run_var, eps=1e-5):
    scale = gamma / jnp.sqrt(run_var + eps)
    bias = (conv_bias - run_mean) * scale + beta
    return scale, bias


def init_params(key):
    params = {}
    channels = [(3, 32), (32, 64), (64, 128)]
    for li, (cin, cout) in enumerate(channels):
        key, kw, kb, kg, kbe, km, kv = jax.random.split(key, 7)
        w = jax.random.normal(kw, (3, 3, cin, cout), jnp.float32) * 0.1
        cb = jax.random.normal(kb, (cout,), jnp.float32) * 0.05
        gamma = 1.0 + 0.1 * jax.random.normal(kg, (cout,), jnp.float32)
        beta = 0.1 * jax.random.normal(kbe, (cout,), jnp.float32)
        rmean = 0.05 * jax.random.normal(km, (cout,), jnp.float32)
        rvar = 0.5 + jnp.abs(jax.random.normal(kv, (cout,), jnp.float32))
        scale, bias = _fold_bn(cb, gamma, beta, rmean, rvar)
        params[f"conv{li}_w"] = w
        params[f"conv{li}_scale"] = scale
        params[f"conv{li}_bias"] = bias
    key, k1, k2, k3, k4 = jax.random.split(key, 5)
    params["fc1_w"] = jax.random.normal(k1, (128, 64), jnp.float32) * 0.1
    params["fc1_b"] = jax.random.normal(k2, (64,), jnp.float32) * 0.05
    params["fc2_w"] = jax.random.normal(k3, (64, 2), jnp.float32) * 0.1
    params["fc2_b"] = jax.random.normal(k4, (2,), jnp.float32) * 0.05
    return params


# ----------------------------------------------------------------------------
# Pure-JAX reference (eval semantics, same bf16-operand / f32-accum precision).
# ----------------------------------------------------------------------------
def _reference_forward(x_nchw, params):
    f32, bf16 = jnp.float32, jnp.bfloat16
    x = jnp.transpose(x_nchw, (0, 2, 3, 1)).astype(f32)

    def conv_block(x, w, s, b):
        y = jax.lax.conv_general_dilated(
            x.astype(bf16), w.astype(bf16), window_strides=(1, 1), padding="SAME",
            dimension_numbers=("NHWC", "HWIO", "NHWC"),
            preferred_element_type=f32)
        return jnp.maximum(y * s + b, 0.0)

    def pool(x):
        return jax.lax.reduce_window(
            x, -jnp.inf, jax.lax.max, (1, 2, 2, 1), (1, 2, 2, 1), "VALID")

    x = pool(conv_block(x, params["conv0_w"], params["conv0_scale"], params["conv0_bias"]))
    x = pool(conv_block(x, params["conv1_w"], params["conv1_scale"], params["conv1_bias"]))
    x = conv_block(x, params["conv2_w"], params["conv2_scale"], params["conv2_bias"])
    feat = jnp.mean(x, axis=(1, 2))
    h = jnp.maximum(
        jnp.dot(feat.astype(bf16), params["fc1_w"].astype(bf16),
                preferred_element_type=f32) + params["fc1_b"], 0.0)
    return jnp.dot(h.astype(bf16), params["fc2_w"].astype(bf16),
                   preferred_element_type=f32) + params["fc2_b"]


if __name__ == "__main__":
    key = jax.random.PRNGKey(0)
    key, kx = jax.random.split(key)
    # 16 images -> 2 grid steps of B_TILE=8 ("parallel" axis can feed 2 TCs).
    x = jax.random.normal(kx, (16, 3, 16, 16), jnp.float32)   # NCHW like PyTorch
    params = init_params(key)

    out = jax.block_until_ready(cnn_binary_classifier_forward(x, params))
    assert out.shape == (16, 2) and out.dtype == jnp.float32

    ref = jax.block_until_ready(_reference_forward(x, params))
    np.testing.assert_allclose(np.asarray(out), np.asarray(ref), rtol=2e-2, atol=2e-2)
    print("KERNEL_OK")
</pallas_src>

<mosaic_0001>
module attributes {stable_mosaic.version = 11 : i64} {
  func.func @_fused_cnn_kernel(%arg0: i32, %arg1: memref<2048x27xbf16, #tpu.memory_space<vmem>>, %arg2: memref<27x32xbf16, #tpu.memory_space<vmem>>, %arg3: memref<1x32xf32, #tpu.memory_space<vmem>>, %arg4: memref<1x32xf32, #tpu.memory_space<vmem>>, %arg5: memref<288x64xbf16, #tpu.memory_space<vmem>>, %arg6: memref<1x64xf32, #tpu.memory_space<vmem>>, %arg7: memref<1x64xf32, #tpu.memory_space<vmem>>, %arg8: memref<576x128xbf16, #tpu.memory_space<vmem>>, %arg9: memref<1x128xf32, #tpu.memory_space<vmem>>, %arg10: memref<1x128xf32, #tpu.memory_space<vmem>>, %arg11: memref<128x64xbf16, #tpu.memory_space<vmem>>, %arg12: memref<1x64xf32, #tpu.memory_space<vmem>>, %arg13: memref<64x2xbf16, #tpu.memory_space<vmem>>, %arg14: memref<1x2xf32, #tpu.memory_space<vmem>>, %arg15: memref<8x2xf32, #tpu.memory_space<vmem>>, %arg16: memref<64x16x32xf32, #tpu.memory_space<vmem>>, %arg17: memref<8x10x10x32xf32, #tpu.memory_space<vmem>>, %arg18: memref<32x8x64xf32, #tpu.memory_space<vmem>>, %arg19: memref<8x6x10x64xf32, #tpu.memory_space<vmem>>) attributes {dimension_semantics = [#tpu.dimension_semantics<parallel>], iteration_bounds = array<i64: 2>, scalar_prefetch = 0 : i64, scratch_operands = 4 : i64, tpu.core_type = #tpu.core_type<tc>, window_params = [{transform_indices = @transform_0, window_bounds = array<i64: 2048, 27>}, {pipeline_mode = #tpu.pipeline_mode<synchronous>, transform_indices = @transform_1, window_bounds = array<i64: 27, 32>}, {pipeline_mode = #tpu.pipeline_mode<synchronous>, transform_indices = @transform_2, window_bounds = array<i64: 1, 32>}, {pipeline_mode = #tpu.pipeline_mode<synchronous>, transform_indices = @transform_3, window_bounds = array<i64: 1, 32>}, {pipeline_mode = #tpu.pipeline_mode<synchronous>, transform_indices = @transform_4, window_bounds = array<i64: 288, 64>}, {pipeline_mode = #tpu.pipeline_mode<synchronous>, transform_indices = @transform_5, window_bounds = array<i64: 1, 64>}, {pipeline_mode = #tpu.pipeline_mode<synchronous>, transform_indices = @transform_6, window_bounds = array<i64: 1, 64>}, {pipeline_mode = #tpu.pipeline_mode<synchronous>, transform_indices = @transform_7, window_bounds = array<i64: 576, 128>}, {pipeline_mode = #tpu.pipeline_mode<synchronous>, transform_indices = @transform_8, window_bounds = array<i64: 1, 128>}, {pipeline_mode = #tpu.pipeline_mode<synchronous>, transform_indices = @transform_9, window_bounds = array<i64: 1, 128>}, {pipeline_mode = #tpu.pipeline_mode<synchronous>, transform_indices = @transform_10, window_bounds = array<i64: 128, 64>}, {pipeline_mode = #tpu.pipeline_mode<synchronous>, transform_indices = @transform_11, window_bounds = array<i64: 1, 64>}, {pipeline_mode = #tpu.pipeline_mode<synchronous>, transform_indices = @transform_12, window_bounds = array<i64: 64, 2>}, {pipeline_mode = #tpu.pipeline_mode<synchronous>, transform_indices = @transform_13, window_bounds = array<i64: 1, 2>}, {transform_indices = @transform_14, window_bounds = array<i64: 8, 2>}]} {
    %c0 = arith.constant 0 : index
    %c0_0 = arith.constant 0 : index
    %0 = vector.load %arg1[%c0, %c0_0] : memref<2048x27xbf16, #tpu.memory_space<vmem>>, vector<2048x27xbf16>
    %c0_1 = arith.constant 0 : index
    %c0_2 = arith.constant 0 : index
    %1 = vector.load %arg2[%c0_1, %c0_2] : memref<27x32xbf16, #tpu.memory_space<vmem>>, vector<27x32xbf16>
    %cst = arith.constant dense<0.000000e+00> : vector<2048x32xf32>
    %2 = tpu.matmul %0, %1, %cst {dimension_numbers = #tpu.dot_dimension_numbers<[1], [0], [0], [1], [0, 0, 1, 1], [], []>} : vector<2048x27xbf16>, vector<27x32xbf16>, vector<2048x32xf32> -> vector<2048x32xf32>
    %c0_3 = arith.constant 0 : index
    %c0_4 = arith.constant 0 : index
    %3 = vector.load %arg3[%c0_3, %c0_4] : memref<1x32xf32, #tpu.memory_space<vmem>>, vector<1x32xf32>
    %4 = vector.broadcast %3 : vector<1x32xf32> to vector<2048x32xf32>
    %5 = arith.mulf %2, %4 : vector<2048x32xf32>
    %c0_5 = arith.constant 0 : index
    %c0_6 = arith.constant 0 : index
    %6 = vector.load %arg4[%c0_5, %c0_6] : memref<1x32xf32, #tpu.memory_space<vmem>>, vector<1x32xf32>
    %7 = vector.broadcast %6 : vector<1x32xf32> to vector<2048x32xf32>
    %8 = arith.addf %5, %7 : vector<2048x32xf32>
    %cst_7 = arith.constant 0.000000e+00 : f32
    %9 = vector.broadcast %cst_7 : f32 to vector<2048x32xf32>
    %10 = arith.maximumf %8, %9 : vector<2048x32xf32>
    %11 = vector.shape_cast %10 : vector<2048x32xf32> to vector<64x2x16x32xf32>
    %12 = vector.extract_strided_slice %11 {offsets = [0, 0, 0, 0], sizes = [64, 1, 16, 32], strides = [1, 1, 1, 1]} : vector<64x2x16x32xf32> to vector<64x1x16x32xf32>
    %13 = vector.shape_cast %12 : vector<64x1x16x32xf32> to vector<64x16x32xf32>
    %14 = vector.extract_strided_slice %11 {offsets = [0, 1, 0, 0], sizes = [64, 1, 16, 32], strides = [1, 1, 1, 1]} : vector<64x2x16x32xf32> to vector<64x1x16x32xf32>
    %15 = vector.shape_cast %14 : vector<64x1x16x32xf32> to vector<64x16x32xf32>
    %16 = arith.maximumf %13, %15 : vector<64x16x32xf32>
    %c0_8 = arith.constant 0 : index
    %c0_9 = arith.constant 0 : index
    %c0_10 = arith.constant 0 : index
    %17 = vector.load %arg16[%c0_8, %c0_9, %c0_10] : memref<64x16x32xf32, #tpu.memory_space<vmem>>, vector<64x16x32xf32>
    tpu.vector_store %arg16[%c0_8, %c0_9, %c0_10], %16 {strides = array<i32>} : memref<64x16x32xf32, #tpu.memory_space<vmem>>, vector<64x16x32xf32>,
    %c0_11 = arith.constant 0 : index
    %c0_12 = arith.constant 0 : index
    %c0_13 = arith.constant 0 : index
    %18 = tpu.strided_load %arg16[%c0_11, %c0_12, %c0_13] {strides = array<i32: 1, 2, 1>} : memref<64x16x32xf32, #tpu.memory_space<vmem>>, vector<64x8x32xf32>
    %c0_14 = arith.constant 0 : index
    %c1 = arith.constant 1 : index
    %c0_15 = arith.constant 0 : index
    %19 = tpu.strided_load %arg16[%c0_14, %c1, %c0_15] {strides = array<i32: 1, 2, 1>} : memref<64x16x32xf32, #tpu.memory_space<vmem>>, vector<64x8x32xf32>
    %20 = arith.maximumf %18, %19 : vector<64x8x32xf32>
    %21 = vector.shape_cast %20 : vector<64x8x32xf32> to vector<8x8x8x32xf32>
    %cst_16 = arith.constant 0.000000e+00 : f32
    %22 = vector.broadcast %cst_16 : f32 to vector<8x1x10x32xf32>
    %c0_17 = arith.constant 0 : index
    %c0_18 = arith.constant 0 : index
    %c0_19 = arith.constant 0 : index
    %c0_20 = arith.constant 0 : index
    %23 = vector.load %arg17[%c0_17, %c0_18, %c0_19, %c0_20] : memref<8x10x10x32xf32, #tpu.memory_space<vmem>>, vector<8x1x10x32xf32>
    tpu.vector_store %arg17[%c0_17, %c0_18, %c0_19, %c0_20], %22 {strides = array<i32>} : memref<8x10x10x32xf32, #tpu.memory_space<vmem>>, vector<8x1x10x32xf32>,
    %cst_21 = arith.constant 0.000000e+00 : f32
    %24 = vector.broadcast %cst_21 : f32 to vector<8x1x10x32xf32>
    %c0_22 = arith.constant 0 : index
    %c9 = arith.constant 9 : index
    %c0_23 = arith.constant 0 : index
    %c0_24 = arith.constant 0 : index
    %25 = vector.load %arg17[%c0_22, %c9, %c0_23, %c0_24] : memref<8x10x10x32xf32, #tpu.memory_space<vmem>>, vector<8x1x10x32xf32>
    tpu.vector_store %arg17[%c0_22, %c9, %c0_23, %c0_24], %24 {strides = array<i32>} : memref<8x10x10x32xf32, #tpu.memory_space<vmem>>, vector<8x1x10x32xf32>,
    %cst_25 = arith.constant 0.000000e+00 : f32
    %26 = vector.broadcast %cst_25 : f32 to vector<8x8x1x32xf32>
    %c0_26 = arith.constant 0 : index
    %c1_27 = arith.constant 1 : index
    %c0_28 = arith.constant 0 : index
    %c0_29 = arith.constant 0 : index
    %27 = vector.load %arg17[%c0_26, %c1_27, %c0_28, %c0_29] : memref<8x10x10x32xf32, #tpu.memory_space<vmem>>, vector<8x8x1x32xf32>
    tpu.vector_store %arg17[%c0_26, %c1_27, %c0_28, %c0_29], %26 {strides = array<i32>} : memref<8x10x10x32xf32, #tpu.memory_space<vmem>>, vector<8x8x1x32xf32>,
    %cst_30 = arith.constant 0.000000e+00 : f32
    %28 = vector.broadcast %cst_30 : f32 to vector<8x8x1x32xf32>
    %c0_31 = arith.constant 0 : index
    %c1_32 = arith.constant 1 : index
    %c9_33 = arith.constant 9 : index
    %c0_34 = arith.constant 0 : index
    %29 = vector.load %arg17[%c0_31, %c1_32, %c9_33, %c0_34] : memref<8x10x10x32xf32, #tpu.memory_space<vmem>>, vector<8x8x1x32xf32>
    tpu.vector_store %arg17[%c0_31, %c1_32, %c9_33, %c0_34], %28 {strides = array<i32>} : memref<8x10x10x32xf32, #tpu.memory_space<vmem>>, vector<8x8x1x32xf32>,
    %c0_35 = arith.constant 0 : index
    %c1_36 = arith.constant 1 : index
    %c1_37 = arith.constant 1 : index
    %c0_38 = arith.constant 0 : index
    %30 = vector.load %arg17[%c0_35, %c1_36, %c1_37, %c0_38] : memref<8x10x10x32xf32, #tpu.memory_space<vmem>>, vector<8x8x8x32xf32>
    tpu.vector_store %arg17[%c0_35, %c1_36, %c1_37, %c0_38], %21 {strides = array<i32>} : memref<8x10x10x32xf32, #tpu.memory_space<vmem>>, vector<8x8x8x32xf32>,
    %c0_39 = arith.constant 0 : index
    %c0_40 = arith.constant 0 : index
    %c0_41 = arith.constant 0 : index
    %c0_42 = arith.constant 0 : index
    %31 = vector.load %arg17[%c0_39, %c0_40, %c0_41, %c0_42] : memref<8x10x10x32xf32, #tpu.memory_space<vmem>>, vector<8x8x8x32xf32>
    %32 = vector.shape_cast %31 : vector<8x8x8x32xf32> to vector<512x32xf32>
    %c0_43 = arith.constant 0 : index
    %c0_44 = arith.constant 0 : index
    %c1_45 = arith.constant 1 : index
    %c0_46 = arith.constant 0 : index
    %33 = vector.load %arg17[%c0_43, %c0_44, %c1_45, %c0_46] : memref<8x10x10x32xf32, #tpu.memory_space<vmem>>, vector<8x8x8x32xf32>
    %34 = vector.shape_cast %33 : vector<8x8x8x32xf32> to vector<512x32xf32>
    %c0_47 = arith.constant 0 : index
    %c0_48 = arith.constant 0 : index
    %c2 = arith.constant 2 : index
    %c0_49 = arith.constant 0 : index
    %35 = vector.load %arg17[%c0_47, %c0_48, %c2, %c0_49] : memref<8x10x10x32xf32, #tpu.memory_space<vmem>>, vector<8x8x8x32xf32>
    %36 = vector.shape_cast %35 : vector<8x8x8x32xf32> to vector<512x32xf32>
    %c0_50 = arith.constant 0 : index
    %c1_51 = arith.constant 1 : index
    %c0_52 = arith.constant 0 : index
    %c0_53 = arith.constant 0 : index
    %37 = vector.load %arg17[%c0_50, %c1_51, %c0_52, %c0_53] : memref<8x10x10x32xf32, #tpu.memory_space<vmem>>, vector<8x8x8x32xf32>
    %38 = vector.shape_cast %37 : vector<8x8x8x32xf32> to vector<512x32xf32>
    %c0_54 = arith.constant 0 : index
    %c1_55 = arith.constant 1 : index
    %c1_56 = arith.constant 1 : index
    %c0_57 = arith.constant 0 : index
    %39 = vector.load %arg17[%c0_54, %c1_55, %c1_56, %c0_57] : memref<8x10x10x32xf32, #tpu.memory_space<vmem>>, vector<8x8x8x32xf32>
    %40 = vector.shape_cast %39 : vector<8x8x8x32xf32> to vector<512x32xf32>
    %c0_58 = arith.constant 0 : index
    %c1_59 = arith.constant 1 : index
    %c2_60 = arith.constant 2 : index
    %c0_61 = arith.constant 0 : index
    %41 = vector.load %arg17[%c0_58, %c1_59, %c2_60, %c0_61] : memref<8x10x10x32xf32, #tpu.memory_space<vmem>>, vector<8x8x8x32xf32>
    %42 = vector.shape_cast %41 : vector<8x8x8x32xf32> to vector<512x32xf32>
    %c0_62 = arith.constant 0 : index
    %c2_63 = arith.constant 2 : index
    %c0_64 = arith.constant 0 : index
    %c0_65 = arith.constant 0 : index
    %43 = vector.load %arg17[%c0_62, %c2_63, %c0_64, %c0_65] : memref<8x10x10x32xf32, #tpu.memory_space<vmem>>, vector<8x8x8x32xf32>
    %44 = vector.shape_cast %43 : vector<8x8x8x32xf32> to vector<512x32xf32>
    %c0_66 = arith.constant 0 : index
    %c2_67 = arith.constant 2 : index
    %c1_68 = arith.constant 1 : index
    %c0_69 = arith.constant 0 : index
    %45 = vector.load %arg17[%c0_66, %c2_67, %c1_68, %c0_69] : memref<8x10x10x32xf32, #tpu.memory_space<vmem>>, vector<8x8x8x32xf32>
    %46 = vector.shape_cast %45 : vector<8x8x8x32xf32> to vector<512x32xf32>
    %c0_70 = arith.constant 0 : index
    %c2_71 = arith.constant 2 : index
    %c2_72 = arith.constant 2 : index
    %c0_73 = arith.constant 0 : index
    %47 = vector.load %arg17[%c0_70, %c2_71, %c2_72, %c0_73] : memref<8x10x10x32xf32, #tpu.memory_space<vmem>>, vector<8x8x8x32xf32>
    %48 = vector.shape_cast %47 : vector<8x8x8x32xf32> to vector<512x32xf32>
    %49 = tpu.concatenate %32, %34, %36, %38, %40, %42, %44, %46, %48 in 1 : vector<512x32xf32>, vector<512x32xf32>, vector<512x32xf32>, vector<512x32xf32>, vector<512x32xf32>, vector<512x32xf32>, vector<512x32xf32>, vector<512x32xf32>, vector<512x32xf32> -> vector<512x288xf32>
    %50 = arith.truncf %49 : vector<512x288xf32> to vector<512x288xbf16>
    %c0_74 = arith.constant 0 : index
    %c0_75 = arith.constant 0 : index
    %51 = vector.load %arg5[%c0_74, %c0_75] : memref<288x64xbf16, #tpu.memory_space<vmem>>, vector<288x64xbf16>
    %cst_76 = arith.constant dense<0.000000e+00> : vector<512x64xf32>
    %52 = tpu.matmul %50, %51, %cst_76 {dimension_numbers = #tpu.dot_dimension_numbers<[1], [0], [0], [1], [0, 0, 1, 1], [], []>} : vector<512x288xbf16>, vector<288x64xbf16>, vector<512x64xf32> -> vector<512x64xf32>
    %c0_77 = arith.constant 0 : index
    %c0_78 = arith.constant 0 : index
    %53 = vector.load %arg6[%c0_77, %c0_78] : memref<1x64xf32, #tpu.memory_space<vmem>>, vector<1x64xf32>
    %54 = vector.broadcast %53 : vector<1x64xf32> to vector<512x64xf32>
    %55 = arith.mulf %52, %54 : vector<512x64xf32>
    %c0_79 = arith.constant 0 : index
    %c0_80 = arith.constant 0 : index
    %56 = vector.load %arg7[%c0_79, %c0_80] : memref<1x64xf32, #tpu.memory_space<vmem>>, vector<1x64xf32>
    %57 = vector.broadcast %56 : vector<1x64xf32> to vector<512x64xf32>
    %58 = arith.addf %55, %57 : vector<512x64xf32>
    %cst_81 = arith.constant 0.000000e+00 : f32
    %59 = vector.broadcast %cst_81 : f32 to vector<512x64xf32>
    %60 = arith.maximumf %58, %59 : vector<512x64xf32>
    %61 = vector.shape_cast %60 : vector<512x64xf32> to vector<32x2x8x64xf32>
    %62 = vector.extract_strided_slice %61 {offsets = [0, 0, 0, 0], sizes = [32, 1, 8, 64], strides = [1, 1, 1, 1]} : vector<32x2x8x64xf32> to vector<32x1x8x64xf32>
    %63 = vector.shape_cast %62 : vector<32x1x8x64xf32> to vector<32x8x64xf32>
    %64 = vector.extract_strided_slice %61 {offsets = [0, 1, 0, 0], sizes = [32, 1, 8, 64], strides = [1, 1, 1, 1]} : vector<32x2x8x64xf32> to vector<32x1x8x64xf32>
    %65 = vector.shape_cast %64 : vector<32x1x8x64xf32> to vector<32x8x64xf32>
    %66 = arith.maximumf %63, %65 : vector<32x8x64xf32>
    %c0_82 = arith.constant 0 : index
    %c0_83 = arith.constant 0 : index
    %c0_84 = arith.constant 0 : index
    %67 = vector.load %arg18[%c0_82, %c0_83, %c0_84] : memref<32x8x64xf32, #tpu.memory_space<vmem>>, vector<32x8x64xf32>
    tpu.vector_store %arg18[%c0_82, %c0_83, %c0_84], %66 {strides = array<i32>} : memref<32x8x64xf32, #tpu.memory_space<vmem>>, vector<32x8x64xf32>,
    %c0_85 = arith.constant 0 : index
    %c0_86 = arith.constant 0 : index
    %c0_87 = arith.constant 0 : index
    %68 = tpu.strided_load %arg18[%c0_85, %c0_86, %c0_87] {strides = array<i32: 1, 2, 1>} : memref<32x8x64xf32, #tpu.memory_space<vmem>>, vector<32x4x64xf32>
    %c0_88 = arith.constant 0 : index
    %c1_89 = arith.constant 1 : index
    %c0_90 = arith.constant 0 : index
    %69 = tpu.strided_load %arg18[%c0_88, %c1_89, %c0_90] {strides = array<i32: 1, 2, 1>} : memref<32x8x64xf32, #tpu.memory_space<vmem>>, vector<32x4x64xf32>
    %70 = arith.maximumf %68, %69 : vector<32x4x64xf32>
    %71 = vector.shape_cast %70 : vector<32x4x64xf32> to vector<8x4x4x64xf32>
    %cst_91 = arith.constant 0.000000e+00 : f32
    %72 = vector.broadcast %cst_91 : f32 to vector<8x1x10x64xf32>
    %c0_92 = arith.constant 0 : index
    %c0_93 = arith.constant 0 : index
    %c0_94 = arith.constant 0 : index
    %c0_95 = arith.constant 0 : index
    %73 = vector.load %arg19[%c0_92, %c0_93, %c0_94, %c0_95] : memref<8x6x10x64xf32, #tpu.memory_space<vmem>>, vector<8x1x10x64xf32>
    tpu.vector_store %arg19[%c0_92, %c0_93, %c0_94, %c0_95], %72 {strides = array<i32>} : memref<8x6x10x64xf32, #tpu.memory_space<vmem>>, vector<8x1x10x64xf32>,
    %cst_96 = arith.constant 0.000000e+00 : f32
    %74 = vector.broadcast %cst_96 : f32 to vector<8x1x10x64xf32>
    %c0_97 = arith.constant 0 : index
    %c5 = arith.constant 5 : index
    %c0_98 = arith.constant 0 : index
    %c0_99 = arith.constant 0 : index
    %75 = vector.load %arg19[%c0_97, %c5, %c0_98, %c0_99] : memref<8x6x10x64xf32, #tpu.memory_space<vmem>>, vector<8x1x10x64xf32>
    tpu.vector_store %arg19[%c0_97, %c5, %c0_98, %c0_99], %74 {strides = array<i32>} : memref<8x6x10x64xf32, #tpu.memory_space<vmem>>, vector<8x1x10x64xf32>,
    %cst_100 = arith.constant 0.000000e+00 : f32
    %76 = vector.broadcast %cst_100 : f32 to vector<8x4x1x64xf32>
    %c0_101 = arith.constant 0 : index
    %c1_102 = arith.constant 1 : index
    %c0_103 = arith.constant 0 : index
    %c0_104 = arith.constant 0 : index
    %77 = vector.load %arg19[%c0_101, %c1_102, %c0_103, %c0_104] : memref<8x6x10x64xf32, #tpu.memory_space<vmem>>, vector<8x4x1x64xf32>
    tpu.vector_store %arg19[%c0_101, %c1_102, %c0_103, %c0_104], %76 {strides = array<i32>} : memref<8x6x10x64xf32, #tpu.memory_space<vmem>>, vector<8x4x1x64xf32>,
    %cst_105 = arith.constant 0.000000e+00 : f32
    %78 = vector.broadcast %cst_105 : f32 to vector<8x4x5x64xf32>
    %c0_106 = arith.constant 0 : index
    %c1_107 = arith.constant 1 : index
    %c5_108 = arith.constant 5 : index
    %c0_109 = arith.constant 0 : index
    %79 = vector.load %arg19[%c0_106, %c1_107, %c5_108, %c0_109] : memref<8x6x10x64xf32, #tpu.memory_space<vmem>>, vector<8x4x5x64xf32>
    tpu.vector_store %arg19[%c0_106, %c1_107, %c5_108, %c0_109], %78 {strides = array<i32>} : memref<8x6x10x64xf32, #tpu.memory_space<vmem>>, vector<8x4x5x64xf32>,
    %c0_110 = arith.constant 0 : index
    %c1_111 = arith.constant 1 : index
    %c1_112 = arith.constant 1 : index
    %c0_113 = arith.constant 0 : index
    %80 = vector.load %arg19[%c0_110, %c1_111, %c1_112, %c0_113] : memref<8x6x10x64xf32, #tpu.memory_space<vmem>>, vector<8x4x4x64xf32>
    tpu.vector_store %arg19[%c0_110, %c1_111, %c1_112, %c0_113], %71 {strides = array<i32>} : memref<8x6x10x64xf32, #tpu.memory_space<vmem>>, vector<8x4x4x64xf32>,
    %c0_114 = arith.constant 0 : index
    %c0_115 = arith.constant 0 : index
    %c0_116 = arith.constant 0 : index
    %c0_117 = arith.constant 0 : index
    %81 = vector.load %arg19[%c0_114, %c0_115, %c0_116, %c0_117] : memref<8x6x10x64xf32, #tpu.memory_space<vmem>>, vector<8x4x8x64xf32>
    %82 = vector.shape_cast %81 : vector<8x4x8x64xf32> to vector<256x64xf32>
    %c0_118 = arith.constant 0 : index
    %c0_119 = arith.constant 0 : index
    %c1_120 = arith.constant 1 : index
    %c0_121 = arith.constant 0 : index
    %83 = vector.load %arg19[%c0_118, %c0_119, %c1_120, %c0_121] : memref<8x6x10x64xf32, #tpu.memory_space<vmem>>, vector<8x4x8x64xf32>
    %84 = vector.shape_cast %83 : vector<8x4x8x64xf32> to vector<256x64xf32>
    %c0_122 = arith.constant 0 : index
    %c0_123 = arith.constant 0 : index
    %c2_124 = arith.constant 2 : index
    %c0_125 = arith.constant 0 : index
    %85 = vector.load %arg19[%c0_122, %c0_123, %c2_124, %c0_125] : memref<8x6x10x64xf32, #tpu.memory_space<vmem>>, vector<8x4x8x64xf32>
    %86 = vector.shape_cast %85 : vector<8x4x8x64xf32> to vector<256x64xf32>
    %c0_126 = arith.constant 0 : index
    %c1_127 = arith.constant 1 : index
    %c0_128 = arith.constant 0 : index
    %c0_129 = arith.constant 0 : index
    %87 = vector.load %arg19[%c0_126, %c1_127, %c0_128, %c0_129] : memref<8x6x10x64xf32, #tpu.memory_space<vmem>>, vector<8x4x8x64xf32>
    %88 = vector.shape_cast %87 : vector<8x4x8x64xf32> to vector<256x64xf32>
    %c0_130 = arith.constant 0 : index
    %c1_131 = arith.constant 1 : index
    %c1_132 = arith.constant 1 : index
    %c0_133 = arith.constant 0 : index
    %89 = vector.load %arg19[%c0_130, %c1_131, %c1_132, %c0_133] : memref<8x6x10x64xf32, #tpu.memory_space<vmem>>, vector<8x4x8x64xf32>
    %90 = vector.shape_cast %89 : vector<8x4x8x64xf32> to vector<256x64xf32>
    %c0_134 = arith.constant 0 : index
    %c1_135 = arith.constant 1 : index
    %c2_136 = arith.constant 2 : index
    %c0_137 = arith.constant 0 : index
    %91 = vector.load %arg19[%c0_134, %c1_135, %c2_136, %c0_137] : memref<8x6x10x64xf32, #tpu.memory_space<vmem>>, vector<8x4x8x64xf32>
    %92 = vector.shape_cast %91 : vector<8x4x8x64xf32> to vector<256x64xf32>
    %c0_138 = arith.constant 0 : index
    %c2_139 = arith.constant 2 : index
    %c0_140 = arith.constant 0 : index
    %c0_141 = arith.constant 0 : index
    %93 = vector.load %arg19[%c0_138, %c2_139, %c0_140, %c0_141] : memref<8x6x10x64xf32, #tpu.memory_space<vmem>>, vector<8x4x8x64xf32>
    %94 = vector.shape_cast %93 : vector<8x4x8x64xf32> to vector<256x64xf32>
    %c0_142 = arith.constant 0 : index
    %c2_143 = arith.constant 2 : index
    %c1_144 = arith.constant 1 : index
    %c0_145 = arith.constant 0 : index
    %95 = vector.load %arg19[%c0_142, %c2_143, %c1_144, %c0_145] : memref<8x6x10x64xf32, #tpu.memory_space<vmem>>, vector<8x4x8x64xf32>
    %96 = vector.shape_cast %95 : vector<8x4x8x64xf32> to vector<256x64xf32>
    %c0_146 = arith.constant 0 : index
    %c2_147 = arith.constant 2 : index
    %c2_148 = arith.constant 2 : index
    %c0_149 = arith.constant 0 : index
    %97 = vector.load %arg19[%c0_146, %c2_147, %c2_148, %c0_149] : memref<8x6x10x64xf32, #tpu.memory_space<vmem>>, vector<8x4x8x64xf32>
    %98 = vector.shape_cast %97 : vector<8x4x8x64xf32> to vector<256x64xf32>
    %99 = tpu.concatenate %82, %84, %86, %88, %90, %92, %94, %96, %98 in 1 : vector<256x64xf32>, vector<256x64xf32>, vector<256x64xf32>, vector<256x64xf32>, vector<256x64xf32>, vector<256x64xf32>, vector<256x64xf32>, vector<256x64xf32>, vector<256x64xf32> -> vector<256x576xf32>
    %100 = arith.truncf %99 : vector<256x576xf32> to vector<256x576xbf16>
    %c0_150 = arith.constant 0 : index
    %c0_151 = arith.constant 0 : index
    %101 = vector.load %arg8[%c0_150, %c0_151] : memref<576x128xbf16, #tpu.memory_space<vmem>>, vector<576x128xbf16>
    %cst_152 = arith.constant dense<0.000000e+00> : vector<256x128xf32>
    %102 = tpu.matmul %100, %101, %cst_152 {dimension_numbers = #tpu.dot_dimension_numbers<[1], [0], [0], [1], [0, 0, 1, 1], [], []>} : vector<256x576xbf16>, vector<576x128xbf16>, vector<256x128xf32> -> vector<256x128xf32>
    %c0_153 = arith.constant 0 : index
    %c0_154 = arith.constant 0 : index
    %103 = vector.load %arg9[%c0_153, %c0_154] : memref<1x128xf32, #tpu.memory_space<vmem>>, vector<1x128xf32>
    %104 = vector.broadcast %103 : vector<1x128xf32> to vector<256x128xf32>
    %105 = arith.mulf %102, %104 : vector<256x128xf32>
    %c0_155 = arith.constant 0 : index
    %c0_156 = arith.constant 0 : index
    %106 = vector.load %arg10[%c0_155, %c0_156] : memref<1x128xf32, #tpu.memory_space<vmem>>, vector<1x128xf32>
    %107 = vector.broadcast %106 : vector<1x128xf32> to vector<256x128xf32>
    %108 = arith.addf %105, %107 : vector<256x128xf32>
    %cst_157 = arith.constant 0.000000e+00 : f32
    %109 = vector.broadcast %cst_157 : f32 to vector<256x128xf32>
    %110 = arith.maximumf %108, %109 : vector<256x128xf32>
    %111 = vector.shape_cast %110 : vector<256x128xf32> to vector<8x4x8x128xf32>
    %112 = vector.extract_strided_slice %111 {offsets = [0, 0, 0, 0], sizes = [8, 1, 8, 128], strides = [1, 1, 1, 1]} : vector<8x4x8x128xf32> to vector<8x1x8x128xf32>
    %113 = vector.shape_cast %112 : vector<8x1x8x128xf32> to vector<8x8x128xf32>
    %114 = vector.extract_strided_slice %111 {offsets = [0, 1, 0, 0], sizes = [8, 1, 8, 128], strides = [1, 1, 1, 1]} : vector<8x4x8x128xf32> to vector<8x1x8x128xf32>
    %115 = vector.shape_cast %114 : vector<8x1x8x128xf32> to vector<8x8x128xf32>
    %116 = arith.addf %113, %115 : vector<8x8x128xf32>
    %117 = vector.extract_strided_slice %111 {offsets = [0, 2, 0, 0], sizes = [8, 1, 8, 128], strides = [1, 1, 1, 1]} : vector<8x4x8x128xf32> to vector<8x1x8x128xf32>
    %118 = vector.shape_cast %117 : vector<8x1x8x128xf32> to vector<8x8x128xf32>
    %119 = arith.addf %116, %118 : vector<8x8x128xf32>
    %120 = vector.extract_strided_slice %111 {offsets = [0, 3, 0, 0], sizes = [8, 1, 8, 128], strides = [1, 1, 1, 1]} : vector<8x4x8x128xf32> to vector<8x1x8x128xf32>
    %121 = vector.shape_cast %120 : vector<8x1x8x128xf32> to vector<8x8x128xf32>
    %122 = arith.addf %119, %121 : vector<8x8x128xf32>
    %123 = vector.extract_strided_slice %122 {offsets = [0, 0, 0], sizes = [8, 4, 128], strides = [1, 1, 1]} : vector<8x8x128xf32> to vector<8x4x128xf32>
    %cst_158 = arith.constant dense<0.000000e+00> : vector<8x128xf32>
    %124 = vector.multi_reduction <add>, %123, %cst_158 [1] : vector<8x4x128xf32> to vector<8x128xf32>
    %cst_159 = arith.constant 6.250000e-02 : f32
    %125 = vector.broadcast %cst_159 : f32 to vector<8x128xf32>
    %126 = arith.mulf %124, %125 : vector<8x128xf32>
    %127 = arith.truncf %126 : vector<8x128xf32> to vector<8x128xbf16>
    %c0_160 = arith.constant 0 : index
    %c0_161 = arith.constant 0 : index
    %128 = vector.load %arg11[%c0_160, %c0_161] : memref<128x64xbf16, #tpu.memory_space<vmem>>, vector<128x64xbf16>
    %cst_162 = arith.constant dense<0.000000e+00> : vector<8x64xf32>
    %129 = tpu.matmul %127, %128, %cst_162 {dimension_numbers = #tpu.dot_dimension_numbers<[1], [0], [0], [1], [0, 0, 1, 1], [], []>} : vector<8x128xbf16>, vector<128x64xbf16>, vector<8x64xf32> -> vector<8x64xf32>
    %c0_163 = arith.constant 0 : index
    %c0_164 = arith.constant 0 : index
    %130 = vector.load %arg12[%c0_163, %c0_164] : memref<1x64xf32, #tpu.memory_space<vmem>>, vector<1x64xf32>
    %131 = vector.broadcast %130 : vector<1x64xf32> to vector<8x64xf32>
    %132 = arith.addf %129, %131 : vector<8x64xf32>
    %cst_165 = arith.constant 0.000000e+00 : f32
    %133 = vector.broadcast %cst_165 : f32 to vector<8x64xf32>
    %134 = arith.maximumf %132, %133 : vector<8x64xf32>
    %135 = arith.truncf %134 : vector<8x64xf32> to vector<8x64xbf16>
    %c0_166 = arith.constant 0 : index
    %c0_167 = arith.constant 0 : index
    %136 = vector.load %arg13[%c0_166, %c0_167] : memref<64x2xbf16, #tpu.memory_space<vmem>>, vector<64x2xbf16>
    %cst_168 = arith.constant dense<0.000000e+00> : vector<8x2xf32>
    %137 = tpu.matmul %135, %136, %cst_168 {dimension_numbers = #tpu.dot_dimension_numbers<[1], [0], [0], [1], [0, 0, 1, 1], [], []>} : vector<8x64xbf16>, vector<64x2xbf16>, vector<8x2xf32> -> vector<8x2xf32>
    %c0_169 = arith.constant 0 : index
    %c0_170 = arith.constant 0 : index
    %138 = vector.load %arg14[%c0_169, %c0_170] : memref<1x2xf32, #tpu.memory_space<vmem>>, vector<1x2xf32>
    %139 = vector.broadcast %138 : vector<1x2xf32> to vector<8x2xf32>
    %140 = arith.addf %137, %139 : vector<8x2xf32>
    %c0_171 = arith.constant 0 : index
    %c0_172 = arith.constant 0 : index
    %141 = vector.load %arg15[%c0_171, %c0_172] : memref<8x2xf32, #tpu.memory_space<vmem>>, vector<8x2xf32>
    tpu.vector_store %arg15[%c0_171, %c0_172], %140 {strides = array<i32>} : memref<8x2xf32, #tpu.memory_space<vmem>>, vector<8x2xf32>,
    return
  }
  func.func @transform_0(%arg0: i32) -> (i32, i32) {
    %c0_i32 = arith.constant 0 : i32
    %c0_i32_0 = arith.constant 0 : i32
    return %arg0, %c0_i32 : i32, i32
  }
  func.func @transform_1(%arg0: i32) -> (i32, i32) {
    %c0_i32 = arith.constant 0 : i32
    %c0_i32_0 = arith.constant 0 : i32
    %c0_i32_1 = arith.constant 0 : i32
    return %c0_i32, %c0_i32_0 : i32, i32
  }
  func.func @transform_2(%arg0: i32) -> (i32, i32) {
    %c0_i32 = arith.constant 0 : i32
    %c0_i32_0 = arith.constant 0 : i32
    %c0_i32_1 = arith.constant 0 : i32
    return %c0_i32, %c0_i32_0 : i32, i32
  }
  func.func @transform_3(%arg0: i32) -> (i32, i32) {
    %c0_i32 = arith.constant 0 : i32
    %c0_i32_0 = arith.constant 0 : i32
    %c0_i32_1 = arith.constant 0 : i32
    return %c0_i32, %c0_i32_0 : i32, i32
  }
  func.func @transform_4(%arg0: i32) -> (i32, i32) {
    %c0_i32 = arith.constant 0 : i32
    %c0_i32_0 = arith.constant 0 : i32
    %c0_i32_1 = arith.constant 0 : i32
    return %c0_i32, %c0_i32_0 : i32, i32
  }
  func.func @transform_5(%arg0: i32) -> (i32, i32) {
    %c0_i32 = arith.constant 0 : i32
    %c0_i32_0 = arith.constant 0 : i32
    %c0_i32_1 = arith.constant 0 : i32
    return %c0_i32, %c0_i32_0 : i32, i32
  }
  func.func @transform_6(%arg0: i32) -> (i32, i32) {
    %c0_i32 = arith.constant 0 : i32
    %c0_i32_0 = arith.constant 0 : i32
    %c0_i32_1 = arith.constant 0 : i32
    return %c0_i32, %c0_i32_0 : i32, i32
  }
  func.func @transform_7(%arg0: i32) -> (i32, i32) {
    %c0_i32 = arith.constant 0 : i32
    %c0_i32_0 = arith.constant 0 : i32
    %c0_i32_1 = arith.constant 0 : i32
    return %c0_i32, %c0_i32_0 : i32, i32
  }
  func.func @transform_8(%arg0: i32) -> (i32, i32) {
    %c0_i32 = arith.constant 0 : i32
    %c0_i32_0 = arith.constant 0 : i32
    %c0_i32_1 = arith.constant 0 : i32
    return %c0_i32, %c0_i32_0 : i32, i32
  }
  func.func @transform_9(%arg0: i32) -> (i32, i32) {
    %c0_i32 = arith.constant 0 : i32
    %c0_i32_0 = arith.constant 0 : i32
    %c0_i32_1 = arith.constant 0 : i32
    return %c0_i32, %c0_i32_0 : i32, i32
  }
  func.func @transform_10(%arg0: i32) -> (i32, i32) {
    %c0_i32 = arith.constant 0 : i32
    %c0_i32_0 = arith.constant 0 : i32
    %c0_i32_1 = arith.constant 0 : i32
    return %c0_i32, %c0_i32_0 : i32, i32
  }
  func.func @transform_11(%arg0: i32) -> (i32, i32) {
    %c0_i32 = arith.constant 0 : i32
    %c0_i32_0 = arith.constant 0 : i32
    %c0_i32_1 = arith.constant 0 : i32
    return %c0_i32, %c0_i32_0 : i32, i32
  }
  func.func @transform_12(%arg0: i32) -> (i32, i32) {
    %c0_i32 = arith.constant 0 : i32
    %c0_i32_0 = arith.constant 0 : i32
    %c0_i32_1 = arith.constant 0 : i32
    return %c0_i32, %c0_i32_0 : i32, i32
  }
  func.func @transform_13(%arg0: i32) -> (i32, i32) {
    %c0_i32 = arith.constant 0 : i32
    %c0_i32_0 = arith.constant 0 : i32
    %c0_i32_1 = arith.constant 0 : i32
    return %c0_i32, %c0_i32_0 : i32, i32
  }
  func.func @transform_14(%arg0: i32) -> (i32, i32) {
    %c0_i32 = arith.constant 0 : i32
    %c0_i32_0 = arith.constant 0 : i32
    return %arg0, %c0_i32 : i32, i32
  }
}

</mosaic_0001>

<bundles_post_ra>
// kernel: cnn_binary_classifier_forward.1
= control target key start
LH: loop header
LB: loop body
LE: loop exit
PB: predicated region body
PF: predicated region fallthrough
CT: control target
= control target key end

     0   :  { %s13518_s29 = smov 0   ;;  %s17704_s0 = inlined_call_operand.vmem [shape: bf16[4096,27], index: 0, kind: input, shape index: {}]   ;;  %s17705_s1 = inlined_call_operand.vmem [shape: bf16[27,32], index: 1, kind: input, shape index: {}]   ;;  %s17706_s2 = inlined_call_operand.vmem [shape: f32[1,32], index: 2, kind: input, shape index: {}]   ;;  %s17707_s3 = inlined_call_operand.vmem [shape: f32[1,32], index: 3, kind: input, shape index: {}]   ;;  %s17708_s4 = inlined_call_operand.vmem [shape: bf16[288,64], index: 4, kind: input, shape index: {}]   ;;  %s17709_s5 = inlined_call_operand.vmem [shape: f32[1,64], index: 5, kind: input, shape index: {}]   ;;  %s17710_s6 = inlined_call_operand.vmem [shape: f32[1,64], index: 6, kind: input, shape index: {}]   ;;  %s17711_s7 = inlined_call_operand.vmem [shape: bf16[576,128], index: 7, kind: input, shape index: {}]   ;;  %s17712_s8 = inlined_call_operand.vmem [shape: f32[1,128], index: 8, kind: input, shape index: {}]   ;;  %s17713_s9 = inlined_call_operand.vmem [shape: f32[1,128], index: 9, kind: input, shape index: {}]   ;;  %s17714_s10 = inlined_call_operand.vmem [shape: bf16[128,64], index: 10, kind: input, shape index: {}]   ;;  %s17715_s11 = inlined_call_operand.vmem [shape: f32[1,64], index: 11, kind: input, shape index: {}]   ;;  %s17716_s12 = inlined_call_operand.vmem [shape: bf16[64,2], index: 12, kind: input, shape index: {}]   ;;  %s17717_s13 = inlined_call_operand.vmem [shape: f32[1,2], index: 13, kind: input, shape index: {}]   ;;  %s17718_s14 = inlined_call_operand.vmem [shape: f32[16,2], index: 14, kind: output, shape index: {}]  }
   0x1 LB: > { %s13524_s30 = sadd.s32 4294967295, %s13434_s29   ;;  %p10712_p0 = scmp.ge.s32.totalorder %s13434_s29, 1  ;;  %s13434_s29 = sphi %s13518_s29, %s24_s29  }
   0x2   : > { %p413_p1 = scmp.lt.s32.totalorder %s13434_s29, 3 }
   0x4   : > { %p414_p2 = pnand %p10712_p0, %p413_p1 }
   0x6   : > { %417 = sbr.rel (%p414_p2) target bundleno = 2067 (0x813), region = 76 }
   0xb   : > { %v13216_v0 = vld [vmem:[%s17705_s1 + $0x8] sm:$0x3f]   ;;  %vm1765_vm0 = vcmask 1044480   ;;  %vm1766_vm1 = vcmask 1045504   ;;  %v13436_v1 = vmov 65535   ;;  %v13217_v3 = vld [vmem:[%s17705_s1] sm:$0xff]  }
   0xc   : > { %v1767_v2 = vsel %vm1765_vm0, 4294967295, %v13436_v1  ;;  %s10713_s19 = sshll.u32 %s13524_s30, 8  ;;  %vm1380_vm2 = vcmask 220160   ;;  %vm3739_vm3 = vcmask 261120   ;;  %vm4188_vm4 = vcmask 254976   ;;  %v13294_v54 = vld [vmem:[%s17708_s4 + $0x38] sm:$0xff]  }
   0xd   : > { %v1768_v4 = vsel %vm1766_vm1, %v1767_v2, 0  ;;  %p459_p3 = scmp.lt.s32.totalorder %s10713_s19, 511  ;;  %vm4222_vm5 = vcmask 253952   ;;  %v17719_v31 = vmov 0.0   ;;  %v13438_v55 = vmov 0   ;;  %v13297_v56 = vld [vmem:[%s17708_s4 + $0x30] sm:$0xff]  }
   0xe   : > { %v1770_v5 = vand.u32 %v13216_v0, %v1768_v4  ;;  %4187 = vst.msk [vmem:[#allocation3] sm:$0xff] %vm3739_vm3, %v17719_v31  ;;  %4190 = vst.msk [vmem:[#allocation3 + $0xa0] sm:$0xff] %vm3739_vm3, %v17719_v31  ;;  %7250 = vmatprep.subr.bf16.mxu1 %v13438_v55  ;;  %v13298_v59 = vld [vmem:[%s17708_s4 + $0x28] sm:$0xff]   ;;  %v13301_v60 = vld [vmem:[%s17708_s4 + $0x20] sm:$0xff]   ;;  %vm6592_vm6 = vcmask 523264   ;;  %s13439_s16 = smov 64  }
   0xf   : > { %s17759_s19 = smov (!%p459_p3, %s10713_s19), 511  ;;  %4189 = vst.msk [vmem:[#allocation3 + $0x8] sm:$0x3] %vm4188_vm4, %v17719_v31  ;;  %4191 = vst.msk [vmem:[#allocation3 + $0xa8] sm:$0x3] %vm4188_vm4, %v17719_v31  ;;  %7251 = vmatpush1.bf16.msra.mxu1 %v13294_v54  ;;  %v13302_v63 = vld [vmem:[%s17708_s4 + $0x18] sm:$0xff]  }
  0x10   : > { %11521 = vmatprep.subr.bf16.mxu0 %v1770_v5  ;;  %s10714_s20 = sshll.u32 %s17759_s19, 2  ;;  %4287 = vst.msk [vmem:[#allocation3 + $0x19] sm:$0x1] %vm4222_vm5, %v17719_v31  ;;  %4223 = vst.msk [vmem:[#allocation3 + $0x10] sm:$0x1] %vm4222_vm5, %v17719_v31  ;;  %7252 = vmatprep.subr.bf16.mxu1 %v13438_v55  ;;  %v13305_v4 = vld [vmem:[%s17708_s4 + $0x10] sm:$0xff]  }
  0x11   : > { %11522 = vmatpush3.bf16.msra.mxu0 %v1770_v5  ;;  %s13538_s23 = scalar_lea.vmem %s17704_s0, %s10714_s20  ;;  %4192 = vst.msk [vmem:[#allocation3 + $0x140] sm:$0xff] %vm3739_vm3, %v17719_v31  ;;  %4194 = vst.msk [vmem:[#allocation3 + $0x1e0] sm:$0xff] %vm3739_vm3, %v17719_v31  ;;  %v13983_v0 = vld [vmem:[%s17706_s2] ss:$0 sm:$0xff]  ;;  %s13440_s17 = smov 32   ;;  %vm6657_vm7 = vcmask 785408  }
  0x12   : > { %11523 = vmatprep.subr.bf16.mxu0 %v13217_v3  ;;  %v13218_v6 = vld [vmem:[%s13538_s23] sm:$0xff]   ;;  %v13219_v7 = vld [vmem:[%s13538_s23 + $0x8] sm:$0xff]   ;;  %v13220_v8 = vld [vmem:[%s13538_s23 + $0x10] sm:$0xff]   ;;  %4193 = vst.msk [vmem:[#allocation3 + $0x148] sm:$0x3] %vm4188_vm4, %v17719_v31  ;;  %s13441_s22 = smov 96  }
  0x13   : > { %11525 = vmatprep.mubr.msk.bf16.mxu0 %vm1380_vm2, %v13218_v6  ;;  %v13221_v9 = vld [vmem:[%s13538_s23 + $0x18] sm:$0xff]   ;;  %v13222_v10 = vld [vmem:[%s13538_s23 + $0x20] sm:$0xff]   ;;  %v13223_v11 = vld [vmem:[%s13538_s23 + $0x28] sm:$0xff]   ;;  %4195 = vst.msk [vmem:[#allocation3 + $0x1e8] sm:$0x3] %vm4188_vm4, %v17719_v31  ;;  %7253 = vmatpush1.bf16.msra.mxu1 %v13297_v56  ;;  %vm8292_vm8 = vcmask 516096  }
  0x14   : > { %v13224_v12 = vld [vmem:[%s13538_s23 + $0x30] sm:$0xff]   ;;  %v13225_v13 = vld [vmem:[%s13538_s23 + $0x38] sm:$0xff]   ;;  %v13226_v14 = vld [vmem:[%s13538_s23 + $0x40] sm:$0xff]   ;;  %4196 = vst.msk [vmem:[#allocation3 + $0x280] sm:$0xff] %vm3739_vm3, %v17719_v31  ;;  %7254 = vmatprep.subr.bf16.mxu1 %v13438_v55  ;;  %vm8325_vm9 = vcmask 520192   ;;  %vm8258_vm10 = vcmask 517120  }
  0x15   : > { %11524 = vmatpush3.bf16.msra.mxu0 %v13217_v3  ;;  %v13227_v15 = vld [vmem:[%s13538_s23 + $0x48] sm:$0xff]   ;;  %v13228_v16 = vld [vmem:[%s13538_s23 + $0x50] sm:$0xff]   ;;  %v13229_v17 = vld [vmem:[%s13538_s23 + $0x58] sm:$0xff]   ;;  %4197 = vst.msk [vmem:[#allocation3 + $0x288] sm:$0x3] %vm4188_vm4, %v17719_v31  ;;  %vm8358_vm11 = vcmask 519168  }
  0x16   : > { %v13230_v18 = vld [vmem:[%s13538_s23 + $0x60] sm:$0xff]   ;;  %v13231_v19 = vld [vmem:[%s13538_s23 + $0x68] sm:$0xff]   ;;  %v13232_v20 = vld [vmem:[%s13538_s23 + $0x70] sm:$0xff]   ;;  %4198 = vst.msk [vmem:[#allocation3 + $0x320] sm:$0xff] %vm3739_vm3, %v17719_v31  ;;  %vm13442_vm12 = vmmov 0   ;;  %vm10353_vm13 = vcmask 1043456  }
  0x17   : > { %v13233_v21 = vld [vmem:[%s13538_s23 + $0x78] sm:$0xff]   ;;  %v13234_v22 = vld [vmem:[%s13538_s23 + $0x80] sm:$0xff]   ;;  %v13235_v23 = vld [vmem:[%s13538_s23 + $0x88] sm:$0xff]   ;;  %4199 = vst.msk [vmem:[#allocation3 + $0x328] sm:$0x3] %vm4188_vm4, %v17719_v31  ;;  %7255 = vmatpush1.bf16.msra.mxu1 %v13298_v59  ;;  %vm10465_vm14 = vcmask 1041409  }
  0x18   : > { %11526 = vmatmul.mubr.msk.bf16.vlgmr.msra.gmra.mxu0 %vm1380_vm2, %v13219_v7  ;;  %v13236_v24 = vld [vmem:[%s13538_s23 + $0x90] sm:$0xff]   ;;  %v13237_v25 = vld [vmem:[%s13538_s23 + $0x98] sm:$0xff]   ;;  %v13238_v26 = vld [vmem:[%s13538_s23 + $0xa0] sm:$0xff]   ;;  %4200 = vst.msk [vmem:[#allocation3 + $0x3c0] sm:$0xff] %vm3739_vm3, %v17719_v31  ;;  %7256 = vmatprep.subr.bf16.mxu1 %v13438_v55  ;;  %vm10467_vm15 = vcmask 1042434   ;;  %vm10469_vm0 = vcmask 1043459  }
  0x19   : > { %11529 = vmatprep.mubr.msk.bf16.mxu0 %vm1380_vm2, %v13220_v8  ;;  %v13239_v27 = vld [vmem:[%s13538_s23 + $0xa8] sm:$0xff]   ;;  %v13240_v28 = vld [vmem:[%s13538_s23 + $0xb0] sm:$0xff]   ;;  %v13241_v29 = vld [vmem:[%s13538_s23 + $0xb8] sm:$0xff]   ;;  %4201 = vst.msk [vmem:[#allocation3 + $0x3c8] sm:$0x3] %vm4188_vm4, %v17719_v31  ;;  %vm10471_vm1 = vcmask 1044484  }
  0x1a   : > { %v13242_v30 = vld [vmem:[%s13538_s23 + $0xc0] sm:$0xff]   ;;  %4202 = vst.msk [vmem:[#allocation3 + $0x460] sm:$0xff] %vm3739_vm3, %v17719_v31  ;;  %4205 = vst.msk [vmem:[#allocation3 + $0x90] sm:$0xff] %vm3739_vm3, %v17719_v31  ;;  %v13243_v32 = vld [vmem:[%s13538_s23 + $0xc8] sm:$0xff]   ;;  %p464_p4 = scmp.lt.s32.totalorder %s13524_s30, 1 }
  0x1b   : > { %4203 = vst.msk [vmem:[#allocation3 + $0x468] sm:$0x3] %vm4188_vm4, %v17719_v31  ;;  %4206 = vst.msk [vmem:[#allocation3 + $0x98] sm:$0x3] %vm4188_vm4, %v17719_v31  ;;  %v13244_v33 = vld [vmem:[%s13538_s23 + $0xd0] sm:$0xff]   ;;  %v13245_v34 = vld [vmem:[%s13538_s23 + $0xd8] sm:$0xff]   ;;  %7257 = vmatpush1.bf16.msra.mxu1 %v13301_v60 }
  0x1c   : > { %4207 = vst.msk [vmem:[#allocation3 + $0x130] sm:$0xff] %vm3739_vm3, %v17719_v31  ;;  %4209 = vst.msk [vmem:[#allocation3 + $0x1d0] sm:$0xff] %vm3739_vm3, %v17719_v31  ;;  %v13246_v35 = vld [vmem:[%s13538_s23 + $0xe0] sm:$0xff]   ;;  %v13247_v36 = vld [vmem:[%s13538_s23 + $0xe8] sm:$0xff]   ;;  %7258 = vmatprep.subr.bf16.mxu1 %v13438_v55  ;;  %s17761_s30 = smov (!%p464_p4, %s13524_s30), 1 }
  0x1d   : > { %4208 = vst.msk [vmem:[#allocation3 + $0x138] sm:$0x3] %vm4188_vm4, %v17719_v31  ;;  %4210 = vst.msk [vmem:[#allocation3 + $0x1d8] sm:$0x3] %vm4188_vm4, %v17719_v31  ;;  %v13248_v37 = vld [vmem:[%s13538_s23 + $0xf0] sm:$0xff]   ;;  %v13249_v38 = vld [vmem:[%s13538_s23 + $0xf8] sm:$0xff]  }
  0x1e   : > { %4211 = vst.msk [vmem:[#allocation3 + $0x270] sm:$0xff] %vm3739_vm3, %v17719_v31  ;;  %4213 = vst.msk [vmem:[#allocation3 + $0x310] sm:$0xff] %vm3739_vm3, %v17719_v31  ;;  %v13250_v39 = vld [vmem:[%s13538_s23 + $0x100] sm:$0xff]   ;;  %v13251_v40 = vld [vmem:[%s13538_s23 + $0x108] sm:$0xff]   ;;  %s10715_s25 = sshll.u32 %s17761_s30, 3 }
  0x1f   : > { %4212 = vst.msk [vmem:[#allocation3 + $0x278] sm:$0x3] %vm4188_vm4, %v17719_v31  ;;  %4214 = vst.msk [vmem:[#allocation3 + $0x318] sm:$0x3] %vm4188_vm4, %v17719_v31  ;;  %v13252_v41 = vld [vmem:[%s13538_s23 + $0x110] sm:$0xff]   ;;  %v13253_v42 = vld [vmem:[%s13538_s23 + $0x118] sm:$0xff]   ;;  %7259 = vmatpush1.bf16.msra.mxu1 %v13302_v63 }
  0x20   : > { %11530 = vmatmul.mubr.msk.bf16.gmra.mxu0 %vm1380_vm2, %v13221_v9  ;;  %4215 = vst.msk [vmem:[#allocation3 + $0x3b0] sm:$0xff] %vm3739_vm3, %v17719_v31  ;;  %4217 = vst.msk [vmem:[#allocation3 + $0x450] sm:$0xff] %vm3739_vm3, %v17719_v31  ;;  %v13254_v43 = vld [vmem:[%s13538_s23 + $0x120] sm:$0xff]   ;;  %v13255_v44 = vld [vmem:[%s13538_s23 + $0x128] sm:$0xff]   ;;  %7260 = vmatprep.subr.bf16.mxu1 %v13438_v55 }
  0x21   : > { %11533 = vmatprep.mubr.msk.bf16.mxu0 %vm1380_vm2, %v13222_v10  ;;  %4216 = vst.msk [vmem:[#allocation3 + $0x3b8] sm:$0x3] %vm4188_vm4, %v17719_v31  ;;  %4218 = vst.msk [vmem:[#allocation3 + $0x458] sm:$0x3] %vm4188_vm4, %v17719_v31  ;;  %v13256_v45 = vld [vmem:[%s13538_s23 + $0x130] sm:$0xff]   ;;  %v13257_v46 = vld [vmem:[%s13538_s23 + $0x138] sm:$0xff]  }
  0x22   : > { %4219 = vst.msk [vmem:[#allocation3 + $0x4f0] sm:$0xff] %vm3739_vm3, %v17719_v31  ;;  %v13258_v47 = vld [vmem:[%s13538_s23 + $0x140] sm:$0xff]   ;;  %v13259_v48 = vld [vmem:[%s13538_s23 + $0x148] sm:$0xff]   ;;  %v13260_v49 = vld [vmem:[%s13538_s23 + $0x150] sm:$0xff]  }
  0x23   : > { %4220 = vst.msk [vmem:[#allocation3 + $0x4f8] sm:$0x3] %vm4188_vm4, %v17719_v31  ;;  %v13261_v50 = vld [vmem:[%s13538_s23 + $0x158] sm:$0xff]   ;;  %v13262_v51 = vld [vmem:[%s13538_s23 + $0x160] sm:$0xff]   ;;  %v13263_v52 = vld [vmem:[%s13538_s23 + $0x168] sm:$0xff]   ;;  %7261 = vmatpush1.bf16.msra.mxu1 %v13305_v4  ;;  %vm10477_vm4 = vcmask 1047559  }
  0x24   : > { %4224 = vst.msk [vmem:[#allocation3 + $0x20] sm:$0x1] %vm4222_vm5, %v17719_v31  ;;  %4225 = vst.msk [vmem:[#allocation3 + $0x30] sm:$0x1] %vm4222_vm5, %v17719_v31  ;;  %v13264_v53 = vld [vmem:[%s13538_s23 + $0x170] sm:$0xff]   ;;  %v13265_v57 = vld [vmem:[%s13538_s23 + $0x178] sm:$0xff]   ;;  %7262 = vmatprep.subr.bf16.mxu1 %v13438_v55 }
  0x25   : > { %4226 = vst.msk [vmem:[#allocation3 + $0x40] sm:$0x1] %vm4222_vm5, %v17719_v31  ;;  %4227 = vst.msk [vmem:[#allocation3 + $0x50] sm:$0x1] %vm4222_vm5, %v17719_v31  ;;  %v13266_v58 = vld [vmem:[%s13538_s23 + $0x180] sm:$0xff]   ;;  %v13267_v61 = vld [vmem:[%s13538_s23 + $0x188] sm:$0xff]  }
  0x26   : > { %4228 = vst.msk [vmem:[#allocation3 + $0x60] sm:$0x1] %vm4222_vm5, %v17719_v31  ;;  %4229 = vst.msk [vmem:[#allocation3 + $0x70] sm:$0x1] %vm4222_vm5, %v17719_v31  ;;  %v13268_v62 = vld [vmem:[%s13538_s23 + $0x190] sm:$0xff]   ;;  %v13269_v9 = vld [vmem:[%s13538_s23 + $0x198] sm:$0xff]  }
  0x27   : > { %4230 = vst.msk [vmem:[#allocation3 + $0x80] sm:$0x1] %vm4222_vm5, %v17719_v31  ;;  %4231 = vst.msk [vmem:[#allocation3 + $0xb0] sm:$0x1] %vm4222_vm5, %v17719_v31  ;;  %v13988_v2 = vld [vmem:[%s17707_s3] ss:$0 sm:$0xff] }
  0x28   : > { %11534 = vmatmul.mubr.msk.bf16.gmra.mxu0 %vm1380_vm2, %v13223_v11  ;;  %4232 = vst.msk [vmem:[#allocation3 + $0xc0] sm:$0x1] %vm4222_vm5, %v17719_v31  ;;  %4233 = vst.msk [vmem:[#allocation3 + $0xd0] sm:$0x1] %vm4222_vm5, %v17719_v31  ;;  %v13314_v63 = vld [vmem:[%s17708_s4 + $0x68] sm:$0xff]  }
  0x29   : > { %11537 = vmatprep.mubr.msk.bf16.mxu0 %vm1380_vm2, %v13224_v12  ;;  %4234 = vst.msk [vmem:[#allocation3 + $0xe0] sm:$0x1] %vm4222_vm5, %v17719_v31  ;;  %4235 = vst.msk [vmem:[#allocation3 + $0xf0] sm:$0x1] %vm4222_vm5, %v17719_v31  ;;  %v13270_v12 = vld [vmem:[%s13538_s23 + $0x1a0] sm:$0xff]  }
  0x2a   : > { %4236 = vst.msk [vmem:[#allocation3 + $0x100] sm:$0x1] %vm4222_vm5, %v17719_v31  ;;  %4237 = vst.msk [vmem:[#allocation3 + $0x110] sm:$0x1] %vm4222_vm5, %v17719_v31 }
  0x2b   : > { %4238 = vst.msk [vmem:[#allocation3 + $0x120] sm:$0x1] %vm4222_vm5, %v17719_v31  ;;  %4239 = vst.msk [vmem:[#allocation3 + $0x150] sm:$0x1] %vm4222_vm5, %v17719_v31 }
  0x2c   : > { %4240 = vst.msk [vmem:[#allocation3 + $0x160] sm:$0x1] %vm4222_vm5, %v17719_v31  ;;  %4241 = vst.msk [vmem:[#allocation3 + $0x170] sm:$0x1] %vm4222_vm5, %v17719_v31 }
  0x2d   : > { %4242 = vst.msk [vmem:[#allocation3 + $0x180] sm:$0x1] %vm4222_vm5, %v17719_v31  ;;  %4243 = vst.msk [vmem:[#allocation3 + $0x190] sm:$0x1] %vm4222_vm5, %v17719_v31 }
  0x2e   : > { %4244 = vst.msk [vmem:[#allocation3 + $0x1a0] sm:$0x1] %vm4222_vm5, %v17719_v31  ;;  %4245 = vst.msk [vmem:[#allocation3 + $0x1b0] sm:$0x1] %vm4222_vm5, %v17719_v31 }
  0x2f   : > { %4246 = vst.msk [vmem:[#allocation3 + $0x1c0] sm:$0x1] %vm4222_vm5, %v17719_v31  ;;  %4247 = vst.msk [vmem:[#allocation3 + $0x1f0] sm:$0x1] %vm4222_vm5, %v17719_v31 }
  0x30   : > { %11538 = vmatmul.mubr.msk.bf16.gmra.mxu0 %vm1380_vm2, %v13225_v13  ;;  %4248 = vst.msk [vmem:[#allocation3 + $0x200] sm:$0x1] %vm4222_vm5, %v17719_v31  ;;  %4249 = vst.msk [vmem:[#allocation3 + $0x210] sm:$0x1] %vm4222_vm5, %v17719_v31  ;;  %v13306_v13 = vld [vmem:[%s17708_s4 + $0x8] sm:$0xff]  }
  0x31   : > { %11541 = vmatprep.mubr.msk.bf16.mxu0 %vm1380_vm2, %v13226_v14  ;;  %4250 = vst.msk [vmem:[#allocation3 + $0x220] sm:$0x1] %vm4222_vm5, %v17719_v31  ;;  %4251 = vst.msk [vmem:[#allocation3 + $0x230] sm:$0x1] %vm4222_vm5, %v17719_v31  ;;  %7263 = vmatpush1.bf16.msra.mxu1 %v13306_v13 }
  0x32   : > { %4252 = vst.msk [vmem:[#allocation3 + $0x240] sm:$0x1] %vm4222_vm5, %v17719_v31  ;;  %4253 = vst.msk [vmem:[#allocation3 + $0x250] sm:$0x1] %vm4222_vm5, %v17719_v31  ;;  %7264 = vmatprep.subr.bf16.mxu1 %v13438_v55 }
  0x33   : > { %4254 = vst.msk [vmem:[#allocation3 + $0x260] sm:$0x1] %vm4222_vm5, %v17719_v31  ;;  %4255 = vst.msk [vmem:[#allocation3 + $0x290] sm:$0x1] %vm4222_vm5, %v17719_v31 }
  0x34   : > { %4256 = vst.msk [vmem:[#allocation3 + $0x2a0] sm:$0x1] %vm4222_vm5, %v17719_v31  ;;  %4257 = vst.msk [vmem:[#allocation3 + $0x2b0] sm:$0x1] %vm4222_vm5, %v17719_v31 }
  0x35   : > { %4258 = vst.msk [vmem:[#allocation3 + $0x2c0] sm:$0x1] %vm4222_vm5, %v17719_v31  ;;  %4259 = vst.msk [vmem:[#allocation3 + $0x2d0] sm:$0x1] %vm4222_vm5, %v17719_v31 }
  0x36   : > { %4260 = vst.msk [vmem:[#allocation3 + $0x2e0] sm:$0x1] %vm4222_vm5, %v17719_v31  ;;  %4261 = vst.msk [vmem:[#allocation3 + $0x2f0] sm:$0x1] %vm4222_vm5, %v17719_v31 }
  0x37   : > { %4262 = vst.msk [vmem:[#allocation3 + $0x300] sm:$0x1] %vm4222_vm5, %v17719_v31  ;;  %4263 = vst.msk [vmem:[#allocation3 + $0x330] sm:$0x1] %vm4222_vm5, %v17719_v31 }
  0x38   : > { %11542 = vmatmul.mubr.msk.bf16.gmra.mxu0 %vm1380_vm2, %v13227_v15  ;;  %4264 = vst.msk [vmem:[#allocation3 + $0x340] sm:$0x1] %vm4222_vm5, %v17719_v31  ;;  %4265 = vst.msk [vmem:[#allocation3 + $0x350] sm:$0x1] %vm4222_vm5, %v17719_v31 }
  0x39   : > { %11545 = vmatprep.mubr.msk.bf16.mxu0 %vm1380_vm2, %v13228_v16  ;;  %4266 = vst.msk [vmem:[#allocation3 + $0x360] sm:$0x1] %vm4222_vm5, %v17719_v31  ;;  %4267 = vst.msk [vmem:[#allocation3 + $0x370] sm:$0x1] %vm4222_vm5, %v17719_v31 }
  0x3a   : > { %4268 = vst.msk [vmem:[#allocation3 + $0x380] sm:$0x1] %vm4222_vm5, %v17719_v31  ;;  %4269 = vst.msk [vmem:[#allocation3 + $0x390] sm:$0x1] %vm4222_vm5, %v17719_v31 }
  0x3b   : > { %4270 = vst.msk [vmem:[#allocation3 + $0x3a0] sm:$0x1] %vm4222_vm5, %v17719_v31  ;;  %4271 = vst.msk [vmem:[#allocation3 + $0x3d0] sm:$0x1] %vm4222_vm5, %v17719_v31 }
  0x3c   : > { %4272 = vst.msk [vmem:[#allocation3 + $0x3e0] sm:$0x1] %vm4222_vm5, %v17719_v31  ;;  %4273 = vst.msk [vmem:[#allocation3 + $0x3f0] sm:$0x1] %vm4222_vm5, %v17719_v31 }
  0x3d   : > { %4274 = vst.msk [vmem:[#allocation3 + $0x400] sm:$0x1] %vm4222_vm5, %v17719_v31  ;;  %4275 = vst.msk [vmem:[#allocation3 + $0x410] sm:$0x1] %vm4222_vm5, %v17719_v31 }
  0x3e   : > { %4276 = vst.msk [vmem:[#allocation3 + $0x420] sm:$0x1] %vm4222_vm5, %v17719_v31  ;;  %4277 = vst.msk [vmem:[#allocation3 + $0x430] sm:$0x1] %vm4222_vm5, %v17719_v31 }
  0x3f   : > { %4278 = vst.msk [vmem:[#allocation3 + $0x440] sm:$0x1] %vm4222_vm5, %v17719_v31  ;;  %4279 = vst.msk [vmem:[#allocation3 + $0x470] sm:$0x1] %vm4222_vm5, %v17719_v31 }
  0x40   : > { %11546 = vmatmul.mubr.msk.bf16.gmra.mxu0 %vm1380_vm2, %v13229_v17  ;;  %4280 = vst.msk [vmem:[#allocation3 + $0x480] sm:$0x1] %vm4222_vm5, %v17719_v31  ;;  %4281 = vst.msk [vmem:[#allocation3 + $0x490] sm:$0x1] %vm4222_vm5, %v17719_v31 }
  0x41   : > { %11549 = vmatprep.mubr.msk.bf16.mxu0 %vm1380_vm2, %v13230_v18  ;;  %4282 = vst.msk [vmem:[#allocation3 + $0x4a0] sm:$0x1] %vm4222_vm5, %v17719_v31  ;;  %4283 = vst.msk [vmem:[#allocation3 + $0x4b0] sm:$0x1] %vm4222_vm5, %v17719_v31 }
  0x42   : > { %4284 = vst.msk [vmem:[#allocation3 + $0x4c0] sm:$0x1] %vm4222_vm5, %v17719_v31  ;;  %4285 = vst.msk [vmem:[#allocation3 + $0x4d0] sm:$0x1] %vm4222_vm5, %v17719_v31 }
  0x43   : > { %4286 = vst.msk [vmem:[#allocation3 + $0x4e0] sm:$0x1] %vm4222_vm5, %v17719_v31  ;;  %4288 = vst.msk [vmem:[#allocation3 + $0x29] sm:$0x1] %vm4222_vm5, %v17719_v31 }
  0x44   : > { %4289 = vst.msk [vmem:[#allocation3 + $0x39] sm:$0x1] %vm4222_vm5, %v17719_v31  ;;  %4290 = vst.msk [vmem:[#allocation3 + $0x49] sm:$0x1] %vm4222_vm5, %v17719_v31 }
  0x45   : > { %4291 = vst.msk [vmem:[#allocation3 + $0x59] sm:$0x1] %vm4222_vm5, %v17719_v31  ;;  %4292 = vst.msk [vmem:[#allocation3 + $0x69] sm:$0x1] %vm4222_vm5, %v17719_v31 }
  0x46   : > { %4293 = vst.msk [vmem:[#allocation3 + $0x79] sm:$0x1] %vm4222_vm5, %v17719_v31  ;;  %4294 = vst.msk [vmem:[#allocation3 + $0x89] sm:$0x1] %vm4222_vm5, %v17719_v31 }
  0x47   : > { %4295 = vst.msk [vmem:[#allocation3 + $0xb9] sm:$0x1] %vm4222_vm5, %v17719_v31  ;;  %4296 = vst.msk [vmem:[#allocation3 + $0xc9] sm:$0x1] %vm4222_vm5, %v17719_v31 }
  0x48   : > { %11550 = vmatmul.mubr.msk.bf16.gmra.mxu0 %vm1380_vm2, %v13231_v19  ;;  %4297 = vst.msk [vmem:[#allocation3 + $0xd9] sm:$0x1] %vm4222_vm5, %v17719_v31  ;;  %4298 = vst.msk [vmem:[#allocation3 + $0xe9] sm:$0x1] %vm4222_vm5, %v17719_v31 }
  0x49   : > { %11553 = vmatprep.mubr.msk.bf16.mxu0 %vm1380_vm2, %v13232_v20  ;;  %4299 = vst.msk [vmem:[#allocation3 + $0xf9] sm:$0x1] %vm4222_vm5, %v17719_v31  ;;  %4300 = vst.msk [vmem:[#allocation3 + $0x109] sm:$0x1] %vm4222_vm5, %v17719_v31 }
  0x4a   : > { %4301 = vst.msk [vmem:[#allocation3 + $0x119] sm:$0x1] %vm4222_vm5, %v17719_v31  ;;  %4302 = vst.msk [vmem:[#allocation3 + $0x129] sm:$0x1] %vm4222_vm5, %v17719_v31 }
  0x4b   : > { %4303 = vst.msk [vmem:[#allocation3 + $0x159] sm:$0x1] %vm4222_vm5, %v17719_v31  ;;  %4304 = vst.msk [vmem:[#allocation3 + $0x169] sm:$0x1] %vm4222_vm5, %v17719_v31 }
  0x4c   : > { %4305 = vst.msk [vmem:[#allocation3 + $0x179] sm:$0x1] %vm4222_vm5, %v17719_v31  ;;  %4306 = vst.msk [vmem:[#allocation3 + $0x189] sm:$0x1] %vm4222_vm5, %v17719_v31 }
  0x4d   : > { %4307 = vst.msk [vmem:[#allocation3 + $0x199] sm:$0x1] %vm4222_vm5, %v17719_v31  ;;  %4308 = vst.msk [vmem:[#allocation3 + $0x1a9] sm:$0x1] %vm4222_vm5, %v17719_v31 }
  0x4e   : > { %4309 = vst.msk [vmem:[#allocation3 + $0x1b9] sm:$0x1] %vm4222_vm5, %v17719_v31  ;;  %4310 = vst.msk [vmem:[#allocation3 + $0x1c9] sm:$0x1] %vm4222_vm5, %v17719_v31 }
  0x4f   : > { %4311 = vst.msk [vmem:[#allocation3 + $0x1f9] sm:$0x1] %vm4222_vm5, %v17719_v31  ;;  %4312 = vst.msk [vmem:[#allocation3 + $0x209] sm:$0x1] %vm4222_vm5, %v17719_v31 }
  0x50   : > { %11554 = vmatmul.mubr.msk.bf16.gmra.mxu0 %vm1380_vm2, %v13233_v21  ;;  %4313 = vst.msk [vmem:[#allocation3 + $0x219] sm:$0x1] %vm4222_vm5, %v17719_v31  ;;  %4314 = vst.msk [vmem:[#allocation3 + $0x229] sm:$0x1] %vm4222_vm5, %v17719_v31 }
  0x51   : > { %11557 = vmatprep.mubr.msk.bf16.mxu0 %vm1380_vm2, %v13234_v22  ;;  %4315 = vst.msk [vmem:[#allocation3 + $0x239] sm:$0x1] %vm4222_vm5, %v17719_v31  ;;  %4316 = vst.msk [vmem:[#allocation3 + $0x249] sm:$0x1] %vm4222_vm5, %v17719_v31 }
  0x52   : > { %4317 = vst.msk [vmem:[#allocation3 + $0x259] sm:$0x1] %vm4222_vm5, %v17719_v31  ;;  %4318 = vst.msk [vmem:[#allocation3 + $0x269] sm:$0x1] %vm4222_vm5, %v17719_v31 }
  0x53   : > { %4319 = vst.msk [vmem:[#allocation3 + $0x299] sm:$0x1] %vm4222_vm5, %v17719_v31  ;;  %4320 = vst.msk [vmem:[#allocation3 + $0x2a9] sm:$0x1] %vm4222_vm5, %v17719_v31 }
  0x54   : > { %4321 = vst.msk [vmem:[#allocation3 + $0x2b9] sm:$0x1] %vm4222_vm5, %v17719_v31  ;;  %4322 = vst.msk [vmem:[#allocation3 + $0x2c9] sm:$0x1] %vm4222_vm5, %v17719_v31 }
  0x55   : > { %4323 = vst.msk [vmem:[#allocation3 + $0x2d9] sm:$0x1] %vm4222_vm5, %v17719_v31  ;;  %4324 = vst.msk [vmem:[#allocation3 + $0x2e9] sm:$0x1] %vm4222_vm5, %v17719_v31 }
  0x56   : > { %4325 = vst.msk [vmem:[#allocation3 + $0x2f9] sm:$0x1] %vm4222_vm5, %v17719_v31  ;;  %4326 = vst.msk [vmem:[#allocation3 + $0x309] sm:$0x1] %vm4222_vm5, %v17719_v31 }
  0x57   : > { %4327 = vst.msk [vmem:[#allocation3 + $0x339] sm:$0x1] %vm4222_vm5, %v17719_v31  ;;  %4328 = vst.msk [vmem:[#allocation3 + $0x349] sm:$0x1] %vm4222_vm5, %v17719_v31 }
  0x58   : > { %11558 = vmatmul.mubr.msk.bf16.gmra.mxu0 %vm1380_vm2, %v13235_v23  ;;  %4329 = vst.msk [vmem:[#allocation3 + $0x359] sm:$0x1] %vm4222_vm5, %v17719_v31  ;;  %4330 = vst.msk [vmem:[#allocation3 + $0x369] sm:$0x1] %vm4222_vm5, %v17719_v31  ;;  %v13309_v23 = vld [vmem:[%s17708_s4] sm:$0xff]  }
  0x59   : > { %11561 = vmatprep.mubr.msk.bf16.mxu0 %vm1380_vm2, %v13236_v24  ;;  %4331 = vst.msk [vmem:[#allocation3 + $0x379] sm:$0x1] %vm4222_vm5, %v17719_v31  ;;  %4332 = vst.msk [vmem:[#allocation3 + $0x389] sm:$0x1] %vm4222_vm5, %v17719_v31  ;;  %7265 = vmatpush1.bf16.msra.mxu1 %v13309_v23 }
  0x5a   : > { %4333 = vst.msk [vmem:[#allocation3 + $0x399] sm:$0x1] %vm4222_vm5, %v17719_v31  ;;  %4334 = vst.msk [vmem:[#allocation3 + $0x3a9] sm:$0x1] %vm4222_vm5, %v17719_v31  ;;  %7266 = vmatprep.subr.bf16.mxu1 %v13438_v55 }
  0x5b   : > { %4335 = vst.msk [vmem:[#allocation3 + $0x3d9] sm:$0x1] %vm4222_vm5, %v17719_v31  ;;  %4336 = vst.msk [vmem:[#allocation3 + $0x3e9] sm:$0x1] %vm4222_vm5, %v17719_v31 }
  0x5c   : > { %4337 = vst.msk [vmem:[#allocation3 + $0x3f9] sm:$0x1] %vm4222_vm5, %v17719_v31  ;;  %4338 = vst.msk [vmem:[#allocation3 + $0x409] sm:$0x1] %vm4222_vm5, %v17719_v31 }
  0x5d   : > { %4339 = vst.msk [vmem:[#allocation3 + $0x419] sm:$0x1] %vm4222_vm5, %v17719_v31  ;;  %4340 = vst.msk [vmem:[#allocation3 + $0x429] sm:$0x1] %vm4222_vm5, %v17719_v31 }
  0x5e   : > { %4341 = vst.msk [vmem:[#allocation3 + $0x439] sm:$0x1] %vm4222_vm5, %v17719_v31  ;;  %4342 = vst.msk [vmem:[#allocation3 + $0x449] sm:$0x1] %vm4222_vm5, %v17719_v31 }
  0x5f   : > { %4343 = vst.msk [vmem:[#allocation3 + $0x479] sm:$0x1] %vm4222_vm5, %v17719_v31  ;;  %4344 = vst.msk [vmem:[#allocation3 + $0x489] sm:$0x1] %vm4222_vm5, %v17719_v31 }
  0x60   : > { %11562 = vmatmul.mubr.msk.bf16.gmra.mxu0 %vm1380_vm2, %v13237_v25  ;;  %4345 = vst.msk [vmem:[#allocation3 + $0x499] sm:$0x1] %vm4222_vm5, %v17719_v31  ;;  %4346 = vst.msk [vmem:[#allocation3 + $0x4a9] sm:$0x1] %vm4222_vm5, %v17719_v31 }
  0x61   : > { %11565 = vmatprep.mubr.msk.bf16.mxu0 %vm1380_vm2, %v13238_v26  ;;  %4347 = vst.msk [vmem:[#allocation3 + $0x4b9] sm:$0x1] %vm4222_vm5, %v17719_v31  ;;  %4348 = vst.msk [vmem:[#allocation3 + $0x4c9] sm:$0x1] %vm4222_vm5, %v17719_v31 }
  0x62   : > { %4349 = vst.msk [vmem:[#allocation3 + $0x4d9] sm:$0x1] %vm4222_vm5, %v17719_v31  ;;  %4350 = vst.msk [vmem:[#allocation3 + $0x4e9] sm:$0x1] %vm4222_vm5, %v17719_v31  ;;  %vm10653_vm5 = vcmask 15360  }
  0x63   : > { %8257 = vst.msk [vmem:[#allocation5] sm:$0xff] %vm6592_vm6, %v17719_v31  ;;  %8260 = vst.msk [vmem:[#allocation5 + $0x60] sm:$0xff] %vm6592_vm6, %v17719_v31 }
  0x64   : > { %8262 = vst.msk [vmem:[#allocation5 + $0xc0] sm:$0xff] %vm6592_vm6, %v17719_v31  ;;  %8264 = vst.msk [vmem:[#allocation5 + $0x120] sm:$0xff] %vm6592_vm6, %v17719_v31 }
  0x65   : > { %8266 = vst.msk [vmem:[#allocation5 + $0x180] sm:$0xff] %vm6592_vm6, %v17719_v31  ;;  %8268 = vst.msk [vmem:[#allocation5 + $0x1e0] sm:$0xff] %vm6592_vm6, %v17719_v31 }
  0x66   : > { %8270 = vst.msk [vmem:[#allocation5 + $0x240] sm:$0xff] %vm6592_vm6, %v17719_v31  ;;  %8272 = vst.msk [vmem:[#allocation5 + $0x2a0] sm:$0xff] %vm6592_vm6, %v17719_v31 }
  0x67   : > { %8275 = vst.msk [vmem:[#allocation5 + $0x50] sm:$0xff] %vm6592_vm6, %v17719_v31  ;;  %8277 = vst.msk [vmem:[#allocation5 + $0xb0] sm:$0xff] %vm6592_vm6, %v17719_v31 }
  0x68   : > { %11566 = vmatmul.mubr.msk.bf16.gmra.mxu0 %vm1380_vm2, %v13239_v27  ;;  %8279 = vst.msk [vmem:[#allocation5 + $0x110] sm:$0xff] %vm6592_vm6, %v17719_v31  ;;  %8281 = vst.msk [vmem:[#allocation5 + $0x170] sm:$0xff] %vm6592_vm6, %v17719_v31 }
  0x69   : > { %11569 = vmatprep.mubr.msk.bf16.mxu0 %vm1380_vm2, %v13240_v28  ;;  %8283 = vst.msk [vmem:[#allocation5 + $0x1d0] sm:$0xff] %vm6592_vm6, %v17719_v31  ;;  %8285 = vst.msk [vmem:[#allocation5 + $0x230] sm:$0xff] %vm6592_vm6, %v17719_v31 }
  0x6a   : > { %8287 = vst.msk [vmem:[#allocation5 + $0x290] sm:$0xff] %vm6592_vm6, %v17719_v31  ;;  %8289 = vst.msk [vmem:[#allocation5 + $0x2f0] sm:$0xff] %vm6592_vm6, %v17719_v31 }
  0x70   : > { %11570 = vmatmul.mubr.msk.bf16.gmra.mxu0 %vm1380_vm2, %v13241_v29 }
  0x71   : > { %11573 = vmatprep.mubr.msk.bf16.mxu0 %vm1380_vm2, %v13242_v30  ;;  %v13271_v30 = vld [vmem:[%s13538_s23 + $0x1a8] sm:$0xff]  }
  0x78   : > { %11574 = vmatmul.mubr.msk.bf16.gmra.mxu0 %vm1380_vm2, %v13243_v32 }
  0x79   : > { %11577 = vmatprep.mubr.msk.bf16.mxu0 %vm1380_vm2, %v13244_v33 }
  0x80   : > { %11578 = vmatmul.mubr.msk.bf16.gmra.mxu0 %vm1380_vm2, %v13245_v34 }
  0x81   : > { %11581 = vmatprep.mubr.msk.bf16.mxu0 %vm1380_vm2, %v13246_v35  ;;  %v13272_v35 = vld [vmem:[%s13538_s23 + $0x1b0] sm:$0xff]  }
  0x88   : > { %11582 = vmatmul.mubr.msk.bf16.gmra.mxu0 %vm1380_vm2, %v13247_v36  ;;  %v13310_v36 = vld [vmem:[%s17708_s4 + $0x78] sm:$0xff]  }
  0x89   : > { %11585 = vmatprep.mubr.msk.bf16.mxu0 %vm1380_vm2, %v13248_v37  ;;  %7267 = vmatpush2.bf16.msra.mxu1 %v13310_v36 }
  0x8a   : > { %7268 = vmatprep.subr.bf16.mxu1 %v13438_v55 }
  0x90   : > { %11586 = vmatmul.mubr.msk.bf16.gmra.mxu0 %vm1380_vm2, %v13249_v38 }
  0x91   : > { %11589 = vmatprep.mubr.msk.bf16.mxu0 %vm1380_vm2, %v13250_v39 }
  0x98   : > { %11590 = vmatmul.mubr.msk.bf16.gmra.mxu0 %vm1380_vm2, %v13251_v40 }
  0x99   : > { %11593 = vmatprep.mubr.msk.bf16.mxu0 %vm1380_vm2, %v13252_v41 }
  0xa0   : > { %11594 = vmatmul.mubr.msk.bf16.gmra.mxu0 %vm1380_vm2, %v13253_v42 }
  0xa1   : > { %11597 = vmatprep.mubr.msk.bf16.mxu0 %vm1380_vm2, %v13254_v43 }
  0xa8   : > { %11598 = vmatmul.mubr.msk.bf16.gmra.mxu0 %vm1380_vm2, %v13255_v44 }
  0xa9   : > { %11601 = vmatprep.mubr.msk.bf16.mxu0 %vm1380_vm2, %v13256_v45 }
  0xb0   : > { %11602 = vmatmul.mubr.msk.bf16.gmra.mxu0 %vm1380_vm2, %v13257_v46  ;;  %v13313_v46 = vld [vmem:[%s17708_s4 + $0x70] sm:$0xff]  }
  0xb1   : > { %11605 = vmatprep.mubr.msk.bf16.mxu0 %vm1380_vm2, %v13258_v47  ;;  %7269 = vmatpush2.bf16.msra.mxu1 %v13313_v46 }
  0xb2   : > { %7270 = vmatprep.subr.bf16.mxu1 %v13438_v55 }
  0xb5   : > { %7271 = vmatpush2.bf16.msra.mxu1 %v13314_v63 }
  0xb6   : > { %7272 = vmatprep.subr.bf16.mxu1 %v13438_v55 }
  0xb8   : > { %11606 = vmatmul.mubr.msk.bf16.gmra.mxu0 %vm1380_vm2, %v13259_v48 }
  0xb9   : > { %11609 = vmatprep.mubr.msk.bf16.mxu0 %vm1380_vm2, %v13260_v49 }
  0xc0   : > { %11610 = vmatmul.mubr.msk.bf16.gmra.mxu0 %vm1380_vm2, %v13261_v50 }
  0xc1   : > { %11613 = vmatprep.mubr.msk.bf16.mxu0 %vm1380_vm2, %v13262_v51 }
  0xc8   : > { %11614 = vmatmul.mubr.msk.bf16.gmra.mxu0 %vm1380_vm2, %v13263_v52 }
  0xc9   : > { %11617 = vmatprep.mubr.msk.bf16.mxu0 %vm1380_vm2, %v13264_v53  ;;  %v13273_v53 = vld [vmem:[%s13538_s23 + $0x1b8] sm:$0xff]  }
  0xd0   : > { %11618 = vmatmul.mubr.msk.bf16.gmra.mxu0 %vm1380_vm2, %v13265_v57 }
  0xd1   : > { %11621 = vmatprep.mubr.msk.bf16.mxu0 %vm1380_vm2, %v13266_v58  ;;  %v13274_v58 = vld [vmem:[%s13538_s23 + $0x1c0] sm:$0xff]  }
  0xd8   : > { %v11527_v1 = vpop.f32.mrf.mxu0  ;;  %11622 = vmatmul.mubr.msk.bf16.gmra.mxu0 %vm1380_vm2, %v13267_v61 }
  0xd9   : > { %v2838_v3 = vmul.f32 %v11527_v1, %v13983_v0  ;;  %11625 = vmatprep.mubr.msk.bf16.mxu0 %vm1380_vm2, %v13268_v62 }
  0xda   : > { %v1806_v5 = vpop.f32.mrf.mxu0 }
  0xdb   : > { %v3101_v6 = vadd.f32 %v13988_v2, %v2838_v3  ;;  %v2836_v7 = vmul.f32 %v13983_v0, %v1806_v5 }
  0xdc   : > { %v11528_v8 = vpop.f32.mrf.mxu0 }
  0xdd   : > { %v3099_v10 = vadd.f32 %v13988_v2, %v2836_v7  ;;  %v2839_v11 = vmul.f32 %v11528_v8, %v13983_v0  ;;  %v3357_v15 = vmax.f32 %v3101_v6, 0.0 }
  0xde   : > { %v1809_v14 = vpop.f32.mrf.mxu0 }
  0xdf   : > { %v3355_v16 = vmax.f32 %v3099_v10, 0.0  ;;  %v3102_v17 = vadd.f32 %v13988_v2, %v2839_v11  ;;  %v2837_v18 = vmul.f32 %v13983_v0, %v1809_v14  ;;  %v13317_v11 = vld [vmem:[%s17708_s4 + $0x60] sm:$0xff]  }
  0xe0   : > { %v11531_v19 = vpop.f32.mrf.mxu0  ;;  %11626 = vmatmul.mubr.msk.bf16.gmra.mxu0 %vm1380_vm2, %v13269_v9  ;;  %7273 = vmatpush2.bf16.msra.mxu1 %v13317_v11 }
  0xe1   : > { %v3611_v20 = vmax.f32 %v3355_v16, %v3357_v15  ;;  %v3100_v21 = vadd.f32 %v13988_v2, %v2837_v18  ;;  %v2842_v22 = vmul.f32 %v11531_v19, %v13983_v0  ;;  %11629 = vmatprep.mubr.msk.bf16.mxu0 %vm1380_vm2, %v13270_v12  ;;  %v3358_v25 = vmax.f32 %v3102_v17, 0.0  ;;  %v13275_v17 = vld [vmem:[%s13538_s23 + $0x1c8] sm:$0xff]   ;;  %7274 = vmatprep.subr.bf16.mxu1 %v13438_v55 }
  0xe2   : > { %v1822_v24 = vpop.f32.mrf.mxu0 }
  0xe3   : > { %3740 = vst.msk [vmem:[#allocation2] sm:$0xff] %vm3739_vm3, %v3611_v20  ;;  %v3356_v26 = vmax.f32 %v3100_v21, 0.0  ;;  %v3105_v27 = vadd.f32 %v13988_v2, %v2842_v22  ;;  %v2840_v28 = vmul.f32 %v13983_v0, %v1822_v24  ;;  %v13276_v21 = vld [vmem:[%s13538_s23 + $0x1d0] sm:$0xff]  }
  0xe4   : > { %v11532_v29 = vpop.f32.mrf.mxu0 }
  0xe5   : > { %v3612_v32 = vmax.f32 %v3356_v26, %v3358_v25  ;;  %v3103_v33 = vadd.f32 %v13988_v2, %v2840_v28  ;;  %v2843_v34 = vmul.f32 %v11532_v29, %v13983_v0  ;;  %v3361_v38 = vmax.f32 %v3105_v27, 0.0  ;;  %v13318_v26 = vld [vmem:[%s17708_s4 + $0x58] sm:$0xff]  }
  0xe6   : > { %v1825_v37 = vpop.f32.mrf.mxu0  ;;  %7275 = vmatpush2.bf16.msra.mxu1 %v13318_v26 }
  0xe7   : > { %3741 = vst.msk [vmem:[#allocation2 + $0x8] sm:$0xff] %vm3739_vm3, %v3612_v32  ;;  %v3359_v39 = vmax.f32 %v3103_v33, 0.0  ;;  %v3106_v40 = vadd.f32 %v13988_v2, %v2843_v34  ;;  %v2841_v41 = vmul.f32 %v13983_v0, %v1825_v37  ;;  %v4479_v32 = vld [vmem:[#allocation3 + $0x1] sm:$0xff]  ;;  %7276 = vmatprep.subr.bf16.mxu1 %v13438_v55 }
  0xe8   : > { %v11535_v42 = vpop.f32.mrf.mxu0  ;;  %11630 = vmatmul.mubr.msk.bf16.gmra.mxu0 %vm1380_vm2, %v13271_v30  ;;  %v4543_v30 = vld [vmem:[#allocation3 + $0x2] sm:$0xff] }
  0xe9   : > { %v3613_v43 = vmax.f32 %v3359_v39, %v3361_v38  ;;  %v3104_v44 = vadd.f32 %v13988_v2, %v2841_v41  ;;  %v2846_v45 = vmul.f32 %v11535_v42, %v13983_v0  ;;  %11633 = vmatprep.mubr.msk.bf16.mxu0 %vm1380_vm2, %v13272_v35  ;;  %v3362_v48 = vmax.f32 %v3106_v40, 0.0 }
  0xea   : > { %v1838_v47 = vpop.f32.mrf.mxu0 }
  0xeb   : > { %3742 = vst.msk [vmem:[#allocation2 + $0x10] sm:$0xff] %vm3739_vm3, %v3613_v43  ;;  %v3360_v49 = vmax.f32 %v3104_v44, 0.0  ;;  %v3109_v50 = vadd.f32 %v13988_v2, %v2846_v45  ;;  %v2844_v51 = vmul.f32 %v13983_v0, %v1838_v47  ;;  %v13321_v43 = vld [vmem:[%s17708_s4 + $0x50] sm:$0xff]  }
  0xec   : > { %v11536_v52 = vpop.f32.mrf.mxu0  ;;  %7277 = vmatpush2.bf16.msra.mxu1 %v13321_v43 }
  0xed   : > { %v3614_v54 = vmax.f32 %v3360_v49, %v3362_v48  ;;  %v3107_v56 = vadd.f32 %v13988_v2, %v2844_v51  ;;  %v2847_v57 = vmul.f32 %v11536_v52, %v13983_v0  ;;  %v3365_v59 = vmax.f32 %v3109_v50, 0.0  ;;  %v13277_v49 = vld [vmem:[%s13538_s23 + $0x1d8] sm:$0xff]   ;;  %7278 = vmatprep.subr.bf16.mxu1 %v13438_v55 }
  0xee   : > { %v1841_v60 = vpop.f32.mrf.mxu0  ;;  %v3868_v61 = vld [vmem:[#allocation2] ss:$2 sm:$0xff]  ;;  %v3996_v62 = vld [vmem:[#allocation2 + $0x1] ss:$2 sm:$0xff] }
  0xef   : > { %3743 = vst.msk [vmem:[#allocation2 + $0x18] sm:$0xff] %vm3739_vm3, %v3614_v54  ;;  %v3363_v1 = vmax.f32 %v3107_v56, 0.0  ;;  %v3110_v3 = vadd.f32 %v13988_v2, %v2847_v57  ;;  %v2845_v4 = vmul.f32 %v13983_v0, %v1841_v60  ;;  %v4123_v5 = vmax.f32 %v3868_v61, %v3996_v62 }
  0xf0   : > { %v11539_v6 = vpop.f32.mrf.mxu0  ;;  %11634 = vmatmul.mubr.msk.bf16.gmra.mxu0 %vm1380_vm2, %v13273_v53  ;;  %v13278_v53 = vld [vmem:[%s13538_s23 + $0x1e0] sm:$0xff]  }
  0xf1   : > { %v3615_v7 = vmax.f32 %v3363_v1, %v3365_v59  ;;  %v3108_v8 = vadd.f32 %v13988_v2, %v2845_v4  ;;  %v2850_v9 = vmul.f32 %v11539_v6, %v13983_v0  ;;  %11637 = vmatprep.mubr.msk.bf16.mxu0 %vm1380_vm2, %v13274_v58  ;;  %4351 = vst.msk [vmem:[#allocation3 + $0x11] sm:$0xff] %vm3739_vm3, %v4123_v5  ;;  %v3366_v12 = vmax.f32 %v3110_v3, 0.0  ;;  %v13322_v59 = vld [vmem:[%s17708_s4 + $0x48] sm:$0xff]  }
  0xf2   : > { %v1854_v10 = vpop.f32.mrf.mxu0  ;;  %7279 = vmatpush2.bf16.msra.mxu1 %v13322_v59 }
  0xf3   : > { %3744 = vst.msk [vmem:[#allocation2 + $0x20] sm:$0xff] %vm3739_vm3, %v3615_v7  ;;  %v3364_v13 = vmax.f32 %v3108_v8, 0.0  ;;  %v3113_v14 = vadd.f32 %v13988_v2, %v2850_v9  ;;  %v2848_v15 = vmul.f32 %v13983_v0, %v1854_v10  ;;  %7280 = vmatprep.subr.bf16.mxu1 %v13438_v55 }
  0xf4   : > { %v11540_v16 = vpop.f32.mrf.mxu0 }
  0xf5   : > { %v3616_v18 = vmax.f32 %v3364_v13, %v3366_v12  ;;  %v3111_v19 = vadd.f32 %v13988_v2, %v2848_v15  ;;  %v2851_v20 = vmul.f32 %v11540_v16, %v13983_v0  ;;  %v3369_v22 = vmax.f32 %v3113_v14, 0.0  ;;  %v13325_v12 = vld [vmem:[%s17708_s4 + $0x40] sm:$0xff]  }
  0xf6   : > { %v1857_v23 = vpop.f32.mrf.mxu0  ;;  %v3870_v24 = vld [vmem:[#allocation2 + $0x10] ss:$2 sm:$0xff]  ;;  %v3998_v25 = vld [vmem:[#allocation2 + $0x11] ss:$2 sm:$0xff]  ;;  %7281 = vmatpush2.bf16.msra.mxu1 %v13325_v12 }
  0xf7   : > { %3745 = vst.msk [vmem:[#allocation2 + $0x28] sm:$0xff] %vm3739_vm3, %v3616_v18  ;;  %v3367_v27 = vmax.f32 %v3111_v19, 0.0  ;;  %v3114_v28 = vadd.f32 %v13988_v2, %v2851_v20  ;;  %v2849_v29 = vmul.f32 %v13983_v0, %v1857_v23  ;;  %v4124_v33 = vmax.f32 %v3870_v24, %v3998_v25  ;;  %v13279_v18 = vld [vmem:[%s13538_s23 + $0x1e8] sm:$0xff]  }
  0xf8   : > { %v11543_v34 = vpop.f32.mrf.mxu0  ;;  %11638 = vmatmul.mubr.msk.bf16.gmra.mxu0 %vm1380_vm2, %v13275_v17  ;;  %v4544_v35 = vld [vmem:[#allocation3 + $0x12] sm:$0xff] }
  0xf9   : > { %v4480_v36 = vld [vmem:[#allocation3 + $0x11] sm:$0xff]  ;;  %v3617_v37 = vmax.f32 %v3367_v27, %v3369_v22  ;;  %v3112_v38 = vadd.f32 %v13988_v2, %v2849_v29  ;;  %v2854_v39 = vmul.f32 %v11543_v34, %v13983_v0  ;;  %11641 = vmatprep.mubr.msk.bf16.mxu0 %vm1380_vm2, %v13276_v21  ;;  %4352 = vst.msk [vmem:[#allocation3 + $0x21] sm:$0xff] %vm3739_vm3, %v4124_v33  ;;  %v3370_v44 = vmax.f32 %v3114_v28, 0.0 }
  0xfa   : > { %v1870_v40 = vpop.f32.mrf.mxu0  ;;  %v11941_v41 = vpack.i.bf16 %v4544_v35, %v4543_v30  ;;  %v11936_v42 = vpack.i.bf16 %v4480_v36, %v4479_v32  ;;  %v4607_v8 = vld [vmem:[#allocation3 + $0x10] sm:$0xff] }
  0xfb   : > { %3746 = vst.msk [vmem:[#allocation2 + $0x30] sm:$0xff] %vm3739_vm3, %v3617_v37  ;;  %v3368_v45 = vmax.f32 %v3112_v38, 0.0  ;;  %v3117_v46 = vadd.f32 %v13988_v2, %v2854_v39  ;;  %v2852_v47 = vmul.f32 %v13983_v0, %v1870_v40  ;;  %v13280_v21 = vld [vmem:[%s13538_s23 + $0x1f0] sm:$0xff]  }
  0xfc   : > { %11942 = vrot.lane.b32.xlu1 %v11941_v41, %s13439_s16  ;;  %11937 = vrot.lane.b32.xlu0 %v11936_v42, %s13440_s17  ;;  %v11544_v48 = vpop.f32.mrf.mxu0 }
  0xfd   : > { %v3618_v50 = vmax.f32 %v3368_v45, %v3370_v44  ;;  %v3115_v51 = vadd.f32 %v13988_v2, %v2852_v47  ;;  %v2855_v52 = vmul.f32 %v11544_v48, %v13983_v0  ;;  %v3373_v54 = vmax.f32 %v3117_v46, 0.0  ;;  %v13281_v46 = vld [vmem:[%s13538_s23 + $0x1f8] sm:$0xff]  }
  0xfe   : > { %v1873_v56 = vpop.f32.mrf.mxu0  ;;  %v3872_v57 = vld [vmem:[#allocation2 + $0x20] ss:$2 sm:$0xff]  ;;  %v4000_v58 = vld [vmem:[#allocation2 + $0x21] ss:$2 sm:$0xff] }
  0xff   : > { %3747 = vst.msk [vmem:[#allocation2 + $0x38] sm:$0xff] %vm3739_vm3, %v3618_v50  ;;  %v3371_v60 = vmax.f32 %v3115_v51, 0.0  ;;  %v3118_v61 = vadd.f32 %v13988_v2, %v2855_v52  ;;  %v2853_v62 = vmul.f32 %v13983_v0, %v1873_v56  ;;  %v4125_v63 = vmax.f32 %v3872_v57, %v4000_v58  ;;  %v13282_v50 = vld [vmem:[%s13538_s23 + $0x200] sm:$0xff]  }
 0x100   : > { %v11547_v1 = vpop.f32.mrf.mxu0  ;;  %11642 = vmatmul.mubr.msk.bf16.gmra.mxu0 %vm1380_vm2, %v13277_v49  ;;  %v14134_v3 = vld [vmem:[#allocation3 + $0x22] sm:$0xff] }
 0x101   : > { %v4608_v4 = vld [vmem:[#allocation3 + $0x20] sm:$0xff]  ;;  %v3619_v5 = vmax.f32 %v3371_v60, %v3373_v54  ;;  %v3116_v6 = vadd.f32 %v13988_v2, %v2853_v62  ;;  %v2858_v7 = vmul.f32 %v11547_v1, %v13983_v0  ;;  %11645 = vmatprep.mubr.msk.bf16.mxu0 %vm1380_vm2, %v13278_v53  ;;  %4353 = vst.msk [vmem:[#allocation3 + $0x31] sm:$0xff] %vm3739_vm3, %v4125_v63  ;;  %v3374_v13 = vmax.f32 %v3118_v61, 0.0 }
 0x102   : > { %v1886_v9 = vpop.f32.mrf.mxu0  ;;  %v11946_v10 = vpack.i.bf16 %v14134_v3, %v4544_v35  ;;  %v11951_v11 = vpack.i.bf16 %v4608_v4, %v4607_v8  ;;  %v4864_v37 = vld [vmem:[#allocation3 + $0x21] sm:$0xff] }
 0x103   : > { %3748 = vst.msk [vmem:[#allocation2 + $0x40] sm:$0xff] %vm3739_vm3, %v3619_v5  ;;  %v3372_v14 = vmax.f32 %v3116_v6, 0.0  ;;  %v3121_v15 = vadd.f32 %v13988_v2, %v2858_v7  ;;  %v2856_v16 = vmul.f32 %v13983_v0, %v1886_v9 }
 0x104   : > { %11947 = vrot.lane.b32.xlu0 %v11946_v10, %s13440_s17  ;;  %11952 = vrot.lane.b32.xlu1 %v11951_v11, %s13441_s22  ;;  %v11548_v17 = vpop.f32.mrf.mxu0 }
 0x105   : > { %v3620_v55 = vmax.f32 %v3372_v14, %v3374_v13  ;;  %v3119_v19 = vadd.f32 %v13988_v2, %v2856_v16  ;;  %v2859_v20 = vmul.f32 %v11548_v17, %v13983_v0  ;;  %v3377_v22 = vmax.f32 %v3121_v15, 0.0  ;;  %v13283_v14 = vld [vmem:[%s13538_s23 + $0x208] sm:$0xff]   ;;  %v13284_v17 = vld [vmem:[%s13538_s23 + $0x210] sm:$0xff]  }
 0x106   : > { %v1889_v23 = vpop.f32.mrf.mxu0  ;;  %v3874_v24 = vld [vmem:[#allocation2 + $0x30] ss:$2 sm:$0xff]  ;;  %v4002_v25 = vld [vmem:[#allocation2 + $0x31] ss:$2 sm:$0xff] }
 0x107   : > { %3749 = vst.msk [vmem:[#allocation2 + $0x48] sm:$0xff] %vm3739_vm3, %v3620_v55  ;;  %v3375_v26 = vmax.f32 %v3119_v19, 0.0  ;;  %v3122_v27 = vadd.f32 %v13988_v2, %v2859_v20  ;;  %v2857_v28 = vmul.f32 %v13983_v0, %v1889_v23  ;;  %v4126_v29 = vmax.f32 %v3874_v24, %v4002_v25 }
 0x108   : > { %v11551_v30 = vpop.f32.mrf.mxu0  ;;  %11646 = vmatmul.mubr.msk.bf16.gmra.mxu0 %vm1380_vm2, %v13279_v18  ;;  %v4865_v32 = vld [vmem:[#allocation3 + $0x31] sm:$0xff] }
 0x109   : > { %v14158_v33 = vld [vmem:[#allocation3 + $0x30] sm:$0xff]  ;;  %v3621_v34 = vmax.f32 %v3375_v26, %v3377_v22  ;;  %v3120_v35 = vadd.f32 %v13988_v2, %v2857_v28  ;;  %v2862_v36 = vmul.f32 %v11551_v30, %v13983_v0  ;;  %11649 = vmatprep.mubr.msk.bf16.mxu0 %vm1380_vm2, %v13280_v21  ;;  %4354 = vst.msk [vmem:[#allocation3 + $0x41] sm:$0xff] %vm3739_vm3, %v4126_v29  ;;  %v3378_v41 = vmax.f32 %v3122_v27, 0.0 }
 0x10a   : > { %v1902_v38 = vpop.f32.mrf.mxu0  ;;  %v11961_v39 = vpack.i.bf16 %v4865_v32, %v4864_v37  ;;  %v11956_v40 = vpack.i.bf16 %v14158_v33, %v4608_v4  ;;  %v4546_v59 = vld [vmem:[#allocation3 + $0x32] sm:$0xff] }
 0x10b   : > { %3750 = vst.msk [vmem:[#allocation2 + $0x50] sm:$0xff] %vm3739_vm3, %v3621_v34  ;;  %v3376_v42 = vmax.f32 %v3120_v35, 0.0  ;;  %v3125_v43 = vadd.f32 %v13988_v2, %v2862_v36  ;;  %v2860_v44 = vmul.f32 %v13983_v0, %v1902_v38  ;;  %v11971_v6 = vpack.i.bf16 %v4546_v59, %v14134_v3 }
 0x10c   : > { %11962 = vrot.lane.b32.xlu0 %v11961_v39, %s13441_s22  ;;  %11957 = vrot.lane.b32.xlu1 %v11956_v40, %s13439_s16  ;;  %v11552_v45 = vpop.f32.mrf.mxu0 }
 0x10d   : > { %v3622_v47 = vmax.f32 %v3376_v42, %v3378_v41  ;;  %v3123_v48 = vadd.f32 %v13988_v2, %v2860_v44  ;;  %v2863_v49 = vmul.f32 %v11552_v45, %v13983_v0  ;;  %v3381_v51 = vmax.f32 %v3125_v43, 0.0 }
 0x10e   : > { %v1905_v52 = vpop.f32.mrf.mxu0  ;;  %v3876_v53 = vld [vmem:[#allocation2 + $0x40] ss:$2 sm:$0xff]  ;;  %v4004_v54 = vld [vmem:[#allocation2 + $0x41] ss:$2 sm:$0xff] }
 0x10f   : > { %3751 = vst.msk [vmem:[#allocation2 + $0x58] sm:$0xff] %vm3739_vm3, %v3622_v47  ;;  %v3379_v56 = vmax.f32 %v3123_v48, 0.0  ;;  %v3126_v57 = vadd.f32 %v13988_v2, %v2863_v49  ;;  %v2861_v58 = vmul.f32 %v13983_v0, %v1905_v52  ;;  %v4127_v60 = vmax.f32 %v3876_v53, %v4004_v54 }
 0x110   : > { %11967 = vrot.lane.b32.xlu1 %v11961_v39, %s13440_s17  ;;  %v11555_v61 = vpop.f32.mrf.mxu0  ;;  %11650 = vmatmul.mubr.msk.bf16.gmra.mxu0 %vm1380_vm2, %v13281_v46  ;;  %v14179_v62 = vld [vmem:[#allocation3 + $0x42] sm:$0xff]  ;;  %v13285_v46 = vld [vmem:[%s13538_s23 + $0x218] sm:$0xff]  }
 0x111   : > { %v3623_v63 = vmax.f32 %v3379_v56, %v3381_v51  ;;  %v3124_v1 = vadd.f32 %v13988_v2, %v2861_v58  ;;  %v2866_v4 = vmul.f32 %v11555_v61, %v13983_v0  ;;  %11653 = vmatprep.mubr.msk.bf16.mxu0 %vm1380_vm2, %v13282_v50  ;;  %4355 = vst.msk [vmem:[#allocation3 + $0x51] sm:$0xff] %vm3739_vm3, %v4127_v60  ;;  %v3382_v8 = vmax.f32 %v3126_v57, 0.0  ;;  %v4610_v12 = vld [vmem:[#allocation3 + $0x40] sm:$0xff] }
 0x112   : > { %v1918_v5 = vpop.f32.mrf.mxu0  ;;  %v11976_v7 = vpack.i.bf16 %v14179_v62, %v4546_v59  ;;  %v11981_v19 = vpack.i.bf16 %v4610_v12, %v14158_v33  ;;  %v4483_v33 = vld [vmem:[#allocation3 + $0x41] sm:$0xff] }
 0x113   : > { %3752 = vst.msk [vmem:[#allocation2 + $0x60] sm:$0xff] %vm3739_vm3, %v3623_v63  ;;  %v3380_v9 = vmax.f32 %v3124_v1, 0.0  ;;  %v3129_v10 = vadd.f32 %v13988_v2, %v2866_v4  ;;  %v2864_v11 = vmul.f32 %v13983_v0, %v1918_v5  ;;  %v13286_v50 = vld [vmem:[%s13538_s23 + $0x220] sm:$0xff]  }
 0x114   : > { %11972 = vrot.lane.b32.xlu1 %v11971_v6, %s13439_s16  ;;  %11977 = vrot.lane.b32.xlu0 %v11976_v7, %s13440_s17  ;;  %v11556_v13 = vpop.f32.mrf.mxu0 }
 0x115   : > { %v3624_v15 = vmax.f32 %v3380_v9, %v3382_v8  ;;  %v3127_v3 = vadd.f32 %v13988_v2, %v2864_v11  ;;  %v2867_v16 = vmul.f32 %v11556_v13, %v13983_v0  ;;  %v3385_v18 = vmax.f32 %v3129_v10, 0.0 }
 0x116   : > { %v1921_v55 = vpop.f32.mrf.mxu0  ;;  %v3878_v20 = vld [vmem:[#allocation2 + $0x50] ss:$2 sm:$0xff]  ;;  %v4006_v21 = vld [vmem:[#allocation2 + $0x51] ss:$2 sm:$0xff] }
 0x117   : > { %3753 = vst.msk [vmem:[#allocation2 + $0x68] sm:$0xff] %vm3739_vm3, %v3624_v15  ;;  %v3383_v22 = vmax.f32 %v3127_v3, 0.0  ;;  %v3130_v23 = vadd.f32 %v13988_v2, %v2867_v16  ;;  %v2865_v24 = vmul.f32 %v13983_v0, %v1921_v55  ;;  %v4128_v25 = vmax.f32 %v3878_v20, %v4006_v21  ;;  %v13288_v16 = vld [vmem:[%s13538_s23 + $0x230] sm:$0xff]  }
 0x118   : > { %11982 = vrot.lane.b32.xlu1 %v11981_v19, %s13441_s22  ;;  %v11559_v26 = vpop.f32.mrf.mxu0  ;;  %11654 = vmatmul.mubr.msk.bf16.gmra.mxu0 %vm1380_vm2, %v13283_v14  ;;  %v4803_v27 = vld [vmem:[#allocation3 + $0x50] sm:$0xff]  ;;  %v13287_v14 = vld [vmem:[%s13538_s23 + $0x228] sm:$0xff]  }
 0x119   : > { %v4484_v28 = vld [vmem:[#allocation3 + $0x51] sm:$0xff]  ;;  %v3625_v29 = vmax.f32 %v3383_v22, %v3385_v18  ;;  %v3128_v30 = vadd.f32 %v13988_v2, %v2865_v24  ;;  %v2870_v32 = vmul.f32 %v11559_v26, %v13983_v0  ;;  %11657 = vmatprep.mubr.msk.bf16.mxu0 %vm1380_vm2, %v13284_v17  ;;  %4356 = vst.msk [vmem:[#allocation3 + $0x61] sm:$0xff] %vm3739_vm3, %v4128_v25  ;;  %v3386_v37 = vmax.f32 %v3130_v23, 0.0 }
 0x11a   : > { %v1934_v34 = vpop.f32.mrf.mxu0  ;;  %v11986_v35 = vpack.i.bf16 %v4803_v27, %v4610_v12  ;;  %v11996_v36 = vpack.i.bf16 %v4484_v28, %v4483_v33  ;;  %v4548_v41 = vld [vmem:[#allocation3 + $0x52] sm:$0xff] }
 0x11b   : > { %3754 = vst.msk [vmem:[#allocation2 + $0x70] sm:$0xff] %vm3739_vm3, %v3625_v29  ;;  %v3384_v38 = vmax.f32 %v3128_v30, 0.0  ;;  %v3133_v39 = vadd.f32 %v13988_v2, %v2870_v32  ;;  %v2868_v40 = vmul.f32 %v13983_v0, %v1934_v34  ;;  %v12001_v49 = vpack.i.bf16 %v4548_v41, %v14179_v62 }
 0x11c   : > { %11987 = vrot.lane.b32.xlu0 %v11986_v35, %s13439_s16  ;;  %11997 = vrot.lane.b32.xlu1 %v11996_v36, %s13440_s17  ;;  %v11560_v42 = vpop.f32.mrf.mxu0 }
 0x11d   : > { %v3626_v43 = vmax.f32 %v3384_v38, %v3386_v37  ;;  %v3131_v44 = vadd.f32 %v13988_v2, %v2868_v40  ;;  %v2871_v45 = vmul.f32 %v11560_v42, %v13983_v0  ;;  %v3389_v47 = vmax.f32 %v3133_v39, 0.0  ;;  %v13289_v42 = vld [vmem:[%s13538_s23 + $0x238] sm:$0xff]  }
 0x11e   : > { %v1937_v48 = vpop.f32.mrf.mxu0  ;;  %v3880_v51 = vld [vmem:[#allocation2 + $0x60] ss:$2 sm:$0xff]  ;;  %v4008_v52 = vld [vmem:[#allocation2 + $0x61] ss:$2 sm:$0xff] }
 0x11f   : > { %3755 = vst.msk [vmem:[#allocation2 + $0x78] sm:$0xff] %vm3739_vm3, %v3626_v43  ;;  %v3387_v53 = vmax.f32 %v3131_v44, 0.0  ;;  %v3134_v54 = vadd.f32 %v13988_v2, %v2871_v45  ;;  %v2869_v56 = vmul.f32 %v13983_v0, %v1937_v48  ;;  %v4129_v57 = vmax.f32 %v3880_v51, %v4008_v52 }
 0x120   : > { %11992 = vrot.lane.b32.xlu0 %v11996_v36, %s13441_s22  ;;  %12002 = vrot.lane.b32.xlu1 %v12001_v49, %s13439_s16  ;;  %v11563_v58 = vpop.f32.mrf.mxu0  ;;  %v14221_v59 = vld [vmem:[#allocation3 + $0x62] sm:$0xff] }
 0x121   : > { %v4612_v60 = vld [vmem:[#allocation3 + $0x60] sm:$0xff]  ;;  %v3627_v61 = vmax.f32 %v3387_v53, %v3389_v47  ;;  %v3132_v62 = vadd.f32 %v13988_v2, %v2869_v56  ;;  %v2874_v63 = vmul.f32 %v11563_v58, %v13983_v0  ;;  %11658 = vmatmul.mubr.msk.bf16.gmra.mxu0 %vm1380_vm2, %v13285_v46  ;;  %4357 = vst.msk [vmem:[#allocation3 + $0x71] sm:$0xff] %vm3739_vm3, %v4129_v57  ;;  %v3390_v6 = vmax.f32 %v3134_v54, 0.0 }
 0x122   : > { %v1950_v1 = vpop.f32.mrf.mxu0  ;;  %v12006_v4 = vpack.i.bf16 %v14221_v59, %v4548_v41  ;;  %v12011_v5 = vpack.i.bf16 %v4612_v60, %v4803_v27  ;;  %11661 = vmatprep.mubr.msk.bf16.mxu0 %vm1380_vm2, %v13286_v50  ;;  %v4485_v28 = vld [vmem:[#allocation3 + $0x61] sm:$0xff] }
 0x123   : > { %3756 = vst.msk [vmem:[#allocation2 + $0x80] sm:$0xff] %vm3739_vm3, %v3627_v61  ;;  %v3388_v7 = vmax.f32 %v3132_v62, 0.0  ;;  %v3137_v8 = vadd.f32 %v13988_v2, %v2874_v63  ;;  %v2872_v9 = vmul.f32 %v13983_v0, %v1950_v1  ;;  %v13290_v46 = vld [vmem:[%s13538_s23 + $0x240] sm:$0xff]  }
 0x124   : > { %12007 = vrot.lane.b32.xlu0 %v12006_v4, %s13440_s17  ;;  %12012 = vrot.lane.b32.xlu1 %v12011_v5, %s13441_s22  ;;  %v11564_v10 = vpop.f32.mrf.mxu0 }
 0x125   : > { %v3628_v11 = vmax.f32 %v3388_v7, %v3390_v6  ;;  %v3135_v12 = vadd.f32 %v13988_v2, %v2872_v9  ;;  %v2875_v13 = vmul.f32 %v11564_v10, %v13983_v0  ;;  %v3393_v15 = vmax.f32 %v3137_v8, 0.0  ;;  %v4807_v6 = vld [vmem:[#allocation3 + $0x90] sm:$0xff] }
 0x126   : > { %v1953_v3 = vpop.f32.mrf.mxu0  ;;  %v3882_v17 = vld [vmem:[#allocation2 + $0x70] ss:$2 sm:$0xff]  ;;  %v4010_v18 = vld [vmem:[#allocation2 + $0x71] ss:$2 sm:$0xff] }
 0x127   : > { %3757 = vst.msk [vmem:[#allocation2 + $0x88] sm:$0xff] %vm3739_vm3, %v3628_v11  ;;  %v3391_v55 = vmax.f32 %v3135_v12, 0.0  ;;  %v3138_v19 = vadd.f32 %v13988_v2, %v2875_v13  ;;  %v2873_v20 = vmul.f32 %v13983_v0, %v1953_v3  ;;  %v4130_v21 = vmax.f32 %v3882_v17, %v4010_v18  ;;  %v13291_v11 = vld [vmem:[%s13538_s23 + $0x248] sm:$0xff]  }
 0x128   : > { %v11567_v22 = vpop.f32.mrf.mxu0  ;;  %v4805_v23 = vld [vmem:[#allocation3 + $0x70] sm:$0xff] }
 0x129   : > { %v4486_v24 = vld [vmem:[#allocation3 + $0x71] sm:$0xff]  ;;  %v3629_v25 = vmax.f32 %v3391_v55, %v3393_v15  ;;  %v3136_v26 = vadd.f32 %v13988_v2, %v2873_v20  ;;  %v2878_v27 = vmul.f32 %v11567_v22, %v13983_v0  ;;  %11662 = vmatmul.mubr.msk.bf16.gmra.mxu0 %vm1380_vm2, %v13287_v14  ;;  %4358 = vst.msk [vmem:[#allocation3 + $0x81] sm:$0xff] %vm3739_vm3, %v4130_v21  ;;  %v3394_v33 = vmax.f32 %v3138_v19, 0.0  ;;  %v4487_v21 = vld [vmem:[#allocation3 + $0xa1] sm:$0xff] }
 0x12a   : > { %v1966_v29 = vpop.f32.mrf.mxu0  ;;  %v12016_v30 = vpack.i.bf16 %v4805_v23, %v4612_v60  ;;  %v12026_v32 = vpack.i.bf16 %v4486_v24, %v4485_v28  ;;  %11665 = vmatprep.mubr.msk.bf16.mxu0 %vm1380_vm2, %v13288_v16  ;;  %v4550_v37 = vld [vmem:[#allocation3 + $0x72] sm:$0xff] }
 0x12b   : > { %3758 = vst.msk [vmem:[#allocation2 + $0x90] sm:$0xff] %vm3739_vm3, %v3629_v25  ;;  %v3392_v34 = vmax.f32 %v3136_v26, 0.0  ;;  %v3141_v35 = vadd.f32 %v13988_v2, %v2878_v27  ;;  %v2876_v36 = vmul.f32 %v13983_v0, %v1966_v29  ;;  %v12031_v45 = vpack.i.bf16 %v4550_v37, %v14221_v59  ;;  %v13292_v15 = vld [vmem:[%s13538_s23 + $0x250] sm:$0xff]  }
 0x12c   : > { %12017 = vrot.lane.b32.xlu0 %v12016_v30, %s13439_s16  ;;  %12027 = vrot.lane.b32.xlu1 %v12026_v32, %s13440_s17  ;;  %v11568_v38 = vpop.f32.mrf.mxu0  ;;  %v4871_v20 = vld [vmem:[#allocation3 + $0x91] sm:$0xff] }
 0x12d   : > { %v3630_v39 = vmax.f32 %v3392_v34, %v3394_v33  ;;  %v3139_v40 = vadd.f32 %v13988_v2, %v2876_v36  ;;  %v2879_v41 = vmul.f32 %v11568_v38, %v13983_v0  ;;  %v3397_v43 = vmax.f32 %v3141_v35, 0.0  ;;  %v4551_v36 = vld [vmem:[#allocation3 + $0xa2] sm:$0xff] }
 0x12e   : > { %v1969_v44 = vpop.f32.mrf.mxu0  ;;  %v3884_v47 = vld [vmem:[#allocation2 + $0x80] ss:$2 sm:$0xff]  ;;  %v4012_v48 = vld [vmem:[#allocation2 + $0x81] ss:$2 sm:$0xff] }
 0x12f   : > { %3759 = vst.msk [vmem:[#allocation2 + $0x98] sm:$0xff] %vm3739_vm3, %v3630_v39  ;;  %v3395_v49 = vmax.f32 %v3139_v40, 0.0  ;;  %v3142_v50 = vadd.f32 %v13988_v2, %v2879_v41  ;;  %v2877_v51 = vmul.f32 %v13983_v0, %v1969_v44  ;;  %v4131_v52 = vmax.f32 %v3884_v47, %v4012_v48 }
 0x130   : > { %12022 = vrot.lane.b32.xlu0 %v12026_v32, %s13441_s22  ;;  %12032 = vrot.lane.b32.xlu1 %v12031_v45, %s13439_s16  ;;  %v11571_v53 = vpop.f32.mrf.mxu0  ;;  %v4742_v54 = vld [vmem:[#allocation3 + $0x82] sm:$0xff] }
 0x131   : > { %v4614_v56 = vld [vmem:[#allocation3 + $0x80] sm:$0xff]  ;;  %v3631_v57 = vmax.f32 %v3395_v49, %v3397_v43  ;;  %v3140_v58 = vadd.f32 %v13988_v2, %v2877_v51  ;;  %v2882_v59 = vmul.f32 %v11571_v53, %v13983_v0  ;;  %11666 = vmatmul.mubr.msk.bf16.gmra.mxu0 %vm1380_vm2, %v13289_v42  ;;  %4359 = vst.msk [vmem:[#allocation3 + $0xb1] sm:$0xff] %vm3739_vm3, %v4131_v52  ;;  %v3398_v63 = vmax.f32 %v3142_v50, 0.0  ;;  %v13293_v42 = vld [vmem:[%s13538_s23 + $0x258] sm:$0xff]  }
 0x132   : > { %v1982_v60 = vpop.f32.mrf.mxu0  ;;  %v12036_v61 = vpack.i.bf16 %v4742_v54, %v4550_v37  ;;  %v12051_v62 = vpack.i.bf16 %v4614_v56, %v4805_v23  ;;  %11669 = vmatprep.mubr.msk.bf16.mxu0 %vm1380_vm2, %v13290_v46  ;;  %v12041_v14 = vpack.i.bf16 %v4807_v6, %v4614_v56  ;;  %v4870_v19 = vld [vmem:[#allocation3 + $0x81] sm:$0xff] }
 0x133   : > { %3760 = vst.msk [vmem:[#allocation2 + $0xa0] sm:$0xff] %vm3739_vm3, %v3631_v57  ;;  %v3396_v1 = vmax.f32 %v3140_v58, 0.0  ;;  %v3145_v4 = vadd.f32 %v13988_v2, %v2882_v59  ;;  %v2880_v5 = vmul.f32 %v13983_v0, %v1982_v60  ;;  %v12046_v29 = vpack.i.bf16 %v4871_v20, %v4870_v19  ;;  %v13295_v46 = vld [vmem:[%s13538_s23 + $0x260] sm:$0xff]  }
 0x134   : > { %12037 = vrot.lane.b32.xlu0 %v12036_v61, %s13440_s17  ;;  %12052 = vrot.lane.b32.xlu1 %v12051_v62, %s13441_s22  ;;  %v11572_v7 = vpop.f32.mrf.mxu0 }
 0x135   : > { %v3632_v8 = vmax.f32 %v3396_v1, %v3398_v63  ;;  %v3143_v9 = vadd.f32 %v13988_v2, %v2880_v5  ;;  %v2883_v10 = vmul.f32 %v11572_v7, %v13983_v0  ;;  %v3401_v12 = vmax.f32 %v3145_v4, 0.0 }
 0x136   : > { %v1985_v13 = vpop.f32.mrf.mxu0  ;;  %v3886_v3 = vld [vmem:[#allocation2 + $0x90] ss:$2 sm:$0xff]  ;;  %v4014_v16 = vld [vmem:[#allocation2 + $0x91] ss:$2 sm:$0xff] }
 0x137   : > { %3761 = vst.msk [vmem:[#allocation2 + $0xa8] sm:$0xff] %vm3739_vm3, %v3632_v8  ;;  %v3399_v17 = vmax.f32 %v3143_v9, 0.0  ;;  %v3146_v18 = vadd.f32 %v13988_v2, %v2883_v10  ;;  %v2881_v55 = vmul.f32 %v13983_v0, %v1985_v13  ;;  %v4132_v22 = vmax.f32 %v3886_v3, %v4014_v16 }
 0x138   : > { %12042 = vrot.lane.b32.xlu0 %v12041_v14, %s13439_s16  ;;  %v11575_v23 = vpop.f32.mrf.mxu0  ;;  %v4488_v24 = vld [vmem:[#allocation3 + $0xb1] sm:$0xff] }
 0x139   : > { %v3633_v25 = vmax.f32 %v3399_v17, %v3401_v12  ;;  %v3144_v26 = vadd.f32 %v13988_v2, %v2881_v55  ;;  %v2886_v27 = vmul.f32 %v11575_v23, %v13983_v0  ;;  %11670 = vmatmul.mubr.msk.bf16.gmra.mxu0 %vm1380_vm2, %v13291_v11  ;;  %4360 = vst.msk [vmem:[#allocation3 + $0xc1] sm:$0xff] %vm3739_vm3, %v4132_v22  ;;  %v3402_v32 = vmax.f32 %v3146_v18, 0.0  ;;  %v4552_v37 = vld [vmem:[#allocation3 + $0xb2] sm:$0xff]  ;;  %v13296_v11 = vld [vmem:[%s13538_s23 + $0x268] sm:$0xff]   ;;  %v14318_v17 = vld [vmem:[%s17707_s3] ss:$0 sm:$0xff] }
 0x13a   : > { %v1998_v28 = vpop.f32.mrf.mxu0  ;;  %v12056_v30 = vpack.i.bf16 %v4488_v24, %v4487_v21  ;;  %11673 = vmatprep.mubr.msk.bf16.mxu0 %vm1380_vm2, %v13292_v15  ;;  %v12061_v45 = vpack.i.bf16 %v4552_v37, %v4551_v36  ;;  %v4615_v60 = vld [vmem:[#allocation3 + $0xb0] sm:$0xff] }
 0x13b   : > { %3762 = vst.msk [vmem:[#allocation2 + $0xb0] sm:$0xff] %vm3739_vm3, %v3633_v25  ;;  %v3400_v33 = vmax.f32 %v3144_v26, 0.0  ;;  %v3149_v34 = vadd.f32 %v13988_v2, %v2886_v27  ;;  %v2884_v35 = vmul.f32 %v13983_v0, %v1998_v28  ;;  %v13299_v14 = vld [vmem:[%s13538_s23 + $0x270] sm:$0xff]  }
 0x13c   : > { %12047 = vrot.lane.b32.xlu0 %v12046_v29, %s13441_s22  ;;  %12057 = vrot.lane.b32.xlu1 %v12056_v30, %s13440_s17  ;;  %v11576_v38 = vpop.f32.mrf.mxu0 }
 0x13d   : > { %v3634_v39 = vmax.f32 %v3400_v33, %v3402_v32  ;;  %v3147_v40 = vadd.f32 %v13988_v2, %v2884_v35  ;;  %v2887_v41 = vmul.f32 %v11576_v38, %v13983_v0  ;;  %v3405_v43 = vmax.f32 %v3149_v34, 0.0 }
 0x13e   : > { %v2001_v44 = vpop.f32.mrf.mxu0  ;;  %v3888_v47 = vld [vmem:[#allocation2 + $0xa0] ss:$2 sm:$0xff]  ;;  %v4016_v48 = vld [vmem:[#allocation2 + $0xa1] ss:$2 sm:$0xff] }
 0x13f   : > { %3763 = vst.msk [vmem:[#allocation2 + $0xb8] sm:$0xff] %vm3739_vm3, %v3634_v39  ;;  %v3403_v49 = vmax.f32 %v3147_v40, 0.0  ;;  %v3150_v50 = vadd.f32 %v13988_v2, %v2887_v41  ;;  %v2885_v51 = vmul.f32 %v13983_v0, %v2001_v44  ;;  %v4133_v52 = vmax.f32 %v3888_v47, %v4016_v48  ;;  %v13300_v39 = vld [vmem:[%s13538_s23 + $0x278] sm:$0xff]  }
 0x140   : > { %12062 = vrot.lane.b32.xlu1 %v12061_v45, %s13439_s16  ;;  %v11579_v53 = vpop.f32.mrf.mxu0  ;;  %v14297_v54 = vld [vmem:[#allocation3 + $0xc2] sm:$0xff] }
 0x141   : > { %v4616_v56 = vld [vmem:[#allocation3 + $0xc0] sm:$0xff]  ;;  %v3635_v57 = vmax.f32 %v3403_v49, %v3405_v43  ;;  %v3148_v58 = vadd.f32 %v13988_v2, %v2885_v51  ;;  %v2890_v59 = vmul.f32 %v11579_v53, %v13983_v0  ;;  %11674 = vmatmul.mubr.msk.bf16.gmra.mxu0 %vm1380_vm2, %v13293_v42  ;;  %4361 = vst.msk [vmem:[#allocation3 + $0xd1] sm:$0xff] %vm3739_vm3, %v4133_v52  ;;  %v3406_v1 = vmax.f32 %v3150_v50, 0.0 }
 0x142   : > { %v2014_v61 = vpop.f32.mrf.mxu0  ;;  %v12066_v62 = vpack.i.bf16 %v14297_v54, %v4552_v37  ;;  %v12071_v63 = vpack.i.bf16 %v4616_v56, %v4615_v60  ;;  %11677 = vmatprep.mubr.msk.bf16.mxu0 %vm1380_vm2, %v13295_v46  ;;  %v4489_v25 = vld [vmem:[#allocation3 + $0xc1] sm:$0xff] }
 0x143   : > { %3764 = vst.msk [vmem:[#allocation2 + $0xc0] sm:$0xff] %vm3739_vm3, %v3635_v57  ;;  %v3404_v4 = vmax.f32 %v3148_v58, 0.0  ;;  %v3153_v5 = vadd.f32 %v13988_v2, %v2890_v59  ;;  %v2888_v6 = vmul.f32 %v13983_v0, %v2014_v61  ;;  %v13303_v43 = vld [vmem:[%s13538_s23 + $0x280] sm:$0xff]  }
 0x144   : > { %12067 = vrot.lane.b32.xlu0 %v12066_v62, %s13440_s17  ;;  %12072 = vrot.lane.b32.xlu1 %v12071_v63, %s13441_s22  ;;  %v11580_v7 = vpop.f32.mrf.mxu0 }
 0x145   : > { %v3636_v8 = vmax.f32 %v3404_v4, %v3406_v1  ;;  %v3151_v9 = vadd.f32 %v13988_v2, %v2888_v6  ;;  %v2891_v10 = vmul.f32 %v11580_v7, %v13983_v0  ;;  %v3409_v12 = vmax.f32 %v3153_v5, 0.0  ;;  %v14324_v0 = vld [vmem:[%s17706_s2] ss:$0 sm:$0xff]  ;;  %v13304_v7 = vld [vmem:[%s13538_s23 + $0x288] sm:$0xff]  }
 0x146   : > { %v2017_v13 = vpop.f32.mrf.mxu0  ;;  %v3890_v15 = vld [vmem:[#allocation2 + $0xb0] ss:$2 sm:$0xff]  ;;  %v4018_v3 = vld [vmem:[#allocation2 + $0xb1] ss:$2 sm:$0xff] }
 0x147   : > { %3765 = vst.msk [vmem:[#allocation2 + $0xc8] sm:$0xff] %vm3739_vm3, %v3636_v8  ;;  %v3407_v16 = vmax.f32 %v3151_v9, 0.0  ;;  %v3154_v18 = vadd.f32 %v14318_v17, %v2891_v10  ;;  %v2889_v2 = vmul.f32 %v14324_v0, %v2017_v13  ;;  %v4134_v55 = vmax.f32 %v3890_v15, %v4018_v3  ;;  %v13307_v10 = vld [vmem:[%s13538_s23 + $0x290] sm:$0xff]  }
 0x148   : > { %v11583_v19 = vpop.f32.mrf.mxu0  ;;  %v4809_v20 = vld [vmem:[#allocation3 + $0xd0] sm:$0xff] }
 0x149   : > { %v4490_v21 = vld [vmem:[#allocation3 + $0xd1] sm:$0xff]  ;;  %v3637_v22 = vmax.f32 %v3407_v16, %v3409_v12  ;;  %v3152_v23 = vadd.f32 %v14318_v17, %v2889_v2  ;;  %v2894_v24 = vmul.f32 %v14324_v0, %v11583_v19  ;;  %11678 = vmatmul.mubr.msk.bf16.gmra.mxu0 %vm1380_vm2, %v13296_v11  ;;  %4362 = vst.msk [vmem:[#allocation3 + $0xe1] sm:$0xff] %vm3739_vm3, %v4134_v55  ;;  %v3410_v29 = vmax.f32 %v3154_v18, 0.0 }
 0x14a   : > { %v2030_v26 = vpop.f32.mrf.mxu0  ;;  %v12076_v27 = vpack.i.bf16 %v4809_v20, %v4616_v56  ;;  %v12086_v28 = vpack.i.bf16 %v4490_v21, %v4489_v25  ;;  %11681 = vmatprep.mubr.msk.bf16.mxu0 %vm1380_vm2, %v13299_v14  ;;  %v4554_v34 = vld [vmem:[#allocation3 + $0xd2] sm:$0xff] }
 0x14b   : > { %3766 = vst.msk [vmem:[#allocation2 + $0xd0] sm:$0xff] %vm3739_vm3, %v3637_v22  ;;  %v3408_v30 = vmax.f32 %v3152_v23, 0.0  ;;  %v3157_v32 = vadd.f32 %v14318_v17, %v2894_v24  ;;  %v2892_v33 = vmul.f32 %v14324_v0, %v2030_v26  ;;  %v12091_v42 = vpack.i.bf16 %v4554_v34, %v14297_v54 }
 0x14c   : > { %12077 = vrot.lane.b32.xlu0 %v12076_v27, %s13439_s16  ;;  %12087 = vrot.lane.b32.xlu1 %v12086_v28, %s13440_s17  ;;  %v11584_v35 = vpop.f32.mrf.mxu0 }
 0x14d   : > { %v3638_v36 = vmax.f32 %v3408_v30, %v3410_v29  ;;  %v3155_v37 = vadd.f32 %v14318_v17, %v2892_v33  ;;  %v2895_v38 = vmul.f32 %v14324_v0, %v11584_v35  ;;  %v3413_v40 = vmax.f32 %v3157_v32, 0.0  ;;  %v13308_v35 = vld [vmem:[%s13538_s23 + $0x298] sm:$0xff]  }
 0x14e   : > { %v2033_v41 = vpop.f32.mrf.mxu0  ;;  %v3892_v44 = vld [vmem:[#allocation2 + $0xc0] ss:$2 sm:$0xff]  ;;  %v4020_v45 = vld [vmem:[#allocation2 + $0xc1] ss:$2 sm:$0xff] }
 0x14f   : > { %3767 = vst.msk [vmem:[#allocation2 + $0xd8] sm:$0xff] %vm3739_vm3, %v3638_v36  ;;  %v3411_v46 = vmax.f32 %v3155_v37, 0.0  ;;  %v3158_v47 = vadd.f32 %v14318_v17, %v2895_v38  ;;  %v2893_v48 = vmul.f32 %v14324_v0, %v2033_v41  ;;  %v4135_v49 = vmax.f32 %v3892_v44, %v4020_v45 }
 0x150   : > { %12082 = vrot.lane.b32.xlu0 %v12086_v28, %s13441_s22  ;;  %12092 = vrot.lane.b32.xlu1 %v12091_v42, %s13439_s16  ;;  %v11587_v50 = vpop.f32.mrf.mxu0  ;;  %v14347_v51 = vld [vmem:[#allocation3 + $0xe2] sm:$0xff] }
 0x151   : > { %v4618_v52 = vld [vmem:[#allocation3 + $0xe0] sm:$0xff]  ;;  %v3639_v53 = vmax.f32 %v3411_v46, %v3413_v40  ;;  %v3156_v54 = vadd.f32 %v14318_v17, %v2893_v48  ;;  %v2898_v56 = vmul.f32 %v14324_v0, %v11587_v50  ;;  %11682 = vmatmul.mubr.msk.bf16.gmra.mxu0 %vm1380_vm2, %v13300_v39  ;;  %4363 = vst.msk [vmem:[#allocation3 + $0xf1] sm:$0xff] %vm3739_vm3, %v4135_v49  ;;  %v3414_v60 = vmax.f32 %v3158_v47, 0.0 }
 0x152   : > { %v2046_v57 = vpop.f32.mrf.mxu0  ;;  %v12096_v58 = vpack.i.bf16 %v14347_v51, %v4554_v34  ;;  %v12101_v59 = vpack.i.bf16 %v4618_v52, %v4809_v20  ;;  %11685 = vmatprep.mubr.msk.bf16.mxu0 %vm1380_vm2, %v13303_v43  ;;  %v4491_v21 = vld [vmem:[#allocation3 + $0xe1] sm:$0xff] }
 0x153   : > { %3768 = vst.msk [vmem:[#allocation2 + $0xe0] sm:$0xff] %vm3739_vm3, %v3639_v53  ;;  %v3412_v61 = vmax.f32 %v3156_v54, 0.0  ;;  %v3161_v62 = vadd.f32 %v14318_v17, %v2898_v56  ;;  %v2896_v63 = vmul.f32 %v14324_v0, %v2046_v57  ;;  %v13311_v39 = vld [vmem:[%s13538_s23 + $0x2a0] sm:$0xff]  }
 0x154   : > { %12097 = vrot.lane.b32.xlu0 %v12096_v58, %s13440_s17  ;;  %12102 = vrot.lane.b32.xlu1 %v12101_v59, %s13441_s22  ;;  %v11588_v1 = vpop.f32.mrf.mxu0 }
 0x155   : > { %v3640_v4 = vmax.f32 %v3412_v61, %v3414_v60  ;;  %v3159_v5 = vadd.f32 %v14318_v17, %v2896_v63  ;;  %v2899_v6 = vmul.f32 %v14324_v0, %v11588_v1  ;;  %v3417_v8 = vmax.f32 %v3161_v62, 0.0  ;;  %v13312_v1 = vld [vmem:[%s13538_s23 + $0x2a8] sm:$0xff]  }
 0x156   : > { %v2049_v9 = vpop.f32.mrf.mxu0  ;;  %v3894_v11 = vld [vmem:[#allocation2 + $0xd0] ss:$2 sm:$0xff]  ;;  %v4022_v12 = vld [vmem:[#allocation2 + $0xd1] ss:$2 sm:$0xff] }
 0x157   : > { %3769 = vst.msk [vmem:[#allocation2 + $0xe8] sm:$0xff] %vm3739_vm3, %v3640_v4  ;;  %v3415_v13 = vmax.f32 %v3159_v5, 0.0  ;;  %v3162_v14 = vadd.f32 %v14318_v17, %v2899_v6  ;;  %v2897_v15 = vmul.f32 %v14324_v0, %v2049_v9  ;;  %v4136_v3 = vmax.f32 %v3894_v11, %v4022_v12  ;;  %v13315_v6 = vld [vmem:[%s13538_s23 + $0x2b0] sm:$0xff]  }
 0x158   : > { %v11591_v16 = vpop.f32.mrf.mxu0  ;;  %v4811_v18 = vld [vmem:[#allocation3 + $0xf0] sm:$0xff] }
 0x159   : > { %v4492_v2 = vld [vmem:[#allocation3 + $0xf1] sm:$0xff]  ;;  %v3641_v55 = vmax.f32 %v3415_v13, %v3417_v8  ;;  %v3160_v19 = vadd.f32 %v14318_v17, %v2897_v15  ;;  %v2902_v20 = vmul.f32 %v14324_v0, %v11591_v16  ;;  %11686 = vmatmul.mubr.msk.bf16.gmra.mxu0 %vm1380_vm2, %v13304_v7  ;;  %4364 = vst.msk [vmem:[#allocation3 + $0x101] sm:$0xff] %vm3739_vm3, %v4136_v3  ;;  %v3418_v25 = vmax.f32 %v3162_v14, 0.0 }
 0x15a   : > { %v2062_v22 = vpop.f32.mrf.mxu0  ;;  %v12106_v23 = vpack.i.bf16 %v4811_v18, %v4618_v52  ;;  %v12116_v24 = vpack.i.bf16 %v4492_v2, %v4491_v21  ;;  %11689 = vmatprep.mubr.msk.bf16.mxu0 %vm1380_vm2, %v13307_v10  ;;  %v4556_v29 = vld [vmem:[#allocation3 + $0xf2] sm:$0xff] }
 0x15b   : > { %3770 = vst.msk [vmem:[#allocation2 + $0xf0] sm:$0xff] %vm3739_vm3, %v3641_v55  ;;  %v3416_v26 = vmax.f32 %v3160_v19, 0.0  ;;  %v3165_v27 = vadd.f32 %v14318_v17, %v2902_v20  ;;  %v2900_v28 = vmul.f32 %v14324_v0, %v2062_v22  ;;  %v12121_v38 = vpack.i.bf16 %v4556_v29, %v14347_v51 }
 0x15c   : > { %12107 = vrot.lane.b32.xlu0 %v12106_v23, %s13439_s16  ;;  %12117 = vrot.lane.b32.xlu1 %v12116_v24, %s13440_s17  ;;  %v11592_v30 = vpop.f32.mrf.mxu0 }
 0x15d   : > { %v3642_v32 = vmax.f32 %v3416_v26, %v3418_v25  ;;  %v3163_v33 = vadd.f32 %v14318_v17, %v2900_v28  ;;  %v2903_v34 = vmul.f32 %v14324_v0, %v11592_v30  ;;  %v3421_v36 = vmax.f32 %v3165_v27, 0.0  ;;  %v13316_v30 = vld [vmem:[%s13538_s23 + $0x2b8] sm:$0xff]  }
 0x15e   : > { %v2065_v37 = vpop.f32.mrf.mxu0  ;;  %v3896_v40 = vld [vmem:[#allocation2 + $0xe0] ss:$2 sm:$0xff]  ;;  %v4024_v41 = vld [vmem:[#allocation2 + $0xe1] ss:$2 sm:$0xff] }
 0x15f   : > { %3771 = vst.msk [vmem:[#allocation2 + $0xf8] sm:$0xff] %vm3739_vm3, %v3642_v32  ;;  %v3419_v42 = vmax.f32 %v3163_v33, 0.0  ;;  %v3166_v43 = vadd.f32 %v14318_v17, %v2903_v34  ;;  %v2901_v44 = vmul.f32 %v14324_v0, %v2065_v37  ;;  %v4137_v45 = vmax.f32 %v3896_v40, %v4024_v41  ;;  %v13319_v33 = vld [vmem:[%s13538_s23 + $0x2c0] sm:$0xff]  }
 0x160   : > { %12112 = vrot.lane.b32.xlu0 %v12116_v24, %s13441_s22  ;;  %12122 = vrot.lane.b32.xlu1 %v12121_v38, %s13439_s16  ;;  %v11595_v46 = vpop.f32.mrf.mxu0  ;;  %v14387_v47 = vld [vmem:[#allocation3 + $0x102] sm:$0xff] }
 0x161   : > { %v4620_v48 = vld [vmem:[#allocation3 + $0x100] sm:$0xff]  ;;  %v3643_v49 = vmax.f32 %v3419_v42, %v3421_v36  ;;  %v3164_v50 = vadd.f32 %v14318_v17, %v2901_v44  ;;  %v2906_v51 = vmul.f32 %v14324_v0, %v11595_v46  ;;  %11690 = vmatmul.mubr.msk.bf16.gmra.mxu0 %vm1380_vm2, %v13308_v35  ;;  %4365 = vst.msk [vmem:[#allocation3 + $0x111] sm:$0xff] %vm3739_vm3, %v4137_v45  ;;  %v3422_v56 = vmax.f32 %v3166_v43, 0.0 }
 0x162   : > { %v2078_v52 = vpop.f32.mrf.mxu0  ;;  %v12126_v53 = vpack.i.bf16 %v14387_v47, %v4556_v29  ;;  %v12131_v54 = vpack.i.bf16 %v4620_v48, %v4811_v18  ;;  %11693 = vmatprep.mubr.msk.bf16.mxu0 %vm1380_vm2, %v13311_v39  ;;  %v4493_v2 = vld [vmem:[#allocation3 + $0x101] sm:$0xff] }
 0x163   : > { %3772 = vst.msk [vmem:[#allocation2 + $0x100] sm:$0xff] %vm3739_vm3, %v3643_v49  ;;  %v3420_v57 = vmax.f32 %v3164_v50, 0.0  ;;  %v3169_v58 = vadd.f32 %v14318_v17, %v2906_v51  ;;  %v2904_v59 = vmul.f32 %v14324_v0, %v2078_v52 }
 0x164   : > { %12127 = vrot.lane.b32.xlu0 %v12126_v53, %s13440_s17  ;;  %12132 = vrot.lane.b32.xlu1 %v12131_v54, %s13441_s22  ;;  %v11596_v60 = vpop.f32.mrf.mxu0 }
 0x165   : > { %v3644_v61 = vmax.f32 %v3420_v57, %v3422_v56  ;;  %v3167_v62 = vadd.f32 %v14318_v17, %v2904_v59  ;;  %v2907_v63 = vmul.f32 %v14324_v0, %v11596_v60  ;;  %v3425_v4 = vmax.f32 %v3169_v58, 0.0  ;;  %v4815_v56 = vld [vmem:[#allocation3 + $0x130] sm:$0xff]  ;;  %v4415_v58 = vld [vmem:[#allocation3] sm:$0xff] }
 0x166   : > { %v2081_v5 = vpop.f32.mrf.mxu0  ;;  %v3898_v7 = vld [vmem:[#allocation2 + $0xf0] ss:$2 sm:$0xff]  ;;  %v4026_v8 = vld [vmem:[#allocation2 + $0xf1] ss:$2 sm:$0xff] }
 0x167   : > { %3773 = vst.msk [vmem:[#allocation2 + $0x108] sm:$0xff] %vm3739_vm3, %v3644_v61  ;;  %v3423_v9 = vmax.f32 %v3167_v62, 0.0  ;;  %v3170_v10 = vadd.f32 %v14318_v17, %v2907_v63  ;;  %v2905_v11 = vmul.f32 %v14324_v0, %v2081_v5  ;;  %v4138_v12 = vmax.f32 %v3898_v7, %v4026_v8  ;;  %v4416_v63 = vld [vmem:[#allocation3 + $0x10] sm:$0xff] }
 0x168   : > { %v11599_v13 = vpop.f32.mrf.mxu0  ;;  %v4813_v14 = vld [vmem:[#allocation3 + $0x110] sm:$0xff] }
 0x169   : > { %v4494_v15 = vld [vmem:[#allocation3 + $0x111] sm:$0xff]  ;;  %v3645_v3 = vmax.f32 %v3423_v9, %v3425_v4  ;;  %v3168_v16 = vadd.f32 %v14318_v17, %v2905_v11  ;;  %v2910_v18 = vmul.f32 %v14324_v0, %v11599_v13  ;;  %11694 = vmatmul.mubr.msk.bf16.gmra.mxu0 %vm1380_vm2, %v13312_v1  ;;  %4366 = vst.msk [vmem:[#allocation3 + $0x121] sm:$0xff] %vm3739_vm3, %v4138_v12  ;;  %v3426_v21 = vmax.f32 %v3170_v10, 0.0  ;;  %v13320_v4 = vld [vmem:[%s13538_s23 + $0x2c8] sm:$0xff]  }
 0x16a   : > { %v2094_v55 = vpop.f32.mrf.mxu0  ;;  %v12136_v19 = vpack.i.bf16 %v4813_v14, %v4620_v48  ;;  %v12146_v20 = vpack.i.bf16 %v4494_v15, %v4493_v2  ;;  %11697 = vmatprep.mubr.msk.bf16.mxu0 %vm1380_vm2, %v13315_v6  ;;  %v4558_v25 = vld [vmem:[#allocation3 + $0x112] sm:$0xff] }
 0x16b   : > { %3774 = vst.msk [vmem:[#allocation2 + $0x110] sm:$0xff] %vm3739_vm3, %v3645_v3  ;;  %v3424_v22 = vmax.f32 %v3168_v16, 0.0  ;;  %v3173_v23 = vadd.f32 %v14318_v17, %v2910_v18  ;;  %v2908_v24 = vmul.f32 %v14324_v0, %v2094_v55  ;;  %v12151_v32 = vpack.i.bf16 %v4558_v25, %v14387_v47  ;;  %v13323_v10 = vld [vmem:[%s13538_s23 + $0x2d0] sm:$0xff]  }
 0x16c   : > { %12137 = vrot.lane.b32.xlu0 %v12136_v19, %s13439_s16  ;;  %12147 = vrot.lane.b32.xlu1 %v12146_v20, %s13440_s17  ;;  %v11600_v26 = vpop.f32.mrf.mxu0  ;;  %v4879_v2 = vld [vmem:[#allocation3 + $0x131] sm:$0xff] }
 0x16d   : > { %v3646_v27 = vmax.f32 %v3424_v22, %v3426_v21  ;;  %v3171_v28 = vadd.f32 %v14318_v17, %v2908_v24  ;;  %v2911_v29 = vmul.f32 %v14324_v0, %v11600_v26  ;;  %v3429_v36 = vmax.f32 %v3173_v23, 0.0  ;;  %v4495_v21 = vld [vmem:[#allocation3 + $0x141] sm:$0xff] }
 0x16e   : > { %v3900_v34 = vld [vmem:[#allocation2 + $0x100] ss:$2 sm:$0xff]  ;;  %v4028_v35 = vld [vmem:[#allocation2 + $0x101] ss:$2 sm:$0xff]  ;;  %v2097_v38 = vpop.f32.mrf.mxu0  ;;  %v11938_v40 = vpop.permute.xlu0 %11937 }
 0x16f   : > { %3775 = vst.msk [vmem:[#allocation2 + $0x118] sm:$0xff] %vm3739_vm3, %v3646_v27  ;;  %v3427_v37 = vmax.f32 %v3171_v28, 0.0  ;;  %v3174_v39 = vadd.f32 %v14318_v17, %v2911_v29  ;;  %v2909_v41 = vmul.f32 %v14324_v0, %v2097_v38  ;;  %v4139_v44 = vmax.f32 %v3900_v34, %v4028_v35  ;;  %v11943_v49 = vpop.permute.xlu1 %11942  ;;  %v4559_v34 = vld [vmem:[#allocation3 + $0x142] sm:$0xff] }
 0x170   : > { %12142 = vrot.lane.b32.xlu0 %v12146_v20, %s13441_s22  ;;  %12152 = vrot.lane.b32.xlu1 %v12151_v32, %s13439_s16  ;;  %v4750_v42 = vld [vmem:[#allocation3 + $0x122] sm:$0xff]  ;;  %v11603_v46 = vpop.f32.mrf.mxu0  ;;  %v11940_v52 = vunpack.i.h.bf16 %v11938_v40  ;;  %v11939_v53 = vunpack.i.l.bf16 %v11938_v40  ;;  %v11945_v62 = vunpack.i.h.bf16 %v11943_v49  ;;  %v11944_v13 = vunpack.i.l.bf16 %v11943_v49 }
 0x171   : > { %v4622_v43 = vld [vmem:[#allocation3 + $0x120] sm:$0xff]  ;;  %v3647_v45 = vmax.f32 %v3427_v37, %v3429_v36  ;;  %11698 = vmatmul.mubr.msk.bf16.gmra.mxu0 %vm1380_vm2, %v13316_v30  ;;  %v12156_v47 = vpack.i.bf16 %v4750_v42, %v4558_v25  ;;  %v3172_v50 = vadd.f32 %v14318_v17, %v2909_v41  ;;  %v2914_v51 = vmul.f32 %v14324_v0, %v11603_v46  ;;  %v4671_v42 = vld [vmem:[#allocation3 + $0x11] sm:$0xff] }
 0x172   : > { %v12171_v48 = vpack.i.bf16 %v4622_v43, %v4813_v14  ;;  %11701 = vmatprep.mubr.msk.bf16.mxu0 %vm1380_vm2, %v13319_v33  ;;  %4367 = vst.msk [vmem:[#allocation3 + $0x151] sm:$0xff] %vm3739_vm3, %v4139_v44  ;;  %v2110_v54 = vpop.f32.mrf.mxu0  ;;  %v3430_v57 = vmax.f32 %v3174_v39, 0.0  ;;  %v12161_v9 = vpack.i.bf16 %v4815_v56, %v4622_v43  ;;  %v6528_v14 = vsel %vm3739_vm3, %v4415_v58, %v11939_v53  ;;  %v4878_v18 = vld [vmem:[#allocation3 + $0x121] sm:$0xff] }
 0x173   : > { %3776 = vst.msk [vmem:[#allocation2 + $0x120] sm:$0xff] %vm3739_vm3, %v3647_v45  ;;  %v3428_v59 = vmax.f32 %v3172_v50, 0.0  ;;  %v3177_v60 = vadd.f32 %v14318_v17, %v2914_v51  ;;  %v2912_v61 = vmul.f32 %v14324_v0, %v2110_v54  ;;  %v6529_v15 = vsel %vm3739_vm3, %v4416_v63, %v11940_v52  ;;  %v13326_v56 = vld [vmem:[%s13538_s23 + $0x2e0] sm:$0xff]  }
 0x174   : > { %12157 = vrot.lane.b32.xlu0 %v12156_v47, %s13440_s17  ;;  %12172 = vrot.lane.b32.xlu1 %v12171_v48, %s13441_s22  ;;  %v11604_v1 = vpop.f32.mrf.mxu0  ;;  %v12166_v30 = vpack.i.bf16 %v4879_v2, %v4878_v18  ;;  %v6593_v36 = vsel %vm6592_vm6, %v6528_v14, %v11944_v13  ;;  %v6594_v37 = vsel %vm6592_vm6, %v6529_v15, %v11945_v62  ;;  %v13324_v47 = vld [vmem:[%s13538_s23 + $0x2d8] sm:$0xff]  }
 0x175   : > { %v3648_v5 = vmax.f32 %v3428_v59, %v3430_v57  ;;  %v3175_v6 = vadd.f32 %v14318_v17, %v2912_v61  ;;  %v2915_v7 = vmul.f32 %v14324_v0, %v11604_v1  ;;  %v3433_v3 = vmax.f32 %v3177_v60, 0.0 }
 0x176   : > { %v14440_v8 = vpop.permute.xlu0 %11947  ;;  %v3902_v11 = vld [vmem:[#allocation2 + $0x110] ss:$2 sm:$0xff]  ;;  %v4030_v12 = vld [vmem:[#allocation2 + $0x111] ss:$2 sm:$0xff]  ;;  %v2113_v16 = vpop.f32.mrf.mxu0 }
 0x177   : > { %3777 = vst.msk [vmem:[#allocation2 + $0x128] sm:$0xff] %vm3739_vm3, %v3648_v5  ;;  %v3431_v55 = vmax.f32 %v3175_v6, 0.0  ;;  %v3178_v19 = vadd.f32 %v14318_v17, %v2915_v7  ;;  %v2913_v20 = vmul.f32 %v14324_v0, %v2113_v16  ;;  %v4140_v22 = vmax.f32 %v3902_v11, %v4030_v12  ;;  %v14451_v27 = vpop.permute.xlu1 %11952  ;;  %v4672_v6 = vld [vmem:[#allocation3 + $0x21] sm:$0xff] }
 0x178   : > { %12162 = vrot.lane.b32.xlu0 %v12161_v9, %s13439_s16  ;;  %v11949_v23 = vunpack.i.l.bf16 %v14440_v8  ;;  %v11607_v24 = vpop.f32.mrf.mxu0  ;;  %v11950_v43 = vunpack.i.h.bf16 %v14440_v8  ;;  %v11955_v44 = vunpack.i.h.bf16 %v14451_v27  ;;  %v11954_v45 = vunpack.i.l.bf16 %v14451_v27 }
 0x179   : > { %11702 = vmatmul.mubr.msk.bf16.gmra.mxu0 %vm1380_vm2, %v13320_v4  ;;  %v4496_v25 = vld [vmem:[#allocation3 + $0x151] sm:$0xff]  ;;  %v3649_v26 = vmax.f32 %v3431_v55, %v3433_v3  ;;  %v3176_v28 = vadd.f32 %v14318_v17, %v2913_v20  ;;  %v2918_v29 = vmul.f32 %v14324_v0, %v11607_v24  ;;  %4368 = vst.msk [vmem:[#allocation3 + $0x161] sm:$0xff] %vm3739_vm3, %v4140_v22  ;;  %v3434_v38 = vmax.f32 %v3178_v19, 0.0 }
 0x17a   : > { %11705 = vmatprep.mubr.msk.bf16.mxu0 %vm1380_vm2, %v13323_v10  ;;  %v2126_v32 = vpop.f32.mrf.mxu0  ;;  %v12176_v33 = vpack.i.bf16 %v4496_v25, %v4495_v21  ;;  %v14457_v35 = vld [vmem:[#allocation3 + $0x152] sm:$0xff]  ;;  %v6722_v48 = vsel %vm3739_vm3, %v4671_v42, %v11949_v23  ;;  %v6723_v12 = vsel %vm3739_vm3, %v4672_v6, %v11950_v43  ;;  %v6658_v14 = vsel %vm6657_vm7, %v6593_v36, %v11954_v45 }
 0x17b   : > { %3778 = vst.msk [vmem:[#allocation2 + $0x130] sm:$0xff] %vm3739_vm3, %v3649_v26  ;;  %v3432_v39 = vmax.f32 %v3176_v28, 0.0  ;;  %v3181_v40 = vadd.f32 %v14318_v17, %v2918_v29  ;;  %v2916_v41 = vmul.f32 %v14324_v0, %v2126_v32  ;;  %v12181_v54 = vpack.i.bf16 %v14457_v35, %v4559_v34  ;;  %v4623_v2 = vld [vmem:[#allocation3 + $0x150] sm:$0xff]  ;;  %v13327_v32 = vld [vmem:[%s13538_s23 + $0x2e8] sm:$0xff]  }
 0x17c   : > { %12167 = vrot.lane.b32.xlu0 %v12166_v30, %s13441_s22  ;;  %12177 = vrot.lane.b32.xlu1 %v12176_v33, %s13440_s17  ;;  %v11608_v46 = vpop.f32.mrf.mxu0  ;;  %v6659_v23 = vsel %vm6657_vm7, %v6594_v37, %v11955_v44 }
 0x17d   : > { %v3650_v49 = vmax.f32 %v3432_v39, %v3434_v38  ;;  %v3179_v50 = vadd.f32 %v14318_v17, %v2916_v41  ;;  %v2919_v51 = vmul.f32 %v14324_v0, %v11608_v46  ;;  %v3437_v57 = vmax.f32 %v3181_v40, 0.0  ;;  %v13328_v39 = vld [vmem:[%s13538_s23 + $0x2f0] sm:$0xff]   ;;  %v4417_v46 = vld [vmem:[#allocation3 + $0x20] sm:$0xff] }
 0x17e   : > { %v11963_v52 = vpop.permute.xlu0 %11962  ;;  %v11958_v53 = vpop.permute.xlu1 %11957  ;;  %v3904_v62 = vld [vmem:[#allocation2 + $0x120] ss:$2 sm:$0xff]  ;;  %v4032_v63 = vld [vmem:[#allocation2 + $0x121] ss:$2 sm:$0xff]  ;;  %v6914_v41 = vpack.c.bf16 %v6659_v23, %v6658_v14 }
 0x17f   : > { %v11964_v58 = vunpack.i.l.bf16 %v11963_v52  ;;  %v11960_v59 = vunpack.i.h.bf16 %v11958_v53  ;;  %v11959_v60 = vunpack.i.l.bf16 %v11958_v53  ;;  %v2129_v61 = vpop.f32.mrf.mxu0  ;;  %3779 = vst.msk [vmem:[#allocation2 + $0x138] sm:$0xff] %vm3739_vm3, %v3650_v49  ;;  %v3435_v1 = vmax.f32 %v3179_v50, 0.0  ;;  %v4418_v50 = vld [vmem:[#allocation3 + $0x30] sm:$0xff] }
 0x180   : > { %v3182_v4 = vadd.f32 %v14318_v17, %v2919_v51  ;;  %v2917_v5 = vmul.f32 %v14324_v0, %v2129_v61  ;;  %v4141_v7 = vmax.f32 %v3904_v62, %v4032_v63  ;;  %v11965_v8 = vunpack.i.h.bf16 %v11963_v52  ;;  %12182 = vrot.lane.b32.xlu1 %v12181_v54, %s13439_s16  ;;  %v14480_v10 = vld [vmem:[#allocation3 + $0x162] sm:$0xff] }
 0x181   : > { %v11611_v9 = vpop.f32.mrf.mxu0  ;;  %11706 = vmatmul.mubr.msk.bf16.gmra.mxu0 %vm1380_vm2, %v13324_v47  ;;  %v14482_v11 = vld [vmem:[#allocation3 + $0x160] sm:$0xff]  ;;  %v6786_v13 = vsel %vm6592_vm6, %v6722_v48, %v11959_v60  ;;  %v3651_v15 = vmax.f32 %v3435_v1, %v3437_v57  ;;  %v6787_v55 = vsel %vm6592_vm6, %v6723_v12, %v11960_v59  ;;  %v12186_v21 = vpack.i.bf16 %v14480_v10, %v14457_v35 }
 0x182   : > { %v3180_v3 = vadd.f32 %v14318_v17, %v2917_v5  ;;  %v2922_v16 = vmul.f32 %v14324_v0, %v11611_v9  ;;  %v11968_v18 = vpop.permute.xlu1 %11967  ;;  %11709 = vmatprep.mubr.msk.bf16.mxu0 %vm1380_vm2, %v13326_v56  ;;  %4369 = vst.msk [vmem:[#allocation3 + $0x171] sm:$0xff] %vm3739_vm3, %v4141_v7  ;;  %v3438_v19 = vmax.f32 %v3182_v4, 0.0  ;;  %v12191_v22 = vpack.i.bf16 %v14482_v11, %v4623_v2  ;;  %v4497_v7 = vld [vmem:[#allocation3 + $0x161] sm:$0xff] }
 0x183   : > { %v2142_v20 = vpop.f32.mrf.mxu0  ;;  %3780 = vst.msk [vmem:[#allocation2 + $0x140] sm:$0xff] %vm3739_vm3, %v3651_v15  ;;  %v6850_v27 = vsel %vm6657_vm7, %v6786_v13, %v11964_v58  ;;  %v11969_v28 = vunpack.i.l.bf16 %v11968_v18  ;;  %12187 = vrot.lane.b32.xlu0 %v12186_v21, %s13440_s17  ;;  %v6851_v30 = vsel %vm6657_vm7, %v6787_v55, %v11965_v8  ;;  %v11970_v34 = vunpack.i.h.bf16 %v11968_v18  ;;  %v4674_v9 = vld [vmem:[#allocation3 + $0x41] sm:$0xff]  ;;  %v13329_v55 = vld [vmem:[%s13538_s23 + $0x2f8] sm:$0xff]  }
 0x184   : > { %v3436_v24 = vmax.f32 %v3180_v3, 0.0  ;;  %v3185_v25 = vadd.f32 %v14318_v17, %v2922_v16  ;;  %v2920_v26 = vmul.f32 %v14324_v0, %v2142_v20  ;;  %12192 = vrot.lane.b32.xlu1 %v12191_v22, %s13441_s22  ;;  %v6915_v40 = vpack.c.bf16 %v6851_v30, %v6850_v27 }
 0x185   : > { %v11612_v29 = vpop.f32.mrf.mxu0  ;;  %v6530_v51 = vsel %vm3739_vm3, %v4417_v46, %v11969_v28  ;;  %v6531_v58 = vsel %vm3739_vm3, %v4418_v50, %v11970_v34 }
 0x186   : > { %v3652_v33 = vmax.f32 %v3436_v24, %v3438_v19  ;;  %v3183_v35 = vadd.f32 %v14318_v17, %v2920_v26  ;;  %v2923_v36 = vmul.f32 %v14324_v0, %v11612_v29  ;;  %v14506_v37 = vpop.permute.xlu1 %11972  ;;  %v14508_v38 = vpop.permute.xlu0 %11977  ;;  %v3906_v43 = vld [vmem:[#allocation2 + $0x130] ss:$2 sm:$0xff]  ;;  %v4034_v44 = vld [vmem:[#allocation2 + $0x131] ss:$2 sm:$0xff]  ;;  %v3441_v45 = vmax.f32 %v3185_v25, 0.0  ;;  %7282 = vmatprep.mubr.bf16.mxu1 %v6915_v40  ;;  %v13330_v24 = vld [vmem:[%s13538_s23 + $0x300] sm:$0xff]  }
 0x187   : > { %v2145_v42 = vpop.f32.mrf.mxu0  ;;  %v11980_v52 = vunpack.i.h.bf16 %v14508_v38  ;;  %v4142_v57 = vmax.f32 %v3906_v43, %v4034_v44  ;;  %7283 = vmatmul.mubr.bf16.vlgmr.msra.gmra.mxu1 %v6914_v41  ;;  %v11974_v60 = vunpack.i.l.bf16 %v14506_v37  ;;  %v11975_v63 = vunpack.i.h.bf16 %v14506_v37 }
 0x188   : > { %3781 = vst.msk [vmem:[#allocation2 + $0x148] sm:$0xff] %vm3739_vm3, %v3652_v33  ;;  %v3439_v47 = vmax.f32 %v3183_v35, 0.0  ;;  %v3186_v48 = vadd.f32 %v14318_v17, %v2923_v36  ;;  %v2921_v49 = vmul.f32 %v14324_v0, %v2145_v42  ;;  %v11979_v1 = vunpack.i.l.bf16 %v14508_v38 }
 0x189   : > { %v11615_v53 = vpop.f32.mrf.mxu0  ;;  %11710 = vmatmul.mubr.msk.bf16.gmra.mxu0 %vm1380_vm2, %v13327_v32  ;;  %v14517_v54 = vld [vmem:[#allocation3 + $0x170] sm:$0xff]  ;;  %4370 = vst.msk [vmem:[#allocation3 + $0x181] sm:$0xff] %vm3739_vm3, %v4142_v57  ;;  %v6725_v3 = vsel %vm3739_vm3, %v4674_v9, %v11980_v52  ;;  %v6595_v25 = vsel %vm6592_vm6, %v6530_v51, %v11974_v60  ;;  %v6596_v30 = vsel %vm6592_vm6, %v6531_v58, %v11975_v63  ;;  %v13331_v63 = vld [vmem:[%s13538_s23 + $0x308] sm:$0xff]  }
 0x18a   : > { %v4498_v56 = vld [vmem:[#allocation3 + $0x171] sm:$0xff]  ;;  %v3653_v59 = vmax.f32 %v3439_v47, %v3441_v45  ;;  %v3184_v61 = vadd.f32 %v14318_v17, %v2921_v49  ;;  %v11983_v62 = vpop.permute.xlu1 %11982  ;;  %11713 = vmatprep.mubr.msk.bf16.mxu0 %vm1380_vm2, %v13328_v39  ;;  %v2926_v4 = vmul.f32 %v14324_v0, %v11615_v53  ;;  %v12196_v6 = vpack.i.bf16 %v14517_v54, %v14482_v11 }
 0x18b   : > { %v2158_v5 = vpop.f32.mrf.mxu0  ;;  %v3442_v8 = vmax.f32 %v3186_v48, 0.0  ;;  %v12206_v14 = vpack.i.bf16 %v4498_v56, %v4497_v7  ;;  %v4562_v15 = vld [vmem:[#allocation3 + $0x172] sm:$0xff]  ;;  %v11985_v18 = vunpack.i.h.bf16 %v11983_v62  ;;  %v11984_v11 = vunpack.i.l.bf16 %v11983_v62 }
 0x18c   : > { %3782 = vst.msk [vmem:[#allocation2 + $0x150] sm:$0xff] %vm3739_vm3, %v3653_v59  ;;  %v3440_v12 = vmax.f32 %v3184_v61, 0.0  ;;  %v2924_v13 = vmul.f32 %v14324_v0, %v2158_v5  ;;  %v3189_v16 = vadd.f32 %v14318_v17, %v2926_v4  ;;  %12197 = vrot.lane.b32.xlu0 %v12196_v6, %s13439_s16  ;;  %v12211_v29 = vpack.i.bf16 %v4562_v15, %v14480_v10  ;;  %v4673_v32 = vld [vmem:[#allocation3 + $0x31] sm:$0xff] }
 0x18d   : > { %v11616_v2 = vpop.f32.mrf.mxu0  ;;  %12207 = vrot.lane.b32.xlu1 %v12206_v14, %s13440_s17  ;;  %v6724_v37 = vsel %vm3739_vm3, %v4673_v32, %v11979_v1  ;;  %v14551_v10 = vsel %vm6657_vm7, %v6595_v25, %v11984_v11  ;;  %v6661_v39 = vsel %vm6657_vm7, %v6596_v30, %v11985_v18  ;;  %v13332_v9 = vld [vmem:[%s13538_s23 + $0x310] sm:$0xff]  }
 0x18e   : > { %v3654_v19 = vmax.f32 %v3440_v12, %v3442_v8  ;;  %v3187_v20 = vadd.f32 %v14318_v17, %v2924_v13  ;;  %v2927_v21 = vmul.f32 %v14324_v0, %v11616_v2  ;;  %v11988_v22 = vpop.permute.xlu0 %11987  ;;  %v14538_v23 = vpop.permute.xlu1 %11997  ;;  %v3445_v33 = vmax.f32 %v3189_v16, 0.0 }
 0x18f   : > { %v11990_v26 = vunpack.i.h.bf16 %v11988_v22  ;;  %v11989_v27 = vunpack.i.l.bf16 %v11988_v22  ;;  %v2161_v28 = vpop.f32.mrf.mxu0  ;;  %v3908_v7 = vld [vmem:[#allocation2 + $0x140] ss:$2 sm:$0xff]  ;;  %v4036_v8 = vld [vmem:[#allocation2 + $0x141] ss:$2 sm:$0xff]  ;;  %v11999_v12 = vunpack.i.l.bf16 %v14538_v23  ;;  %v12000_v2 = vunpack.i.h.bf16 %v14538_v23 }
 0x190   : > { %3783 = vst.msk [vmem:[#allocation2 + $0x158] sm:$0xff] %vm3739_vm3, %v3654_v19  ;;  %v3443_v34 = vmax.f32 %v3187_v20, 0.0  ;;  %v3190_v35 = vadd.f32 %v14318_v17, %v2927_v21  ;;  %v2925_v36 = vmul.f32 %v14324_v0, %v2161_v28  ;;  %12202 = vrot.lane.b32.xlu0 %v12206_v14, %s13441_s22  ;;  %v14558_v44 = vld [vmem:[#allocation3 + $0x182] sm:$0xff]  ;;  %v6917_v20 = vpack.c.bf16 %v6661_v39, %v14551_v10 }
 0x191   : > { %v11619_v38 = vpop.f32.mrf.mxu0  ;;  %11714 = vmatmul.mubr.msk.bf16.gmra.mxu0 %vm1380_vm2, %v13329_v55  ;;  %12212 = vrot.lane.b32.xlu1 %v12211_v29, %s13439_s16  ;;  %v14560_v45 = vld [vmem:[#allocation3 + $0x180] sm:$0xff]  ;;  %v6788_v46 = vsel %vm6592_vm6, %v6724_v37, %v11989_v27  ;;  %v6789_v51 = vsel %vm6592_vm6, %v6725_v3, %v11990_v26  ;;  %v12216_v57 = vpack.i.bf16 %v14558_v44, %v4562_v15 }
 0x192   : > { %v3655_v40 = vmax.f32 %v3443_v34, %v3445_v33  ;;  %v3188_v41 = vadd.f32 %v14318_v17, %v2925_v36  ;;  %v11993_v42 = vpop.permute.xlu0 %11992  ;;  %v14556_v43 = vpop.permute.xlu1 %12002  ;;  %11717 = vmatprep.mubr.msk.bf16.mxu0 %vm1380_vm2, %v13330_v24  ;;  %v2930_v47 = vmul.f32 %v14324_v0, %v11619_v38  ;;  %v3446_v52 = vmax.f32 %v3190_v35, 0.0  ;;  %v4419_v22 = vld [vmem:[#allocation3 + $0x40] sm:$0xff]  ;;  %v4420_v34 = vld [vmem:[#allocation3 + $0x50] sm:$0xff] }
 0x193   : > { %v11995_v48 = vunpack.i.h.bf16 %v11993_v42  ;;  %v11994_v49 = vunpack.i.l.bf16 %v11993_v42  ;;  %v2174_v50 = vpop.f32.mrf.mxu0  ;;  %v12221_v59 = vpack.i.bf16 %v14560_v45, %v14517_v54  ;;  %v12004_v55 = vunpack.i.l.bf16 %v14556_v43  ;;  %v13333_v42 = vld [vmem:[%s13538_s23 + $0x318] sm:$0xff]  }
 0x194   : > { %3784 = vst.msk [vmem:[#allocation2 + $0x160] sm:$0xff] %vm3739_vm3, %v3655_v40  ;;  %v3444_v53 = vmax.f32 %v3188_v41, 0.0  ;;  %v2928_v56 = vmul.f32 %v14324_v0, %v2174_v50  ;;  %v3193_v58 = vadd.f32 %v14318_v17, %v2930_v47  ;;  %12217 = vrot.lane.b32.xlu0 %v12216_v57, %s13440_s17  ;;  %v4143_v21 = vmax.f32 %v3908_v7, %v4036_v8  ;;  %v4421_v7 = vld [vmem:[#allocation3 + $0x60] sm:$0xff] }
 0x195   : > { %v11620_v60 = vpop.f32.mrf.mxu0  ;;  %v6852_v61 = vsel %vm6657_vm7, %v6788_v46, %v11994_v49  ;;  %v6853_v62 = vsel %vm6657_vm7, %v6789_v51, %v11995_v48  ;;  %12222 = vrot.lane.b32.xlu1 %v12221_v59, %s13441_s22  ;;  %v12005_v24 = vunpack.i.h.bf16 %v14556_v43  ;;  %v6532_v23 = vsel %vm3739_vm3, %v4419_v22, %v11999_v12  ;;  %v13334_v51 = vld [vmem:[%s13538_s23 + $0x320] sm:$0xff]   ;;  %v4675_v59 = vld [vmem:[#allocation3 + $0x51] sm:$0xff] }
 0x196   : > { %v3656_v1 = vmax.f32 %v3444_v53, %v3446_v52  ;;  %v3191_v4 = vadd.f32 %v14318_v17, %v2928_v56  ;;  %v2931_v5 = vmul.f32 %v14324_v0, %v11620_v60  ;;  %v6918_v6 = vpack.c.bf16 %v6853_v62, %v6852_v61  ;;  %v12013_v3 = vpop.permute.xlu1 %12012  ;;  %v12008_v26 = vpop.permute.xlu0 %12007  ;;  %4371 = vst.msk [vmem:[#allocation3 + $0x191] sm:$0xff] %vm3739_vm3, %v4143_v21  ;;  %v4676_v60 = vld [vmem:[#allocation3 + $0x61] sm:$0xff] }
 0x197   : > { %v2177_v54 = vpop.f32.mrf.mxu0  ;;  %v3449_v13 = vmax.f32 %v3193_v58, 0.0  ;;  %v3910_v18 = vld [vmem:[#allocation2 + $0x150] ss:$2 sm:$0xff]  ;;  %v4038_v11 = vld [vmem:[#allocation2 + $0x151] ss:$2 sm:$0xff]  ;;  %v12015_v29 = vunpack.i.h.bf16 %v12013_v3  ;;  %v12014_v30 = vunpack.i.l.bf16 %v12013_v3  ;;  %v6533_v10 = vsel %vm3739_vm3, %v4420_v34, %v12000_v2 }
 0x198   : > { %3785 = vst.msk [vmem:[#allocation2 + $0x168] sm:$0xff] %vm3739_vm3, %v3656_v1  ;;  %v3447_v14 = vmax.f32 %v3191_v4, 0.0  ;;  %v3194_v15 = vadd.f32 %v14318_v17, %v2931_v5  ;;  %v2929_v16 = vmul.f32 %v14324_v0, %v2177_v54  ;;  %7290 = vmatprep.mubr.bf16.mxu1 %v6918_v6  ;;  %v4144_v33 = vmax.f32 %v3910_v18, %v4038_v11  ;;  %v4499_v54 = vld [vmem:[#allocation3 + $0x181] sm:$0xff] }
 0x199   : > { %v11623_v19 = vpop.f32.mrf.mxu0  ;;  %11718 = vmatmul.mubr.msk.bf16.gmra.mxu0 %vm1380_vm2, %v13331_v63  ;;  %7291 = vmatmul.mubr.bf16.gmra.mxu1 %v6917_v20  ;;  %v12010_v39 = vunpack.i.h.bf16 %v12008_v26  ;;  %v12009_v40 = vunpack.i.l.bf16 %v12008_v26  ;;  %v6597_v43 = vsel %vm6592_vm6, %v6532_v23, %v12004_v55  ;;  %v6598_v52 = vsel %vm6592_vm6, %v6533_v10, %v12005_v24  ;;  %v14645_v26 = vld [vmem:[%s17707_s3] ss:$0 sm:$0xff] }
 0x19a   : > { %v3657_v25 = vmax.f32 %v3447_v14, %v3449_v13  ;;  %v3192_v27 = vadd.f32 %v14318_v17, %v2929_v16  ;;  %v2934_v28 = vmul.f32 %v14324_v0, %v11623_v19  ;;  %11721 = vmatprep.mubr.msk.bf16.mxu0 %vm1380_vm2, %v13332_v9  ;;  %v3450_v35 = vmax.f32 %v3194_v15, 0.0  ;;  %4372 = vst.msk [vmem:[#allocation3 + $0x1a1] sm:$0xff] %vm3739_vm3, %v4144_v33 }
 0x19b   : > { %v2190_v32 = vpop.f32.mrf.mxu0  ;;  %v14609_v57 = vsel %vm6657_vm7, %v6597_v43, %v12014_v30  ;;  %v14612_v58 = vsel %vm6657_vm7, %v6598_v52, %v12015_v29  ;;  %v6726_v4 = vsel %vm3739_vm3, %v4675_v59, %v12009_v40  ;;  %v6727_v5 = vsel %vm3739_vm3, %v4676_v60, %v12010_v39 }
 0x19c   : > { %3786 = vst.msk [vmem:[#allocation2 + $0x170] sm:$0xff] %vm3739_vm3, %v3657_v25  ;;  %v3448_v36 = vmax.f32 %v3192_v27, 0.0  ;;  %v3197_v37 = vadd.f32 %v14318_v17, %v2934_v28  ;;  %v2932_v38 = vmul.f32 %v14324_v0, %v2190_v32  ;;  %v6920_v19 = vpack.c.bf16 %v14612_v58, %v14609_v57  ;;  %v14651_v28 = vld [vmem:[%s17706_s2] ss:$0 sm:$0xff] }
 0x19d   : > { %v11624_v41 = vpop.f32.mrf.mxu0  ;;  %v14620_v12 = vld [vmem:[#allocation3 + $0x190] sm:$0xff] }
 0x19e   : > { %v3658_v46 = vmax.f32 %v3448_v36, %v3450_v35  ;;  %v3195_v47 = vadd.f32 %v14318_v17, %v2932_v38  ;;  %v2935_v48 = vmul.f32 %v14324_v0, %v11624_v41  ;;  %v12018_v49 = vpop.permute.xlu0 %12017  ;;  %v14603_v50 = vpop.permute.xlu1 %12027  ;;  %v3453_v61 = vmax.f32 %v3197_v37, 0.0  ;;  %v4500_v13 = vld [vmem:[#allocation3 + $0x191] sm:$0xff]  ;;  %v13335_v38 = vld [vmem:[%s13538_s23 + $0x328] sm:$0xff]  }
 0x19f   : > { %v12029_v53 = vunpack.i.l.bf16 %v14603_v50  ;;  %v2193_v56 = vpop.f32.mrf.mxu0  ;;  %v12019_v6 = vunpack.i.l.bf16 %v12018_v49  ;;  %v12020_v14 = vunpack.i.h.bf16 %v12018_v49  ;;  %v12226_v18 = vpack.i.bf16 %v14620_v12, %v14560_v45  ;;  %v14633_v21 = vld [vmem:[#allocation3 + $0x192] sm:$0xff]  ;;  %v3912_v43 = vld [vmem:[#allocation2 + $0x160] ss:$2 sm:$0xff] }
 0x1a0   : > { %3787 = vst.msk [vmem:[#allocation2 + $0x178] sm:$0xff] %vm3739_vm3, %v3658_v46  ;;  %v3451_v62 = vmax.f32 %v3195_v47, 0.0  ;;  %v3198_v63 = vadd.f32 %v14318_v17, %v2935_v48  ;;  %v2933_v1 = vmul.f32 %v14324_v0, %v2193_v56  ;;  %v12236_v11 = vpack.i.bf16 %v4500_v13, %v4499_v54  ;;  %v4040_v46 = vld [vmem:[#allocation2 + $0x161] ss:$2 sm:$0xff]  ;;  %v13336_v47 = vld [vmem:[%s13538_s23 + $0x330] sm:$0xff]  }
 0x1a1   : > { %v11627_v8 = vpop.f32.mrf.mxu0  ;;  %11722 = vmatmul.mubr.msk.bf16.gmra.mxu0 %vm1380_vm2, %v13333_v42  ;;  %v14628_v2 = vsel %vm3739_vm3, %v4421_v7, %v12029_v53  ;;  %v14637_v25 = vld [vmem:[#allocation3 + $0x1a2] sm:$0xff]  ;;  %12227 = vrot.lane.b32.xlu0 %v12226_v18, %s13439_s16  ;;  %v12030_v45 = vunpack.i.h.bf16 %v14603_v50  ;;  %v6790_v32 = vsel %vm6592_vm6, %v6726_v4, %v12019_v6  ;;  %v6791_v36 = vsel %vm6592_vm6, %v6727_v5, %v12020_v14 }
 0x1a2   : > { %v3659_v9 = vmax.f32 %v3451_v62, %v3453_v61  ;;  %v3196_v15 = vadd.f32 %v14318_v17, %v2933_v1  ;;  %v2938_v3 = vmul.f32 %v14324_v0, %v11627_v8  ;;  %v12023_v16 = vpop.permute.xlu0 %12022  ;;  %11725 = vmatprep.mubr.msk.bf16.mxu0 %vm1380_vm2, %v13334_v51  ;;  %v3454_v20 = vmax.f32 %v3198_v63, 0.0  ;;  %v14635_v24 = vpop.permute.xlu1 %12032  ;;  %12237 = vrot.lane.b32.xlu1 %v12236_v11, %s13440_s17  ;;  %v14654_v29 = vld [vmem:[#allocation3 + $0x1a0] sm:$0xff] }
 0x1a3   : > { %v2206_v55 = vpop.f32.mrf.mxu0  ;;  %v12025_v0 = vunpack.i.h.bf16 %v12023_v16  ;;  %v12024_v22 = vunpack.i.l.bf16 %v12023_v16  ;;  %v12241_v10 = vpack.i.bf16 %v14633_v21, %v14558_v44  ;;  %v12035_v39 = vunpack.i.h.bf16 %v14635_v24 }
 0x1a4   : > { %3788 = vst.msk [vmem:[#allocation2 + $0x180] sm:$0xff] %vm3739_vm3, %v3659_v9  ;;  %v3452_v17 = vmax.f32 %v3196_v15, 0.0  ;;  %v3201_v27 = vadd.f32 %v14645_v26, %v2938_v3  ;;  %v2936_v23 = vmul.f32 %v14651_v28, %v2206_v55  ;;  %v12246_v41 = vpack.i.bf16 %v14637_v25, %v14633_v21  ;;  %v4677_v15 = vld [vmem:[#allocation3 + $0x71] sm:$0xff]  ;;  %v4678_v55 = vld [vmem:[#allocation3 + $0x81] sm:$0xff] }
 0x1a5   : > { %v11628_v30 = vpop.f32.mrf.mxu0  ;;  %v6854_v37 = vsel %vm6657_vm7, %v6790_v32, %v12024_v22  ;;  %v12251_v48 = vpack.i.bf16 %v14654_v29, %v14620_v12  ;;  %v6855_v51 = vsel %vm6657_vm7, %v6791_v36, %v12025_v0  ;;  %12232 = vrot.lane.b32.xlu0 %v12236_v11, %s13441_s22  ;;  %v4145_v7 = vmax.f32 %v3912_v43, %v4040_v46 }
 0x1a6   : > { %v3660_v33 = vmax.f32 %v3452_v17, %v3454_v20  ;;  %v2939_v34 = vmul.f32 %v14651_v28, %v11628_v30  ;;  %v12038_v35 = vpop.permute.xlu0 %12037  ;;  %v3199_v40 = vadd.f32 %v14645_v26, %v2936_v23  ;;  %12242 = vrot.lane.b32.xlu1 %v12241_v10, %s13439_s16  ;;  %v3457_v56 = vmax.f32 %v3201_v27, 0.0  ;;  %v14676_v1 = vpop.permute.xlu1 %12052  ;;  %v13337_v30 = vld [vmem:[%s13538_s23 + $0x338] sm:$0xff]  }
 0x1a7   : > { %v2209_v42 = vpop.f32.mrf.mxu0  ;;  %v3914_v52 = vld [vmem:[#allocation2 + $0x170] ss:$2 sm:$0xff]  ;;  %v4042_v53 = vld [vmem:[#allocation2 + $0x171] ss:$2 sm:$0xff]  ;;  %v12039_v60 = vunpack.i.l.bf16 %v12038_v35  ;;  %v6921_v61 = vpack.c.bf16 %v6855_v51, %v6854_v37  ;;  %v12040_v63 = vunpack.i.h.bf16 %v12038_v35  ;;  %4373 = vst.msk [vmem:[#allocation3 + $0x1b1] sm:$0xff] %vm3739_vm3, %v4145_v7  ;;  %v12034_v11 = vunpack.i.l.bf16 %v14635_v24  ;;  %v13338_v37 = vld [vmem:[%s13538_s23 + $0x340] sm:$0xff]  }
 0x1a8   : > { %3789 = vst.msk [vmem:[#allocation2 + $0x188] sm:$0xff] %vm3739_vm3, %v3660_v33  ;;  %v3202_v49 = vadd.f32 %v14645_v26, %v2939_v34  ;;  %v2937_v44 = vmul.f32 %v14651_v28, %v2209_v42  ;;  %v3455_v59 = vmax.f32 %v3199_v40, 0.0  ;;  %v4146_v13 = vmax.f32 %v3914_v52, %v4042_v53  ;;  %v4501_v53 = vld [vmem:[#allocation3 + $0x1a1] sm:$0xff] }
 0x1a9   : > { %v11631_v62 = vpop.f32.mrf.mxu0  ;;  %11726 = vmatmul.mubr.msk.bf16.gmra.mxu0 %vm1380_vm2, %v13335_v38  ;;  %7298 = vmatprep.mubr.bf16.mxu1 %v6921_v61  ;;  %v6728_v20 = vsel %vm3739_vm3, %v4677_v15, %v12039_v60  ;;  %v12055_v17 = vunpack.i.h.bf16 %v14676_v1  ;;  %v12054_v57 = vunpack.i.l.bf16 %v14676_v1  ;;  %v4422_v38 = vld [vmem:[#allocation3 + $0x70] sm:$0xff] }
 0x1aa   : > { %v3200_v4 = vadd.f32 %v14645_v26, %v2937_v44  ;;  %v2942_v5 = vmul.f32 %v14651_v28, %v11631_v62  ;;  %v12043_v6 = vpop.permute.xlu0 %12042  ;;  %v3661_v8 = vmax.f32 %v3455_v59, %v3457_v56  ;;  %11729 = vmatprep.mubr.msk.bf16.mxu0 %vm1380_vm2, %v13336_v47  ;;  %v3458_v14 = vmax.f32 %v3202_v49, 0.0  ;;  %7299 = vmatmul.mubr.bf16.gmra.mxu1 %v6920_v19 }
 0x1ab   : > { %v12045_v9 = vunpack.i.h.bf16 %v12043_v6  ;;  %v12044_v12 = vunpack.i.l.bf16 %v12043_v6  ;;  %v2222_v54 = vpop.f32.mrf.mxu0  ;;  %12247 = vrot.lane.b32.xlu0 %v12246_v41, %s13440_s17  ;;  %12252 = vrot.lane.b32.xlu1 %v12251_v48, %s13441_s22  ;;  %4374 = vst.msk [vmem:[#allocation3 + $0x1c1] sm:$0xff] %vm3739_vm3, %v4146_v13  ;;  %v6729_v19 = vsel %vm3739_vm3, %v4678_v55, %v12040_v63  ;;  %v6535_v43 = vsel %vm3739_vm3, %v4422_v38, %v12030_v45 }
 0x1ac   : > { %v3456_v3 = vmax.f32 %v3200_v4, 0.0  ;;  %v3205_v16 = vadd.f32 %v14645_v26, %v2942_v5  ;;  %v2940_v18 = vmul.f32 %v14651_v28, %v2222_v54  ;;  %3790 = vst.msk [vmem:[#allocation2 + $0x190] sm:$0xff] %vm3739_vm3, %v3661_v8  ;;  %v6599_v49 = vsel %vm6592_vm6, %v14628_v2, %v12034_v11  ;;  %v13339_v54 = vld [vmem:[%s13538_s23 + $0x348] sm:$0xff]  }
 0x1ad   : > { %v11632_v58 = vpop.f32.mrf.mxu0  ;;  %v6792_v35 = vsel %vm6592_vm6, %v6728_v20, %v12044_v12  ;;  %v6793_v36 = vsel %vm6592_vm6, %v6729_v19, %v12045_v9  ;;  %v6600_v50 = vsel %vm6592_vm6, %v6535_v43, %v12035_v39  ;;  %v6664_v61 = vsel %vm6657_vm7, %v6599_v49, %v12054_v57  ;;  %v4823_v43 = vld [vmem:[#allocation3 + $0x1d0] sm:$0xff] }
 0x1ae   : > { %v3662_v21 = vmax.f32 %v3456_v3, %v3458_v14  ;;  %v3203_v0 = vadd.f32 %v14645_v26, %v2940_v18  ;;  %v2943_v22 = vmul.f32 %v14651_v28, %v11632_v58  ;;  %v12048_v27 = vpop.permute.xlu0 %12047  ;;  %v14699_v23 = vpop.permute.xlu1 %12057  ;;  %v3461_v10 = vmax.f32 %v3205_v16, 0.0  ;;  %v14721_v45 = vld [vmem:[#allocation3 + $0x1b0] sm:$0xff] }
 0x1af   : > { %v12050_v32 = vunpack.i.h.bf16 %v12048_v27  ;;  %v12049_v33 = vunpack.i.l.bf16 %v12048_v27  ;;  %v2225_v34 = vpop.f32.mrf.mxu0  ;;  %v4502_v56 = vld [vmem:[#allocation3 + $0x1b1] sm:$0xff]  ;;  %v6665_v2 = vsel %vm6657_vm7, %v6600_v50, %v12055_v17  ;;  %v12256_v62 = vpack.i.bf16 %v14721_v45, %v14654_v29  ;;  %v3916_v3 = vld [vmem:[#allocation2 + $0x180] ss:$2 sm:$0xff]  ;;  %v4044_v57 = vld [vmem:[#allocation2 + $0x181] ss:$2 sm:$0xff] }
 0x1b0   : > { %3791 = vst.msk [vmem:[#allocation2 + $0x198] sm:$0xff] %vm3739_vm3, %v3662_v21  ;;  %v3459_v40 = vmax.f32 %v3203_v0, 0.0  ;;  %v3206_v41 = vadd.f32 %v14645_v26, %v2943_v22  ;;  %v2941_v42 = vmul.f32 %v14651_v28, %v2225_v34  ;;  %v12266_v24 = vpack.i.bf16 %v4502_v56, %v4501_v53  ;;  %v4566_v4 = vld [vmem:[#allocation3 + $0x1b2] sm:$0xff] }
 0x1b1   : > { %v11635_v46 = vpop.f32.mrf.mxu0  ;;  %v6856_v47 = vsel %vm6657_vm7, %v6792_v35, %v12049_v33  ;;  %v6857_v48 = vsel %vm6657_vm7, %v6793_v36, %v12050_v32  ;;  %11730 = vmatmul.mubr.msk.bf16.gmra.mxu0 %vm1380_vm2, %v13337_v30  ;;  %12257 = vrot.lane.b32.xlu0 %v12256_v62, %s13439_s16  ;;  %v6923_v12 = vpack.c.bf16 %v6665_v2, %v6664_v61  ;;  %v13340_v16 = vld [vmem:[%s13538_s23 + $0x350] sm:$0xff]   ;;  %v12060_v18 = vunpack.i.h.bf16 %v14699_v23  ;;  %v4423_v32 = vld [vmem:[#allocation3 + $0xa0] sm:$0xff] }
 0x1b2   : > { %v3663_v44 = vmax.f32 %v3459_v40, %v3461_v10  ;;  %v3204_v51 = vadd.f32 %v14645_v26, %v2941_v42  ;;  %v2946_v52 = vmul.f32 %v14651_v28, %v11635_v46  ;;  %v6924_v60 = vpack.c.bf16 %v6857_v48, %v6856_v47  ;;  %11733 = vmatprep.mubr.msk.bf16.mxu0 %vm1380_vm2, %v13338_v37  ;;  %v14729_v1 = vpop.permute.xlu1 %12062  ;;  %v4758_v29 = vld [vmem:[#allocation3 + $0x1c2] sm:$0xff]  ;;  %v4424_v40 = vld [vmem:[#allocation3 + $0xb0] sm:$0xff] }
 0x1b3   : > { %v2238_v59 = vpop.f32.mrf.mxu0  ;;  %v3462_v39 = vmax.f32 %v3206_v41, 0.0  ;;  %12267 = vrot.lane.b32.xlu1 %v12266_v24, %s13440_s17  ;;  %v14738_v14 = vld [vmem:[#allocation3 + $0x1c0] sm:$0xff]  ;;  %v12271_v11 = vpack.i.bf16 %v4566_v4, %v14637_v25  ;;  %v12059_v21 = vunpack.i.l.bf16 %v14699_v23  ;;  %v12276_v27 = vpack.i.bf16 %v4758_v29, %v4566_v4 }
 0x1b4   : > { %3792 = vst.msk [vmem:[#allocation2 + $0x1a0] sm:$0xff] %vm3739_vm3, %v3663_v44  ;;  %v3460_v63 = vmax.f32 %v3204_v51, 0.0  ;;  %v3209_v5 = vadd.f32 %v14645_v26, %v2946_v52  ;;  %v2944_v6 = vmul.f32 %v14651_v28, %v2238_v59  ;;  %7306 = vmatprep.mubr.bf16.mxu1 %v6924_v60  ;;  %v12291_v25 = vpack.i.bf16 %v14738_v14, %v14721_v45  ;;  %v4679_v45 = vld [vmem:[#allocation3 + $0xb1] sm:$0xff]  ;;  %v4886_v59 = vld [vmem:[#allocation3 + $0x1c1] sm:$0xff] }
 0x1b5   : > { %v11636_v7 = vpop.f32.mrf.mxu0  ;;  %7307 = vmatmul.mubr.bf16.gmra.mxu1 %v6923_v12  ;;  %12262 = vrot.lane.b32.xlu0 %v12266_v24, %s13441_s22  ;;  %v4147_v38 = vmax.f32 %v3916_v3, %v4044_v57  ;;  %v6536_v48 = vsel %vm3739_vm3, %v4423_v32, %v12059_v21  ;;  %v6537_v49 = vsel %vm3739_vm3, %v4424_v40, %v12060_v18  ;;  %v12064_v44 = vunpack.i.l.bf16 %v14729_v1  ;;  %v4887_v60 = vld [vmem:[#allocation3 + $0x1d1] sm:$0xff]  ;;  %v13342_v12 = vld [vmem:[%s13538_s23 + $0x360] sm:$0xff]  }
 0x1b6   : > { %v3664_v8 = vmax.f32 %v3460_v63, %v3462_v39  ;;  %v2947_v9 = vmul.f32 %v14651_v28, %v11636_v7  ;;  %v3207_v13 = vadd.f32 %v14645_v26, %v2944_v6  ;;  %v14745_v20 = vpop.permute.xlu0 %12067  ;;  %v3465_v0 = vmax.f32 %v3209_v5, 0.0  ;;  %v14753_v33 = vpop.permute.xlu1 %12072  ;;  %v13341_v5 = vld [vmem:[%s13538_s23 + $0x358] sm:$0xff]   ;;  %v4680_v6 = vld [vmem:[#allocation3 + $0xc1] sm:$0xff] }
 0x1b7   : > { %v2241_v15 = vpop.f32.mrf.mxu0  ;;  %v3918_v58 = vld [vmem:[#allocation2 + $0x190] ss:$2 sm:$0xff]  ;;  %v4046_v19 = vld [vmem:[#allocation2 + $0x191] ss:$2 sm:$0xff]  ;;  %12272 = vrot.lane.b32.xlu1 %v12271_v11, %s13439_s16  ;;  %v12069_v23 = vunpack.i.l.bf16 %v14745_v20  ;;  %v12070_v51 = vunpack.i.h.bf16 %v14745_v20  ;;  %4375 = vst.msk [vmem:[#allocation3 + $0x1f1] sm:$0xff] %vm3739_vm3, %v4147_v38  ;;  %v12065_v50 = vunpack.i.h.bf16 %v14729_v1  ;;  %v12075_v39 = vunpack.i.h.bf16 %v14753_v33 }
 0x1b8   : > { %3793 = vst.msk [vmem:[#allocation2 + $0x1a8] sm:$0xff] %vm3739_vm3, %v3664_v8  ;;  %v3210_v55 = vadd.f32 %v14645_v26, %v2947_v9  ;;  %v2945_v17 = vmul.f32 %v14651_v28, %v2241_v15  ;;  %v3463_v22 = vmax.f32 %v3207_v13, 0.0  ;;  %v4148_v10 = vmax.f32 %v3918_v58, %v4046_v19 }
 0x1b9   : > { %v11639_v30 = vpop.f32.mrf.mxu0  ;;  %11734 = vmatmul.mubr.msk.bf16.gmra.mxu0 %vm1380_vm2, %v13339_v54  ;;  %12277 = vrot.lane.b32.xlu0 %v12276_v27, %s13440_s17  ;;  %v6730_v24 = vsel %vm3739_vm3, %v4679_v45, %v12069_v23  ;;  %v12074_v63 = vunpack.i.l.bf16 %v14753_v33  ;;  %v12281_v1 = vpack.i.bf16 %v4823_v43, %v14738_v14  ;;  %v6731_v54 = vsel %vm3739_vm3, %v4680_v6, %v12070_v51  ;;  %v4567_v43 = vld [vmem:[#allocation3 + $0x1e2] sm:$0xff]  ;;  %v13344_v6 = vld [vmem:[%s13538_s23 + $0x370] sm:$0xff]  }
 0x1ba   : > { %v3208_v34 = vadd.f32 %v14645_v26, %v2945_v17  ;;  %v2950_v35 = vmul.f32 %v14651_v28, %v11639_v30  ;;  %v3665_v36 = vmax.f32 %v3463_v22, %v3465_v0  ;;  %v3466_v41 = vmax.f32 %v3210_v55, 0.0  ;;  %11737 = vmatprep.mubr.msk.bf16.mxu0 %vm1380_vm2, %v13340_v16  ;;  %4376 = vst.msk [vmem:[#allocation3 + $0x201] sm:$0xff] %vm3739_vm3, %v4148_v10  ;;  %v4503_v55 = vld [vmem:[#allocation3 + $0x1e1] sm:$0xff] }
 0x1bb   : > { %v2254_v37 = vpop.f32.mrf.mxu0  ;;  %12292 = vrot.lane.b32.xlu1 %v12291_v25, %s13441_s22  ;;  %v12286_v13 = vpack.i.bf16 %v4887_v60, %v4886_v59  ;;  %v6601_v14 = vsel %vm6592_vm6, %v6536_v48, %v12064_v44  ;;  %v6602_v58 = vsel %vm6592_vm6, %v6537_v49, %v12065_v50 }
 0x1bc   : > { %v3464_v42 = vmax.f32 %v3208_v34, 0.0  ;;  %v3213_v46 = vadd.f32 %v14645_v26, %v2950_v35  ;;  %v2948_v47 = vmul.f32 %v14651_v28, %v2254_v37  ;;  %3794 = vst.msk [vmem:[#allocation2 + $0x1b0] sm:$0xff] %vm3739_vm3, %v3665_v36  ;;  %v6666_v40 = vsel %vm6657_vm7, %v6601_v14, %v12074_v63 }
 0x1bd   : > { %v11640_v52 = vpop.f32.mrf.mxu0  ;;  %12282 = vrot.lane.b32.xlu0 %v12281_v1, %s13439_s16 }
 0x1be   : > { %v3666_v53 = vmax.f32 %v3464_v42, %v3466_v41  ;;  %v3211_v56 = vadd.f32 %v14645_v26, %v2948_v47  ;;  %v2951_v61 = vmul.f32 %v14651_v28, %v11640_v52  ;;  %v14774_v2 = vpop.permute.xlu0 %12077  ;;  %v14776_v62 = vpop.permute.xlu1 %12087  ;;  %v3469_v7 = vmax.f32 %v3213_v46, 0.0  ;;  %v4504_v30 = vld [vmem:[#allocation3 + $0x1f1] sm:$0xff] }
 0x1bf   : > { %v2257_v4 = vpop.f32.mrf.mxu0  ;;  %v12079_v15 = vunpack.i.l.bf16 %v14774_v2  ;;  %v3920_v16 = vld [vmem:[#allocation2 + $0x1a0] ss:$2 sm:$0xff]  ;;  %v4048_v18 = vld [vmem:[#allocation2 + $0x1a1] ss:$2 sm:$0xff]  ;;  %v12080_v21 = vunpack.i.h.bf16 %v14774_v2  ;;  %v12296_v23 = vpack.i.bf16 %v4504_v30, %v4503_v55  ;;  %v4568_v37 = vld [vmem:[#allocation3 + $0x1f2] sm:$0xff]  ;;  %v6667_v41 = vsel %vm6657_vm7, %v6602_v58, %v12075_v39 }
 0x1c0   : > { %3795 = vst.msk [vmem:[#allocation2 + $0x1b8] sm:$0xff] %vm3739_vm3, %v3666_v53  ;;  %v3467_v8 = vmax.f32 %v3211_v56, 0.0  ;;  %v3214_v29 = vadd.f32 %v14645_v26, %v2951_v61  ;;  %v2949_v9 = vmul.f32 %v14651_v28, %v2257_v4  ;;  %v4149_v36 = vmax.f32 %v3920_v16, %v4048_v18  ;;  %v4426_v18 = vld [vmem:[#allocation3 + $0xd0] sm:$0xff] }
 0x1c1   : > { %v11643_v3 = vpop.f32.mrf.mxu0  ;;  %11738 = vmatmul.mubr.msk.bf16.gmra.mxu0 %vm1380_vm2, %v13341_v5  ;;  %v14801_v35 = vld [vmem:[#allocation3 + $0x202] sm:$0xff]  ;;  %v6794_v10 = vsel %vm6592_vm6, %v6730_v24, %v12079_v15  ;;  %12287 = vrot.lane.b32.xlu0 %v12286_v13, %s13441_s22  ;;  %v12090_v49 = vunpack.i.h.bf16 %v14776_v62  ;;  %v12089_v44 = vunpack.i.l.bf16 %v14776_v62  ;;  %v6795_v50 = vsel %vm6592_vm6, %v6731_v54, %v12080_v21  ;;  %v4681_v30 = vld [vmem:[#allocation3 + $0xd1] sm:$0xff] }
 0x1c2   : > { %v3667_v11 = vmax.f32 %v3467_v8, %v3469_v7  ;;  %v3212_v20 = vadd.f32 %v14645_v26, %v2949_v9  ;;  %v2954_v17 = vmul.f32 %v14651_v28, %v11643_v3  ;;  %v12083_v57 = vpop.permute.xlu0 %12082  ;;  %v3470_v19 = vmax.f32 %v3214_v29, 0.0  ;;  %v14798_v33 = vpop.permute.xlu1 %12092  ;;  %11741 = vmatprep.mubr.msk.bf16.mxu0 %vm1380_vm2, %v13342_v12  ;;  %4377 = vst.msk [vmem:[#allocation3 + $0x211] sm:$0xff] %vm3739_vm3, %v4149_v36  ;;  %v4632_v60 = vld [vmem:[#allocation3 + $0x200] sm:$0xff]  ;;  %v13343_v62 = vld [vmem:[%s13538_s23 + $0x368] sm:$0xff]   ;;  %v4631_v29 = vld [vmem:[#allocation3 + $0x1f0] sm:$0xff] }
 0x1c3   : > { %v12085_v0 = vunpack.i.h.bf16 %v12083_v57  ;;  %v12084_v22 = vunpack.i.l.bf16 %v12083_v57  ;;  %v2270_v27 = vpop.f32.mrf.mxu0  ;;  %v12306_v47 = vpack.i.bf16 %v14801_v35, %v4568_v37  ;;  %12297 = vrot.lane.b32.xlu1 %v12296_v23, %s13440_s17  ;;  %v12301_v39 = vpack.i.bf16 %v4568_v37, %v4567_v43  ;;  %v4425_v7 = vld [vmem:[#allocation3 + $0xc0] sm:$0xff] }
 0x1c4   : > { %3796 = vst.msk [vmem:[#allocation2 + $0x1c0] sm:$0xff] %vm3739_vm3, %v3667_v11  ;;  %v3468_v32 = vmax.f32 %v3212_v20, 0.0  ;;  %v3217_v25 = vadd.f32 %v14645_v26, %v2954_v17  ;;  %v2952_v34 = vmul.f32 %v14651_v28, %v2270_v27  ;;  %v6926_v5 = vpack.c.bf16 %v6667_v41, %v6666_v40  ;;  %v4505_v23 = vld [vmem:[#allocation3 + $0x201] sm:$0xff] }
 0x1c5   : > { %v11644_v38 = vpop.f32.mrf.mxu0  ;;  %v6858_v48 = vsel %vm6657_vm7, %v6794_v10, %v12084_v22  ;;  %v6859_v24 = vsel %vm6657_vm7, %v6795_v50, %v12085_v0  ;;  %12307 = vrot.lane.b32.xlu0 %v12306_v47, %s13440_s17  ;;  %v6538_v15 = vsel %vm3739_vm3, %v4425_v7, %v12089_v44  ;;  %v12311_v3 = vpack.i.bf16 %v4632_v60, %v4631_v29  ;;  %v4682_v43 = vld [vmem:[#allocation3 + $0xe1] sm:$0xff] }
 0x1c6   : > { %v3668_v42 = vmax.f32 %v3468_v32, %v3470_v19  ;;  %v3215_v46 = vadd.f32 %v14645_v26, %v2952_v34  ;;  %v2955_v51 = vmul.f32 %v14651_v28, %v11644_v38  ;;  %v3473_v56 = vmax.f32 %v3217_v25, 0.0  ;;  %v14818_v61 = vpop.permute.xlu0 %12097  ;;  %v14826_v9 = vpop.permute.xlu1 %12102 }
 0x1c7   : > { %v2273_v52 = vpop.f32.mrf.mxu0  ;;  %v3922_v45 = vld [vmem:[#allocation2 + $0x1b0] ss:$2 sm:$0xff]  ;;  %v4050_v53 = vld [vmem:[#allocation2 + $0x1b1] ss:$2 sm:$0xff]  ;;  %v6927_v1 = vpack.c.bf16 %v6859_v24, %v6858_v48  ;;  %12302 = vrot.lane.b32.xlu1 %v12301_v39, %s13439_s16  ;;  %v12099_v14 = vunpack.i.l.bf16 %v14818_v61  ;;  %v6539_v57 = vsel %vm3739_vm3, %v4426_v18, %v12090_v49  ;;  %v12095_v58 = vunpack.i.h.bf16 %v14798_v33  ;;  %v4427_v18 = vld [vmem:[#allocation3 + $0xe0] sm:$0xff] }
 0x1c8   : > { %3797 = vst.msk [vmem:[#allocation2 + $0x1c8] sm:$0xff] %vm3739_vm3, %v3668_v42  ;;  %v3471_v59 = vmax.f32 %v3215_v46, 0.0  ;;  %v2953_v2 = vmul.f32 %v14651_v28, %v2273_v52  ;;  %v3218_v63 = vadd.f32 %v14645_v26, %v2955_v51  ;;  %v4150_v13 = vmax.f32 %v3922_v45, %v4050_v53  ;;  %v13345_v51 = vld [vmem:[%s13538_s23 + $0x378] sm:$0xff]  }
 0x1c9   : > { %v11647_v4 = vpop.f32.mrf.mxu0  ;;  %7314 = vmatprep.mubr.bf16.mxu1 %v6927_v1  ;;  %11742 = vmatmul.mubr.msk.bf16.gmra.mxu0 %vm1380_vm2, %v13343_v62  ;;  %v12094_v19 = vunpack.i.l.bf16 %v14798_v33  ;;  %v12100_v21 = vunpack.i.h.bf16 %v14818_v61  ;;  %v14842_v0 = vld [vmem:[#allocation3 + $0x210] sm:$0xff]  ;;  %v12105_v32 = vunpack.i.h.bf16 %v14826_v9  ;;  %v6732_v38 = vsel %vm3739_vm3, %v4681_v30, %v12099_v14 }
 0x1ca   : > { %v3669_v8 = vmax.f32 %v3471_v59, %v3473_v56  ;;  %v3216_v12 = vadd.f32 %v14645_v26, %v2953_v2  ;;  %v2958_v54 = vmul.f32 %v14651_v28, %v11647_v4  ;;  %v3474_v11 = vmax.f32 %v3218_v63, 0.0  ;;  %7315 = vmatmul.mubr.bf16.gmra.mxu1 %v6926_v5  ;;  %4378 = vst.msk [vmem:[#allocation3 + $0x221] sm:$0xff] %vm3739_vm3, %v4150_v13  ;;  %v4506_v22 = vld [vmem:[#allocation3 + $0x211] sm:$0xff]  ;;  %v13346_v56 = vld [vmem:[%s13538_s23 + $0x380] sm:$0xff]  }
 0x1cb   : > { %v2286_v16 = vpop.f32.mrf.mxu0  ;;  %11745 = vmatprep.mubr.msk.bf16.mxu0 %vm1380_vm2, %v13344_v6  ;;  %v12316_v36 = vpack.i.bf16 %v14842_v0, %v4632_v60  ;;  %12312 = vrot.lane.b32.xlu1 %v12311_v3, %s13441_s22  ;;  %v12104_v10 = vunpack.i.l.bf16 %v14826_v9  ;;  %v12326_v40 = vpack.i.bf16 %v4506_v22, %v4505_v23  ;;  %v4570_v44 = vld [vmem:[#allocation3 + $0x212] sm:$0xff]  ;;  %v6733_v52 = vsel %vm3739_vm3, %v4682_v43, %v12100_v21  ;;  %v13347_v21 = vld [vmem:[%s13538_s23 + $0x388] sm:$0xff]  }
 0x1cc   : > { %3798 = vst.msk [vmem:[#allocation2 + $0x1d0] sm:$0xff] %vm3739_vm3, %v3669_v8  ;;  %v3472_v55 = vmax.f32 %v3216_v12, 0.0  ;;  %v3221_v20 = vadd.f32 %v14645_v26, %v2958_v54  ;;  %v2956_v17 = vmul.f32 %v14651_v28, %v2286_v16  ;;  %v6603_v59 = vsel %vm6592_vm6, %v6538_v15, %v12094_v19 }
 0x1cd   : > { %v11648_v27 = vpop.f32.mrf.mxu0  ;;  %12317 = vrot.lane.b32.xlu0 %v12316_v36, %s13439_s16  ;;  %v6604_v39 = vsel %vm6592_vm6, %v6539_v57, %v12095_v58  ;;  %v12331_v63 = vpack.i.bf16 %v4570_v44, %v14801_v35  ;;  %v6668_v22 = vsel %vm6657_vm7, %v6603_v59, %v12104_v10 }
 0x1ce   : > { %v3670_v25 = vmax.f32 %v3472_v55, %v3474_v11  ;;  %v3219_v34 = vadd.f32 %v14645_v26, %v2956_v17  ;;  %v12108_v37 = vpop.permute.xlu0 %12107  ;;  %v14848_v33 = vpop.permute.xlu1 %12117  ;;  %v2959_v41 = vmul.f32 %v14651_v28, %v11648_v27  ;;  %v3477_v46 = vmax.f32 %v3221_v20, 0.0 }
 0x1cf   : > { %v2289_v42 = vpop.f32.mrf.mxu0  ;;  %v12109_v48 = vunpack.i.l.bf16 %v12108_v37  ;;  %v12110_v45 = vunpack.i.h.bf16 %v12108_v37  ;;  %v12119_v61 = vunpack.i.l.bf16 %v14848_v33  ;;  %12327 = vrot.lane.b32.xlu1 %v12326_v40, %s13440_s17  ;;  %v12120_v57 = vunpack.i.h.bf16 %v14848_v33  ;;  %v3924_v30 = vld [vmem:[#allocation2 + $0x1c0] ss:$2 sm:$0xff] }
 0x1d0   : > { %3799 = vst.msk [vmem:[#allocation2 + $0x1d8] sm:$0xff] %vm3739_vm3, %v3670_v25  ;;  %v3475_v47 = vmax.f32 %v3219_v34, 0.0  ;;  %v2957_v49 = vmul.f32 %v14651_v28, %v2289_v42  ;;  %v3222_v50 = vadd.f32 %v14645_v26, %v2959_v41  ;;  %v6669_v27 = vsel %vm6657_vm7, %v6604_v39, %v12105_v32  ;;  %v4052_v25 = vld [vmem:[#allocation2 + $0x1c1] ss:$2 sm:$0xff]  ;;  %v13348_v42 = vld [vmem:[%s13538_s23 + $0x390] sm:$0xff]  }
 0x1d1   : > { %v11651_v53 = vpop.f32.mrf.mxu0  ;;  %v14870_v7 = vld [vmem:[#allocation3 + $0x222] sm:$0xff]  ;;  %12322 = vrot.lane.b32.xlu0 %v12326_v40, %s13441_s22  ;;  %11746 = vmatmul.mubr.msk.bf16.gmra.mxu0 %vm1380_vm2, %v13345_v51  ;;  %v6796_v35 = vsel %vm6592_vm6, %v6732_v38, %v12109_v48  ;;  %v6797_v14 = vsel %vm6592_vm6, %v6733_v52, %v12110_v45  ;;  %v6540_v9 = vsel %vm3739_vm3, %v4427_v18, %v12119_v61 }
 0x1d2   : > { %v3671_v60 = vmax.f32 %v3475_v47, %v3477_v46  ;;  %v3220_v2 = vadd.f32 %v14645_v26, %v2957_v49  ;;  %v12113_v24 = vpop.permute.xlu0 %12112  ;;  %v14864_v62 = vpop.permute.xlu1 %12122  ;;  %v2962_v1 = vmul.f32 %v14651_v28, %v11651_v53  ;;  %v3478_v8 = vmax.f32 %v3222_v50, 0.0  ;;  %v14876_v54 = vld [vmem:[#allocation3 + $0x220] sm:$0xff]  ;;  %11749 = vmatprep.mubr.msk.bf16.mxu0 %vm1380_vm2, %v13346_v56  ;;  %v4428_v53 = vld [vmem:[#allocation3 + $0xf0] sm:$0xff] }
 0x1d3   : > { %v12115_v4 = vunpack.i.h.bf16 %v12113_v24  ;;  %v12114_v5 = vunpack.i.l.bf16 %v12113_v24  ;;  %v2302_v6 = vpop.f32.mrf.mxu0  ;;  %v12336_v15 = vpack.i.bf16 %v14870_v7, %v4570_v44  ;;  %12332 = vrot.lane.b32.xlu1 %v12331_v63, %s13439_s16  ;;  %v12341_v58 = vpack.i.bf16 %v14876_v54, %v14842_v0 }
 0x1d4   : > { %3800 = vst.msk [vmem:[#allocation2 + $0x1e0] sm:$0xff] %vm3739_vm3, %v3671_v60  ;;  %v3476_v29 = vmax.f32 %v3220_v2, 0.0  ;;  %v2960_v12 = vmul.f32 %v14651_v28, %v2302_v6  ;;  %v3225_v13 = vadd.f32 %v14645_v26, %v2962_v1  ;;  %v12125_v32 = vunpack.i.h.bf16 %v14864_v62 }
 0x1d5   : > { %v11652_v3 = vpop.f32.mrf.mxu0  ;;  %v6860_v16 = vsel %vm6657_vm7, %v6796_v35, %v12114_v5  ;;  %v6861_v17 = vsel %vm6657_vm7, %v6797_v14, %v12115_v4  ;;  %12337 = vrot.lane.b32.xlu0 %v12336_v15, %s13440_s17  ;;  %v12124_v10 = vunpack.i.l.bf16 %v14864_v62  ;;  %v6929_v49 = vpack.c.bf16 %v6669_v27, %v6668_v22  ;;  %v4683_v15 = vld [vmem:[#allocation3 + $0xf1] sm:$0xff] }
 0x1d6   : > { %v3672_v11 = vmax.f32 %v3476_v29, %v3478_v8  ;;  %v3223_v55 = vadd.f32 %v14645_v26, %v2960_v12  ;;  %v2963_v20 = vmul.f32 %v14651_v28, %v11652_v3  ;;  %v3481_v34 = vmax.f32 %v3225_v13, 0.0  ;;  %v12133_v0 = vpop.permute.xlu1 %12132  ;;  %v12128_v46 = vpop.permute.xlu0 %12127  ;;  %v4684_v3 = vld [vmem:[#allocation3 + $0x101] sm:$0xff] }
 0x1d7   : > { %v2305_v19 = vpop.f32.mrf.mxu0  ;;  %v3926_v33 = vld [vmem:[#allocation2 + $0x1d0] ss:$2 sm:$0xff]  ;;  %v4054_v38 = vld [vmem:[#allocation2 + $0x1d1] ss:$2 sm:$0xff]  ;;  %v6930_v40 = vpack.c.bf16 %v6861_v17, %v6860_v16  ;;  %12342 = vrot.lane.b32.xlu1 %v12341_v58, %s13441_s22  ;;  %v12135_v44 = vunpack.i.h.bf16 %v12133_v0  ;;  %v12134_v51 = vunpack.i.l.bf16 %v12133_v0  ;;  %v4151_v50 = vmax.f32 %v3924_v30, %v4052_v25  ;;  %v4507_v0 = vld [vmem:[#allocation3 + $0x221] sm:$0xff] }
 0x1d8   : > { %3801 = vst.msk [vmem:[#allocation2 + $0x1e8] sm:$0xff] %vm3739_vm3, %v3672_v11  ;;  %v3479_v36 = vmax.f32 %v3223_v55, 0.0  ;;  %v3226_v23 = vadd.f32 %v14645_v26, %v2963_v20  ;;  %v2961_v37 = vmul.f32 %v14651_v28, %v2305_v19  ;;  %v4152_v45 = vmax.f32 %v3926_v33, %v4054_v38  ;;  %v13349_v55 = vld [vmem:[%s13538_s23 + $0x398] sm:$0xff]   ;;  %v4429_v33 = vld [vmem:[#allocation3 + $0x100] sm:$0xff] }
 0x1d9   : > { %v11655_v41 = vpop.f32.mrf.mxu0  ;;  %7322 = vmatprep.mubr.bf16.mxu1 %v6930_v40  ;;  %11750 = vmatmul.mubr.msk.bf16.gmra.mxu0 %vm1380_vm2, %v13347_v21  ;;  %v6541_v2 = vsel %vm3739_vm3, %v4428_v53, %v12120_v57  ;;  %v12130_v24 = vunpack.i.h.bf16 %v12128_v46  ;;  %v12129_v62 = vunpack.i.l.bf16 %v12128_v46  ;;  %4379 = vst.msk [vmem:[#allocation3 + $0x231] sm:$0xff] %vm3739_vm3, %v4151_v50  ;;  %v6605_v63 = vsel %vm6592_vm6, %v6540_v9, %v12124_v10  ;;  %v13350_v21 = vld [vmem:[%s13538_s23 + $0x3a0] sm:$0xff]  }
 0x1da   : > { %v3673_v43 = vmax.f32 %v3479_v36, %v3481_v34  ;;  %v3224_v47 = vadd.f32 %v14645_v26, %v2961_v37  ;;  %v2966_v48 = vmul.f32 %v14651_v28, %v11655_v41  ;;  %v3482_v56 = vmax.f32 %v3226_v23, 0.0  ;;  %7323 = vmatmul.mubr.bf16.gmra.mxu1 %v6929_v49  ;;  %11753 = vmatprep.mubr.msk.bf16.mxu0 %vm1380_vm2, %v13348_v42 }
 0x1db   : > { %v2318_v52 = vpop.f32.mrf.mxu0  ;;  %4380 = vst.msk [vmem:[#allocation3 + $0x241] sm:$0xff] %vm3739_vm3, %v4152_v45  ;;  %v6606_v29 = vsel %vm6592_vm6, %v6541_v2, %v12125_v32  ;;  %v14922_v35 = vsel %vm6657_vm7, %v6605_v63, %v12134_v51  ;;  %v6734_v20 = vsel %vm3739_vm3, %v4683_v15, %v12129_v62  ;;  %v6735_v17 = vsel %vm3739_vm3, %v4684_v3, %v12130_v24 }
 0x1dc   : > { %3802 = vst.msk [vmem:[#allocation2 + $0x1f0] sm:$0xff] %vm3739_vm3, %v3673_v43  ;;  %v3480_v59 = vmax.f32 %v3224_v47, 0.0  ;;  %v3229_v60 = vadd.f32 %v14645_v26, %v2966_v48  ;;  %v2964_v61 = vmul.f32 %v14651_v28, %v2318_v52  ;;  %v14925_v13 = vsel %vm6657_vm7, %v6606_v29, %v12135_v44 }
 0x1dd   : > { %v11656_v39 = vpop.f32.mrf.mxu0  ;;  %v6932_v10 = vpack.c.bf16 %v14925_v13, %v14922_v35 }
 0x1de   : > { %v3674_v1 = vmax.f32 %v3480_v59, %v3482_v56  ;;  %v3227_v4 = vadd.f32 %v14645_v26, %v2964_v61  ;;  %v2967_v5 = vmul.f32 %v14651_v28, %v11656_v39  ;;  %v12138_v6 = vpop.permute.xlu0 %12137  ;;  %v14918_v8 = vpop.permute.xlu1 %12147  ;;  %v3485_v14 = vmax.f32 %v3229_v60, 0.0 }
 0x1df   : > { %v2321_v12 = vpop.f32.mrf.mxu0  ;;  %v12140_v57 = vunpack.i.h.bf16 %v12138_v6  ;;  %v12149_v58 = vunpack.i.l.bf16 %v14918_v8  ;;  %v3928_v22 = vld [vmem:[#allocation2 + $0x1e0] ss:$2 sm:$0xff]  ;;  %v4056_v27 = vld [vmem:[#allocation2 + $0x1e1] ss:$2 sm:$0xff]  ;;  %v12139_v25 = vunpack.i.l.bf16 %v12138_v6  ;;  %v12150_v38 = vunpack.i.h.bf16 %v14918_v8 }
 0x1e0   : > { %3803 = vst.msk [vmem:[#allocation2 + $0x1f8] sm:$0xff] %vm3739_vm3, %v3674_v1  ;;  %v3483_v16 = vmax.f32 %v3227_v4, 0.0  ;;  %v3230_v18 = vadd.f32 %v14645_v26, %v2967_v5  ;;  %v2965_v11 = vmul.f32 %v14651_v28, %v2321_v12  ;;  %v14941_v40 = vld [vmem:[#allocation3 + $0x230] sm:$0xff]  ;;  %v4153_v49 = vmax.f32 %v3928_v22, %v4056_v27  ;;  %v13351_v4 = vld [vmem:[%s13538_s23 + $0x3a8] sm:$0xff]  }
 0x1e1   : > { %v11659_v19 = vpop.f32.mrf.mxu0  ;;  %v4508_v41 = vld [vmem:[#allocation3 + $0x231] sm:$0xff]  ;;  %11754 = vmatmul.mubr.msk.bf16.gmra.mxu0 %vm1380_vm2, %v13349_v55  ;;  %v12346_v44 = vpack.i.bf16 %v14941_v40, %v14876_v54  ;;  %v14953_v52 = vsel %vm3739_vm3, %v4429_v33, %v12149_v58  ;;  %v6798_v61 = vsel %vm6592_vm6, %v6734_v20, %v12139_v25  ;;  %v6799_v2 = vsel %vm6592_vm6, %v6735_v17, %v12140_v57 }
 0x1e2   : > { %v3675_v30 = vmax.f32 %v3483_v16, %v3485_v14  ;;  %v3228_v34 = vadd.f32 %v14645_v26, %v2965_v11  ;;  %v2970_v36 = vmul.f32 %v14651_v28, %v11659_v19  ;;  %v12143_v23 = vpop.permute.xlu0 %12142  ;;  %v3486_v37 = vmax.f32 %v3230_v18, 0.0  ;;  %v14943_v43 = vld [vmem:[#allocation3 + $0x232] sm:$0xff]  ;;  %v14947_v47 = vpop.permute.xlu1 %12152  ;;  %v14955_v45 = vld [vmem:[#allocation3 + $0x242] sm:$0xff]  ;;  %11757 = vmatprep.mubr.msk.bf16.mxu0 %vm1380_vm2, %v13350_v21  ;;  %4381 = vst.msk [vmem:[#allocation3 + $0x251] sm:$0xff] %vm3739_vm3, %v4153_v49 }
 0x1e3   : > { %v12144_v9 = vunpack.i.l.bf16 %v12143_v23  ;;  %v2334_v32 = vpop.f32.mrf.mxu0  ;;  %v12356_v51 = vpack.i.bf16 %v4508_v41, %v4507_v0  ;;  %v12145_v50 = vunpack.i.h.bf16 %v12143_v23  ;;  %12347 = vrot.lane.b32.xlu0 %v12346_v44, %s13439_s16  ;;  %v12361_v54 = vpack.i.bf16 %v14943_v43, %v14870_v7  ;;  %v14967_v62 = vld [vmem:[#allocation3 + $0x240] sm:$0xff]  ;;  %v13352_v55 = vld [vmem:[%s13538_s23 + $0x3b0] sm:$0xff]  }
 0x1e4   : > { %3804 = vst.msk [vmem:[#allocation2 + $0x200] sm:$0xff] %vm3739_vm3, %v3675_v30  ;;  %v3484_v42 = vmax.f32 %v3228_v34, 0.0  ;;  %v3233_v46 = vadd.f32 %v14645_v26, %v2970_v36  ;;  %v2968_v48 = vmul.f32 %v14651_v28, %v2334_v32  ;;  %v12155_v24 = vunpack.i.h.bf16 %v14947_v47  ;;  %v4685_v36 = vld [vmem:[#allocation3 + $0x111] sm:$0xff]  ;;  %v4686_v23 = vld [vmem:[#allocation3 + $0x121] sm:$0xff] }
 0x1e5   : > { %v11660_v53 = vpop.f32.mrf.mxu0  ;;  %12357 = vrot.lane.b32.xlu1 %v12356_v51, %s13440_s17  ;;  %v6862_v1 = vsel %vm6657_vm7, %v6798_v61, %v12144_v9  ;;  %v12366_v29 = vpack.i.bf16 %v14955_v45, %v14943_v43  ;;  %v6863_v18 = vsel %vm6657_vm7, %v6799_v2, %v12145_v50  ;;  %v12371_v22 = vpack.i.bf16 %v14967_v62, %v14941_v40  ;;  %v4509_v13 = vld [vmem:[#allocation3 + $0x241] sm:$0xff]  ;;  %v15016_v50 = vld [vmem:[%s17706_s2] ss:$0 sm:$0xff] }
 0x1e6   : > { %v3676_v56 = vmax.f32 %v3484_v42, %v3486_v37  ;;  %v3231_v59 = vadd.f32 %v14645_v26, %v2968_v48  ;;  %v12158_v60 = vpop.permute.xlu0 %12157  ;;  %v2971_v39 = vmul.f32 %v14651_v28, %v11660_v53  ;;  %v3489_v5 = vmax.f32 %v3233_v46, 0.0  ;;  %v14979_v17 = vpop.permute.xlu1 %12172  ;;  %v15005_v48 = vld [vmem:[%s17707_s3] ss:$0 sm:$0xff] }
 0x1e7   : > { %v2337_v63 = vpop.f32.mrf.mxu0  ;;  %v3930_v12 = vld [vmem:[#allocation2 + $0x1f0] ss:$2 sm:$0xff]  ;;  %v4058_v15 = vld [vmem:[#allocation2 + $0x1f1] ss:$2 sm:$0xff]  ;;  %v12160_v14 = vunpack.i.h.bf16 %v12158_v60  ;;  %v12159_v16 = vunpack.i.l.bf16 %v12158_v60  ;;  %v6933_v58 = vpack.c.bf16 %v6863_v18, %v6862_v1  ;;  %12352 = vrot.lane.b32.xlu0 %v12356_v51, %s13441_s22  ;;  %v12154_v32 = vunpack.i.l.bf16 %v14947_v47  ;;  %v13354_v18 = vld [vmem:[%s13538_s23 + $0x3c0] sm:$0xff]  }
 0x1e8   : > { %3805 = vst.msk [vmem:[#allocation2 + $0x208] sm:$0xff] %vm3739_vm3, %v3676_v56  ;;  %v3487_v6 = vmax.f32 %v3231_v59, 0.0  ;;  %v2969_v7 = vmul.f32 %v14651_v28, %v2337_v63  ;;  %v3234_v3 = vadd.f32 %v14645_v26, %v2971_v39  ;;  %v4154_v34 = vmax.f32 %v3930_v12, %v4058_v15  ;;  %v4430_v63 = vld [vmem:[#allocation3 + $0x110] sm:$0xff] }
 0x1e9   : > { %v11663_v11 = vpop.f32.mrf.mxu0  ;;  %12362 = vrot.lane.b32.xlu1 %v12361_v54, %s13439_s16  ;;  %7330 = vmatprep.mubr.bf16.mxu1 %v6933_v58  ;;  %v6736_v40 = vsel %vm3739_vm3, %v4685_v36, %v12159_v16  ;;  %v6737_v41 = vsel %vm3739_vm3, %v4686_v23, %v12160_v14  ;;  %v12174_v42 = vunpack.i.l.bf16 %v14979_v17  ;;  %v14998_v43 = vld [vmem:[#allocation3 + $0x250] sm:$0xff]  ;;  %v12175_v1 = vunpack.i.h.bf16 %v14979_v17 }
 0x1ea   : > { %v3677_v20 = vmax.f32 %v3487_v6, %v3489_v5  ;;  %v3232_v57 = vadd.f32 %v14645_v26, %v2969_v7  ;;  %v2974_v19 = vmul.f32 %v14651_v28, %v11663_v11  ;;  %v12163_v21 = vpop.permute.xlu0 %12162  ;;  %v3490_v27 = vmax.f32 %v3234_v3, 0.0  ;;  %11758 = vmatmul.mubr.msk.bf16.gmra.mxu0 %vm1380_vm2, %v13351_v4  ;;  %7331 = vmatmul.mubr.bf16.gmra.mxu1 %v6932_v10  ;;  %v4574_v14 = vld [vmem:[#allocation3 + $0x252] sm:$0xff] }
 0x1eb   : > { %v12164_v30 = vunpack.i.l.bf16 %v12163_v21  ;;  %v2350_v25 = vpop.f32.mrf.mxu0  ;;  %v12165_v33 = vunpack.i.h.bf16 %v12163_v21  ;;  %11761 = vmatprep.mubr.msk.bf16.mxu0 %vm1380_vm2, %v13352_v55  ;;  %4382 = vst.msk [vmem:[#allocation3 + $0x261] sm:$0xff] %vm3739_vm3, %v4154_v34  ;;  %v12376_v35 = vpack.i.bf16 %v14998_v43, %v14967_v62  ;;  %12367 = vrot.lane.b32.xlu0 %v12366_v29, %s13440_s17  ;;  %v13353_v62 = vld [vmem:[%s13538_s23 + $0x3b8] sm:$0xff]   ;;  %v6543_v12 = vsel %vm3739_vm3, %v4430_v63, %v12150_v38 }
 0x1ec   : > { %3806 = vst.msk [vmem:[#allocation2 + $0x210] sm:$0xff] %vm3739_vm3, %v3677_v20  ;;  %v3488_v0 = vmax.f32 %v3232_v57, 0.0  ;;  %v3237_v37 = vadd.f32 %v14645_v26, %v2974_v19  ;;  %v2972_v9 = vmul.f32 %v14651_v28, %v2350_v25  ;;  %v4510_v26 = vld [vmem:[#allocation3 + $0x251] sm:$0xff]  ;;  %v6607_v16 = vsel %vm6592_vm6, %v14953_v52, %v12154_v32 }
 0x1ed   : > { %v11664_v46 = vpop.f32.mrf.mxu0  ;;  %v6800_v44 = vsel %vm6592_vm6, %v6736_v40, %v12164_v30  ;;  %12372 = vrot.lane.b32.xlu1 %v12371_v22, %s13441_s22  ;;  %v12386_v51 = vpack.i.bf16 %v4510_v26, %v4509_v13  ;;  %v6801_v39 = vsel %vm6592_vm6, %v6737_v41, %v12165_v33  ;;  %v6672_v8 = vsel %vm6657_vm7, %v6607_v16, %v12174_v42  ;;  %v13355_v26 = vld [vmem:[%s13538_s23 + $0x3c8] sm:$0xff]  }
 0x1ee   : > { %v3678_v28 = vmax.f32 %v3488_v0, %v3490_v27  ;;  %v3235_v49 = vadd.f32 %v15005_v48, %v2972_v9  ;;  %v12168_v10 = vpop.permute.xlu0 %12167  ;;  %v2975_v53 = vmul.f32 %v15016_v50, %v11664_v46  ;;  %v3493_v61 = vmax.f32 %v3237_v37, 0.0  ;;  %v15025_v5 = vpop.permute.xlu1 %12177 }
 0x1ef   : > { %v12170_v56 = vunpack.i.h.bf16 %v12168_v10  ;;  %v12169_v59 = vunpack.i.l.bf16 %v12168_v10  ;;  %v2353_v60 = vpop.f32.mrf.mxu0  ;;  %12377 = vrot.lane.b32.xlu0 %v12376_v35, %s13439_s16  ;;  %v3932_v17 = vld [vmem:[#allocation2 + $0x200] ss:$2 sm:$0xff]  ;;  %v6608_v21 = vsel %vm6592_vm6, %v6543_v12, %v12155_v24  ;;  %v4060_v22 = vld [vmem:[#allocation2 + $0x201] ss:$2 sm:$0xff]  ;;  %v12391_v27 = vpack.i.bf16 %v4574_v14, %v14955_v45  ;;  %v13356_v35 = vld [vmem:[%s13538_s23 + $0x3d0] sm:$0xff]  }
 0x1f0   : > { %3807 = vst.msk [vmem:[#allocation2 + $0x218] sm:$0xff] %vm3739_vm3, %v3678_v28  ;;  %v3491_v2 = vmax.f32 %v3235_v49, 0.0  ;;  %v2973_v54 = vmul.f32 %v15016_v50, %v2353_v60  ;;  %v3238_v4 = vadd.f32 %v15005_v48, %v2975_v53  ;;  %v6673_v34 = vsel %vm6657_vm7, %v6608_v21, %v12175_v1  ;;  %v4831_v49 = vld [vmem:[#allocation3 + $0x270] sm:$0xff]  ;;  %v4431_v53 = vld [vmem:[#allocation3 + $0x140] sm:$0xff] }
 0x1f1   : > { %v11667_v6 = vpop.f32.mrf.mxu0  ;;  %v6864_v29 = vsel %vm6657_vm7, %v6800_v44, %v12169_v59  ;;  %v6865_v7 = vsel %vm6657_vm7, %v6801_v39, %v12170_v56  ;;  %12387 = vrot.lane.b32.xlu1 %v12386_v51, %s13440_s17  ;;  %v6935_v37 = vpack.c.bf16 %v6673_v34, %v6672_v8  ;;  %v4155_v33 = vmax.f32 %v3932_v17, %v4060_v22  ;;  %v13357_v22 = vld [vmem:[%s13538_s23 + $0x3d8] sm:$0xff]  }
 0x1f2   : > { %v3679_v15 = vmax.f32 %v3491_v2, %v3493_v61  ;;  %v3236_v3 = vadd.f32 %v15005_v48, %v2973_v54  ;;  %v2978_v11 = vmul.f32 %v15016_v50, %v11667_v6  ;;  %v6936_v20 = vpack.c.bf16 %v6865_v7, %v6864_v29  ;;  %11762 = vmatmul.mubr.msk.bf16.gmra.mxu0 %vm1380_vm2, %v13353_v62  ;;  %v4766_v58 = vld [vmem:[#allocation3 + $0x262] sm:$0xff]  ;;  %v15056_v47 = vpop.permute.xlu1 %12182  ;;  %v4432_v54 = vld [vmem:[#allocation3 + $0x150] sm:$0xff] }
 0x1f3   : > { %v2366_v55 = vpop.f32.mrf.mxu0  ;;  %v3494_v38 = vmax.f32 %v3238_v4, 0.0  ;;  %v15043_v19 = vld [vmem:[#allocation3 + $0x260] sm:$0xff]  ;;  %11765 = vmatprep.mubr.msk.bf16.mxu0 %vm1380_vm2, %v13354_v18  ;;  %12382 = vrot.lane.b32.xlu0 %v12386_v51, %s13441_s22  ;;  %v12396_v45 = vpack.i.bf16 %v4766_v58, %v4574_v14  ;;  %4383 = vst.msk [vmem:[#allocation3 + $0x291] sm:$0xff] %vm3739_vm3, %v4155_v33  ;;  %v12179_v10 = vunpack.i.l.bf16 %v15025_v5  ;;  %v4895_v6 = vld [vmem:[#allocation3 + $0x271] sm:$0xff]  ;;  %v12185_v12 = vunpack.i.h.bf16 %v15056_v47 }
 0x1f4   : > { %3808 = vst.msk [vmem:[#allocation2 + $0x220] sm:$0xff] %vm3739_vm3, %v3679_v15  ;;  %v3492_v57 = vmax.f32 %v3236_v3, 0.0  ;;  %v2976_v52 = vmul.f32 %v15016_v50, %v2366_v55  ;;  %v3241_v30 = vadd.f32 %v15005_v48, %v2978_v11  ;;  %7338 = vmatprep.mubr.bf16.mxu1 %v6936_v20  ;;  %v12411_v24 = vpack.i.bf16 %v15043_v19, %v14998_v43  ;;  %v4511_v3 = vld [vmem:[#allocation3 + $0x281] sm:$0xff] }
 0x1f5   : > { %v11668_v25 = vpop.f32.mrf.mxu0  ;;  %12392 = vrot.lane.b32.xlu1 %v12391_v27, %s13439_s16  ;;  %7339 = vmatmul.mubr.bf16.gmra.mxu1 %v6935_v37  ;;  %v12180_v43 = vunpack.i.h.bf16 %v15025_v5  ;;  %v12188_v56 = vpop.permute.xlu0 %12187  ;;  %v12401_v61 = vpack.i.bf16 %v4831_v49, %v15043_v19  ;;  %v4894_v5 = vld [vmem:[#allocation3 + $0x261] sm:$0xff]  ;;  %v6544_v29 = vsel %vm3739_vm3, %v4431_v53, %v12179_v10  ;;  %v4687_v27 = vld [vmem:[#allocation3 + $0x151] sm:$0xff] }
 0x1f6   : > { %v3680_v36 = vmax.f32 %v3492_v57, %v3494_v38  ;;  %v3239_v23 = vadd.f32 %v15005_v48, %v2976_v52  ;;  %v2979_v0 = vmul.f32 %v15016_v50, %v11668_v25  ;;  %v3497_v40 = vmax.f32 %v3241_v30, 0.0  ;;  %v15076_v39 = vpop.permute.xlu1 %12192  ;;  %v4575_v33 = vld [vmem:[#allocation3 + $0x282] sm:$0xff] }
 0x1f7   : > { %v3934_v9 = vld [vmem:[#allocation2 + $0x210] ss:$2 sm:$0xff]  ;;  %v4062_v32 = vld [vmem:[#allocation2 + $0x211] ss:$2 sm:$0xff]  ;;  %v2369_v42 = vpop.f32.mrf.mxu0  ;;  %12397 = vrot.lane.b32.xlu0 %v12396_v45, %s13440_s17  ;;  %v6545_v7 = vsel %vm3739_vm3, %v4432_v54, %v12180_v43  ;;  %v12189_v15 = vunpack.i.l.bf16 %v12188_v56  ;;  %v12190_v11 = vunpack.i.h.bf16 %v12188_v56  ;;  %v12184_v57 = vunpack.i.l.bf16 %v15056_v47 }
 0x1f8   : > { %3809 = vst.msk [vmem:[#allocation2 + $0x228] sm:$0xff] %vm3739_vm3, %v3680_v36  ;;  %v3495_v41 = vmax.f32 %v3239_v23, 0.0  ;;  %v3242_v46 = vadd.f32 %v15005_v48, %v2979_v0  ;;  %v2977_v28 = vmul.f32 %v15016_v50, %v2369_v42  ;;  %v4156_v13 = vmax.f32 %v3934_v9, %v4062_v32  ;;  %v13358_v23 = vld [vmem:[%s13538_s23 + $0x3e0] sm:$0xff]  }
 0x1f9   : > { %v11671_v51 = vpop.f32.mrf.mxu0  ;;  %12412 = vrot.lane.b32.xlu1 %v12411_v24, %s13441_s22  ;;  %v12195_v52 = vunpack.i.h.bf16 %v15076_v39  ;;  %v12406_v58 = vpack.i.bf16 %v4895_v6, %v4894_v5  ;;  %v12194_v30 = vunpack.i.l.bf16 %v15076_v39  ;;  %v4688_v0 = vld [vmem:[#allocation3 + $0x161] sm:$0xff]  ;;  %v6738_v37 = vsel %vm3739_vm3, %v4687_v27, %v12189_v15 }
 0x1fa   : > { %v3681_v44 = vmax.f32 %v3495_v41, %v3497_v40  ;;  %v3240_v59 = vadd.f32 %v15005_v48, %v2977_v28  ;;  %v2982_v60 = vmul.f32 %v15016_v50, %v11671_v51  ;;  %4384 = vst.msk [vmem:[#allocation3 + $0x2a1] sm:$0xff] %vm3739_vm3, %v4156_v13  ;;  %11766 = vmatmul.mubr.msk.bf16.gmra.mxu0 %vm1380_vm2, %v13355_v26  ;;  %v3498_v62 = vmax.f32 %v3242_v46, 0.0  ;;  %v4512_v19 = vld [vmem:[#allocation3 + $0x291] sm:$0xff] }
 0x1fb   : > { %v2382_v2 = vpop.f32.mrf.mxu0  ;;  %11769 = vmatprep.mubr.msk.bf16.mxu0 %vm1380_vm2, %v13356_v35  ;;  %12402 = vrot.lane.b32.xlu0 %v12401_v61, %s13439_s16  ;;  %v12416_v36 = vpack.i.bf16 %v4512_v19, %v4511_v3  ;;  %v4576_v9 = vld [vmem:[#allocation3 + $0x292] sm:$0xff]  ;;  %v6739_v40 = vsel %vm3739_vm3, %v4688_v0, %v12190_v11 }
 0x1fc   : > { %3810 = vst.msk [vmem:[#allocation2 + $0x230] sm:$0xff] %vm3739_vm3, %v3681_v44  ;;  %v3496_v63 = vmax.f32 %v3240_v59, 0.0  ;;  %v3245_v1 = vadd.f32 %v15005_v48, %v2982_v60  ;;  %v2980_v4 = vmul.f32 %v15016_v50, %v2382_v2  ;;  %v6609_v44 = vsel %vm6592_vm6, %v6544_v29, %v12184_v57  ;;  %v4639_v54 = vld [vmem:[#allocation3 + $0x290] sm:$0xff] }
 0x1fd   : > { %v11672_v14 = vpop.f32.mrf.mxu0  ;;  %12417 = vrot.lane.b32.xlu1 %v12416_v36, %s13440_s17  ;;  %v12421_v51 = vpack.i.bf16 %v4576_v9, %v4575_v33  ;;  %v6610_v59 = vsel %vm6592_vm6, %v6545_v7, %v12185_v12  ;;  %v6674_v11 = vsel %vm6657_vm7, %v6609_v44, %v12194_v30  ;;  %v13360_v57 = vld [vmem:[%s13538_s23 + $0x3f0] sm:$0xff]  }
 0x1fe   : > { %v3682_v55 = vmax.f32 %v3496_v63, %v3498_v62  ;;  %v3243_v20 = vadd.f32 %v15005_v48, %v2980_v4  ;;  %v2983_v8 = vmul.f32 %v15016_v50, %v11672_v14  ;;  %v12198_v17 = vpop.permute.xlu0 %12197  ;;  %v3501_v25 = vmax.f32 %v3245_v1, 0.0 }
 0x1ff   : > { %v3936_v16 = vld [vmem:[#allocation2 + $0x220] ss:$2 sm:$0xff]  ;;  %v4064_v18 = vld [vmem:[#allocation2 + $0x221] ss:$2 sm:$0xff]  ;;  %v2385_v21 = vpop.f32.mrf.mxu0  ;;  %v12199_v45 = vunpack.i.l.bf16 %v12198_v17  ;;  %12407 = vrot.lane.b32.xlu0 %v12406_v58, %s13441_s22  ;;  %v12200_v42 = vunpack.i.h.bf16 %v12198_v17  ;;  %v15113_v1 = vpop.permute.xlu1 %12207  ;;  %v6675_v17 = vsel %vm6657_vm7, %v6610_v59, %v12195_v52 }
 0x200   : > { %v4157_v38 = vmax.f32 %v3936_v16, %v4064_v18  ;;  %3811 = vst.msk [vmem:[#allocation2 + $0x238] sm:$0xff] %vm3739_vm3, %v3682_v55  ;;  %v3499_v34 = vmax.f32 %v3243_v20, 0.0  ;;  %v3246_v47 = vadd.f32 %v15005_v48, %v2983_v8  ;;  %v2981_v24 = vmul.f32 %v15016_v50, %v2385_v21  ;;  %v13359_v18 = vld [vmem:[%s13538_s23 + $0x3e8] sm:$0xff]  }
 0x201   : > { %v11675_v32 = vpop.f32.mrf.mxu0  ;;  %v15101_v28 = vld [vmem:[#allocation3 + $0x2a2] sm:$0xff]  ;;  %v6802_v63 = vsel %vm6592_vm6, %v6738_v37, %v12199_v45  ;;  %12422 = vrot.lane.b32.xlu1 %v12421_v51, %s13439_s16  ;;  %v6803_v29 = vsel %vm6592_vm6, %v6739_v40, %v12200_v42  ;;  %v12210_v45 = vunpack.i.h.bf16 %v15113_v1 }
 0x202   : > { %4385 = vst.msk [vmem:[#allocation3 + $0x2b1] sm:$0xff] %vm3739_vm3, %v4157_v38  ;;  %v3683_v41 = vmax.f32 %v3499_v34, %v3501_v25  ;;  %v2986_v26 = vmul.f32 %v15016_v50, %v11675_v32  ;;  %v12203_v46 = vpop.permute.xlu0 %12202  ;;  %v3244_v49 = vadd.f32 %v15005_v48, %v2981_v24  ;;  %11770 = vmatmul.mubr.msk.bf16.gmra.mxu0 %vm1380_vm2, %v13357_v22  ;;  %v4640_v10 = vld [vmem:[#allocation3 + $0x2a0] sm:$0xff]  ;;  %v3502_v60 = vmax.f32 %v3246_v47, 0.0  ;;  %v13362_v59 = vld [vmem:[%s17708_s4 + $0x88] sm:$0xff]  }
 0x203   : > { %v12205_v35 = vunpack.i.h.bf16 %v12203_v46  ;;  %v12204_v13 = vunpack.i.l.bf16 %v12203_v46  ;;  %v2398_v43 = vpop.f32.mrf.mxu0  ;;  %11773 = vmatprep.mubr.msk.bf16.mxu0 %vm1380_vm2, %v13358_v23  ;;  %v12426_v2 = vpack.i.bf16 %v15101_v28, %v4576_v9  ;;  %v12431_v5 = vpack.i.bf16 %v4640_v10, %v4639_v54  ;;  %v4513_v23 = vld [vmem:[#allocation3 + $0x2a1] sm:$0xff]  ;;  %v15139_v0 = vpop.permute.xlu1 %12212  ;;  %11781 = vmatprep.subr.bf16.mxu1 %v13362_v59 }
 0x204   : > { %3812 = vst.msk [vmem:[#allocation2 + $0x240] sm:$0xff] %vm3739_vm3, %v3683_v41  ;;  %v3249_v53 = vadd.f32 %v15005_v48, %v2986_v26  ;;  %v2984_v56 = vmul.f32 %v15016_v50, %v2398_v43  ;;  %v3500_v61 = vmax.f32 %v3244_v49, 0.0  ;;  %v6938_v25 = vpack.c.bf16 %v6675_v17, %v6674_v11  ;;  %v4434_v26 = vld [vmem:[#allocation3 + $0x170] sm:$0xff]  ;;  %11782 = vmatpush3.bf16.msra.mxu1 %v13362_v59 }
 0x205   : > { %v11676_v62 = vpop.f32.mrf.mxu0  ;;  %12427 = vrot.lane.b32.xlu0 %v12426_v2, %s13440_s17  ;;  %v6866_v14 = vsel %vm6657_vm7, %v6802_v63, %v12204_v13  ;;  %v6867_v16 = vsel %vm6657_vm7, %v6803_v29, %v12205_v35  ;;  %12432 = vrot.lane.b32.xlu1 %v12431_v5, %s13441_s22  ;;  %v13361_v13 = vld [vmem:[%s13538_s23 + $0x3f8] sm:$0xff]   ;;  %v12215_v29 = vunpack.i.h.bf16 %v15139_v0  ;;  %s467_s23 = scalar_lea.vmem %s17718_s14, %s10715_s25 }
 0x206   : > { %v3247_v4 = vadd.f32 %v15005_v48, %v2984_v56  ;;  %v2987_v6 = vmul.f32 %v15016_v50, %v11676_v62  ;;  %v3684_v15 = vmax.f32 %v3500_v61, %v3502_v60  ;;  %v3505_v20 = vmax.f32 %v3249_v53, 0.0 }
 0x207   : > { %v3938_v7 = vld [vmem:[#allocation2 + $0x230] ss:$2 sm:$0xff]  ;;  %v4066_v12 = vld [vmem:[#allocation2 + $0x231] ss:$2 sm:$0xff]  ;;  %v2401_v3 = vpop.f32.mrf.mxu0  ;;  %v6939_v30 = vpack.c.bf16 %v6867_v16, %v6866_v14  ;;  %v12209_v60 = vunpack.i.l.bf16 %v15113_v1  ;;  %v6547_v61 = vsel %vm3739_vm3, %v4434_v26, %v12210_v45  ;;  %v4433_v14 = vld [vmem:[#allocation3 + $0x160] sm:$0xff] }
 0x208   : > { %v4158_v55 = vmax.f32 %v3938_v7, %v4066_v12  ;;  %v3503_v8 = vmax.f32 %v3247_v4, 0.0  ;;  %3813 = vst.msk [vmem:[#allocation2 + $0x248] sm:$0xff] %vm3739_vm3, %v3684_v15  ;;  %v3250_v58 = vadd.f32 %v15005_v48, %v2987_v6  ;;  %v2985_v19 = vmul.f32 %v15016_v50, %v2401_v3  ;;  %v12218_v4 = vpop.permute.xlu0 %12217 }
 0x209   : > { %v15127_v38 = vld [vmem:[#allocation3 + $0x2b0] sm:$0xff]  ;;  %v11679_v21 = vpop.f32.mrf.mxu0  ;;  %7346 = vmatprep.mubr.bf16.mxu1 %v6939_v30  ;;  %v12214_v7 = vunpack.i.l.bf16 %v15139_v0  ;;  %v12219_v17 = vunpack.i.l.bf16 %v12218_v4  ;;  %v6612_v0 = vsel %vm6592_vm6, %v6547_v61, %v12215_v29 }
 0x20a   : > { %v4514_v22 = vld [vmem:[#allocation3 + $0x2b1] sm:$0xff]  ;;  %4386 = vst.msk [vmem:[#allocation3 + $0x2c1] sm:$0xff] %vm3739_vm3, %v4158_v55  ;;  %v3685_v27 = vmax.f32 %v3503_v8, %v3505_v20  ;;  %v3248_v39 = vadd.f32 %v15005_v48, %v2985_v19  ;;  %v2990_v52 = vmul.f32 %v15016_v50, %v11679_v21  ;;  %11774 = vmatmul.mubr.msk.bf16.gmra.mxu0 %vm1380_vm2, %v13359_v18  ;;  %v3506_v24 = vmax.f32 %v3250_v58, 0.0 }
 0x20b   : > { %v2414_v34 = vpop.f32.mrf.mxu0  ;;  %v12436_v36 = vpack.i.bf16 %v15127_v38, %v4640_v10  ;;  %v12446_v47 = vpack.i.bf16 %v4514_v22, %v4513_v23  ;;  %11777 = vmatprep.mubr.msk.bf16.mxu0 %vm1380_vm2, %v13360_v57  ;;  %7347 = vmatmul.mubr.bf16.gmra.mxu1 %v6938_v25  ;;  %v4578_v40 = vld [vmem:[#allocation3 + $0x2b2] sm:$0xff]  ;;  %v6546_v20 = vsel %vm3739_vm3, %v4433_v14, %v12209_v60  ;;  %v12220_v8 = vunpack.i.h.bf16 %v12218_v4 }
 0x20c   : > { %3814 = vst.msk [vmem:[#allocation2 + $0x250] sm:$0xff] %vm3739_vm3, %v3685_v27  ;;  %v2988_v37 = vmul.f32 %v15016_v50, %v2414_v34  ;;  %v3504_v33 = vmax.f32 %v3248_v39, 0.0  ;;  %v3253_v9 = vadd.f32 %v15005_v48, %v2990_v52  ;;  %v12451_v56 = vpack.i.bf16 %v4578_v40, %v15101_v28  ;;  %v12223_v28 = vpop.permute.xlu1 %12222  ;;  %v4689_v39 = vld [vmem:[#allocation3 + $0x171] sm:$0xff]  ;;  %v4690_v52 = vld [vmem:[#allocation3 + $0x181] sm:$0xff] }
 0x20d   : > { %12437 = vrot.lane.b32.xlu0 %v12436_v36, %s13439_s16  ;;  %v11680_v32 = vpop.f32.mrf.mxu0  ;;  %12447 = vrot.lane.b32.xlu1 %v12446_v47, %s13440_s17  ;;  %v12224_v57 = vunpack.i.l.bf16 %v12223_v28  ;;  %v12225_v19 = vunpack.i.h.bf16 %v12223_v28  ;;  %v6611_v23 = vsel %vm6592_vm6, %v6546_v20, %v12214_v7 }
 0x20e   : > { %v3251_v41 = vadd.f32 %v15005_v48, %v2988_v37  ;;  %v2991_v42 = vmul.f32 %v15016_v50, %v11680_v32  ;;  %v3686_v46 = vmax.f32 %v3504_v33, %v3506_v24  ;;  %v3509_v49 = vmax.f32 %v3253_v9, 0.0 }
 0x20f   : > { %v2417_v35 = vpop.f32.mrf.mxu0  ;;  %v3940_v43 = vld [vmem:[#allocation2 + $0x240] ss:$2 sm:$0xff]  ;;  %v4068_v10 = vld [vmem:[#allocation2 + $0x241] ss:$2 sm:$0xff]  ;;  %v6740_v32 = vsel %vm3739_vm3, %v4689_v39, %v12219_v17  ;;  %v6676_v26 = vsel %vm6657_vm7, %v6611_v23, %v12224_v57 }
 0x210   : > { %v3507_v44 = vmax.f32 %v3251_v41, 0.0  ;;  %v3254_v51 = vadd.f32 %v15005_v48, %v2991_v42  ;;  %v2989_v53 = vmul.f32 %v15016_v50, %v2417_v35  ;;  %v4159_v2 = vmax.f32 %v3940_v43, %v4068_v10  ;;  %3815 = vst.msk [vmem:[#allocation2 + $0x258] sm:$0xff] %vm3739_vm3, %v3686_v46 }
 0x211   : > { %12442 = vrot.lane.b32.xlu0 %v12446_v47, %s13441_s22  ;;  %v11683_v54 = vpop.f32.mrf.mxu0  ;;  %v15161_v62 = vld [vmem:[#allocation3 + $0x2c2] sm:$0xff]  ;;  %12452 = vrot.lane.b32.xlu1 %v12451_v56, %s13439_s16  ;;  %v6677_v10 = vsel %vm6657_vm7, %v6612_v0, %v12225_v19 }
 0x212   : > { %v15163_v63 = vld [vmem:[#allocation3 + $0x2c0] sm:$0xff]  ;;  %v3687_v5 = vmax.f32 %v3507_v44, %v3509_v49  ;;  %v3252_v6 = vadd.f32 %v15005_v48, %v2989_v53  ;;  %v2994_v1 = vmul.f32 %v15016_v50, %v11683_v54  ;;  %4387 = vst.msk [vmem:[#allocation3 + $0x2d1] sm:$0xff] %vm3739_vm3, %v4159_v2  ;;  %11778 = vmatmul.mubr.msk.bf16.gmra.mxu0 %vm1380_vm2, %v13361_v13  ;;  %v3510_v16 = vmax.f32 %v3254_v51, 0.0 }
 0x213   : > { %v2430_v12 = vpop.f32.mrf.mxu0  ;;  %v12456_v15 = vpack.i.bf16 %v15161_v62, %v4578_v40  ;;  %v12461_v3 = vpack.i.bf16 %v15163_v63, %v15127_v38  ;;  %v12228_v38 = vpop.permute.xlu0 %12227  ;;  %v6741_v40 = vsel %vm3739_vm3, %v4690_v52, %v12220_v8  ;;  %v6941_v57 = vpack.c.bf16 %v6677_v10, %v6676_v26  ;;  %v4691_v10 = vld [vmem:[#allocation3 + $0x191] sm:$0xff] }
 0x214   : > { %3816 = vst.msk [vmem:[#allocation2 + $0x260] sm:$0xff] %vm3739_vm3, %v3687_v5  ;;  %v3508_v18 = vmax.f32 %v3252_v6, 0.0  ;;  %v3257_v11 = vadd.f32 %v15005_v48, %v2994_v1  ;;  %v2992_v55 = vmul.f32 %v15016_v50, %v2430_v12  ;;  %v15180_v21 = vpop.permute.xlu1 %12237  ;;  %v12230_v25 = vunpack.i.h.bf16 %v12228_v38  ;;  %v4515_v5 = vld [vmem:[#allocation3 + $0x2c1] sm:$0xff] }
 0x215   : > { %12457 = vrot.lane.b32.xlu0 %v12456_v15, %s13440_s17  ;;  %v11684_v58 = vpop.f32.mrf.mxu0  ;;  %12462 = vrot.lane.b32.xlu1 %v12461_v3, %s13441_s22  ;;  %v12229_v34 = vunpack.i.l.bf16 %v12228_v38  ;;  %vm10473_vm2 = vcmask 1045509  }
 0x216   : > { %v3688_v22 = vmax.f32 %v3508_v18, %v3510_v16  ;;  %v3255_v27 = vadd.f32 %v15005_v48, %v2992_v55  ;;  %v2995_v30 = vmul.f32 %v15016_v50, %v11684_v58  ;;  %v3513_v45 = vmax.f32 %v3257_v11, 0.0 }
 0x217   : > { %v2433_v36 = vpop.f32.mrf.mxu0  ;;  %v3942_v37 = vld [vmem:[#allocation2 + $0x250] ss:$2 sm:$0xff]  ;;  %v4070_v47 = vld [vmem:[#allocation2 + $0x251] ss:$2 sm:$0xff]  ;;  %v12233_v46 = vpop.permute.xlu0 %12232  ;;  %v6804_v43 = vsel %vm6592_vm6, %v6740_v32, %v12229_v34  ;;  %v6805_v60 = vsel %vm6592_vm6, %v6741_v40, %v12230_v25  ;;  %v12239_v11 = vunpack.i.l.bf16 %v15180_v21 }
 0x218   : > { %3817 = vst.msk [vmem:[#allocation2 + $0x268] sm:$0xff] %vm3739_vm3, %v3688_v22  ;;  %v3511_v24 = vmax.f32 %v3255_v27, 0.0  ;;  %v3258_v33 = vadd.f32 %v15005_v48, %v2995_v30  ;;  %v2993_v9 = vmul.f32 %v15016_v50, %v2433_v36  ;;  %v4160_v41 = vmax.f32 %v3942_v37, %v4070_v47  ;;  %v15193_v49 = vpop.permute.xlu1 %12242 }
 0x219   : > { %v11687_v42 = vpop.f32.mrf.mxu0  ;;  %v15198_v44 = vld [vmem:[#allocation3 + $0x2d0] sm:$0xff]  ;;  %v12235_v53 = vunpack.i.h.bf16 %v12233_v46  ;;  %v12234_v56 = vunpack.i.l.bf16 %v12233_v46  ;;  %v12245_v8 = vunpack.i.h.bf16 %v15193_v49  ;;  %v12244_v30 = vunpack.i.l.bf16 %v15193_v49 }
 0x21a   : > { %v3689_v35 = vmax.f32 %v3511_v24, %v3513_v45  ;;  %v3256_v13 = vadd.f32 %v15005_v48, %v2993_v9  ;;  %v4516_v51 = vld [vmem:[#allocation3 + $0x2d1] sm:$0xff]  ;;  %4388 = vst.msk [vmem:[#allocation3 + $0x2e1] sm:$0xff] %vm3739_vm3, %v4160_v41  ;;  %v3514_v59 = vmax.f32 %v3258_v33, 0.0  ;;  %v2998_v54 = vmul.f32 %v15016_v50, %v11687_v42  ;;  %v4435_v45 = vld [vmem:[#allocation3 + $0x180] sm:$0xff] }
 0x21b   : > { %v2446_v61 = vpop.f32.mrf.mxu0  ;;  %v12466_v28 = vpack.i.bf16 %v15198_v44, %v15163_v63  ;;  %v6868_v6 = vsel %vm6657_vm7, %v6804_v43, %v12234_v56  ;;  %v6869_v1 = vsel %vm6657_vm7, %v6805_v60, %v12235_v53  ;;  %v12476_v29 = vpack.i.bf16 %v4516_v51, %v4515_v5  ;;  %v4580_v18 = vld [vmem:[#allocation3 + $0x2d2] sm:$0xff] }
 0x21c   : > { %3818 = vst.msk [vmem:[#allocation2 + $0x270] sm:$0xff] %vm3739_vm3, %v3689_v35  ;;  %v3512_v2 = vmax.f32 %v3256_v13, 0.0  ;;  %v2996_v4 = vmul.f32 %v15016_v50, %v2446_v61  ;;  %v6942_v3 = vpack.c.bf16 %v6869_v1, %v6868_v6  ;;  %v3261_v14 = vadd.f32 %v15005_v48, %v2998_v54  ;;  %v4436_v24 = vld [vmem:[#allocation3 + $0x190] sm:$0xff] }
 0x21d   : > { %v11688_v7 = vpop.f32.mrf.mxu0  ;;  %v15209_v12 = vpop.permute.xlu0 %12247  ;;  %12467 = vrot.lane.b32.xlu0 %v12466_v28, %s13439_s16  ;;  %v12240_v63 = vunpack.i.h.bf16 %v15180_v21  ;;  %12477 = vrot.lane.b32.xlu1 %v12476_v29, %s13440_s17  ;;  %v12481_v52 = vpack.i.bf16 %v4580_v18, %v15161_v62  ;;  %v6548_v41 = vsel %vm3739_vm3, %v4435_v45, %v12239_v11 }
 0x21e   : > { %v3690_v15 = vmax.f32 %v3512_v2, %v3514_v59  ;;  %v3259_v16 = vadd.f32 %v15005_v48, %v2996_v4  ;;  %v12253_v17 = vpop.permute.xlu1 %12252  ;;  %7354 = vmatprep.mubr.bf16.mxu1 %v6942_v3  ;;  %v3517_v38 = vmax.f32 %v3261_v14, 0.0  ;;  %v2999_v27 = vmul.f32 %v15016_v50, %v11688_v7 }
 0x21f   : > { %v3944_v55 = vld [vmem:[#allocation2 + $0x260] ss:$2 sm:$0xff]  ;;  %v4072_v20 = vld [vmem:[#allocation2 + $0x261] ss:$2 sm:$0xff]  ;;  %v2449_v58 = vpop.f32.mrf.mxu0  ;;  %v12249_v21 = vunpack.i.l.bf16 %v15209_v12  ;;  %7355 = vmatmul.mubr.bf16.gmra.mxu1 %v6941_v57  ;;  %v12255_v34 = vunpack.i.h.bf16 %v12253_v17  ;;  %v12254_v33 = vunpack.i.l.bf16 %v12253_v17  ;;  %v6549_v42 = vsel %vm3739_vm3, %v4436_v24, %v12240_v63 }
 0x220   : > { %v4161_v19 = vmax.f32 %v3944_v55, %v4072_v20  ;;  %3819 = vst.msk [vmem:[#allocation2 + $0x278] sm:$0xff] %vm3739_vm3, %v3690_v15  ;;  %v3515_v22 = vmax.f32 %v3259_v16, 0.0  ;;  %v2997_v39 = vmul.f32 %v15016_v50, %v2449_v58  ;;  %v3262_v23 = vadd.f32 %v15005_v48, %v2999_v27  ;;  %v4692_v15 = vld [vmem:[#allocation3 + $0x1a1] sm:$0xff]  ;;  %v4438_v20 = vld [vmem:[#allocation3 + $0x1b0] sm:$0xff] }
 0x221   : > { %v11691_v25 = vpop.f32.mrf.mxu0  ;;  %12472 = vrot.lane.b32.xlu0 %v12476_v29, %s13441_s22  ;;  %v15228_v37 = vld [vmem:[#allocation3 + $0x2e2] sm:$0xff]  ;;  %12482 = vrot.lane.b32.xlu1 %v12481_v52, %s13439_s16  ;;  %v12250_v46 = vunpack.i.h.bf16 %v15209_v12  ;;  %v6613_v53 = vsel %vm6592_vm6, %v6548_v41, %v12244_v30  ;;  %v6614_v56 = vsel %vm6592_vm6, %v6549_v42, %v12245_v8  ;;  %v6742_v59 = vsel %vm3739_vm3, %v4691_v10, %v12249_v21 }
 0x222   : > { %4389 = vst.msk [vmem:[#allocation3 + $0x2f1] sm:$0xff] %vm3739_vm3, %v4161_v19  ;;  %v3691_v36 = vmax.f32 %v3515_v22, %v3517_v38  ;;  %v3002_v0 = vmul.f32 %v15016_v50, %v11691_v25  ;;  %v15230_v47 = vld [vmem:[#allocation3 + $0x2e0] sm:$0xff]  ;;  %v3260_v62 = vadd.f32 %v15005_v48, %v2997_v39  ;;  %v12486_v32 = vpack.i.bf16 %v15228_v37, %v4580_v18 }
 0x223   : > { %v2462_v9 = vpop.f32.mrf.mxu0  ;;  %v12491_v40 = vpack.i.bf16 %v15230_v47, %v15198_v44  ;;  %v3518_v49 = vmax.f32 %v3262_v23, 0.0  ;;  %v12258_v2 = vpop.permute.xlu0 %12257  ;;  %v15251_v28 = vsel %vm6657_vm7, %v6613_v53, %v12254_v33  ;;  %v15254_v5 = vsel %vm6657_vm7, %v6614_v56, %v12255_v34  ;;  %v4517_v23 = vld [vmem:[#allocation3 + $0x2e1] sm:$0xff] }
 0x224   : > { %3820 = vst.msk [vmem:[#allocation2 + $0x280] sm:$0xff] %vm3739_vm3, %v3691_v36  ;;  %v3000_v26 = vmul.f32 %v15016_v50, %v2462_v9  ;;  %v3516_v35 = vmax.f32 %v3260_v62, 0.0  ;;  %v3265_v13 = vadd.f32 %v15005_v48, %v3002_v0  ;;  %v12260_v1 = vunpack.i.h.bf16 %v12258_v2  ;;  %v4437_v0 = vld [vmem:[#allocation3 + $0x1a0] sm:$0xff] }
 0x225   : > { %v11692_v43 = vpop.f32.mrf.mxu0  ;;  %12487 = vrot.lane.b32.xlu0 %v12486_v32, %s13440_s17  ;;  %v12268_v54 = vpop.permute.xlu1 %12267  ;;  %12492 = vrot.lane.b32.xlu1 %v12491_v40, %s13441_s22  ;;  %v12259_v29 = vunpack.i.l.bf16 %v12258_v2  ;;  %v6743_v11 = vsel %vm3739_vm3, %v4692_v15, %v12250_v46  ;;  %v6944_v17 = vpack.c.bf16 %v15254_v5, %v15251_v28 }
 0x226   : > { %v3263_v51 = vadd.f32 %v15005_v48, %v3000_v26  ;;  %v3003_v44 = vmul.f32 %v15016_v50, %v11692_v43  ;;  %v3692_v4 = vmax.f32 %v3516_v35, %v3518_v49  ;;  %v12270_v7 = vunpack.i.h.bf16 %v12268_v54 }
 0x227   : > { %v3946_v60 = vld [vmem:[#allocation2 + $0x270] ss:$2 sm:$0xff]  ;;  %v4074_v61 = vld [vmem:[#allocation2 + $0x271] ss:$2 sm:$0xff]  ;;  %v2465_v12 = vpop.f32.mrf.mxu0  ;;  %v3521_v3 = vmax.f32 %v3265_v13, 0.0  ;;  %v12269_v55 = vunpack.i.l.bf16 %v12268_v54  ;;  %v12263_v38 = vpop.permute.xlu0 %12262  ;;  %v6806_v21 = vsel %vm6592_vm6, %v6742_v59, %v12259_v29  ;;  %v6807_v34 = vsel %vm6592_vm6, %v6743_v11, %v12260_v1  ;;  %v4694_v11 = vld [vmem:[#allocation3 + $0x1c1] sm:$0xff] }
 0x228   : > { %v4162_v6 = vmax.f32 %v3946_v60, %v4074_v61  ;;  %3821 = vst.msk [vmem:[#allocation2 + $0x288] sm:$0xff] %vm3739_vm3, %v3692_v4  ;;  %v3519_v14 = vmax.f32 %v3263_v51, 0.0  ;;  %v3266_v16 = vadd.f32 %v15005_v48, %v3003_v44  ;;  %v3001_v18 = vmul.f32 %v15016_v50, %v2465_v12 }
 0x229   : > { %v15259_v63 = vld [vmem:[#allocation3 + $0x2f0] sm:$0xff]  ;;  %v11695_v8 = vpop.f32.mrf.mxu0  ;;  %v15268_v19 = vsel %vm3739_vm3, %v4438_v20, %v12270_v7  ;;  %v15270_v22 = vpop.permute.xlu1 %12272  ;;  %v12265_v39 = vunpack.i.h.bf16 %v12263_v38  ;;  %v12264_v52 = vunpack.i.l.bf16 %v12263_v38  ;;  %v6550_v9 = vsel %vm3739_vm3, %v4437_v0, %v12269_v55 }
 0x22a   : > { %4390 = vst.msk [vmem:[#allocation3 + $0x301] sm:$0xff] %vm3739_vm3, %v4162_v6  ;;  %v12496_v57 = vpack.i.bf16 %v15259_v63, %v15230_v47  ;;  %v4518_v58 = vld [vmem:[#allocation3 + $0x2f1] sm:$0xff]  ;;  %v3693_v27 = vmax.f32 %v3519_v14, %v3521_v3  ;;  %v3264_v30 = vadd.f32 %v15005_v48, %v3001_v18  ;;  %v3522_v25 = vmax.f32 %v3266_v16, 0.0 }
 0x22b   : > { %v2478_v36 = vpop.f32.mrf.mxu0  ;;  %v3006_v45 = vmul.f32 %v15016_v50, %v11695_v8  ;;  %v12506_v33 = vpack.i.bf16 %v4518_v58, %v4517_v23  ;;  %v4582_v62 = vld [vmem:[#allocation3 + $0x2f2] sm:$0xff]  ;;  %v12274_v32 = vunpack.i.l.bf16 %v15270_v22  ;;  %v6870_v40 = vsel %vm6657_vm7, %v6806_v21, %v12264_v52  ;;  %v12278_v26 = vpop.permute.xlu0 %12277 }
 0x22c   : > { %12497 = vrot.lane.b32.xlu0 %v12496_v57, %s13439_s16  ;;  %3822 = vst.msk [vmem:[#allocation2 + $0x290] sm:$0xff] %vm3739_vm3, %v3693_v27  ;;  %v3520_v47 = vmax.f32 %v3264_v30, 0.0  ;;  %v3004_v24 = vmul.f32 %v15016_v50, %v2478_v36  ;;  %v6871_v41 = vsel %vm6657_vm7, %v6807_v34, %v12265_v39  ;;  %v12275_v44 = vunpack.i.h.bf16 %v15270_v22  ;;  %v4693_v18 = vld [vmem:[#allocation3 + $0x1b1] sm:$0xff] }
 0x22d   : > { %v11696_v42 = vpop.f32.mrf.mxu0  ;;  %v15283_v46 = vpop.permute.xlu1 %12292  ;;  %v6945_v35 = vpack.c.bf16 %v6871_v41, %v6870_v40  ;;  %v3269_v13 = vadd.f32 %v15005_v48, %v3006_v45  ;;  %12507 = vrot.lane.b32.xlu1 %v12506_v33, %s13440_s17  ;;  %v12280_v53 = vunpack.i.h.bf16 %v12278_v26  ;;  %v12279_v56 = vunpack.i.l.bf16 %v12278_v26  ;;  %v4839_v27 = vld [vmem:[#allocation3 + $0x310] sm:$0xff] }
 0x22e   : > { %v3694_v49 = vmax.f32 %v3520_v47, %v3522_v25  ;;  %v3267_v43 = vadd.f32 %v15005_v48, %v3004_v24  ;;  %v12511_v60 = vpack.i.bf16 %v4582_v62, %v15228_v37  ;;  %v3007_v4 = vmul.f32 %v15016_v50, %v11696_v42 }
 0x22f   : > { %v3948_v10 = vld [vmem:[#allocation2 + $0x280] ss:$2 sm:$0xff]  ;;  %v4076_v51 = vld [vmem:[#allocation2 + $0x281] ss:$2 sm:$0xff]  ;;  %v2481_v59 = vpop.f32.mrf.mxu0  ;;  %7362 = vmatprep.mubr.bf16.mxu1 %v6945_v35  ;;  %v3525_v2 = vmax.f32 %v3269_v13, 0.0  ;;  %v12294_v6 = vunpack.i.l.bf16 %v15283_v46  ;;  %v6615_v12 = vsel %vm6592_vm6, %v6550_v9, %v12274_v32  ;;  %v12283_v37 = vpop.permute.xlu0 %12282  ;;  %v12295_v55 = vunpack.i.h.bf16 %v15283_v46 }
 0x230   : > { %12502 = vrot.lane.b32.xlu0 %v12506_v33, %s13441_s22  ;;  %v4163_v61 = vmax.f32 %v3948_v10, %v4076_v51  ;;  %3823 = vst.msk [vmem:[#allocation2 + $0x298] sm:$0xff] %vm3739_vm3, %v3694_v49  ;;  %v3523_v54 = vmax.f32 %v3267_v43, 0.0  ;;  %7363 = vmatmul.mubr.bf16.gmra.mxu1 %v6944_v17  ;;  %v3005_v1 = vmul.f32 %v15016_v50, %v2481_v59  ;;  %v12285_v20 = vunpack.i.h.bf16 %v12283_v37 }
 0x231   : > { %v4774_v28 = vld [vmem:[#allocation3 + $0x302] sm:$0xff]  ;;  %v11699_v29 = vpop.f32.mrf.mxu0  ;;  %v3270_v3 = vadd.f32 %v15005_v48, %v3007_v4  ;;  %12512 = vrot.lane.b32.xlu1 %v12511_v60, %s13439_s16  ;;  %v12284_v8 = vunpack.i.l.bf16 %v12283_v37  ;;  %v6744_v58 = vsel %vm3739_vm3, %v4693_v18, %v12279_v56  ;;  %v6745_v38 = vsel %vm3739_vm3, %v4694_v11, %v12280_v53  ;;  %v4903_v56 = vld [vmem:[#allocation3 + $0x311] sm:$0xff] }
 0x232   : > { %v4646_v5 = vld [vmem:[#allocation3 + $0x300] sm:$0xff]  ;;  %v12516_v7 = vpack.i.bf16 %v4774_v28, %v4582_v62  ;;  %4391 = vst.msk [vmem:[#allocation3 + $0x331] sm:$0xff] %vm3739_vm3, %v4163_v61  ;;  %v3695_v15 = vmax.f32 %v3523_v54, %v3525_v2  ;;  %v3010_v14 = vmul.f32 %v15016_v50, %v11699_v29  ;;  %v3268_v17 = vadd.f32 %v15005_v48, %v3005_v1 }
 0x233   : > { %v12531_v16 = vpack.i.bf16 %v4646_v5, %v15259_v63  ;;  %v2494_v57 = vpop.f32.mrf.mxu0  ;;  %v3526_v30 = vmax.f32 %v3270_v3, 0.0  ;;  %v6616_v52 = vsel %vm6592_vm6, %v15268_v19, %v12275_v44  ;;  %v6680_v25 = vsel %vm6657_vm7, %v6615_v12, %v12294_v6  ;;  %v12288_v34 = vpop.permute.xlu0 %12287  ;;  %v4902_v53 = vld [vmem:[#allocation3 + $0x301] sm:$0xff]  ;;  %v15330_v2 = vld [vmem:[%s17707_s3] ss:$0 sm:$0xff] }
 0x234   : > { %12517 = vrot.lane.b32.xlu0 %v12516_v7, %s13440_s17  ;;  %3824 = vst.msk [vmem:[#allocation2 + $0x2a0] sm:$0xff] %vm3739_vm3, %v3695_v15  ;;  %v3273_v22 = vadd.f32 %v15005_v48, %v3010_v14  ;;  %v3008_v63 = vmul.f32 %v15016_v50, %v2494_v57  ;;  %v3524_v21 = vmax.f32 %v3268_v17, 0.0  ;;  %v6808_v23 = vsel %vm6592_vm6, %v6744_v58, %v12284_v8  ;;  %v4519_v54 = vld [vmem:[#allocation3 + $0x321] sm:$0xff]  ;;  %v15337_v1 = vld [vmem:[%s17706_s2] ss:$0 sm:$0xff]  ;;  %v4440_v8 = vld [vmem:[#allocation3 + $0x1f0] sm:$0xff] }
 0x235   : > { %v11700_v39 = vpop.f32.mrf.mxu0  ;;  %v6809_v0 = vsel %vm6592_vm6, %v6745_v38, %v12285_v20  ;;  %12532 = vrot.lane.b32.xlu1 %v12531_v16, %s13441_s22  ;;  %v12290_v33 = vunpack.i.h.bf16 %v12288_v34  ;;  %v12289_v62 = vunpack.i.l.bf16 %v12288_v34  ;;  %v12298_v9 = vpop.permute.xlu1 %12297  ;;  %v12521_v40 = vpack.i.bf16 %v4839_v27, %v4646_v5  ;;  %v4439_v28 = vld [vmem:[#allocation3 + $0x1e0] sm:$0xff] }
 0x236   : > { %v3271_v36 = vadd.f32 %v15005_v48, %v3008_v63  ;;  %v3011_v47 = vmul.f32 %v15016_v50, %v11700_v39  ;;  %v3696_v32 = vmax.f32 %v3524_v21, %v3526_v30  ;;  %v3529_v42 = vmax.f32 %v3273_v22, 0.0  ;;  %v4583_v14 = vld [vmem:[#allocation3 + $0x322] sm:$0xff] }
 0x237   : > { %v3950_v45 = vld [vmem:[#allocation2 + $0x290] ss:$2 sm:$0xff]  ;;  %v4078_v24 = vld [vmem:[#allocation2 + $0x291] ss:$2 sm:$0xff]  ;;  %v2497_v19 = vpop.f32.mrf.mxu0  ;;  %v6681_v46 = vsel %vm6657_vm7, %v6616_v52, %v12295_v55  ;;  %v6872_v49 = vsel %vm6657_vm7, %v6808_v23, %v12289_v62  ;;  %v6873_v35 = vsel %vm6657_vm7, %v6809_v0, %v12290_v33  ;;  %v12299_v59 = vunpack.i.l.bf16 %v12298_v9  ;;  %v12308_v6 = vpop.permute.xlu0 %12307 }
 0x238   : > { %v4164_v41 = vmax.f32 %v3950_v45, %v4078_v24  ;;  %v3527_v26 = vmax.f32 %v3271_v36, 0.0  ;;  %3825 = vst.msk [vmem:[#allocation2 + $0x2a8] sm:$0xff] %vm3739_vm3, %v3696_v32  ;;  %v3274_v13 = vadd.f32 %v15005_v48, %v3011_v47  ;;  %v3009_v43 = vmul.f32 %v15016_v50, %v2497_v19  ;;  %12522 = vrot.lane.b32.xlu0 %v12521_v40, %s13439_s16  ;;  %v4695_v62 = vld [vmem:[#allocation3 + $0x1f1] sm:$0xff] }
 0x239   : > { %v11703_v10 = vpop.f32.mrf.mxu0  ;;  %v6948_v44 = vpack.c.bf16 %v6873_v35, %v6872_v49  ;;  %v15325_v60 = vpop.permute.xlu1 %12302  ;;  %v6947_v61 = vpack.c.bf16 %v6681_v46, %v6680_v25  ;;  %v4520_v4 = vld [vmem:[#allocation3 + $0x331] sm:$0xff]  ;;  %v12300_v5 = vunpack.i.h.bf16 %v12298_v9  ;;  %v12526_v15 = vpack.i.bf16 %v4903_v56, %v4902_v53  ;;  %v4696_v9 = vld [vmem:[#allocation3 + $0x201] sm:$0xff] }
 0x23a   : > { %4392 = vst.msk [vmem:[#allocation3 + $0x341] sm:$0xff] %vm3739_vm3, %v4164_v41  ;;  %v3697_v51 = vmax.f32 %v3527_v26, %v3529_v42  ;;  %v3272_v48 = vadd.f32 %v15330_v2, %v3009_v43  ;;  %v3014_v29 = vmul.f32 %v15337_v1, %v11703_v10  ;;  %v3530_v12 = vmax.f32 %v3274_v13, 0.0  ;;  %v4584_v16 = vld [vmem:[#allocation3 + $0x332] sm:$0xff] }
 0x23b   : > { %v2510_v50 = vpop.f32.mrf.mxu0  ;;  %7370 = vmatprep.mubr.bf16.mxu1 %v6948_v44  ;;  %v12536_v55 = vpack.i.bf16 %v4520_v4, %v4519_v54  ;;  %v15345_v17 = vsel %vm3739_vm3, %v4439_v28, %v12299_v59  ;;  %v12310_v57 = vunpack.i.h.bf16 %v12308_v6  ;;  %v12309_v58 = vunpack.i.l.bf16 %v12308_v6  ;;  %v4647_v13 = vld [vmem:[#allocation3 + $0x330] sm:$0xff] }
 0x23c   : > { %3826 = vst.msk [vmem:[#allocation2 + $0x2b0] sm:$0xff] %vm3739_vm3, %v3697_v51  ;;  %v3012_v7 = vmul.f32 %v15337_v1, %v2510_v50  ;;  %7371 = vmatmul.mubr.bf16.gmra.mxu1 %v6947_v61  ;;  %v3528_v37 = vmax.f32 %v3272_v48, 0.0  ;;  %v3277_v18 = vadd.f32 %v15330_v2, %v3014_v29  ;;  %12527 = vrot.lane.b32.xlu0 %v12526_v15, %s13441_s22  ;;  %v12305_v42 = vunpack.i.h.bf16 %v15325_v60 }
 0x23d   : > { %v11704_v3 = vpop.f32.mrf.mxu0  ;;  %v6553_v63 = vsel %vm3739_vm3, %v4440_v8, %v12300_v5  ;;  %12537 = vrot.lane.b32.xlu1 %v12536_v55, %s13440_s17  ;;  %v12541_v25 = vpack.i.bf16 %v4584_v16, %v4583_v14  ;;  %v15350_v36 = vpop.permute.xlu1 %12312  ;;  %v12304_v26 = vunpack.i.l.bf16 %v15325_v60  ;;  %v6746_v46 = vsel %vm3739_vm3, %v4695_v62, %v12309_v58 }
 0x23e   : > { %v3275_v11 = vadd.f32 %v15330_v2, %v3012_v7  ;;  %v3015_v20 = vmul.f32 %v15337_v1, %v11704_v3  ;;  %v3698_v38 = vmax.f32 %v3528_v37, %v3530_v12  ;;  %v3533_v21 = vmax.f32 %v3277_v18, 0.0 }
 0x23f   : > { %v2513_v22 = vpop.f32.mrf.mxu0  ;;  %v3952_v27 = vld [vmem:[#allocation2 + $0x2a0] ss:$2 sm:$0xff]  ;;  %v4080_v30 = vld [vmem:[#allocation2 + $0x2a1] ss:$2 sm:$0xff]  ;;  %v12318_v52 = vpop.permute.xlu0 %12317  ;;  %v6747_v49 = vsel %vm3739_vm3, %v4696_v9, %v12310_v57  ;;  %v12315_v43 = vunpack.i.h.bf16 %v15350_v36  ;;  %v12314_v10 = vunpack.i.l.bf16 %v15350_v36  ;;  %v6618_v55 = vsel %vm6592_vm6, %v6553_v63, %v12305_v42 }
 0x240   : > { %v3531_v39 = vmax.f32 %v3275_v11, 0.0  ;;  %v4165_v34 = vmax.f32 %v3952_v27, %v4080_v30  ;;  %3827 = vst.msk [vmem:[#allocation2 + $0x2b8] sm:$0xff] %vm3739_vm3, %v3698_v38  ;;  %v3278_v23 = vadd.f32 %v15330_v2, %v3015_v20  ;;  %v12320_v0 = vunpack.i.h.bf16 %v12318_v52 }
 0x241   : > { %v12319_v47 = vunpack.i.l.bf16 %v12318_v52  ;;  %v11707_v45 = vpop.f32.mrf.mxu0  ;;  %v15354_v24 = vld [vmem:[#allocation3 + $0x342] sm:$0xff]  ;;  %v3013_v19 = vmul.f32 %v15337_v1, %v2513_v22  ;;  %12542 = vrot.lane.b32.xlu1 %v12541_v25, %s13439_s16  ;;  %v15375_v54 = vpop.permute.xlu1 %12327  ;;  %v6617_v11 = vsel %vm6592_vm6, %v15345_v17, %v12304_v26  ;;  %v6683_v63 = vsel %vm6657_vm7, %v6618_v55, %v12315_v43 }
 0x242   : > { %v15356_v33 = vld [vmem:[#allocation3 + $0x340] sm:$0xff]  ;;  %v3699_v32 = vmax.f32 %v3531_v39, %v3533_v21  ;;  %v3018_v40 = vmul.f32 %v15337_v1, %v11707_v45  ;;  %v12546_v41 = vpack.i.bf16 %v15354_v24, %v4584_v16  ;;  %4393 = vst.msk [vmem:[#allocation3 + $0x351] sm:$0xff] %vm3739_vm3, %v4165_v34  ;;  %v3534_v50 = vmax.f32 %v3278_v23, 0.0 }
 0x243   : > { %v2526_v35 = vpop.f32.mrf.mxu0  ;;  %v3276_v51 = vadd.f32 %v15330_v2, %v3013_v19  ;;  %v12323_v44 = vpop.permute.xlu0 %12322  ;;  %v12551_v53 = vpack.i.bf16 %v15356_v33, %v4647_v13  ;;  %v6810_v28 = vsel %vm6592_vm6, %v6746_v46, %v12319_v47  ;;  %v6811_v5 = vsel %vm6592_vm6, %v6747_v49, %v12320_v0  ;;  %v4521_v19 = vld [vmem:[#allocation3 + $0x341] sm:$0xff] }
 0x244   : > { %3828 = vst.msk [vmem:[#allocation2 + $0x2c0] sm:$0xff] %vm3739_vm3, %v3699_v32  ;;  %12547 = vrot.lane.b32.xlu0 %v12546_v41, %s13440_s17  ;;  %v3281_v56 = vadd.f32 %v15330_v2, %v3018_v40  ;;  %v12325_v59 = vunpack.i.h.bf16 %v12323_v44  ;;  %v12324_v60 = vunpack.i.l.bf16 %v12323_v44  ;;  %v3016_v61 = vmul.f32 %v15337_v1, %v2526_v35 }
 0x245   : > { %v11708_v48 = vpop.f32.mrf.mxu0  ;;  %v3532_v4 = vmax.f32 %v3276_v51, 0.0  ;;  %12552 = vrot.lane.b32.xlu1 %v12551_v53, %s13441_s22  ;;  %v6682_v39 = vsel %vm6657_vm7, %v6617_v11, %v12314_v10  ;;  %v15399_v36 = vpop.permute.xlu1 %12332  ;;  %v12330_v43 = vunpack.i.h.bf16 %v15375_v54  ;;  %v12329_v44 = vunpack.i.l.bf16 %v15375_v54 }
 0x246   : > { %v3279_v6 = vadd.f32 %v15330_v2, %v3016_v61  ;;  %v3019_v29 = vmul.f32 %v15337_v1, %v11708_v48  ;;  %v6874_v12 = vsel %vm6657_vm7, %v6810_v28, %v12324_v60  ;;  %v6875_v37 = vsel %vm6657_vm7, %v6811_v5, %v12325_v59 }
 0x247   : > { %v2529_v7 = vpop.f32.mrf.mxu0  ;;  %v3954_v15 = vld [vmem:[#allocation2 + $0x2b0] ss:$2 sm:$0xff]  ;;  %v4082_v3 = vld [vmem:[#allocation2 + $0x2b1] ss:$2 sm:$0xff]  ;;  %v3700_v14 = vmax.f32 %v3532_v4, %v3534_v50  ;;  %v15384_v16 = vpop.f32.mrf.mxu1  ;;  %v3537_v8 = vmax.f32 %v3281_v56, 0.0  ;;  %v6951_v30 = vpack.c.bf16 %v6875_v37, %v6874_v12  ;;  %v6950_v62 = vpack.c.bf16 %v6683_v63, %v6682_v39 }
 0x248   : > { %v3017_v18 = vmul.f32 %v15337_v1, %v2529_v7  ;;  %v4166_v20 = vmax.f32 %v3954_v15, %v4082_v3  ;;  %v3535_v57 = vmax.f32 %v3279_v6, 0.0  ;;  %v3282_v58 = vadd.f32 %v15330_v2, %v3019_v29  ;;  %v15412_v10 = vpop.permute.xlu0 %12337 }
 0x249   : > { %v11711_v38 = vpop.f32.mrf.mxu0  ;;  %3829 = vst.msk [vmem:[#allocation2 + $0x2c8] sm:$0xff] %vm3739_vm3, %v3700_v14  ;;  %v7286_v27 = vpop.f32.mrf.mxu1  ;;  %v15395_v52 = vld [vmem:[#allocation3 + $0x350] sm:$0xff]  ;;  %7378 = vmatprep.mubr.bf16.mxu1 %v6951_v30  ;;  %v12335_v59 = vunpack.i.h.bf16 %v15399_v36  ;;  %v12334_v54 = vunpack.i.l.bf16 %v15399_v36  ;;  %v12340_v12 = vunpack.i.h.bf16 %v15412_v10  ;;  %v4441_v14 = vld [vmem:[#allocation3 + $0x200] sm:$0xff] }
 0x24a   : > { %v3280_v22 = vadd.f32 %v15330_v2, %v3017_v18  ;;  %v3022_v21 = vmul.f32 %v15337_v1, %v11711_v38  ;;  %4394 = vst.msk [vmem:[#allocation3 + $0x361] sm:$0xff] %vm3739_vm3, %v4166_v20  ;;  %v3701_v17 = vmax.f32 %v3535_v57, %v3537_v8  ;;  %v4522_v34 = vld [vmem:[#allocation3 + $0x351] sm:$0xff]  ;;  %v3538_v23 = vmax.f32 %v3282_v58, 0.0  ;;  %7379 = vmatmul.mubr.bf16.gmra.mxu1 %v6950_v62  ;;  %v12343_v4 = vpop.permute.xlu1 %12342  ;;  %v4698_v27 = vld [vmem:[#allocation3 + $0x221] sm:$0xff] }
 0x24b   : > { %v2542_v25 = vpop.f32.mrf.mxu0  ;;  %v15401_v47 = vpop.f32.mrf.mxu1  ;;  %v12556_v32 = vpack.i.bf16 %v15395_v52, %v15356_v33  ;;  %v12566_v26 = vpack.i.bf16 %v4522_v34, %v4521_v19  ;;  %v4586_v13 = vld [vmem:[#allocation3 + $0x352] sm:$0xff]  ;;  %v6554_v20 = vsel %vm3739_vm3, %v4441_v14, %v12329_v44  ;;  %v12339_v8 = vunpack.i.l.bf16 %v15412_v10 }
 0x24c   : > { %v3536_v0 = vmax.f32 %v3280_v22, 0.0  ;;  %3830 = vst.msk [vmem:[#allocation2 + $0x2d0] sm:$0xff] %vm3739_vm3, %v3701_v17  ;;  %v3285_v45 = vadd.f32 %v15330_v2, %v3022_v21  ;;  %v3020_v9 = vmul.f32 %v15337_v1, %v2542_v25  ;;  %v12571_v5 = vpack.i.bf16 %v4586_v13, %v15354_v24  ;;  %v4442_v22 = vld [vmem:[#allocation3 + $0x210] sm:$0xff] }
 0x24d   : > { %v11712_v40 = vpop.f32.mrf.mxu0  ;;  %v7289_v42 = vpop.f32.mrf.mxu1  ;;  %12557 = vrot.lane.b32.xlu0 %v12556_v32, %s13439_s16  ;;  %12567 = vrot.lane.b32.xlu1 %v12566_v26, %s13440_s17  ;;  %v12345_v57 = vunpack.i.h.bf16 %v12343_v4  ;;  %v12344_v30 = vunpack.i.l.bf16 %v12343_v4  ;;  %v6749_v63 = vsel %vm3739_vm3, %v4698_v27, %v12340_v12 }
 0x24e   : > { %v3702_v41 = vmax.f32 %v3536_v0, %v3538_v23  ;;  %v3023_v46 = vmul.f32 %v15337_v1, %v11712_v40  ;;  %v3283_v49 = vadd.f32 %v15330_v2, %v3020_v9  ;;  %v3541_v60 = vmax.f32 %v3285_v45, 0.0  ;;  %v4697_v40 = vld [vmem:[#allocation3 + $0x211] sm:$0xff] }
 0x24f   : > { %v2545_v35 = vpop.f32.mrf.mxu0  ;;  %v6619_v0 = vsel %vm6592_vm6, %v6554_v20, %v12334_v54 }
 0x250   : > { %3831 = vst.msk [vmem:[#allocation2 + $0x2d8] sm:$0xff] %vm3739_vm3, %v3702_v41  ;;  %v3286_v33 = vadd.f32 %v15330_v2, %v3023_v46  ;;  %v3021_v51 = vmul.f32 %v15337_v1, %v2545_v35  ;;  %v3956_v53 = vld [vmem:[#allocation2 + $0x2c0] ss:$2 sm:$0xff]  ;;  %v4084_v56 = vld [vmem:[#allocation2 + $0x2c1] ss:$2 sm:$0xff]  ;;  %v3539_v61 = vmax.f32 %v3283_v49, 0.0  ;;  %v6748_v35 = vsel %vm3739_vm3, %v4697_v40, %v12339_v8 }
 0x251   : > { %v11715_v48 = vpop.f32.mrf.mxu0  ;;  %v4167_v50 = vmax.f32 %v3956_v53, %v4084_v56  ;;  %v15423_v29 = vld [vmem:[#allocation3 + $0x362] sm:$0xff]  ;;  %12562 = vrot.lane.b32.xlu0 %v12566_v26, %s13441_s22  ;;  %12572 = vrot.lane.b32.xlu1 %v12571_v5, %s13439_s16  ;;  %v6684_v10 = vsel %vm6657_vm7, %v6619_v0, %v12344_v30 }
 0x252   : > { %v3284_v28 = vadd.f32 %v15330_v2, %v3021_v51  ;;  %v3026_v6 = vmul.f32 %v15337_v1, %v11715_v48  ;;  %v15425_v7 = vld [vmem:[#allocation3 + $0x360] sm:$0xff]  ;;  %v3703_v37 = vmax.f32 %v3539_v61, %v3541_v60  ;;  %v12576_v3 = vpack.i.bf16 %v15423_v29, %v4586_v13 }
 0x253   : > { %v2558_v15 = vpop.f32.mrf.mxu0  ;;  %4395 = vst.msk [vmem:[#allocation3 + $0x371] sm:$0xff] %vm3739_vm3, %v4167_v50  ;;  %v3542_v24 = vmax.f32 %v3286_v33, 0.0  ;;  %v12581_v55 = vpack.i.bf16 %v15425_v7, %v15395_v52  ;;  %v6555_v52 = vsel %vm3739_vm3, %v4442_v22, %v12330_v43  ;;  %v4523_v14 = vld [vmem:[#allocation3 + $0x361] sm:$0xff] }
 0x254   : > { %v3540_v18 = vmax.f32 %v3284_v28, 0.0  ;;  %v3024_v11 = vmul.f32 %v15337_v1, %v2558_v15  ;;  %3832 = vst.msk [vmem:[#allocation2 + $0x2e0] sm:$0xff] %vm3739_vm3, %v3703_v37  ;;  %v3289_v58 = vadd.f32 %v15330_v2, %v3026_v6  ;;  %v6620_v19 = vsel %vm6592_vm6, %v6555_v52, %v12335_v59 }
 0x255   : > { %v11716_v38 = vpop.f32.mrf.mxu0  ;;  %v12348_v36 = vpop.permute.xlu0 %12347  ;;  %12577 = vrot.lane.b32.xlu0 %v12576_v3, %s13440_s17  ;;  %12582 = vrot.lane.b32.xlu1 %v12581_v55, %s13441_s22  ;;  %v6685_v33 = vsel %vm6657_vm7, %v6620_v19, %v12345_v57 }
 0x256   : > { %v3704_v21 = vmax.f32 %v3540_v18, %v3542_v24  ;;  %v3287_v39 = vadd.f32 %v15330_v2, %v3024_v11  ;;  %v3027_v17 = vmul.f32 %v15337_v1, %v11716_v38  ;;  %v12350_v62 = vunpack.i.h.bf16 %v12348_v36  ;;  %v4443_v24 = vld [vmem:[#allocation3 + $0x220] sm:$0xff]  ;;  %v4444_v18 = vld [vmem:[#allocation3 + $0x230] sm:$0xff] }
 0x257   : > { %v3958_v25 = vld [vmem:[#allocation2 + $0x2d0] ss:$2 sm:$0xff]  ;;  %v4086_v34 = vld [vmem:[#allocation2 + $0x2d1] ss:$2 sm:$0xff]  ;;  %v12358_v23 = vpop.permute.xlu1 %12357  ;;  %v12349_v9 = vunpack.i.l.bf16 %v12348_v36  ;;  %v2561_v32 = vpop.f32.mrf.mxu0  ;;  %v3545_v41 = vmax.f32 %v3289_v58, 0.0 }
 0x258   : > { %v4168_v45 = vmax.f32 %v3958_v25, %v4086_v34  ;;  %3833 = vst.msk [vmem:[#allocation2 + $0x2e8] sm:$0xff] %vm3739_vm3, %v3704_v21  ;;  %v3543_v42 = vmax.f32 %v3287_v39, 0.0  ;;  %v3290_v26 = vadd.f32 %v15330_v2, %v3027_v17  ;;  %v3025_v46 = vmul.f32 %v15337_v1, %v2561_v32 }
 0x259   : > { %v15451_v49 = vpop.f32.mrf.mxu1  ;;  %v12360_v13 = vunpack.i.h.bf16 %v12358_v23  ;;  %v11719_v43 = vpop.f32.mrf.mxu0  ;;  %v12359_v51 = vunpack.i.l.bf16 %v12358_v23  ;;  %v6812_v60 = vsel %vm6592_vm6, %v6748_v35, %v12349_v9  ;;  %v6813_v5 = vsel %vm6592_vm6, %v6749_v63, %v12350_v62 }
 0x25a   : > { %4396 = vst.msk [vmem:[#allocation3 + $0x381] sm:$0xff] %vm3739_vm3, %v4168_v45  ;;  %v12353_v44 = vpop.permute.xlu0 %12352  ;;  %v3705_v56 = vmax.f32 %v3543_v42, %v3545_v41  ;;  %v3288_v59 = vadd.f32 %v15330_v2, %v3025_v46  ;;  %v15461_v61 = vld [vmem:[#allocation3 + $0x370] sm:$0xff]  ;;  %v3546_v28 = vmax.f32 %v3290_v26, 0.0  ;;  %v3030_v37 = vmul.f32 %v15337_v1, %v11719_v43 }
 0x25b   : > { %v15457_v53 = vpop.permute.xlu1 %12362  ;;  %v4524_v48 = vld [vmem:[#allocation3 + $0x371] sm:$0xff]  ;;  %v12355_v50 = vunpack.i.h.bf16 %v12353_v44  ;;  %v12354_v4 = vunpack.i.l.bf16 %v12353_v44  ;;  %v2574_v6 = vpop.f32.mrf.mxu0  ;;  %v12586_v3 = vpack.i.bf16 %v15461_v61, %v15425_v7  ;;  %v15479_v52 = vsel %vm3739_vm3, %v4443_v24, %v12359_v51 }
 0x25c   : > { %v7294_v54 = vpop.f32.mrf.mxu1  ;;  %3834 = vst.msk [vmem:[#allocation2 + $0x2f0] sm:$0xff] %vm3739_vm3, %v3705_v56  ;;  %v3544_v12 = vmax.f32 %v3288_v59, 0.0  ;;  %v3028_v15 = vmul.f32 %v15337_v1, %v2574_v6  ;;  %v12596_v20 = vpack.i.bf16 %v4524_v48, %v4523_v14  ;;  %v3293_v7 = vadd.f32 %v15330_v2, %v3030_v37  ;;  %v4588_v17 = vld [vmem:[#allocation3 + $0x372] sm:$0xff] }
 0x25d   : > { %v6876_v11 = vsel %vm6657_vm7, %v6812_v60, %v12354_v4  ;;  %v6877_v55 = vsel %vm6657_vm7, %v6813_v5, %v12355_v50  ;;  %v11720_v8 = vpop.f32.mrf.mxu0  ;;  %12587 = vrot.lane.b32.xlu0 %v12586_v3, %s13439_s16  ;;  %v15482_v63 = vsel %vm3739_vm3, %v4444_v18, %v12360_v13  ;;  %v6953_v34 = vpack.c.bf16 %v6685_v33, %v6684_v10  ;;  %v4699_v48 = vld [vmem:[#allocation3 + $0x231] sm:$0xff]  ;;  %v4700_v50 = vld [vmem:[#allocation3 + $0x241] sm:$0xff] }
 0x25e   : > { %v15471_v57 = vpop.f32.mrf.mxu1  ;;  %v12368_v22 = vpop.permute.xlu0 %12367  ;;  %v3706_v30 = vmax.f32 %v3544_v12, %v3546_v28  ;;  %v6954_v21 = vpack.c.bf16 %v6877_v55, %v6876_v11  ;;  %v3291_v39 = vadd.f32 %v15330_v2, %v3028_v15  ;;  %12597 = vrot.lane.b32.xlu1 %v12596_v20, %s13440_s17  ;;  %v12365_v0 = vunpack.i.h.bf16 %v15457_v53 }
 0x25f   : > { %v3960_v58 = vld [vmem:[#allocation2 + $0x2e0] ss:$2 sm:$0xff]  ;;  %v4088_v38 = vld [vmem:[#allocation2 + $0x2e1] ss:$2 sm:$0xff]  ;;  %v15473_v27 = vpop.permute.xlu1 %12372  ;;  %v2577_v36 = vpop.f32.mrf.mxu0  ;;  %v3549_v45 = vmax.f32 %v3293_v7, 0.0  ;;  %v3031_v9 = vmul.f32 %v15337_v1, %v11720_v8  ;;  %v12370_v40 = vunpack.i.h.bf16 %v12368_v22  ;;  %v12369_v41 = vunpack.i.l.bf16 %v12368_v22 }
 0x260   : > { %v4169_v25 = vmax.f32 %v3960_v58, %v4088_v38  ;;  %v7297_v23 = vpop.f32.mrf.mxu1  ;;  %3835 = vst.msk [vmem:[#allocation2 + $0x2f8] sm:$0xff] %vm3739_vm3, %v3706_v30  ;;  %7386 = vmatprep.mubr.bf16.mxu1 %v6954_v21  ;;  %v3547_v62 = vmax.f32 %v3291_v39, 0.0  ;;  %v3029_v42 = vmul.f32 %v15337_v1, %v2577_v36  ;;  %v12601_v26 = vpack.i.bf16 %v4588_v17, %v15423_v29 }
 0x261   : > { %v15488_v32 = vld [vmem:[#allocation3 + $0x382] sm:$0xff]  ;;  %7387 = vmatmul.mubr.bf16.gmra.mxu1 %v6953_v34  ;;  %v11723_v46 = vpop.f32.mrf.mxu0  ;;  %v3294_v13 = vadd.f32 %v15330_v2, %v3031_v9  ;;  %12592 = vrot.lane.b32.xlu0 %v12596_v20, %s13441_s22  ;;  %v12364_v44 = vunpack.i.l.bf16 %v15457_v53  ;;  %v12375_v4 = vunpack.i.h.bf16 %v15473_v27  ;;  %v6750_v54 = vsel %vm3739_vm3, %v4699_v48, %v12369_v41 }
 0x262   : > { %v15490_v19 = vld [vmem:[#allocation3 + $0x380] sm:$0xff]  ;;  %4397 = vst.msk [vmem:[#allocation3 + $0x391] sm:$0xff] %vm3739_vm3, %v4169_v25  ;;  %v3707_v35 = vmax.f32 %v3547_v62, %v3549_v45  ;;  %v12378_v43 = vpop.permute.xlu0 %12377  ;;  %v3034_v33 = vmul.f32 %v15337_v1, %v11723_v46  ;;  %v12606_v51 = vpack.i.bf16 %v15488_v32, %v4588_v17  ;;  %12602 = vrot.lane.b32.xlu1 %v12601_v26, %s13439_s16  ;;  %v12374_v37 = vunpack.i.l.bf16 %v15473_v27 }
 0x263   : > { %v15496_v10 = vpop.permute.xlu1 %12387  ;;  %v12380_v56 = vunpack.i.h.bf16 %v12378_v43  ;;  %v12379_v59 = vunpack.i.l.bf16 %v12378_v43  ;;  %v2590_v29 = vpop.f32.mrf.mxu0  ;;  %v12611_v60 = vpack.i.bf16 %v15490_v19, %v15461_v61  ;;  %v3292_v28 = vadd.f32 %v15330_v2, %v3029_v42 }
 0x264   : > { %3836 = vst.msk [vmem:[#allocation2 + $0x300] sm:$0xff] %vm3739_vm3, %v3707_v35  ;;  %v3297_v5 = vadd.f32 %v15330_v2, %v3034_v33  ;;  %v3032_v6 = vmul.f32 %v15337_v1, %v2590_v29  ;;  %v6751_v12 = vsel %vm3739_vm3, %v4700_v50, %v12370_v40  ;;  %v3550_v15 = vmax.f32 %v3294_v13, 0.0 }
 0x265   : > { %v11724_v61 = vpop.f32.mrf.mxu0  ;;  %v3548_v3 = vmax.f32 %v3292_v28, 0.0  ;;  %12607 = vrot.lane.b32.xlu0 %v12606_v51, %s13440_s17  ;;  %v6814_v55 = vsel %vm6592_vm6, %v6750_v54, %v12379_v59  ;;  %v6815_v30 = vsel %vm6592_vm6, %v6751_v12, %v12380_v56  ;;  %v12390_v25 = vunpack.i.h.bf16 %v15496_v10 }
 0x266   : > { %v12383_v14 = vpop.permute.xlu0 %12382  ;;  %v3295_v18 = vadd.f32 %v15330_v2, %v3032_v6  ;;  %v3035_v11 = vmul.f32 %v15337_v1, %v11724_v61  ;;  %v3553_v58 = vmax.f32 %v3297_v5, 0.0  ;;  %12612 = vrot.lane.b32.xlu1 %v12611_v60, %s13441_s22  ;;  %v12389_v9 = vunpack.i.l.bf16 %v15496_v10 }
 0x267   : > { %v15513_v24 = vpop.permute.xlu1 %12392  ;;  %v3962_v20 = vld [vmem:[#allocation2 + $0x2f0] ss:$2 sm:$0xff]  ;;  %v4090_v8 = vld [vmem:[#allocation2 + $0x2f1] ss:$2 sm:$0xff]  ;;  %v12385_v38 = vunpack.i.h.bf16 %v12383_v14  ;;  %v12384_v22 = vunpack.i.l.bf16 %v12383_v14  ;;  %v2593_v27 = vpop.f32.mrf.mxu0  ;;  %v3708_v7 = vmax.f32 %v3548_v3, %v3550_v15  ;;  %v6621_v33 = vsel %vm6592_vm6, %v15479_v52, %v12364_v44 }
 0x268   : > { %v4170_v21 = vmax.f32 %v3962_v20, %v4090_v8  ;;  %v3551_v39 = vmax.f32 %v3295_v18, 0.0  ;;  %v3298_v17 = vadd.f32 %v15330_v2, %v3035_v11  ;;  %v3033_v34 = vmul.f32 %v15337_v1, %v2593_v27  ;;  %v4701_v20 = vld [vmem:[#allocation3 + $0x251] sm:$0xff]  ;;  %v4702_v8 = vld [vmem:[#allocation3 + $0x261] sm:$0xff] }
 0x269   : > { %v6878_v36 = vsel %vm6657_vm7, %v6814_v55, %v12384_v22  ;;  %v6879_v23 = vsel %vm6657_vm7, %v6815_v30, %v12385_v38  ;;  %v11727_v45 = vpop.f32.mrf.mxu0  ;;  %3837 = vst.msk [vmem:[#allocation2 + $0x308] sm:$0xff] %vm3739_vm3, %v3708_v7  ;;  %v12395_v35 = vunpack.i.h.bf16 %v15513_v24  ;;  %v12394_v13 = vunpack.i.l.bf16 %v15513_v24  ;;  %v15538_v59 = vld [vmem:[#allocation3 + $0x390] sm:$0xff] }
 0x26a   : > { %v15526_v62 = vpop.f32.mrf.mxu1  ;;  %4398 = vst.msk [vmem:[#allocation3 + $0x3a1] sm:$0xff] %vm3739_vm3, %v4170_v21  ;;  %v3709_v40 = vmax.f32 %v3551_v39, %v3553_v58  ;;  %v12398_v41 = vpop.permute.xlu0 %12397  ;;  %v6957_v26 = vpack.c.bf16 %v6879_v23, %v6878_v36  ;;  %v3038_v46 = vmul.f32 %v15337_v1, %v11727_v45  ;;  %v3554_v43 = vmax.f32 %v3298_v17, 0.0  ;;  %v4526_v28 = vld [vmem:[#allocation3 + $0x391] sm:$0xff] }
 0x26b   : > { %v15531_v42 = vpop.permute.xlu1 %12412  ;;  %v2606_v51 = vpop.f32.mrf.mxu0  ;;  %v12400_v29 = vunpack.i.h.bf16 %v12398_v41  ;;  %v3296_v60 = vadd.f32 %v15330_v2, %v3033_v34  ;;  %v6622_v48 = vsel %vm6592_vm6, %v15482_v63, %v12365_v0  ;;  %v6686_v50 = vsel %vm6657_vm7, %v6621_v33, %v12374_v37  ;;  %v4525_v0 = vld [vmem:[#allocation3 + $0x381] sm:$0xff]  ;;  %v15560_v27 = vld [vmem:[#allocation3 + $0x392] sm:$0xff] }
 0x26c   : > { %v7302_v56 = vpop.f32.mrf.mxu1  ;;  %3838 = vst.msk [vmem:[#allocation2 + $0x310] sm:$0xff] %vm3739_vm3, %v3709_v40  ;;  %7394 = vmatprep.mubr.bf16.mxu1 %v6957_v26  ;;  %v12399_v5 = vunpack.i.l.bf16 %v12398_v41  ;;  %v3301_v52 = vadd.f32 %v15330_v2, %v3038_v46  ;;  %v6687_v44 = vsel %vm6657_vm7, %v6622_v48, %v12375_v4  ;;  %v3036_v6 = vmul.f32 %v15337_v1, %v2606_v51 }
 0x26d   : > { %v11728_v54 = vpop.f32.mrf.mxu0  ;;  %v12415_v15 = vunpack.i.h.bf16 %v15531_v42  ;;  %v3552_v61 = vmax.f32 %v3296_v60, 0.0  ;;  %v6956_v53 = vpack.c.bf16 %v6687_v44, %v6686_v50  ;;  %v12616_v63 = vpack.i.bf16 %v15538_v59, %v15490_v19  ;;  %v4446_v44 = vld [vmem:[#allocation3 + $0x250] sm:$0xff] }
 0x26e   : > { %v15550_v12 = vpop.f32.mrf.mxu1  ;;  %v12403_v3 = vpop.permute.xlu0 %12402  ;;  %v12414_v37 = vunpack.i.l.bf16 %v15531_v42  ;;  %v3299_v18 = vadd.f32 %v15330_v2, %v3036_v6  ;;  %v12626_v4 = vpack.i.bf16 %v4526_v28, %v4525_v0  ;;  %v3039_v22 = vmul.f32 %v15337_v1, %v11728_v54 }
 0x26f   : > { %v12405_v14 = vunpack.i.h.bf16 %v12403_v3  ;;  %v2609_v11 = vpop.f32.mrf.mxu0  ;;  %v3710_v58 = vmax.f32 %v3552_v61, %v3554_v43  ;;  %7395 = vmatmul.mubr.bf16.gmra.mxu1 %v6956_v53  ;;  %v12404_v38 = vunpack.i.l.bf16 %v12403_v3  ;;  %12617 = vrot.lane.b32.xlu0 %v12616_v63, %s13439_s16  ;;  %v6752_v7 = vsel %vm3739_vm3, %v4701_v20, %v12399_v5  ;;  %v15567_v41 = vpop.permute.xlu1 %12417 }
 0x270   : > { %v7305_v55 = vpop.f32.mrf.mxu1  ;;  %v3037_v19 = vmul.f32 %v15337_v1, %v2609_v11  ;;  %v3964_v30 = vld [vmem:[#allocation2 + $0x300] ss:$2 sm:$0xff]  ;;  %v4092_v21 = vld [vmem:[#allocation2 + $0x301] ss:$2 sm:$0xff]  ;;  %v6753_v39 = vsel %vm3739_vm3, %v4702_v8, %v12400_v29  ;;  %v3557_v17 = vmax.f32 %v3301_v52, 0.0  ;;  %v3555_v34 = vmax.f32 %v3299_v18, 0.0  ;;  %12627 = vrot.lane.b32.xlu1 %v12626_v4, %s13440_s17 }
 0x271   : > { %v11731_v36 = vpop.f32.mrf.mxu0  ;;  %v4171_v23 = vmax.f32 %v3964_v30, %v4092_v21  ;;  %3839 = vst.msk [vmem:[#allocation2 + $0x318] sm:$0xff] %vm3739_vm3, %v3710_v58  ;;  %v3302_v45 = vadd.f32 %v15330_v2, %v3039_v22  ;;  %v12631_v56 = vpack.i.bf16 %v15560_v27, %v15488_v32  ;;  %v6816_v50 = vsel %vm6592_vm6, %v6752_v7, %v12404_v38  ;;  %v4782_v5 = vld [vmem:[#allocation3 + $0x3a2] sm:$0xff]  ;;  %v4847_v21 = vld [vmem:[#allocation3 + $0x3b0] sm:$0xff] }
 0x272   : > { %v12408_v40 = vpop.permute.xlu0 %12407  ;;  %v3300_v26 = vadd.f32 %v15330_v2, %v3037_v19  ;;  %v3042_v46 = vmul.f32 %v15337_v1, %v11731_v36  ;;  %v3711_v43 = vmax.f32 %v3555_v34, %v3557_v17  ;;  %v6817_v28 = vsel %vm6592_vm6, %v6753_v39, %v12405_v14  ;;  %v4445_v52 = vld [vmem:[#allocation3 + $0x240] sm:$0xff] }
 0x273   : > { %v12410_v33 = vunpack.i.h.bf16 %v12408_v40  ;;  %v12409_v51 = vunpack.i.l.bf16 %v12408_v40  ;;  %v2622_v29 = vpop.f32.mrf.mxu0  ;;  %4399 = vst.msk [vmem:[#allocation3 + $0x3d1] sm:$0xff] %vm3739_vm3, %v4171_v23  ;;  %v3558_v60 = vmax.f32 %v3302_v45, 0.0  ;;  %12622 = vrot.lane.b32.xlu0 %v12626_v4, %s13441_s22  ;;  %v15583_v53 = vld [vmem:[#allocation3 + $0x3a0] sm:$0xff]  ;;  %v6558_v0 = vsel %vm3739_vm3, %v4445_v52, %v12389_v9  ;;  %v15593_v4 = vpop.permute.xlu1 %12422  ;;  %v4448_v23 = vld [vmem:[#allocation3 + $0x290] sm:$0xff] }
 0x274   : > { %v3556_v48 = vmax.f32 %v3300_v26, 0.0  ;;  %3840 = vst.msk [vmem:[#allocation2 + $0x320] sm:$0xff] %vm3739_vm3, %v3711_v43  ;;  %12632 = vrot.lane.b32.xlu1 %v12631_v56, %s13439_s16  ;;  %v3305_v32 = vadd.f32 %v15330_v2, %v3042_v46  ;;  %v3040_v6 = vmul.f32 %v15337_v1, %v2622_v29  ;;  %v6559_v14 = vsel %vm3739_vm3, %v4446_v44, %v12390_v25  ;;  %v4447_v9 = vld [vmem:[#allocation3 + $0x280] sm:$0xff] }
 0x275   : > { %v6880_v54 = vsel %vm6657_vm7, %v6816_v50, %v12409_v51  ;;  %v6881_v61 = vsel %vm6657_vm7, %v6817_v28, %v12410_v33  ;;  %v11732_v3 = vpop.f32.mrf.mxu0  ;;  %v15585_v63 = vpop.f32.mrf.mxu1  ;;  %v12420_v55 = vunpack.i.h.bf16 %v15567_v41  ;;  %v12419_v20 = vunpack.i.l.bf16 %v15567_v41  ;;  %v4527_v26 = vld [vmem:[#allocation3 + $0x3c1] sm:$0xff]  ;;  %v4911_v28 = vld [vmem:[#allocation3 + $0x3b1] sm:$0xff] }
 0x276   : > { %v3712_v18 = vmax.f32 %v3556_v48, %v3558_v60  ;;  %v6960_v11 = vpack.c.bf16 %v6881_v61, %v6880_v54  ;;  %v3303_v8 = vadd.f32 %v15330_v2, %v3040_v6  ;;  %v12636_v58 = vpack.i.bf16 %v4782_v5, %v15560_v27  ;;  %v4910_v50 = vld [vmem:[#allocation3 + $0x3a1] sm:$0xff] }
 0x277   : > { %v15599_v38 = vpop.permute.xlu0 %12427  ;;  %v2625_v22 = vpop.f32.mrf.mxu0  ;;  %v12651_v10 = vpack.i.bf16 %v15583_v53, %v15538_v59  ;;  %v3043_v25 = vmul.f32 %v15337_v1, %v11732_v3  ;;  %v6623_v19 = vsel %vm6592_vm6, %v6558_v0, %v12394_v13  ;;  %v6624_v27 = vsel %vm6592_vm6, %v6559_v14, %v12395_v35  ;;  %v4704_v52 = vld [vmem:[#allocation3 + $0x2a1] sm:$0xff] }
 0x278   : > { %3841 = vst.msk [vmem:[#allocation2 + $0x328] sm:$0xff] %vm3739_vm3, %v3712_v18  ;;  %7402 = vmatprep.mubr.bf16.mxu1 %v6960_v11  ;;  %v7310_v30 = vpop.f32.mrf.mxu1  ;;  %v3966_v7 = vld [vmem:[#allocation2 + $0x310] ss:$2 sm:$0xff]  ;;  %v4094_v39 = vld [vmem:[#allocation2 + $0x311] ss:$2 sm:$0xff]  ;;  %v3561_v17 = vmax.f32 %v3305_v32, 0.0  ;;  %12637 = vrot.lane.b32.xlu0 %v12636_v58, %s13440_s17  ;;  %v6688_v59 = vsel %vm6657_vm7, %v6623_v19, %v12414_v37  ;;  %v6689_v13 = vsel %vm6657_vm7, %v6624_v27, %v12415_v15  ;;  %v12430_v45 = vunpack.i.h.bf16 %v15599_v38  ;;  %v15620_v40 = vpop.permute.xlu1 %12432 }
 0x279   : > { %v3559_v34 = vmax.f32 %v3303_v8, 0.0  ;;  %v11735_v36 = vpop.f32.mrf.mxu0  ;;  %v4172_v24 = vmax.f32 %v3966_v7, %v4094_v39  ;;  %12652 = vrot.lane.b32.xlu1 %v12651_v10, %s13441_s22  ;;  %v6959_v35 = vpack.c.bf16 %v6689_v13, %v6688_v59  ;;  %v15625_v46 = vsel %vm3739_vm3, %v4447_v9, %v12419_v20  ;;  %v4591_v11 = vld [vmem:[#allocation3 + $0x3c2] sm:$0xff]  ;;  %v4703_v19 = vld [vmem:[#allocation3 + $0x291] sm:$0xff] }
 0x27a   : > { %v15622_v41 = vpop.f32.mrf.mxu1  ;;  %v15628_v42 = vsel %vm3739_vm3, %v4448_v23, %v12420_v55  ;;  %v3306_v37 = vadd.f32 %v15330_v2, %v3043_v25  ;;  %v4528_v33 = vld [vmem:[#allocation3 + $0x3d1] sm:$0xff]  ;;  %v12425_v51 = vunpack.i.h.bf16 %v15593_v4  ;;  %v12424_v56 = vunpack.i.l.bf16 %v15593_v4 }
 0x27b   : > { %v3713_v15 = vmax.f32 %v3559_v34, %v3561_v17  ;;  %v2638_v43 = vpop.f32.mrf.mxu0  ;;  %4400 = vst.msk [vmem:[#allocation3 + $0x3e1] sm:$0xff] %vm3739_vm3, %v4172_v24  ;;  %7403 = vmatmul.mubr.bf16.gmra.mxu1 %v6959_v35  ;;  %v3041_v29 = vmul.f32 %v15337_v1, %v2625_v22  ;;  %v12641_v60 = vpack.i.bf16 %v4847_v21, %v15583_v53  ;;  %v12429_v5 = vunpack.i.l.bf16 %v15599_v38  ;;  %v4592_v10 = vld [vmem:[#allocation3 + $0x3d2] sm:$0xff] }
 0x27c   : > { %v7313_v48 = vpop.f32.mrf.mxu1  ;;  %v3046_v44 = vmul.f32 %v15337_v1, %v11735_v36  ;;  %v3044_v32 = vmul.f32 %v15337_v1, %v2638_v43  ;;  %v12656_v6 = vpack.i.bf16 %v4528_v33, %v4527_v26  ;;  %v15643_v3 = vsel %vm3739_vm3, %v4704_v52, %v12430_v45  ;;  %v13363_v45 = vld [vmem:[%s17708_s4 + $0x80] sm:$0xff]  }
 0x27d   : > { %3842 = vst.msk [vmem:[#allocation2 + $0x330] sm:$0xff] %vm3739_vm3, %v3713_v15  ;;  %v11736_v54 = vpop.f32.mrf.mxu0  ;;  %v12435_v53 = vunpack.i.h.bf16 %v15620_v40  ;;  %v3304_v0 = vadd.f32 %v15330_v2, %v3041_v29  ;;  %12642 = vrot.lane.b32.xlu0 %v12641_v60, %s13439_s16  ;;  %v3562_v8 = vmax.f32 %v3306_v37, 0.0  ;;  %v12646_v22 = vpack.i.bf16 %v4911_v28, %v4910_v50  ;;  %11783 = vmatprep.subr.bf16.mxu1 %v13363_v45 }
 0x27e   : > { %v3047_v14 = vmul.f32 %v15337_v1, %v11736_v54  ;;  %v3309_v58 = vadd.f32 %v15330_v2, %v3046_v44  ;;  %v3307_v38 = vadd.f32 %v15330_v2, %v3044_v32  ;;  %12657 = vrot.lane.b32.xlu1 %v12656_v6, %s13440_s17  ;;  %v6754_v7 = vsel %vm3739_vm3, %v4703_v19, %v12429_v5  ;;  %v4655_v44 = vld [vmem:[#allocation3 + $0x3d0] sm:$0xff] }
 0x27f   : > { %v15640_v61 = vpop.permute.xlu0 %12437  ;;  %v15649_v18 = vpop.permute.xlu1 %12447  ;;  %v3968_v55 = vld [vmem:[#allocation2 + $0x320] ss:$2 sm:$0xff]  ;;  %v4096_v20 = vld [vmem:[#allocation2 + $0x321] ss:$2 sm:$0xff]  ;;  %v3560_v27 = vmax.f32 %v3304_v0, 0.0  ;;  %v12434_v39 = vunpack.i.l.bf16 %v15620_v40  ;;  %v12661_v35 = vpack.i.bf16 %v4592_v10, %v4591_v11  ;;  %11784 = vmatpush3.bf16.msra.mxu1 %v13363_v45 }
 0x280   : > { %v2641_v9 = vpop.f32.mrf.mxu0  ;;  %v4173_v25 = vmax.f32 %v3968_v55, %v4096_v20  ;;  %v3310_v30 = vadd.f32 %v15330_v2, %v3047_v14  ;;  %v3565_v17 = vmax.f32 %v3309_v58, 0.0  ;;  %v3563_v34 = vmax.f32 %v3307_v38, 0.0  ;;  %v4449_v14 = vld [vmem:[#allocation3 + $0x2a0] sm:$0xff] }
 0x281   : > { %v3045_v21 = vmul.f32 %v15337_v1, %v2641_v9  ;;  %v3714_v36 = vmax.f32 %v3560_v27, %v3562_v8  ;;  %12647 = vrot.lane.b32.xlu0 %v12646_v22, %s13441_s22  ;;  %v12439_v24 = vunpack.i.l.bf16 %v15640_v61  ;;  %v12450_v15 = vunpack.i.h.bf16 %v15649_v18  ;;  %v15689_v20 = vld [vmem:[%s17707_s3] ss:$0 sm:$0xff] }
 0x282   : > { %v11739_v59 = vpop.f32.mrf.mxu0  ;;  %4401 = vst.msk [vmem:[#allocation3 + $0x3f1] sm:$0xff] %vm3739_vm3, %v4173_v25  ;;  %v3715_v26 = vmax.f32 %v3563_v34, %v3565_v17  ;;  %v12449_v37 = vunpack.i.l.bf16 %v15649_v18  ;;  %v15670_v29 = vld [vmem:[#allocation3 + $0x3e2] sm:$0xff]  ;;  %v3566_v48 = vmax.f32 %v3310_v30, 0.0  ;;  %v12440_v50 = vunpack.i.h.bf16 %v15640_v61  ;;  %12662 = vrot.lane.b32.xlu1 %v12661_v35, %s13439_s16  ;;  %v4450_v18 = vld [vmem:[#allocation3 + $0x2b0] sm:$0xff]  ;;  %v15710_v30 = vld [vmem:[%s17706_s2] ss:$0 sm:$0xff] }
 0x283   : > { %v15658_v13 = vpop.permute.xlu0 %12442  ;;  %v3308_v23 = vadd.f32 %v15330_v2, %v3045_v21  ;;  %v3050_v43 = vmul.f32 %v15337_v1, %v11739_v59  ;;  %v15672_v60 = vld [vmem:[#allocation3 + $0x3e0] sm:$0xff]  ;;  %3843 = vst.msk [vmem:[#allocation2 + $0x338] sm:$0xff] %vm3739_vm3, %v3714_v36  ;;  %v15677_v5 = vpop.permute.xlu1 %12452  ;;  %v12666_v54 = vpack.i.bf16 %v15670_v29, %v4592_v10  ;;  %v15699_v22 = vsel %vm3739_vm3, %v4450_v18, %v12450_v15 }
 0x284   : > { %v2654_v33 = vpop.f32.mrf.mxu0  ;;  %3844 = vst.msk [vmem:[#allocation2 + $0x340] sm:$0xff] %vm3739_vm3, %v3715_v26  ;;  %v12444_v6 = vunpack.i.l.bf16 %v15658_v13  ;;  %v12671_v0 = vpack.i.bf16 %v15672_v60, %v4655_v44  ;;  %v12445_v55 = vunpack.i.h.bf16 %v15658_v13  ;;  %v15696_v38 = vsel %vm3739_vm3, %v4449_v14, %v12449_v37  ;;  %v4529_v4 = vld [vmem:[#allocation3 + $0x3e1] sm:$0xff] }
 0x285   : > { %v3564_v28 = vmax.f32 %v3308_v23, 0.0  ;;  %v3048_v52 = vmul.f32 %v15337_v1, %v2654_v33  ;;  %v3313_v32 = vadd.f32 %v15330_v2, %v3050_v43  ;;  %v12455_v9 = vunpack.i.h.bf16 %v15677_v5  ;;  %12667 = vrot.lane.b32.xlu0 %v12666_v54, %s13440_s17  ;;  %v4706_v14 = vld [vmem:[#allocation3 + $0x2c1] sm:$0xff] }
 0x286   : > { %v11740_v61 = vpop.f32.mrf.mxu0  ;;  %v6818_v25 = vsel %vm6592_vm6, %v6754_v7, %v12439_v24  ;;  %12672 = vrot.lane.b32.xlu1 %v12671_v0, %s13441_s22  ;;  %v6819_v7 = vsel %vm6592_vm6, %v15643_v3, %v12440_v50  ;;  %v6625_v36 = vsel %vm6592_vm6, %v15625_v46, %v12424_v56  ;;  %v6626_v46 = vsel %vm6592_vm6, %v15628_v42, %v12425_v51 }
 0x287   : > { %v3716_v11 = vmax.f32 %v3564_v28, %v3566_v48  ;;  %v3311_v2 = vadd.f32 %v15689_v20, %v3048_v52  ;;  %v3051_v8 = vmul.f32 %v15337_v1, %v11740_v61  ;;  %v15693_v58 = vpop.permute.xlu0 %12457  ;;  %v3569_v19 = vmax.f32 %v3313_v32, 0.0  ;;  %v15723_v35 = vpop.permute.xlu1 %12462 }
 0x288   : > { %v2657_v10 = vpop.f32.mrf.mxu0  ;;  %v12460_v17 = vunpack.i.h.bf16 %v15693_v58  ;;  %v6882_v34 = vsel %vm6657_vm7, %v6818_v25, %v12444_v6  ;;  %v6883_v26 = vsel %vm6657_vm7, %v6819_v7, %v12445_v55  ;;  %v6690_v56 = vsel %vm6657_vm7, %v6625_v36, %v12434_v39 }
 0x289   : > { %3845 = vst.msk [vmem:[#allocation2 + $0x348] sm:$0xff] %vm3739_vm3, %v3716_v11  ;;  %v3567_v27 = vmax.f32 %v3311_v2, 0.0  ;;  %v3314_v1 = vadd.f32 %v15689_v20, %v3051_v8  ;;  %v3049_v21 = vmul.f32 %v15710_v30, %v2657_v10  ;;  %v15727_v15 = vld [vmem:[#allocation3 + $0x3f0] sm:$0xff]  ;;  %v6963_v33 = vpack.c.bf16 %v6883_v26, %v6882_v34 }
 0x28a   : > { %v11743_v59 = vpop.f32.mrf.mxu0  ;;  %v15717_v13 = vpop.f32.mrf.mxu1  ;;  %v4530_v3 = vld [vmem:[#allocation3 + $0x3f1] sm:$0xff]  ;;  %v6691_v32 = vsel %vm6657_vm7, %v6626_v46, %v12435_v53  ;;  %v12676_v39 = vpack.i.bf16 %v15727_v15, %v15672_v60  ;;  %v12454_v40 = vunpack.i.l.bf16 %v15677_v5  ;;  %v12459_v10 = vunpack.i.l.bf16 %v15693_v58 }
 0x28b   : > { %v3717_v24 = vmax.f32 %v3567_v27, %v3569_v19  ;;  %v3570_v23 = vmax.f32 %v3314_v1, 0.0  ;;  %v3312_v45 = vadd.f32 %v15689_v20, %v3049_v21  ;;  %v3970_v37 = vld [vmem:[#allocation2 + $0x330] ss:$2 sm:$0xff]  ;;  %v4098_v43 = vld [vmem:[#allocation2 + $0x331] ss:$2 sm:$0xff]  ;;  %v3054_v48 = vmul.f32 %v15710_v30, %v11743_v59  ;;  %7410 = vmatprep.mubr.bf16.mxu1 %v6963_v33 }
 0x28c   : > { %v2670_v50 = vpop.f32.mrf.mxu0  ;;  %v7318_v28 = vpop.f32.mrf.mxu1  ;;  %v4174_v52 = vmax.f32 %v3970_v37, %v4098_v43  ;;  %v6962_v51 = vpack.c.bf16 %v6691_v32, %v6690_v56  ;;  %v12686_v54 = vpack.i.bf16 %v4530_v3, %v4529_v4  ;;  %v6757_v60 = vsel %vm3739_vm3, %v4706_v14, %v12460_v17  ;;  %12677 = vrot.lane.b32.xlu0 %v12676_v39, %s13439_s16  ;;  %v4594_v21 = vld [vmem:[#allocation3 + $0x3f2] sm:$0xff] }
 0x28d   : > { %3846 = vst.msk [vmem:[#allocation2 + $0x350] sm:$0xff] %vm3739_vm3, %v3717_v24  ;;  %v3568_v44 = vmax.f32 %v3312_v45, 0.0  ;;  %v3052_v6 = vmul.f32 %v15710_v30, %v2670_v50  ;;  %v3317_v42 = vadd.f32 %v15689_v20, %v3054_v48  ;;  %v12465_v25 = vunpack.i.h.bf16 %v15723_v35  ;;  %v4705_v3 = vld [vmem:[#allocation3 + $0x2b1] sm:$0xff] }
 0x28e   : > { %v11744_v0 = vpop.f32.mrf.mxu0  ;;  %v15745_v61 = vpop.f32.mrf.mxu1  ;;  %4402 = vst.msk [vmem:[#allocation3 + $0x401] sm:$0xff] %vm3739_vm3, %v4174_v52  ;;  %v12464_v19 = vunpack.i.l.bf16 %v15723_v35  ;;  %7411 = vmatmul.mubr.bf16.gmra.mxu1 %v6962_v51  ;;  %12687 = vrot.lane.b32.xlu1 %v12686_v54, %s13440_s17  ;;  %v12691_v33 = vpack.i.bf16 %v4594_v21, %v15670_v29  ;;  %v6756_v56 = vsel %vm3739_vm3, %v4705_v3, %v12459_v10  ;;  %v4452_v32 = vld [vmem:[#allocation3 + $0x2d0] sm:$0xff] }
 0x28f   : > { %v3718_v53 = vmax.f32 %v3568_v44, %v3570_v23  ;;  %v3315_v18 = vadd.f32 %v15689_v20, %v3052_v6  ;;  %v3055_v11 = vmul.f32 %v15710_v30, %v11744_v0  ;;  %v12468_v55 = vpop.permute.xlu0 %12467  ;;  %v12478_v27 = vpop.permute.xlu1 %12477  ;;  %v3573_v34 = vmax.f32 %v3317_v42, 0.0 }
 0x290   : > { %v3972_v2 = vld [vmem:[#allocation2 + $0x340] ss:$2 sm:$0xff]  ;;  %v4100_v8 = vld [vmem:[#allocation2 + $0x341] ss:$2 sm:$0xff]  ;;  %v2673_v1 = vpop.f32.mrf.mxu0  ;;  %v12469_v58 = vunpack.i.l.bf16 %v12468_v55  ;;  %v7321_v36 = vpop.f32.mrf.mxu1  ;;  %v12470_v24 = vunpack.i.h.bf16 %v12468_v55  ;;  %v12480_v23 = vunpack.i.h.bf16 %v12478_v27  ;;  %v12479_v43 = vunpack.i.l.bf16 %v12478_v27  ;;  %12682 = vrot.lane.b32.xlu0 %v12686_v54, %s13441_s22 }
 0x291   : > { %v4175_v7 = vmax.f32 %v3972_v2, %v4100_v8  ;;  %3847 = vst.msk [vmem:[#allocation2 + $0x358] sm:$0xff] %vm3739_vm3, %v3718_v53  ;;  %v3571_v59 = vmax.f32 %v3315_v18, 0.0  ;;  %v3318_v17 = vadd.f32 %v15689_v20, %v3055_v11  ;;  %v3053_v45 = vmul.f32 %v15710_v30, %v2673_v1  ;;  %v4451_v54 = vld [vmem:[#allocation3 + $0x2c0] sm:$0xff] }
 0x292   : > { %v11747_v26 = vpop.f32.mrf.mxu0  ;;  %12692 = vrot.lane.b32.xlu1 %v12691_v33, %s13439_s16  ;;  %v6820_v42 = vsel %vm6592_vm6, %v6756_v56, %v12469_v58  ;;  %v6627_v51 = vsel %vm6592_vm6, %v15696_v38, %v12454_v40  ;;  %v15776_v0 = vsel %vm3739_vm3, %v4452_v32, %v12480_v23  ;;  %v6821_v55 = vsel %vm6592_vm6, %v6757_v60, %v12470_v24 }
 0x293   : > { %4403 = vst.msk [vmem:[#allocation3 + $0x411] sm:$0xff] %vm3739_vm3, %v4175_v7  ;;  %v3719_v37 = vmax.f32 %v3571_v59, %v3573_v34  ;;  %v3058_v48 = vmul.f32 %v15710_v30, %v11747_v26  ;;  %v12473_v46 = vpop.permute.xlu0 %12472  ;;  %v3316_v50 = vadd.f32 %v15689_v20, %v3053_v45  ;;  %v15769_v29 = vpop.permute.xlu1 %12482  ;;  %v3574_v39 = vmax.f32 %v3318_v17, 0.0 }
 0x294   : > { %v12475_v28 = vunpack.i.h.bf16 %v12473_v46  ;;  %v12474_v52 = vunpack.i.l.bf16 %v12473_v46  ;;  %v2686_v44 = vpop.f32.mrf.mxu0  ;;  %v15782_v2 = vsel %vm3739_vm3, %v4451_v54, %v12479_v43  ;;  %v12484_v24 = vunpack.i.l.bf16 %v15769_v29 }
 0x295   : > { %3848 = vst.msk [vmem:[#allocation2 + $0x360] sm:$0xff] %vm3739_vm3, %v3719_v37  ;;  %v3321_v6 = vadd.f32 %v15689_v20, %v3058_v48  ;;  %v3056_v4 = vmul.f32 %v15710_v30, %v2686_v44  ;;  %v3572_v14 = vmax.f32 %v3316_v50, 0.0  ;;  %v15778_v53 = vld [vmem:[#allocation3 + $0x402] sm:$0xff]  ;;  %v6628_v37 = vsel %vm6592_vm6, %v15699_v22, %v12455_v9 }
 0x296   : > { %v4658_v18 = vld [vmem:[#allocation3 + $0x400] sm:$0xff]  ;;  %v11748_v11 = vpop.f32.mrf.mxu0  ;;  %v12696_v10 = vpack.i.bf16 %v15778_v53, %v4594_v21  ;;  %v6884_v58 = vsel %vm6657_vm7, %v6820_v42, %v12474_v52  ;;  %v6885_v60 = vsel %vm6657_vm7, %v6821_v55, %v12475_v28  ;;  %v6692_v28 = vsel %vm6657_vm7, %v6627_v51, %v12464_v19 }
 0x297   : > { %v3319_v8 = vadd.f32 %v15689_v20, %v3056_v4  ;;  %v12701_v38 = vpack.i.bf16 %v4658_v18, %v15727_v15  ;;  %v12488_v40 = vpop.permute.xlu0 %12487  ;;  %v3720_v7 = vmax.f32 %v3572_v14, %v3574_v39  ;;  %v3059_v34 = vmul.f32 %v15710_v30, %v11748_v11  ;;  %v15805_v46 = vpop.permute.xlu1 %12492  ;;  %v4707_v14 = vld [vmem:[#allocation3 + $0x2d1] sm:$0xff] }
 0x298   : > { %v3974_v27 = vld [vmem:[#allocation2 + $0x350] ss:$2 sm:$0xff]  ;;  %v4102_v1 = vld [vmem:[#allocation2 + $0x351] ss:$2 sm:$0xff]  ;;  %v2689_v59 = vpop.f32.mrf.mxu0  ;;  %v3577_v17 = vmax.f32 %v3321_v6, 0.0  ;;  %12697 = vrot.lane.b32.xlu0 %v12696_v10, %s13440_s17  ;;  %v12489_v21 = vunpack.i.l.bf16 %v12488_v40  ;;  %v6966_v56 = vpack.c.bf16 %v6885_v60, %v6884_v58  ;;  %v12490_v52 = vunpack.i.h.bf16 %v12488_v40  ;;  %v4531_v6 = vld [vmem:[#allocation3 + $0x401] sm:$0xff] }
 0x299   : > { %v4176_v36 = vmax.f32 %v3974_v27, %v4102_v1  ;;  %v3575_v23 = vmax.f32 %v3319_v8, 0.0  ;;  %12702 = vrot.lane.b32.xlu1 %v12701_v38, %s13441_s22  ;;  %3849 = vst.msk [vmem:[#allocation2 + $0x368] sm:$0xff] %vm3739_vm3, %v3720_v7  ;;  %v3322_v15 = vadd.f32 %v15689_v20, %v3059_v34  ;;  %v3057_v45 = vmul.f32 %v15710_v30, %v2689_v59  ;;  %v4708_v10 = vld [vmem:[#allocation3 + $0x2e1] sm:$0xff] }
 0x29a   : > { %v11751_v26 = vpop.f32.mrf.mxu0  ;;  %v15796_v3 = vpop.f32.mrf.mxu1  ;;  %v15802_v43 = vld [vmem:[#allocation3 + $0x410] sm:$0xff]  ;;  %v6693_v22 = vsel %vm6657_vm7, %v6628_v37, %v12465_v25  ;;  %7418 = vmatprep.mubr.bf16.mxu1 %v6966_v56  ;;  %v12485_v54 = vunpack.i.h.bf16 %v15769_v29  ;;  %v12495_v25 = vunpack.i.h.bf16 %v15805_v46  ;;  %v6758_v38 = vsel %vm3739_vm3, %v4707_v14, %v12489_v21 }
 0x29b   : > { %v4532_v33 = vld [vmem:[#allocation3 + $0x411] sm:$0xff]  ;;  %4404 = vst.msk [vmem:[#allocation3 + $0x421] sm:$0xff] %vm3739_vm3, %v4176_v36  ;;  %v3721_v48 = vmax.f32 %v3575_v23, %v3577_v17  ;;  %v3062_v50 = vmul.f32 %v15710_v30, %v11751_v26  ;;  %v3320_v5 = vadd.f32 %v15689_v20, %v3057_v45  ;;  %v12706_v32 = vpack.i.bf16 %v15802_v43, %v4658_v18 }
 0x29c   : > { %v2702_v9 = vpop.f32.mrf.mxu0  ;;  %v7326_v44 = vpop.f32.mrf.mxu1  ;;  %v6965_v42 = vpack.c.bf16 %v6693_v22, %v6692_v28  ;;  %v12716_v51 = vpack.i.bf16 %v4532_v33, %v4531_v6  ;;  %v3578_v35 = vmax.f32 %v3322_v15, 0.0  ;;  %v4596_v8 = vld [vmem:[#allocation3 + $0x412] sm:$0xff]  ;;  %v12494_v40 = vunpack.i.l.bf16 %v15805_v46 }
 0x29d   : > { %3850 = vst.msk [vmem:[#allocation2 + $0x370] sm:$0xff] %vm3739_vm3, %v3721_v48  ;;  %v3325_v4 = vadd.f32 %v15689_v20, %v3062_v50  ;;  %v3060_v19 = vmul.f32 %v15710_v30, %v2702_v9  ;;  %v3576_v11 = vmax.f32 %v3320_v5, 0.0  ;;  %12707 = vrot.lane.b32.xlu0 %v12706_v32, %s13439_s16  ;;  %v6759_v7 = vsel %vm3739_vm3, %v4708_v10, %v12490_v52 }
 0x29e   : > { %v12498_v39 = vpop.permute.xlu0 %12497  ;;  %v11752_v18 = vpop.f32.mrf.mxu0  ;;  %7419 = vmatmul.mubr.bf16.gmra.mxu1 %v6965_v42  ;;  %12717 = vrot.lane.b32.xlu1 %v12716_v51, %s13440_s17  ;;  %v12721_v26 = vpack.i.bf16 %v4596_v8, %v15778_v53  ;;  %v6629_v33 = vsel %vm6592_vm6, %v15782_v2, %v12484_v24 }
 0x29f   : > { %v15822_v55 = vpop.f32.mrf.mxu1  ;;  %v3323_v27 = vadd.f32 %v15689_v20, %v3060_v19  ;;  %v3063_v1 = vmul.f32 %v15710_v30, %v11752_v18  ;;  %v3722_v34 = vmax.f32 %v3576_v11, %v3578_v35  ;;  %v12500_v59 = vunpack.i.h.bf16 %v12498_v39  ;;  %v12508_v60 = vpop.permute.xlu1 %12507  ;;  %v4453_v19 = vld [vmem:[#allocation3 + $0x2e0] sm:$0xff] }
 0x2a0   : > { %v12499_v58 = vunpack.i.l.bf16 %v12498_v39  ;;  %v2705_v36 = vpop.f32.mrf.mxu0  ;;  %v3976_v17 = vld [vmem:[#allocation2 + $0x360] ss:$2 sm:$0xff]  ;;  %v4104_v23 = vld [vmem:[#allocation2 + $0x361] ss:$2 sm:$0xff]  ;;  %v3581_v15 = vmax.f32 %v3325_v4, 0.0  ;;  %v12509_v50 = vunpack.i.l.bf16 %v12508_v60  ;;  %v12510_v29 = vunpack.i.h.bf16 %v12508_v60 }
 0x2a1   : > { %v3579_v21 = vmax.f32 %v3323_v27, 0.0  ;;  %v7329_v45 = vpop.f32.mrf.mxu1  ;;  %v4177_v48 = vmax.f32 %v3976_v17, %v4104_v23  ;;  %3851 = vst.msk [vmem:[#allocation2 + $0x378] sm:$0xff] %vm3739_vm3, %v3722_v34  ;;  %v3326_v56 = vadd.f32 %v15689_v20, %v3063_v1  ;;  %v3061_v28 = vmul.f32 %v15710_v30, %v2705_v36  ;;  %12712 = vrot.lane.b32.xlu0 %v12716_v51, %s13441_s22  ;;  %v13364_v1 = vld [vmem:[%s17711_s7 + $0xf8] sm:$0xff]  }
 0x2a2   : > { %v12503_v37 = vpop.permute.xlu0 %12502  ;;  %v11755_v52 = vpop.f32.mrf.mxu0  ;;  %v15839_v5 = vld [vmem:[#allocation3 + $0x422] sm:$0xff]  ;;  %12722 = vrot.lane.b32.xlu1 %v12721_v26, %s13439_s16  ;;  %v6822_v35 = vsel %vm6592_vm6, %v6758_v38, %v12499_v58  ;;  %v6823_v14 = vsel %vm6592_vm6, %v6759_v7, %v12500_v59  ;;  %v6630_v11 = vsel %vm6592_vm6, %v15776_v0, %v12485_v54  ;;  %v13365_v38 = vld [vmem:[%s17711_s7 + $0xb8] sm:$0xff]   ;;  %v4454_v7 = vld [vmem:[#allocation3 + $0x2f0] sm:$0xff]  ;;  %v6694_v23 = vsel %vm6657_vm7, %v6629_v33, %v12494_v40 }
 0x2a3   : > { %v15841_v53 = vld [vmem:[#allocation3 + $0x420] sm:$0xff]  ;;  %v3723_v22 = vmax.f32 %v3579_v21, %v3581_v15  ;;  %v12505_v2 = vunpack.i.h.bf16 %v12503_v37  ;;  %v12504_v24 = vunpack.i.l.bf16 %v12503_v37  ;;  %4405 = vst.msk [vmem:[#allocation3 + $0x431] sm:$0xff] %vm3739_vm3, %v4177_v48  ;;  %v3324_v9 = vadd.f32 %v15689_v20, %v3061_v28  ;;  %v15847_v32 = vpop.permute.xlu1 %12512  ;;  %11375 = vmatprep.subr.bf16.mxu0 %v13364_v1 }
 0x2a4   : > { %v3066_v44 = vmul.f32 %v15710_v30, %v11755_v52  ;;  %v2718_v6 = vpop.f32.mrf.mxu0  ;;  %v12726_v4 = vpack.i.bf16 %v15839_v5, %v4596_v8  ;;  %v12731_v42 = vpack.i.bf16 %v15841_v53, %v15802_v43  ;;  %v3582_v18 = vmax.f32 %v3326_v56, 0.0  ;;  %11376 = vmatpush3.bf16.msra.mxu0 %v13365_v38 }
 0x2a5   : > { %3852 = vst.msk [vmem:[#allocation2 + $0x380] sm:$0xff] %vm3739_vm3, %v3723_v22  ;;  %v3064_v51 = vmul.f32 %v15710_v30, %v2718_v6  ;;  %v15861_v8 = vsel %vm3739_vm3, %v4453_v19, %v12509_v50  ;;  %v3580_v10 = vmax.f32 %v3324_v9, 0.0  ;;  %v6886_v34 = vsel %vm6657_vm7, %v6822_v35, %v12504_v24  ;;  %v4709_v19 = vld [vmem:[#allocation3 + $0x2f1] sm:$0xff]  ;;  %v4533_v35 = vld [vmem:[#allocation3 + $0x421] sm:$0xff] }
 0x2a6   : > { %v15854_v39 = vpop.permute.xlu0 %12517  ;;  %v3329_v43 = vadd.f32 %v15689_v20, %v3066_v44  ;;  %12727 = vrot.lane.b32.xlu0 %v12726_v4, %s13440_s17  ;;  %v11756_v27 = vpop.f32.mrf.mxu0  ;;  %12732 = vrot.lane.b32.xlu1 %v12731_v42, %s13441_s22  ;;  %v6887_v59 = vsel %vm6657_vm7, %v6823_v14, %v12505_v2  ;;  %v15877_v58 = vsel %vm3739_vm3, %v4454_v7, %v12510_v29  ;;  %v12515_v33 = vunpack.i.h.bf16 %v15847_v32  ;;  %v4710_v14 = vld [vmem:[#allocation3 + $0x301] sm:$0xff] }
 0x2a7   : > { %v3327_v0 = vadd.f32 %v15689_v20, %v3064_v51  ;;  %v3067_v54 = vmul.f32 %v15710_v30, %v11756_v27  ;;  %v3724_v60 = vmax.f32 %v3580_v10, %v3582_v18  ;;  %v12520_v36 = vunpack.i.h.bf16 %v15854_v39  ;;  %v15886_v50 = vpop.permute.xlu1 %12532 }
 0x2a8   : > { %v2721_v17 = vpop.f32.mrf.mxu0  ;;  %v3978_v15 = vld [vmem:[#allocation2 + $0x370] ss:$2 sm:$0xff]  ;;  %v4106_v21 = vld [vmem:[#allocation2 + $0x371] ss:$2 sm:$0xff]  ;;  %v3585_v45 = vmax.f32 %v3329_v43, 0.0  ;;  %v12519_v48 = vunpack.i.l.bf16 %v15854_v39  ;;  %v6969_v52 = vpack.c.bf16 %v6887_v59, %v6886_v34  ;;  %v6695_v40 = vsel %vm6657_vm7, %v6630_v11, %v12495_v25 }
 0x2a9   : > { %v3583_v26 = vmax.f32 %v3327_v0, 0.0  ;;  %v3330_v37 = vadd.f32 %v15689_v20, %v3067_v54  ;;  %v4178_v56 = vmax.f32 %v3978_v15, %v4106_v21  ;;  %3853 = vst.msk [vmem:[#allocation2 + $0x388] sm:$0xff] %vm3739_vm3, %v3724_v60  ;;  %v3065_v28 = vmul.f32 %v15710_v30, %v2721_v17 }
 0x2aa   : > { %v11759_v22 = vpop.f32.mrf.mxu0  ;;  %v15894_v24 = vpop.f32.mrf.mxu1  ;;  %v6968_v9 = vpack.c.bf16 %v6695_v40, %v6694_v23  ;;  %v15896_v6 = vld [vmem:[#allocation3 + $0x430] sm:$0xff]  ;;  %v12514_v42 = vunpack.i.l.bf16 %v15847_v32  ;;  %7426 = vmatprep.mubr.bf16.mxu1 %v6969_v52  ;;  %v6760_v11 = vsel %vm3739_vm3, %v4709_v19, %v12519_v48  ;;  %v6761_v38 = vsel %vm3739_vm3, %v4710_v14, %v12520_v36 }
 0x2ab   : > { %v3725_v29 = vmax.f32 %v3583_v26, %v3585_v45  ;;  %v3070_v2 = vmul.f32 %v15710_v30, %v11759_v22  ;;  %v12523_v44 = vpop.permute.xlu0 %12522  ;;  %v4534_v4 = vld [vmem:[#allocation3 + $0x431] sm:$0xff]  ;;  %4406 = vst.msk [vmem:[#allocation3 + $0x441] sm:$0xff] %vm3739_vm3, %v4178_v56  ;;  %v3328_v46 = vadd.f32 %v15689_v20, %v3065_v28  ;;  %v12736_v39 = vpack.i.bf16 %v15896_v6, %v15841_v53 }
 0x2ac   : > { %v12524_v25 = vunpack.i.l.bf16 %v12523_v44  ;;  %v2734_v51 = vpop.f32.mrf.mxu0  ;;  %7427 = vmatmul.mubr.bf16.gmra.mxu1 %v6968_v9  ;;  %v7334_v10 = vpop.f32.mrf.mxu1  ;;  %v12746_v43 = vpack.i.bf16 %v4534_v4, %v4533_v35  ;;  %v15907_v27 = vld [vmem:[#allocation3 + $0x432] sm:$0xff]  ;;  %v3586_v1 = vmax.f32 %v3330_v37, 0.0  ;;  %v12535_v53 = vunpack.i.h.bf16 %v15886_v50 }
 0x2ad   : > { %3854 = vst.msk [vmem:[#allocation2 + $0x390] sm:$0xff] %vm3739_vm3, %v3725_v29  ;;  %v3333_v18 = vadd.f32 %v15689_v20, %v3070_v2  ;;  %v3068_v32 = vmul.f32 %v15710_v30, %v2734_v51  ;;  %v3584_v7 = vmax.f32 %v3328_v46, 0.0  ;;  %12737 = vrot.lane.b32.xlu0 %v12736_v39, %s13439_s16  ;;  %v12534_v54 = vunpack.i.l.bf16 %v15886_v50 }
 0x2ae   : > { %v11760_v0 = vpop.f32.mrf.mxu0  ;;  %v12525_v34 = vunpack.i.h.bf16 %v12523_v44  ;;  %12747 = vrot.lane.b32.xlu1 %v12746_v43, %s13440_s17  ;;  %v15916_v17 = vpop.f32.mrf.mxu1  ;;  %v12751_v36 = vpack.i.bf16 %v15907_v27, %v15839_v5  ;;  %v6824_v21 = vsel %vm6592_vm6, %v6760_v11, %v12524_v25  ;;  %v6631_v45 = vsel %vm6592_vm6, %v15861_v8, %v12514_v42 }
 0x2af   : > { %v3331_v59 = vadd.f32 %v15689_v20, %v3068_v32  ;;  %v3071_v60 = vmul.f32 %v15710_v30, %v11760_v0  ;;  %v3726_v23 = vmax.f32 %v3584_v7, %v3586_v1  ;;  %v3589_v48 = vmax.f32 %v3333_v18, 0.0  ;;  %v12528_v28 = vpop.permute.xlu0 %12527  ;;  %v15929_v44 = vpop.permute.xlu1 %12537 }
 0x2b0   : > { %v2737_v15 = vpop.f32.mrf.mxu0  ;;  %v3980_v26 = vld [vmem:[#allocation2 + $0x380] ss:$2 sm:$0xff]  ;;  %v4108_v37 = vld [vmem:[#allocation2 + $0x381] ss:$2 sm:$0xff]  ;;  %v7337_v22 = vpop.f32.mrf.mxu1  ;;  %v12530_v29 = vunpack.i.h.bf16 %v12528_v28  ;;  %v12529_v5 = vunpack.i.l.bf16 %v12528_v28  ;;  %v6632_v8 = vsel %vm6592_vm6, %v15877_v58, %v12515_v33  ;;  %v6825_v4 = vsel %vm6592_vm6, %v6761_v38, %v12525_v34  ;;  %v4855_v34 = vld [vmem:[#allocation3 + $0x450] sm:$0xff] }
 0x2b1   : > { %v3587_v56 = vmax.f32 %v3331_v59, 0.0  ;;  %v3334_v50 = vadd.f32 %v15689_v20, %v3071_v60  ;;  %v3069_v52 = vmul.f32 %v15710_v30, %v2737_v15  ;;  %v4179_v40 = vmax.f32 %v3980_v26, %v4108_v37  ;;  %3855 = vst.msk [vmem:[#allocation2 + $0x398] sm:$0xff] %vm3739_vm3, %v3726_v23  ;;  %12742 = vrot.lane.b32.xlu0 %v12746_v43, %s13441_s22  ;;  %v4535_v23 = vld [vmem:[#allocation3 + $0x461] sm:$0xff] }
 0x2b2   : > { %v11763_v2 = vpop.f32.mrf.mxu0  ;;  %12752 = vrot.lane.b32.xlu1 %v12751_v36, %s13439_s16  ;;  %v4790_v42 = vld [vmem:[#allocation3 + $0x442] sm:$0xff]  ;;  %v6696_v46 = vsel %vm6657_vm7, %v6631_v45, %v12534_v54  ;;  %v6697_v25 = vsel %vm6657_vm7, %v6632_v8, %v12535_v53  ;;  %v6888_v33 = vsel %vm6657_vm7, %v6824_v21, %v12529_v5  ;;  %v6889_v35 = vsel %vm6657_vm7, %v6825_v4, %v12530_v29 }
 0x2b3   : > { %v3727_v9 = vmax.f32 %v3587_v56, %v3589_v48  ;;  %v4662_v19 = vld [vmem:[#allocation3 + $0x440] sm:$0xff]  ;;  %4407 = vst.msk [vmem:[#allocation3 + $0x471] sm:$0xff] %vm3739_vm3, %v4179_v40  ;;  %v3332_v51 = vadd.f32 %v15689_v20, %v3069_v52  ;;  %v3074_v39 = vmul.f32 %v15710_v30, %v11763_v2  ;;  %v3590_v14 = vmax.f32 %v3334_v50, 0.0  ;;  %v15951_v36 = vpop.permute.xlu1 %12542  ;;  %v4919_v2 = vld [vmem:[#allocation3 + $0x451] sm:$0xff] }
 0x2b4   : > { %v2750_v58 = vpop.f32.mrf.mxu0  ;;  %v6972_v18 = vpack.c.bf16 %v6889_v35, %v6888_v33  ;;  %v12756_v43 = vpack.i.bf16 %v4790_v42, %v15907_v27  ;;  %v12771_v1 = vpack.i.bf16 %v4662_v19, %v15896_v6  ;;  %v6971_v54 = vpack.c.bf16 %v6697_v25, %v6696_v46  ;;  %v15960_v5 = vld [vmem:[#allocation3 + $0x441] sm:$0xff]  ;;  %v4456_v35 = vld [vmem:[#allocation3 + $0x330] sm:$0xff] }
 0x2b5   : > { %3856 = vst.msk [vmem:[#allocation2 + $0x3a0] sm:$0xff] %vm3739_vm3, %v3727_v9  ;;  %v3072_v11 = vmul.f32 %v15710_v30, %v2750_v58  ;;  %v3588_v32 = vmax.f32 %v3332_v51, 0.0  ;;  %v3337_v10 = vadd.f32 %v15689_v20, %v3074_v39  ;;  %v15947_v0 = vpop.f32.mrf.mxu1  ;;  %v12761_v50 = vpack.i.bf16 %v4855_v34, %v4662_v19  ;;  %v4455_v9 = vld [vmem:[#allocation3 + $0x320] sm:$0xff] }
 0x2b6   : > { %v11764_v38 = vpop.f32.mrf.mxu0  ;;  %7434 = vmatprep.mubr.bf16.mxu1 %v6972_v18  ;;  %12757 = vrot.lane.b32.xlu0 %v12756_v43, %s13440_s17  ;;  %v12548_v56 = vpop.permute.xlu0 %12547  ;;  %v12540_v52 = vunpack.i.h.bf16 %v15929_v44  ;;  %v12539_v22 = vunpack.i.l.bf16 %v15929_v44  ;;  %v4599_v58 = vld [vmem:[#allocation3 + $0x462] sm:$0xff]  ;;  %v12544_v34 = vunpack.i.l.bf16 %v15951_v36 }
 0x2b7   : > { %v3335_v53 = vadd.f32 %v15689_v20, %v3072_v11  ;;  %v3075_v7 = vmul.f32 %v15710_v30, %v11764_v38  ;;  %v3728_v59 = vmax.f32 %v3588_v32, %v3590_v14  ;;  %12772 = vrot.lane.b32.xlu1 %v12771_v1, %s13441_s22  ;;  %v3593_v6 = vmax.f32 %v3337_v10, 0.0  ;;  %7435 = vmatmul.mubr.bf16.gmra.mxu1 %v6971_v54  ;;  %v7342_v26 = vpop.f32.mrf.mxu1  ;;  %v12553_v38 = vpop.permute.xlu1 %12552 }
 0x2b8   : > { %v2753_v60 = vpop.f32.mrf.mxu0  ;;  %v3982_v27 = vld [vmem:[#allocation2 + $0x390] ss:$2 sm:$0xff]  ;;  %v4110_v15 = vld [vmem:[#allocation2 + $0x391] ss:$2 sm:$0xff]  ;;  %v12550_v44 = vunpack.i.h.bf16 %v12548_v56  ;;  %v12549_v25 = vunpack.i.l.bf16 %v12548_v56  ;;  %v12766_v32 = vpack.i.bf16 %v4919_v2, %v15960_v5  ;;  %v6568_v43 = vsel %vm3739_vm3, %v4455_v9, %v12539_v22 }
 0x2b9   : > { %v3591_v21 = vmax.f32 %v3335_v53, 0.0  ;;  %v3073_v45 = vmul.f32 %v15710_v30, %v2753_v60  ;;  %v4180_v37 = vmax.f32 %v3982_v27, %v4110_v15  ;;  %3857 = vst.msk [vmem:[#allocation2 + $0x3a8] sm:$0xff] %vm3739_vm3, %v3728_v59  ;;  %v3338_v48 = vadd.f32 %v15689_v20, %v3075_v7  ;;  %v15958_v29 = vpop.f32.mrf.mxu1  ;;  %v4711_v59 = vld [vmem:[#allocation3 + $0x331] sm:$0xff]  ;;  %v4712_v60 = vld [vmem:[#allocation3 + $0x341] sm:$0xff] }
 0x2ba   : > { %v11767_v28 = vpop.f32.mrf.mxu0  ;;  %v4536_v8 = vld [vmem:[#allocation3 + $0x471] sm:$0xff]  ;;  %12762 = vrot.lane.b32.xlu0 %v12761_v50, %s13439_s16  ;;  %v6569_v1 = vsel %vm3739_vm3, %v4456_v35, %v12540_v52  ;;  %v12545_v54 = vunpack.i.h.bf16 %v15951_v36  ;;  %v6763_v36 = vsel %vm3739_vm3, %v4712_v60, %v12550_v44  ;;  %v12555_v52 = vunpack.i.h.bf16 %v12553_v38 }
 0x2bb   : > { %v3729_v40 = vmax.f32 %v3591_v21, %v3593_v6  ;;  %4408 = vst.msk [vmem:[#allocation3 + $0x481] sm:$0xff] %vm3739_vm3, %v4180_v37  ;;  %v3336_v4 = vadd.f32 %v15689_v20, %v3073_v45  ;;  %v3078_v42 = vmul.f32 %v15710_v30, %v11767_v28  ;;  %v12776_v46 = vpack.i.bf16 %v4536_v8, %v4535_v23  ;;  %v7345_v39 = vpop.f32.mrf.mxu1  ;;  %v4600_v33 = vld [vmem:[#allocation3 + $0x472] sm:$0xff] }
 0x2bc   : > { %v2766_v19 = vpop.f32.mrf.mxu0  ;;  %v3594_v14 = vmax.f32 %v3338_v48, 0.0  ;;  %v12781_v15 = vpack.i.bf16 %v4600_v33, %v4599_v58  ;;  %v6762_v28 = vsel %vm3739_vm3, %v4711_v59, %v12549_v25 }
 0x2bd   : > { %3858 = vst.msk [vmem:[#allocation2 + $0x3b0] sm:$0xff] %vm3739_vm3, %v3729_v40  ;;  %v3076_v51 = vmul.f32 %v15710_v30, %v2766_v19  ;;  %v3592_v11 = vmax.f32 %v3336_v4, 0.0  ;;  %v3341_v18 = vadd.f32 %v15689_v20, %v3078_v42  ;;  %12777 = vrot.lane.b32.xlu1 %v12776_v46, %s13440_s17  ;;  %v12554_v40 = vunpack.i.l.bf16 %v12553_v38  ;;  %v15988_v19 = vld [vmem:[#allocation3 + $0x470] sm:$0xff] }
 0x2be   : > { %v11768_v10 = vpop.f32.mrf.mxu0  ;;  %12767 = vrot.lane.b32.xlu0 %v12766_v32, %s13441_s22  ;;  %v6634_v32 = vsel %vm6592_vm6, %v6569_v1, %v12545_v54 }
 0x2bf   : > { %v3339_v53 = vadd.f32 %v15689_v20, %v3076_v51  ;;  %v3079_v7 = vmul.f32 %v15710_v30, %v11768_v10  ;;  %v3730_v23 = vmax.f32 %v3592_v11, %v3594_v14  ;;  %v3597_v45 = vmax.f32 %v3341_v18, 0.0  ;;  %v12558_v48 = vpop.permute.xlu0 %12557  ;;  %v15984_v4 = vpop.permute.xlu1 %12567 }
 0x2c0   : > { %v2769_v27 = vpop.f32.mrf.mxu0  ;;  %v3984_v6 = vld [vmem:[#allocation2 + $0x3a0] ss:$2 sm:$0xff]  ;;  %v4112_v21 = vld [vmem:[#allocation2 + $0x3a1] ss:$2 sm:$0xff]  ;;  %v12560_v8 = vunpack.i.h.bf16 %v12558_v48  ;;  %v12559_v9 = vunpack.i.l.bf16 %v12558_v48  ;;  %v6633_v18 = vsel %vm6592_vm6, %v6568_v43, %v12544_v34 }
 0x2c1   : > { %v3595_v26 = vmax.f32 %v3339_v53, 0.0  ;;  %v3342_v37 = vadd.f32 %v15689_v20, %v3079_v7  ;;  %v3077_v56 = vmul.f32 %v15710_v30, %v2769_v27  ;;  %v4181_v50 = vmax.f32 %v3984_v6, %v4112_v21  ;;  %3859 = vst.msk [vmem:[#allocation2 + $0x3b8] sm:$0xff] %vm3739_vm3, %v3730_v23  ;;  %12782 = vrot.lane.b32.xlu1 %v12781_v15, %s13439_s16 }
 0x2c2   : > { %v11771_v22 = vpop.f32.mrf.mxu0  ;;  %v15986_v42 = vld [vmem:[#allocation3 + $0x482] sm:$0xff]  ;;  %v6826_v23 = vsel %vm6592_vm6, %v6762_v28, %v12559_v9  ;;  %v6698_v43 = vsel %vm6657_vm7, %v6633_v18, %v12554_v40  ;;  %v6827_v54 = vsel %vm6592_vm6, %v6763_v36, %v12560_v8  ;;  %v6699_v15 = vsel %vm6657_vm7, %v6634_v32, %v12555_v52 }
 0x2c3   : > { %v3731_v2 = vmax.f32 %v3595_v26, %v3597_v45  ;;  %v15990_v46 = vld [vmem:[#allocation3 + $0x480] sm:$0xff]  ;;  %4409 = vst.msk [vmem:[#allocation3 + $0x491] sm:$0xff] %vm3739_vm3, %v4181_v50  ;;  %v3340_v44 = vadd.f32 %v15689_v20, %v3077_v56  ;;  %v3082_v25 = vmul.f32 %v15710_v30, %v11771_v22  ;;  %v12786_v39 = vpack.i.bf16 %v15986_v42, %v4600_v33  ;;  %v12563_v14 = vpop.permute.xlu0 %12562  ;;  %v16012_v26 = vpop.permute.xlu1 %12572 }
 0x2c4   : > { %v2782_v51 = vpop.f32.mrf.mxu0  ;;  %v12791_v58 = vpack.i.bf16 %v15990_v46, %v15988_v19  ;;  %v3598_v35 = vmax.f32 %v3342_v37, 0.0  ;;  %v12565_v53 = vunpack.i.h.bf16 %v12563_v14  ;;  %v12564_v7 = vunpack.i.l.bf16 %v12563_v14  ;;  %v4457_v32 = vld [vmem:[#allocation3 + $0x340] sm:$0xff] }
 0x2c5   : > { %3860 = vst.msk [vmem:[#allocation2 + $0x3c0] sm:$0xff] %vm3739_vm3, %v3731_v2  ;;  %v3080_v11 = vmul.f32 %v15710_v30, %v2782_v51  ;;  %v3596_v10 = vmax.f32 %v3340_v44, 0.0  ;;  %v3345_v38 = vadd.f32 %v15689_v20, %v3082_v25  ;;  %12787 = vrot.lane.b32.xlu0 %v12786_v39, %s13440_s17  ;;  %v12569_v40 = vunpack.i.l.bf16 %v15984_v4 }
 0x2c6   : > { %12792 = vrot.lane.b32.xlu1 %v12791_v58, %s13441_s22  ;;  %v11772_v33 = vpop.f32.mrf.mxu0  ;;  %v6890_v27 = vsel %vm6657_vm7, %v6826_v23, %v12564_v7  ;;  %v6891_v56 = vsel %vm6657_vm7, %v6827_v54, %v12565_v53  ;;  %v6974_v2 = vpack.c.bf16 %v6699_v15, %v6698_v43  ;;  %v16028_v58 = vld [vmem:[#allocation3 + $0x481] sm:$0xff]  ;;  %v12575_v43 = vunpack.i.h.bf16 %v16012_v26 }
 0x2c7   : > { %v3343_v59 = vadd.f32 %v15689_v20, %v3080_v11  ;;  %v3083_v60 = vmul.f32 %v15710_v30, %v11772_v33  ;;  %v3732_v34 = vmax.f32 %v3596_v10, %v3598_v35  ;;  %v3601_v45 = vmax.f32 %v3345_v38, 0.0  ;;  %v12578_v35 = vpop.permute.xlu0 %12577 }
 0x2c8   : > { %v2785_v1 = vpop.f32.mrf.mxu0  ;;  %v3986_v6 = vld [vmem:[#allocation2 + $0x3b0] ss:$2 sm:$0xff]  ;;  %v4114_v21 = vld [vmem:[#allocation2 + $0x3b1] ss:$2 sm:$0xff]  ;;  %v6975_v36 = vpack.c.bf16 %v6891_v56, %v6890_v27  ;;  %v12570_v10 = vunpack.i.h.bf16 %v15984_v4  ;;  %v6570_v23 = vsel %vm3739_vm3, %v4457_v32, %v12569_v40  ;;  %v12574_v54 = vunpack.i.l.bf16 %v16012_v26 }
 0x2c9   : > { %v3599_v37 = vmax.f32 %v3343_v59, 0.0  ;;  %v3081_v48 = vmul.f32 %v15710_v30, %v2785_v1  ;;  %v4182_v50 = vmax.f32 %v3986_v6, %v4114_v21  ;;  %3861 = vst.msk [vmem:[#allocation2 + $0x3c8] sm:$0xff] %vm3739_vm3, %v3732_v34  ;;  %v3346_v28 = vadd.f32 %v15689_v20, %v3083_v60  ;;  %v16040_v34 = vpop.permute.xlu1 %12582  ;;  %v4458_v1 = vld [vmem:[#allocation3 + $0x350] sm:$0xff] }
 0x2ca   : > { %v11775_v22 = vpop.f32.mrf.mxu0  ;;  %v16019_v8 = vld [vmem:[#allocation3 + $0x490] sm:$0xff]  ;;  %7442 = vmatprep.mubr.bf16.mxu1 %v6975_v36  ;;  %v12580_v27 = vunpack.i.h.bf16 %v12578_v35  ;;  %v12579_v15 = vunpack.i.l.bf16 %v12578_v35  ;;  %v6571_v40 = vsel %vm3739_vm3, %v4458_v1, %v12570_v10  ;;  %v12585_v26 = vunpack.i.h.bf16 %v16040_v34 }
 0x2cb   : > { %v3733_v52 = vmax.f32 %v3599_v37, %v3601_v45  ;;  %v16021_v9 = vld [vmem:[#allocation3 + $0x491] sm:$0xff]  ;;  %4410 = vst.msk [vmem:[#allocation3 + $0x4a1] sm:$0xff] %vm3739_vm3, %v4182_v50  ;;  %v3344_v44 = vadd.f32 %v15689_v20, %v3081_v48  ;;  %v3086_v25 = vmul.f32 %v15710_v30, %v11775_v22  ;;  %v16026_v51 = vpop.f32.mrf.mxu1  ;;  %7443 = vmatmul.mubr.bf16.gmra.mxu1 %v6974_v2  ;;  %v3602_v38 = vmax.f32 %v3346_v28, 0.0 }
 0x2cc   : > { %v2798_v39 = vpop.f32.mrf.mxu0  ;;  %v12796_v11 = vpack.i.bf16 %v16019_v8, %v15990_v46  ;;  %v12806_v18 = vpack.i.bf16 %v16021_v9, %v16028_v58  ;;  %v4602_v60 = vld [vmem:[#allocation3 + $0x492] sm:$0xff] }
 0x2cd   : > { %3862 = vst.msk [vmem:[#allocation2 + $0x3d0] sm:$0xff] %vm3739_vm3, %v3733_v52  ;;  %v3084_v14 = vmul.f32 %v15710_v30, %v2798_v39  ;;  %v3600_v53 = vmax.f32 %v3344_v44, 0.0  ;;  %v3349_v7 = vadd.f32 %v15689_v20, %v3086_v25  ;;  %v7350_v33 = vpop.f32.mrf.mxu1  ;;  %v12811_v22 = vpack.i.bf16 %v4602_v60, %v15986_v42  ;;  %v4713_v10 = vld [vmem:[#allocation3 + $0x351] sm:$0xff] }
 0x2ce   : > { %v11776_v59 = vpop.f32.mrf.mxu0  ;;  %12797 = vrot.lane.b32.xlu0 %v12796_v11, %s13439_s16  ;;  %12807 = vrot.lane.b32.xlu1 %v12806_v18, %s13440_s17  ;;  %v12584_v25 = vunpack.i.l.bf16 %v16040_v34  ;;  %v6764_v34 = vsel %vm3739_vm3, %v4713_v10, %v12579_v15 }
 0x2cf   : > { %v3347_v46 = vadd.f32 %v15689_v20, %v3084_v14  ;;  %v3087_v4 = vmul.f32 %v15710_v30, %v11776_v59  ;;  %v3734_v6 = vmax.f32 %v3600_v53, %v3602_v38  ;;  %v16047_v21 = vpop.f32.mrf.mxu1  ;;  %v3605_v56 = vmax.f32 %v3349_v7, 0.0  ;;  %v12588_v28 = vpop.permute.xlu0 %12587  ;;  %v4714_v38 = vld [vmem:[#allocation3 + $0x361] sm:$0xff]  ;;  %v13422_v53 = vld [vmem:[%s17707_s3] ss:$0 sm:$0xff] }
 0x2d0   : > { %v2801_v45 = vpop.f32.mrf.mxu0  ;;  %v3988_v37 = vld [vmem:[#allocation2 + $0x3c0] ss:$2 sm:$0xff]  ;;  %v4116_v48 = vld [vmem:[#allocation2 + $0x3c1] ss:$2 sm:$0xff]  ;;  %v12590_v35 = vunpack.i.h.bf16 %v12588_v28  ;;  %v12589_v14 = vunpack.i.l.bf16 %v12588_v28 }
 0x2d1   : > { %v3603_v50 = vmax.f32 %v3347_v46, 0.0  ;;  %v3085_v36 = vmul.f32 %v15710_v30, %v2801_v45  ;;  %v4183_v52 = vmax.f32 %v3988_v37, %v4116_v48  ;;  %3863 = vst.msk [vmem:[#allocation2 + $0x3d8] sm:$0xff] %vm3739_vm3, %v3734_v6  ;;  %v3350_v2 = vadd.f32 %v15689_v20, %v3087_v4  ;;  %v7353_v44 = vpop.f32.mrf.mxu1  ;;  %v16063_v20 = vpop.permute.xlu1 %12597 }
 0x2d2   : > { %12802 = vrot.lane.b32.xlu0 %v12806_v18, %s13441_s22  ;;  %12812 = vrot.lane.b32.xlu1 %v12811_v22, %s13439_s16  ;;  %v11779_v42 = vpop.f32.mrf.mxu0  ;;  %v16058_v11 = vld [vmem:[#allocation3 + $0x4a2] sm:$0xff]  ;;  %v6765_v46 = vsel %vm3739_vm3, %v4714_v38, %v12580_v27  ;;  %v6635_v6 = vsel %vm6592_vm6, %v6570_v23, %v12574_v54  ;;  %v6636_v45 = vsel %vm6592_vm6, %v6571_v40, %v12575_v43 }
 0x2d3   : > { %v3735_v39 = vmax.f32 %v3603_v50, %v3605_v56  ;;  %v16060_v32 = vld [vmem:[#allocation3 + $0x4a0] sm:$0xff]  ;;  %4411 = vst.msk [vmem:[#allocation3 + $0x4b1] sm:$0xff] %vm3739_vm3, %v4183_v52  ;;  %v3348_v7 = vadd.f32 %v13422_v53, %v3085_v36  ;;  %v3090_v18 = vmul.f32 %v15710_v30, %v11779_v42  ;;  %v12816_v33 = vpack.i.bf16 %v16058_v11, %v4602_v60  ;;  %v12593_v4 = vpop.permute.xlu0 %12592 }
 0x2d4   : > { %v12821_v59 = vpack.i.bf16 %v16060_v32, %v16019_v8  ;;  %v2814_v1 = vpop.f32.mrf.mxu0  ;;  %v3606_v37 = vmax.f32 %v3350_v2, 0.0  ;;  %v12595_v30 = vunpack.i.h.bf16 %v12593_v4  ;;  %v12594_v56 = vunpack.i.l.bf16 %v12593_v4  ;;  %v13423_v50 = vld [vmem:[%s17706_s2] ss:$0 sm:$0xff] }
 0x2d5   : > { %3864 = vst.msk [vmem:[#allocation2 + $0x3e0] sm:$0xff] %vm3739_vm3, %v3735_v39  ;;  %v3604_v48 = vmax.f32 %v3348_v7, 0.0  ;;  %v3353_v60 = vadd.f32 %v13422_v53, %v3090_v18  ;;  %v3088_v15 = vmul.f32 %v13423_v50, %v2814_v1  ;;  %v6700_v28 = vsel %vm6657_vm7, %v6635_v6, %v12584_v25  ;;  %v16089_v25 = vpop.permute.xlu1 %12602 }
 0x2d6   : > { %12817 = vrot.lane.b32.xlu0 %v12816_v33, %s13440_s17  ;;  %12822 = vrot.lane.b32.xlu1 %v12821_v59, %s13441_s22  ;;  %v11780_v27 = vpop.f32.mrf.mxu0  ;;  %v6828_v43 = vsel %vm6592_vm6, %v6764_v34, %v12589_v14  ;;  %v6829_v36 = vsel %vm6592_vm6, %v6765_v46, %v12590_v35  ;;  %v6701_v42 = vsel %vm6657_vm7, %v6636_v45, %v12585_v26  ;;  %v16096_v46 = vld [vmem:[#allocation3 + $0x4a1] sm:$0xff] }
 0x2d7   : > { %v3736_v23 = vmax.f32 %v3604_v48, %v3606_v37  ;;  %v3091_v54 = vmul.f32 %v13423_v50, %v11780_v27  ;;  %v3351_v52 = vadd.f32 %v13422_v53, %v3088_v15  ;;  %v6892_v44 = vsel %vm6657_vm7, %v6828_v43, %v12594_v56  ;;  %v12608_v37 = vpop.permute.xlu0 %12607 }
 0x2d8   : > { %v3990_v22 = vld [vmem:[#allocation2 + $0x3d0] ss:$2 sm:$0xff]  ;;  %v4118_v40 = vld [vmem:[#allocation2 + $0x3d1] ss:$2 sm:$0xff]  ;;  %v2817_v2 = vpop.f32.mrf.mxu0  ;;  %v6893_v39 = vsel %vm6657_vm7, %v6829_v36, %v12595_v30  ;;  %v3609_v38 = vmax.f32 %v3353_v60, 0.0  ;;  %v6977_v34 = vpack.c.bf16 %v6701_v42, %v6700_v28  ;;  %v12600_v27 = vunpack.i.h.bf16 %v16063_v20 }
 0x2d9   : > { %v4184_v10 = vmax.f32 %v3990_v22, %v4118_v40  ;;  %3865 = vst.msk [vmem:[#allocation2 + $0x3e8] sm:$0xff] %vm3739_vm3, %v3736_v23  ;;  %v3607_v7 = vmax.f32 %v3351_v52, 0.0  ;;  %v3354_v14 = vadd.f32 %v13422_v53, %v3091_v54  ;;  %v3089_v18 = vmul.f32 %v13423_v50, %v2817_v2  ;;  %v12613_v56 = vpop.permute.xlu1 %12612 }
 0x2da   : > { %v16091_v35 = vld [vmem:[#allocation3 + $0x4b0] sm:$0xff]  ;;  %v6978_v59 = vpack.c.bf16 %v6893_v39, %v6892_v44  ;;  %v12599_v28 = vunpack.i.l.bf16 %v16063_v20  ;;  %v12605_v36 = vunpack.i.h.bf16 %v16089_v25  ;;  %v12604_v22 = vunpack.i.l.bf16 %v16089_v25 }
 0x2db   : > { %v16093_v33 = vld [vmem:[#allocation3 + $0x4b1] sm:$0xff]  ;;  %4412 = vst.msk [vmem:[#allocation3 + $0x4c1] sm:$0xff] %vm3739_vm3, %v4184_v10  ;;  %v3737_v26 = vmax.f32 %v3607_v7, %v3609_v38  ;;  %v3352_v4 = vadd.f32 %v13422_v53, %v3089_v18  ;;  %v12826_v1 = vpack.i.bf16 %v16091_v35, %v16060_v32  ;;  %v3610_v45 = vmax.f32 %v3354_v14, 0.0  ;;  %v4459_v7 = vld [vmem:[#allocation3 + $0x360] sm:$0xff] }
 0x2dc   : > { %v12836_v6 = vpack.i.bf16 %v16093_v33, %v16096_v46  ;;  %7450 = vmatprep.mubr.bf16.mxu1 %v6978_v59  ;;  %v4604_v30 = vld [vmem:[#allocation3 + $0x4b2] sm:$0xff]  ;;  %v12610_v20 = vunpack.i.h.bf16 %v12608_v37  ;;  %v12609_v44 = vunpack.i.l.bf16 %v12608_v37  ;;  %v12615_v18 = vunpack.i.h.bf16 %v12613_v56  ;;  %v4716_v37 = vld [vmem:[#allocation3 + $0x381] sm:$0xff] }
 0x2dd   : > { %3866 = vst.msk [vmem:[#allocation2 + $0x3f0] sm:$0xff] %vm3739_vm3, %v3737_v26  ;;  %v3608_v48 = vmax.f32 %v3352_v4, 0.0  ;;  %7451 = vmatmul.mubr.bf16.gmra.mxu1 %v6977_v34  ;;  %12827 = vrot.lane.b32.xlu0 %v12826_v1, %s13439_s16  ;;  %v12841_v43 = vpack.i.bf16 %v4604_v30, %v16058_v11  ;;  %v13366_v25 = vld [vmem:[%s17711_s7 + $0xf0] sm:$0xff]   ;;  %v12614_v59 = vunpack.i.l.bf16 %v12613_v56  ;;  %v6572_v4 = vsel %vm3739_vm3, %v4459_v7, %v12599_v28 }
 0x2de   : > { %12837 = vrot.lane.b32.xlu1 %v12836_v6, %s13440_s17  ;;  %v13367_v38 = vld [vmem:[%s17711_s7 + $0xb0] sm:$0xff]   ;;  %11377 = vmatprep.subr.bf16.mxu0 %v13366_v25 }
 0x2df   : > { %v16104_v60 = vpop.f32.mrf.mxu1  ;;  %v3738_v15 = vmax.f32 %v3608_v48, %v3610_v45  ;;  %v4460_v14 = vld [vmem:[#allocation3 + $0x370] sm:$0xff]  ;;  %11378 = vmatpush3.bf16.msra.mxu0 %v13367_v38 }
 0x2e0   : > { %v3992_v53 = vld [vmem:[#allocation2 + $0x3e0] ss:$2 sm:$0xff]  ;;  %v4120_v50 = vld [vmem:[#allocation2 + $0x3e1] ss:$2 sm:$0xff]  ;;  %v6573_v1 = vsel %vm3739_vm3, %v4460_v14, %v12600_v27  ;;  %v4715_v45 = vld [vmem:[#allocation3 + $0x371] sm:$0xff] }
 0x2e1   : > { %v4185_v23 = vmax.f32 %v3992_v53, %v4120_v50  ;;  %v7358_v54 = vpop.f32.mrf.mxu1  ;;  %3867 = vst.msk [vmem:[#allocation2 + $0x3f8] sm:$0xff] %vm3739_vm3, %v3738_v15  ;;  %v12618_v40 = vpop.permute.xlu0 %12617  ;;  %12832 = vrot.lane.b32.xlu0 %v12836_v6, %s13441_s22  ;;  %v6638_v53 = vsel %vm6592_vm6, %v6573_v1, %v12605_v36  ;;  %v6766_v56 = vsel %vm3739_vm3, %v4715_v45, %v12609_v44 }
 0x2e2   : > { %v16114_v52 = vld [vmem:[#allocation3 + $0x4c2] sm:$0xff]  ;;  %v16121_v11 = vpop.permute.xlu1 %12627  ;;  %12842 = vrot.lane.b32.xlu1 %v12841_v43, %s13439_s16  ;;  %v12620_v34 = vunpack.i.h.bf16 %v12618_v40  ;;  %v12619_v26 = vunpack.i.l.bf16 %v12618_v40  ;;  %v6767_v50 = vsel %vm3739_vm3, %v4716_v37, %v12610_v20 }
 0x2e3   : > { %v16116_v2 = vld [vmem:[#allocation3 + $0x4c0] sm:$0xff]  ;;  %4413 = vst.msk [vmem:[#allocation3 + $0x4d1] sm:$0xff] %vm3739_vm3, %v4185_v23  ;;  %v16119_v39 = vpop.f32.mrf.mxu1  ;;  %v12846_v42 = vpack.i.bf16 %v16114_v52, %v4604_v30  ;;  %v6637_v30 = vsel %vm6592_vm6, %v6572_v4, %v12604_v22  ;;  %v6703_v22 = vsel %vm6657_vm7, %v6638_v53, %v12615_v18  ;;  %v12629_v4 = vunpack.i.l.bf16 %v16121_v11 }
 0x2e4   : > { %v12851_v10 = vpack.i.bf16 %v16116_v2, %v16091_v35  ;;  %v6830_v23 = vsel %vm6592_vm6, %v6766_v56, %v12619_v26  ;;  %v6831_v54 = vsel %vm6592_vm6, %v6767_v50, %v12620_v34  ;;  %v6702_v43 = vsel %vm6657_vm7, %v6637_v30, %v12614_v59  ;;  %v4461_v50 = vld [vmem:[#allocation3 + $0x380] sm:$0xff] }
 0x2e5   : > { %v7361_v6 = vpop.f32.mrf.mxu1  ;;  %v12623_v48 = vpop.permute.xlu0 %12622  ;;  %12847 = vrot.lane.b32.xlu0 %v12846_v42, %s13440_s17  ;;  %v6980_v34 = vpack.c.bf16 %v6703_v22, %v6702_v43 }
 0x2e6   : > { %v12625_v15 = vunpack.i.h.bf16 %v12623_v48  ;;  %v12624_v28 = vunpack.i.l.bf16 %v12623_v48  ;;  %12852 = vrot.lane.b32.xlu1 %v12851_v10, %s13441_s22  ;;  %v12633_v27 = vpop.permute.xlu1 %12632  ;;  %v16149_v10 = vld [vmem:[#allocation3 + $0x4c1] sm:$0xff]  ;;  %v12630_v6 = vunpack.i.h.bf16 %v16121_v11 }
 0x2e7   : > { %v12634_v45 = vunpack.i.l.bf16 %v12633_v27  ;;  %v12635_v37 = vunpack.i.h.bf16 %v12633_v27 }
 0x2e8   : > { %v3994_v40 = vld [vmem:[#allocation2 + $0x3f0] ss:$2 sm:$0xff]  ;;  %v4122_v36 = vld [vmem:[#allocation2 + $0x3f1] ss:$2 sm:$0xff]  ;;  %v6894_v42 = vsel %vm6657_vm7, %v6830_v23, %v12624_v28  ;;  %v6895_v44 = vsel %vm6657_vm7, %v6831_v54, %v12625_v15  ;;  %v6574_v54 = vsel %vm3739_vm3, %v4461_v50, %v12629_v4 }
 0x2e9   : > { %v4186_v20 = vmax.f32 %v3994_v40, %v4122_v36  ;;  %v6981_v25 = vpack.c.bf16 %v6895_v44, %v6894_v42  ;;  %v4462_v23 = vld [vmem:[#allocation3 + $0x390] sm:$0xff] }
 0x2ea   : > { %v16147_v38 = vld [vmem:[#allocation3 + $0x4d0] sm:$0xff]  ;;  %v12638_v14 = vpop.permute.xlu0 %12637  ;;  %v6575_v27 = vsel %vm3739_vm3, %v4462_v23, %v12630_v6 }
 0x2eb   : > { %v16151_v7 = vld [vmem:[#allocation3 + $0x4d1] sm:$0xff]  ;;  %v12856_v59 = vpack.i.bf16 %v16147_v38, %v16116_v2  ;;  %4414 = vst.msk [vmem:[#allocation3 + $0x4e1] sm:$0xff] %vm3739_vm3, %v4186_v20  ;;  %7458 = vmatprep.mubr.bf16.mxu1 %v6981_v25  ;;  %v12653_v1 = vpop.permute.xlu1 %12652  ;;  %v12639_v48 = vunpack.i.l.bf16 %v12638_v14  ;;  %v12640_v15 = vunpack.i.h.bf16 %v12638_v14  ;;  %v6639_v20 = vsel %vm6592_vm6, %v6574_v54, %v12634_v45  ;;  %v4718_v25 = vld [vmem:[#allocation3 + $0x3a1] sm:$0xff] }
 0x2ec   : > { %v12866_v18 = vpack.i.bf16 %v16151_v7, %v16149_v10  ;;  %7459 = vmatmul.mubr.bf16.gmra.mxu1 %v6980_v34  ;;  %v4606_v26 = vld [vmem:[#allocation3 + $0x4d2] sm:$0xff]  ;;  %v12654_v28 = vunpack.i.l.bf16 %v12653_v1  ;;  %v12655_v43 = vunpack.i.h.bf16 %v12653_v1  ;;  %v6640_v1 = vsel %vm6592_vm6, %v6575_v27, %v12635_v37 }
 0x2ed   : > { %12857 = vrot.lane.b32.xlu0 %v12856_v59, %s13439_s16  ;;  %v12871_v56 = vpack.i.bf16 %v4606_v26, %v16114_v52  ;;  %v4717_v42 = vld [vmem:[#allocation3 + $0x391] sm:$0xff] }
 0x2ee   : > { %12867 = vrot.lane.b32.xlu1 %v12866_v18, %s13440_s17  ;;  %v6768_v14 = vsel %vm3739_vm3, %v4717_v42, %v12639_v48  ;;  %v6704_v50 = vsel %vm6657_vm7, %v6639_v20, %v12654_v28  ;;  %v4863_v23 = vld [vmem:[#allocation3 + $0x4f0] sm:$0xff] }
 0x2ef   : > { %v12643_v53 = vpop.permute.xlu0 %12642  ;;  %v4927_v20 = vld [vmem:[#allocation3 + $0x4f1] sm:$0xff] }
 0x2f0   : > { %v16162_v30 = vpop.f32.mrf.mxu1  ;;  %v12645_v22 = vunpack.i.h.bf16 %v12643_v53  ;;  %v12644_v40 = vunpack.i.l.bf16 %v12643_v53  ;;  %v12658_v36 = vpop.permute.xlu1 %12657  ;;  %v6769_v53 = vsel %vm3739_vm3, %v4718_v25, %v12640_v15 }
 0x2f1   : > { %12862 = vrot.lane.b32.xlu0 %v12866_v18, %s13441_s22 }
 0x2f2   : > { %v7366_v11 = vpop.f32.mrf.mxu1  ;;  %12872 = vrot.lane.b32.xlu1 %v12871_v56, %s13439_s16  ;;  %v4798_v44 = vld [vmem:[#allocation3 + $0x4e2] sm:$0xff]  ;;  %v6832_v45 = vsel %vm6592_vm6, %v6768_v14, %v12644_v40  ;;  %v6833_v48 = vsel %vm6592_vm6, %v6769_v53, %v12645_v22 }
 0x2f3   : > { %v4670_v52 = vld [vmem:[#allocation3 + $0x4e0] sm:$0xff]  ;;  %v12648_v59 = vpop.permute.xlu0 %12647  ;;  %v12876_v18 = vpack.i.bf16 %v4798_v44, %v4606_v26  ;;  %v6705_v26 = vsel %vm6657_vm7, %v6640_v1, %v12655_v43 }
 0x2f4   : > { %v16171_v34 = vpop.f32.mrf.mxu1  ;;  %v12891_v4 = vpack.i.bf16 %v4670_v52, %v16147_v38  ;;  %v12650_v56 = vunpack.i.h.bf16 %v12648_v59  ;;  %v12649_v6 = vunpack.i.l.bf16 %v12648_v59  ;;  %v12663_v54 = vpop.permute.xlu1 %12662  ;;  %v12881_v42 = vpack.i.bf16 %v4863_v23, %v4670_v52  ;;  %v16184_v44 = vld [vmem:[#allocation3 + $0x4e1] sm:$0xff] }
 0x2f5   : > { %12877 = vrot.lane.b32.xlu0 %v12876_v18, %s13440_s17  ;;  %v6983_v28 = vpack.c.bf16 %v6705_v26, %v6704_v50  ;;  %v12886_v40 = vpack.i.bf16 %v4927_v20, %v16184_v44  ;;  %v12660_v59 = vunpack.i.h.bf16 %v12658_v36  ;;  %v12659_v18 = vunpack.i.l.bf16 %v12658_v36  ;;  %v4719_v36 = vld [vmem:[#allocation3 + $0x3d1] sm:$0xff] }
 0x2f6   : > { %v7369_v11 = vpop.f32.mrf.mxu1  ;;  %12892 = vrot.lane.b32.xlu1 %v12891_v4, %s13441_s22  ;;  %v6896_v37 = vsel %vm6657_vm7, %v6832_v45, %v12649_v6  ;;  %v6897_v15 = vsel %vm6657_vm7, %v6833_v48, %v12650_v56  ;;  %v4463_v4 = vld [vmem:[#allocation3 + $0x3c0] sm:$0xff]  ;;  %v12665_v1 = vunpack.i.h.bf16 %v12663_v54  ;;  %v12664_v53 = vunpack.i.l.bf16 %v12663_v54  ;;  %v4464_v45 = vld [vmem:[#allocation3 + $0x3d0] sm:$0xff] }
 0x2f7   : > { %v6984_v27 = vpack.c.bf16 %v6897_v15, %v6896_v37  ;;  %v12668_v43 = vpop.permute.xlu0 %12667 }
 0x2f8   : > { %v12673_v25 = vpop.permute.xlu1 %12672  ;;  %v12670_v6 = vunpack.i.h.bf16 %v12668_v43  ;;  %v12669_v50 = vunpack.i.l.bf16 %v12668_v43 }
 0x2f9   : > { %7466 = vmatprep.mubr.bf16.mxu1 %v6984_v27  ;;  %12882 = vrot.lane.b32.xlu0 %v12881_v42, %s13439_s16  ;;  %v12675_v48 = vunpack.i.h.bf16 %v12673_v25  ;;  %v12674_v26 = vunpack.i.l.bf16 %v12673_v25  ;;  %v6576_v27 = vsel %vm3739_vm3, %v4463_v4, %v12659_v18  ;;  %v6577_v42 = vsel %vm3739_vm3, %v4464_v45, %v12660_v59 }
 0x2fa   : > { %7467 = vmatmul.mubr.bf16.gmra.mxu1 %v6983_v28  ;;  %v4720_v28 = vld [vmem:[#allocation3 + $0x3e1] sm:$0xff]  ;;  %v6642_v54 = vsel %vm6592_vm6, %v6577_v42, %v12665_v1  ;;  %v6770_v43 = vsel %vm3739_vm3, %v4719_v36, %v12669_v50 }
 0x2fb   : > { %v6707_v4 = vsel %vm6657_vm7, %v6642_v54, %v12675_v48 }
 0x2fc   : > { %v16187_v22 = vpop.f32.mrf.mxu1 }
 0x2fd   : > { %12887 = vrot.lane.b32.xlu0 %v12886_v40, %s13441_s22  ;;  %v6641_v40 = vsel %vm6592_vm6, %v6576_v27, %v12664_v53 }
 0x2fe   : > { %v7374_v14 = vpop.f32.mrf.mxu1  ;;  %v12678_v56 = vpop.permute.xlu0 %12677  ;;  %v6706_v59 = vsel %vm6657_vm7, %v6641_v40, %v12674_v26 }
 0x2ff   : > { %v12680_v37 = vunpack.i.h.bf16 %v12678_v56  ;;  %v12679_v15 = vunpack.i.l.bf16 %v12678_v56  ;;  %v6771_v14 = vsel %vm3739_vm3, %v4720_v28, %v12670_v6  ;;  %v6986_v27 = vpack.c.bf16 %v6707_v4, %v6706_v59 }
 0x300   : > { %v16191_v52 = vpop.f32.mrf.mxu1  ;;  %v12688_v11 = vpop.permute.xlu1 %12687 }
 0x301   : > { %v6834_v56 = vsel %vm6592_vm6, %v6770_v43, %v12679_v15  ;;  %v6835_v18 = vsel %vm6592_vm6, %v6771_v14, %v12680_v37  ;;  %v12690_v42 = vunpack.i.h.bf16 %v12688_v11  ;;  %v12689_v36 = vunpack.i.l.bf16 %v12688_v11  ;;  %v4466_v43 = vld [vmem:[#allocation3 + $0x3f0] sm:$0xff] }
 0x302   : > { %v7377_v23 = vpop.f32.mrf.mxu1  ;;  %v12683_v20 = vpop.permute.xlu0 %12682 }
 0x303   : > { %v12685_v23 = vunpack.i.h.bf16 %v12683_v20  ;;  %v12684_v31 = vunpack.i.l.bf16 %v12683_v20  ;;  %v6579_v4 = vsel %vm3739_vm3, %v4466_v43, %v12690_v42 }
 0x304   : > { %v12693_v25 = vpop.permute.xlu1 %12692 }
 0x305   : > { %v6898_v45 = vsel %vm6657_vm7, %v6834_v56, %v12684_v31  ;;  %v6899_v53 = vsel %vm6657_vm7, %v6835_v18, %v12685_v23  ;;  %v12695_v15 = vunpack.i.h.bf16 %v12693_v25  ;;  %v12694_v37 = vunpack.i.l.bf16 %v12693_v25  ;;  %v4465_v31 = vld [vmem:[#allocation3 + $0x3e0] sm:$0xff] }
 0x306   : > { %v6987_v1 = vpack.c.bf16 %v6899_v53, %v6898_v45  ;;  %v6578_v59 = vsel %vm3739_vm3, %v4465_v31, %v12689_v36  ;;  %v4721_v45 = vld [vmem:[#allocation3 + $0x3f1] sm:$0xff]  ;;  %v4722_v53 = vld [vmem:[#allocation3 + $0x401] sm:$0xff] }
 0x308   : > { %7474 = vmatprep.mubr.bf16.mxu1 %v6987_v1  ;;  %v6643_v1 = vsel %vm6592_vm6, %v6578_v59, %v12694_v37 }
 0x309   : > { %7475 = vmatmul.mubr.bf16.gmra.mxu1 %v6986_v27  ;;  %v6644_v27 = vsel %vm6592_vm6, %v6579_v4, %v12695_v15 }
 0x30a   : > { %v12698_v50 = vpop.permute.xlu0 %12697  ;;  %v16205_v28 = vpop.f32.mrf.mxu1 }
 0x30b   : > { %v12703_v6 = vpop.permute.xlu1 %12702  ;;  %17721 = vst [vmem:[#allocation6_spill] sm:$0xff] %v16205_v28  ;;  %v12700_v26 = vunpack.i.h.bf16 %v12698_v50  ;;  %v12699_v40 = vunpack.i.l.bf16 %v12698_v50 }
 0x30c   : > { %v7382_v48 = vpop.f32.mrf.mxu1  ;;  %v12705_v14 = vunpack.i.h.bf16 %v12703_v6  ;;  %v12704_v23 = vunpack.i.l.bf16 %v12703_v6 }
 0x30d   : > { %v6772_v50 = vsel %vm3739_vm3, %v4721_v45, %v12699_v40  ;;  %v6773_v48 = vsel %vm3739_vm3, %v4722_v53, %v12700_v26 }
 0x30e   : > { %v16209_v11 = vpop.f32.mrf.mxu1  ;;  %v6708_v31 = vsel %vm6657_vm7, %v6643_v1, %v12704_v23  ;;  %v6709_v43 = vsel %vm6657_vm7, %v6644_v27, %v12705_v14  ;;  %v4467_v14 = vld [vmem:[#allocation3 + $0x400] sm:$0xff]  ;;  %v4468_v27 = vld [vmem:[#allocation3 + $0x410] sm:$0xff] }
 0x30f   : > { %v12708_v20 = vpop.permute.xlu0 %12707  ;;  %17722 = vst [vmem:[#allocation7_spill] sm:$0xff] %v16209_v11  ;;  %v6989_v40 = vpack.c.bf16 %v6709_v43, %v6708_v31 }
 0x310   : > { %v12718_v54 = vpop.permute.xlu1 %12717  ;;  %v12710_v56 = vunpack.i.h.bf16 %v12708_v20  ;;  %v12709_v18 = vunpack.i.l.bf16 %v12708_v20  ;;  %v7385_v6 = vpop.f32.mrf.mxu1 }
 0x311   : > { %v12720_v45 = vunpack.i.h.bf16 %v12718_v54  ;;  %v12719_v53 = vunpack.i.l.bf16 %v12718_v54  ;;  %v13368_v54 = vld [vmem:[%s17711_s7 + $0xe8] sm:$0xff]  }
 0x312   : > { %v6836_v36 = vsel %vm6592_vm6, %v6772_v50, %v12709_v18  ;;  %v6837_v42 = vsel %vm6592_vm6, %v6773_v48, %v12710_v56  ;;  %11379 = vmatprep.subr.bf16.mxu0 %v13368_v54 }
 0x313   : > { %v12713_v25 = vpop.permute.xlu0 %12712  ;;  %v6581_v31 = vsel %vm3739_vm3, %v4468_v27, %v12720_v45 }
 0x314   : > { %v12715_v28 = vunpack.i.h.bf16 %v12713_v25  ;;  %v12714_v20 = vunpack.i.l.bf16 %v12713_v25  ;;  %v12723_v11 = vpop.permute.xlu1 %12722 }
 0x315   : > { %v12725_v18 = vunpack.i.h.bf16 %v12723_v11  ;;  %v12724_v25 = vunpack.i.l.bf16 %v12723_v11  ;;  %v13369_v11 = vld [vmem:[%s17711_s7 + $0xa8] sm:$0xff]  }
 0x316   : > { %v6900_v37 = vsel %vm6657_vm7, %v6836_v36, %v12714_v20  ;;  %v6901_v15 = vsel %vm6657_vm7, %v6837_v42, %v12715_v28  ;;  %v6580_v42 = vsel %vm3739_vm3, %v4467_v14, %v12719_v53  ;;  %11380 = vmatpush3.bf16.msra.mxu0 %v13369_v11  ;;  %v4469_v11 = vld [vmem:[#allocation3 + $0x420] sm:$0xff] }
 0x317   : > { %v6990_v59 = vpack.c.bf16 %v6901_v15, %v6900_v37  ;;  %v6645_v43 = vsel %vm6592_vm6, %v6580_v42, %v12724_v25  ;;  %v6646_v37 = vsel %vm6592_vm6, %v6581_v31, %v12725_v18  ;;  %v4723_v15 = vld [vmem:[#allocation3 + $0x411] sm:$0xff] }
 0x318   : > { %v12728_v26 = vpop.permute.xlu0 %12727  ;;  %v12733_v4 = vpop.permute.xlu1 %12732 }
 0x319   : > { %7482 = vmatprep.mubr.bf16.mxu1 %v6990_v59  ;;  %v12730_v50 = vunpack.i.h.bf16 %v12728_v26  ;;  %v12729_v23 = vunpack.i.l.bf16 %v12728_v26  ;;  %v12735_v48 = vunpack.i.h.bf16 %v12733_v4  ;;  %v12734_v6 = vunpack.i.l.bf16 %v12733_v4  ;;  %v4724_v59 = vld [vmem:[#allocation3 + $0x421] sm:$0xff] }
 0x31a   : > { %7483 = vmatmul.mubr.bf16.gmra.mxu1 %v6989_v40 }
 0x31b   : > { %v6774_v4 = vsel %vm3739_vm3, %v4723_v15, %v12729_v23  ;;  %v6775_v45 = vsel %vm3739_vm3, %v4724_v59, %v12730_v50  ;;  %v6710_v25 = vsel %vm6657_vm7, %v6645_v43, %v12734_v6  ;;  %v6711_v18 = vsel %vm6657_vm7, %v6646_v37, %v12735_v48  ;;  %v4470_v37 = vld [vmem:[#allocation3 + $0x430] sm:$0xff] }
 0x31c   : > { %v6992_v59 = vpack.c.bf16 %v6711_v18, %v6710_v25 }
 0x31f   : > { %v12738_v56 = vpop.permute.xlu0 %12737 }
 0x320   : > { %v12748_v1 = vpop.permute.xlu1 %12747  ;;  %v12740_v28 = vunpack.i.h.bf16 %v12738_v56  ;;  %v12739_v36 = vunpack.i.l.bf16 %v12738_v56 }
 0x321   : > { %v16221_v20 = vpop.f32.mrf.mxu1 }
 0x322   : > { %17723 = vst [vmem:[#allocation8_spill] sm:$0xff] %v16221_v20  ;;  %v6839_v27 = vsel %vm6592_vm6, %v6775_v45, %v12740_v28  ;;  %v6838_v20 = vsel %vm6592_vm6, %v6774_v4, %v12739_v36  ;;  %v12749_v28 = vunpack.i.l.bf16 %v12748_v1 }
 0x323   : > { %v7390_v40 = vpop.f32.mrf.mxu1  ;;  %v12743_v26 = vpop.permute.xlu0 %12742 }
 0x324   : > { %v12745_v53 = vunpack.i.h.bf16 %v12743_v26  ;;  %v12744_v56 = vunpack.i.l.bf16 %v12743_v26  ;;  %v12753_v42 = vpop.permute.xlu1 %12752  ;;  %v12750_v40 = vunpack.i.h.bf16 %v12748_v1 }
 0x325   : > { %v16235_v14 = vpop.f32.mrf.mxu1  ;;  %v12755_v36 = vunpack.i.h.bf16 %v12753_v42  ;;  %v12754_v4 = vunpack.i.l.bf16 %v12753_v42  ;;  %v4725_v42 = vld [vmem:[#allocation3 + $0x431] sm:$0xff] }
 0x326   : > { %v6902_v31 = vsel %vm6657_vm7, %v6838_v20, %v12744_v56  ;;  %v6903_v23 = vsel %vm6657_vm7, %v6839_v27, %v12745_v53  ;;  %v6582_v27 = vsel %vm3739_vm3, %v4469_v11, %v12749_v28  ;;  %v6583_v25 = vsel %vm3739_vm3, %v4470_v37, %v12750_v40 }
 0x327   : > { %v7393_v50 = vpop.f32.mrf.mxu1  ;;  %v6993_v15 = vpack.c.bf16 %v6903_v23, %v6902_v31  ;;  %v6647_v1 = vsel %vm6592_vm6, %v6582_v27, %v12754_v4  ;;  %v6648_v31 = vsel %vm6592_vm6, %v6583_v25, %v12755_v36 }
 0x328   : > { %v12758_v54 = vpop.permute.xlu0 %12757 }
 0x329   : > { %7490 = vmatprep.mubr.bf16.mxu1 %v6993_v15  ;;  %v12773_v26 = vpop.permute.xlu1 %12772  ;;  %v12760_v43 = vunpack.i.h.bf16 %v12758_v54  ;;  %v12759_v48 = vunpack.i.l.bf16 %v12758_v54 }
 0x32a   : > { %7491 = vmatmul.mubr.bf16.gmra.mxu1 %v6992_v59  ;;  %v12775_v45 = vunpack.i.h.bf16 %v12773_v26  ;;  %v12774_v20 = vunpack.i.l.bf16 %v12773_v26 }
 0x32b   : > { %v6776_v15 = vsel %vm3739_vm3, %v4725_v42, %v12759_v48  ;;  %v6777_v59 = vsel %vm3739_vm3, %v15960_v5, %v12760_v43 }
 0x32c   : > { %v12763_v6 = vpop.permute.xlu0 %12762  ;;  %v6712_v11 = vsel %vm6657_vm7, %v6647_v1, %v12774_v20  ;;  %v6713_v4 = vsel %vm6657_vm7, %v6648_v31, %v12775_v45  ;;  %v4471_v45 = vld [vmem:[#allocation3 + $0x460] sm:$0xff] }
 0x32d   : > { %v12765_v56 = vunpack.i.h.bf16 %v12763_v6  ;;  %v12764_v53 = vunpack.i.l.bf16 %v12763_v6  ;;  %v6995_v5 = vpack.c.bf16 %v6713_v4, %v6712_v11 }
 0x32f   : > { %v16245_v18 = vpop.f32.mrf.mxu1  ;;  %v12778_v50 = vpop.permute.xlu1 %12777  ;;  %v6840_v28 = vsel %vm6592_vm6, %v6776_v15, %v12764_v53  ;;  %v6841_v40 = vsel %vm6592_vm6, %v6777_v59, %v12765_v56 }
 0x330   : > { %v12768_v23 = vpop.permute.xlu0 %12767  ;;  %v12780_v20 = vunpack.i.h.bf16 %v12778_v50  ;;  %v12779_v1 = vunpack.i.l.bf16 %v12778_v50 }
 0x331   : > { %v7398_v54 = vpop.f32.mrf.mxu1  ;;  %v12770_v26 = vunpack.i.h.bf16 %v12768_v23  ;;  %v12769_v6 = vunpack.i.l.bf16 %v12768_v23 }
 0x333   : > { %v16256_v36 = vpop.f32.mrf.mxu1  ;;  %v6904_v37 = vsel %vm6657_vm7, %v6840_v28, %v12769_v6  ;;  %v6905_v48 = vsel %vm6657_vm7, %v6841_v40, %v12770_v26  ;;  %v12783_v43 = vpop.permute.xlu1 %12782 }
 0x334   : > { %17724 = vst [vmem:[#allocation9_spill] sm:$0xff] %v16256_v36  ;;  %v6996_v27 = vpack.c.bf16 %v6905_v48, %v6904_v37  ;;  %v12785_v31 = vunpack.i.h.bf16 %v12783_v43  ;;  %v12784_v15 = vunpack.i.l.bf16 %v12783_v43  ;;  %v4727_v43 = vld [vmem:[#allocation3 + $0x471] sm:$0xff] }
 0x335   : > { %v7401_v25 = vpop.f32.mrf.mxu1 }
 0x336   : > { %7498 = vmatprep.mubr.bf16.mxu1 %v6996_v27  ;;  %v6584_v27 = vsel %vm3739_vm3, %v4471_v45, %v12779_v1  ;;  %v6585_v25 = vsel %vm3739_vm3, %v15988_v19, %v12780_v20 }
 0x337   : > { %7499 = vmatmul.mubr.bf16.gmra.mxu1 %v6995_v5  ;;  %v12788_v53 = vpop.permute.xlu0 %12787  ;;  %v6649_v50 = vsel %vm6592_vm6, %v6584_v27, %v12784_v15  ;;  %v6650_v5 = vsel %vm6592_vm6, %v6585_v25, %v12785_v31 }
 0x338   : > { %v12793_v56 = vpop.permute.xlu1 %12792  ;;  %v12790_v26 = vunpack.i.h.bf16 %v12788_v53  ;;  %v12789_v6 = vunpack.i.l.bf16 %v12788_v53 }
 0x339   : > { %v12795_v40 = vunpack.i.h.bf16 %v12793_v56  ;;  %v12794_v11 = vunpack.i.l.bf16 %v12793_v56 }
 0x33a   : > { %v6778_v36 = vsel %vm3739_vm3, %v4727_v43, %v12789_v6  ;;  %v6779_v53 = vsel %vm3739_vm3, %v16028_v58, %v12790_v26 }
 0x33b   : > { %v16260_v42 = vpop.f32.mrf.mxu1  ;;  %v6714_v1 = vsel %vm6657_vm7, %v6649_v50, %v12794_v11 }
 0x33d   : > { %v7406_v23 = vpop.f32.mrf.mxu1 }
 0x33f   : > { %v16262_v59 = vpop.f32.mrf.mxu1 }
 0x340   : > { %v12798_v54 = vpop.permute.xlu0 %12797  ;;  %v12808_v28 = vpop.permute.xlu1 %12807 }
 0x341   : > { %v7409_v4 = vpop.f32.mrf.mxu1  ;;  %v12800_v37 = vunpack.i.h.bf16 %v12798_v54  ;;  %v12799_v48 = vunpack.i.l.bf16 %v12798_v54  ;;  %v6715_v54 = vsel %vm6657_vm7, %v6650_v5, %v12795_v40  ;;  %v12810_v25 = vunpack.i.h.bf16 %v12808_v28 }
 0x342   : > { %v6998_v6 = vpack.c.bf16 %v6715_v54, %v6714_v1  ;;  %v12809_v43 = vunpack.i.l.bf16 %v12808_v28  ;;  %v13424_v54 = vld [vmem:[#allocation3 + $0x480] sm:$0xff] }
 0x343   : > { %v6843_v45 = vsel %vm6592_vm6, %v6779_v53, %v12800_v37  ;;  %v6842_v19 = vsel %vm6592_vm6, %v6778_v36, %v12799_v48 }
 0x344   : > { %v12803_v23 = vpop.permute.xlu0 %12802  ;;  %v12813_v20 = vpop.permute.xlu1 %12812  ;;  %v6586_v1 = vsel %vm3739_vm3, %v13424_v54, %v12809_v43 }
 0x345   : > { %v12805_v56 = vunpack.i.h.bf16 %v12803_v23  ;;  %v12804_v4 = vunpack.i.l.bf16 %v12803_v23  ;;  %v12815_v11 = vunpack.i.h.bf16 %v12813_v20  ;;  %v12814_v50 = vunpack.i.l.bf16 %v12813_v20 }
 0x347   : > { %v6906_v31 = vsel %vm6657_vm7, %v6842_v19, %v12804_v4  ;;  %v6907_v15 = vsel %vm6657_vm7, %v6843_v45, %v12805_v56  ;;  %v6587_v19 = vsel %vm3739_vm3, %v16019_v8, %v12810_v25 }
 0x348   : > { %v6999_v27 = vpack.c.bf16 %v6907_v15, %v6906_v31  ;;  %v12818_v58 = vpop.permute.xlu0 %12817  ;;  %v12823_v26 = vpop.permute.xlu1 %12822  ;;  %v6651_v31 = vsel %vm6592_vm6, %v6586_v1, %v12814_v50  ;;  %v6652_v20 = vsel %vm6592_vm6, %v6587_v19, %v12815_v11 }
 0x349   : > { %v12820_v5 = vunpack.i.h.bf16 %v12818_v58  ;;  %v12819_v36 = vunpack.i.l.bf16 %v12818_v58  ;;  %v12825_v53 = vunpack.i.h.bf16 %v12823_v26  ;;  %v12824_v4 = vunpack.i.l.bf16 %v12823_v26 }
 0x34a   : > { %7506 = vmatprep.mubr.bf16.mxu1 %v6999_v27 }
 0x34b   : > { %7507 = vmatmul.mubr.bf16.gmra.mxu1 %v6998_v6  ;;  %v6780_v27 = vsel %vm3739_vm3, %v16021_v9, %v12819_v36  ;;  %v6781_v6 = vsel %vm3739_vm3, %v16096_v46, %v12820_v5  ;;  %v6717_v43 = vsel %vm6657_vm7, %v6652_v20, %v12825_v53  ;;  %v6716_v8 = vsel %vm6657_vm7, %v6651_v31, %v12824_v4 }
 0x34c   : > { %v7001_v36 = vpack.c.bf16 %v6717_v43, %v6716_v8 }
 0x34e   : > { %v16278_v40 = vpop.f32.mrf.mxu1 }
 0x34f   : > { %v12828_v37 = vpop.permute.xlu0 %12827 }
 0x350   : > { %v7414_v48 = vpop.f32.mrf.mxu1  ;;  %v12838_v23 = vpop.permute.xlu1 %12837  ;;  %v12830_v56 = vunpack.i.h.bf16 %v12828_v37  ;;  %v12829_v45 = vunpack.i.l.bf16 %v12828_v37 }
 0x351   : > { %v12840_v1 = vunpack.i.h.bf16 %v12838_v23  ;;  %v12839_v19 = vunpack.i.l.bf16 %v12838_v23 }
 0x352   : > { %v16283_v28 = vpop.f32.mrf.mxu1  ;;  %v6845_v25 = vsel %vm6592_vm6, %v6781_v6, %v12830_v56  ;;  %v6844_v50 = vsel %vm6592_vm6, %v6780_v27, %v12829_v45  ;;  %v13370_v45 = vld [vmem:[%s17711_s7 + $0xe0] sm:$0xff]  }
 0x353   : > { %v12833_v15 = vpop.permute.xlu0 %12832  ;;  %11381 = vmatprep.subr.bf16.mxu0 %v13370_v45  ;;  %v6588_v8 = vsel %vm3739_vm3, %v16060_v32, %v12839_v19 }
 0x354   : > { %v7417_v58 = vpop.f32.mrf.mxu1  ;;  %v12835_v26 = vunpack.i.h.bf16 %v12833_v15  ;;  %v12834_v37 = vunpack.i.l.bf16 %v12833_v15  ;;  %v12843_v48 = vpop.permute.xlu1 %12842 }
 0x355   : > { %v12845_v4 = vunpack.i.h.bf16 %v12843_v48  ;;  %v12844_v31 = vunpack.i.l.bf16 %v12843_v48  ;;  %v13371_v58 = vld [vmem:[%s17711_s7 + $0xa0] sm:$0xff]  }
 0x356   : > { %v6908_v11 = vsel %vm6657_vm7, %v6844_v50, %v12834_v37  ;;  %v6909_v54 = vsel %vm6657_vm7, %v6845_v25, %v12835_v26  ;;  %v6589_v25 = vsel %vm3739_vm3, %v16091_v35, %v12840_v1  ;;  %11382 = vmatpush3.bf16.msra.mxu0 %v13371_v58 }
 0x357   : > { %v7002_v9 = vpack.c.bf16 %v6909_v54, %v6908_v11  ;;  %v12848_v46 = vpop.permute.xlu0 %12847  ;;  %v6653_v48 = vsel %vm6592_vm6, %v6588_v8, %v12844_v31  ;;  %v6654_v11 = vsel %vm6592_vm6, %v6589_v25, %v12845_v4 }
 0x358   : > { %v12853_v5 = vpop.permute.xlu1 %12852  ;;  %v12850_v20 = vunpack.i.h.bf16 %v12848_v46  ;;  %v12849_v15 = vunpack.i.l.bf16 %v12848_v46 }
 0x359   : > { %7514 = vmatprep.mubr.bf16.mxu1 %v7002_v9  ;;  %v12855_v26 = vunpack.i.h.bf16 %v12853_v5  ;;  %v12854_v37 = vunpack.i.l.bf16 %v12853_v5 }
 0x35a   : > { %7515 = vmatmul.mubr.bf16.gmra.mxu1 %v7001_v36  ;;  %v6782_v9 = vsel %vm3739_vm3, %v16093_v33, %v12849_v15  ;;  %v6783_v36 = vsel %vm3739_vm3, %v16149_v10, %v12850_v20 }
 0x35b   : > { %v6719_v19 = vsel %vm6657_vm7, %v6654_v11, %v12855_v26  ;;  %v6718_v35 = vsel %vm6657_vm7, %v6653_v48, %v12854_v37 }
 0x35c   : > { %v7004_v15 = vpack.c.bf16 %v6719_v19, %v6718_v35 }
 0x35e   : > { %v16297_v53 = vpop.f32.mrf.mxu1 }
 0x35f   : > { %v12858_v56 = vpop.permute.xlu0 %12857 }
 0x360   : > { %v7422_v27 = vpop.f32.mrf.mxu1  ;;  %v12868_v6 = vpop.permute.xlu1 %12867  ;;  %v12860_v23 = vunpack.i.h.bf16 %v12858_v56  ;;  %v12859_v43 = vunpack.i.l.bf16 %v12858_v56 }
 0x361   : > { %v12870_v10 = vunpack.i.h.bf16 %v12868_v6  ;;  %v12869_v20 = vunpack.i.l.bf16 %v12868_v6 }
 0x362   : > { %v16309_v50 = vpop.f32.mrf.mxu1  ;;  %v6847_v1 = vsel %vm6592_vm6, %v6783_v36, %v12860_v23  ;;  %v6846_v31 = vsel %vm6592_vm6, %v6782_v9, %v12859_v43 }
 0x363   : > { %v12863_v54 = vpop.permute.xlu0 %12862 }
 0x364   : > { %v7425_v46 = vpop.f32.mrf.mxu1  ;;  %v12865_v5 = vunpack.i.h.bf16 %v12863_v54  ;;  %v12864_v32 = vunpack.i.l.bf16 %v12863_v54  ;;  %v12873_v56 = vpop.permute.xlu1 %12872 }
 0x365   : > { %v12875_v26 = vunpack.i.h.bf16 %v12873_v56  ;;  %v12874_v8 = vunpack.i.l.bf16 %v12873_v56  ;;  %v6590_v46 = vsel %vm3739_vm3, %v16116_v2, %v12869_v20  ;;  %v4929_v20 = vld [vmem:[#allocation3 + $0x32] sm:$0xff] }
 0x366   : > { %v6910_v4 = vsel %vm6657_vm7, %v6846_v31, %v12864_v32  ;;  %v6911_v45 = vsel %vm6657_vm7, %v6847_v1, %v12865_v5  ;;  %v6591_v5 = vsel %vm3739_vm3, %v16147_v38, %v12870_v10 }
 0x367   : > { %v7005_v33 = vpack.c.bf16 %v6911_v45, %v6910_v4  ;;  %v12878_v27 = vpop.permute.xlu0 %12877  ;;  %v6655_v6 = vsel %vm6592_vm6, %v6590_v46, %v12874_v8  ;;  %v6656_v32 = vsel %vm6592_vm6, %v6591_v5, %v12875_v26  ;;  %v4928_v26 = vld [vmem:[#allocation3 + $0x22] sm:$0xff] }
 0x368   : > { %v12893_v58 = vpop.permute.xlu1 %12892  ;;  %v12880_v25 = vunpack.i.h.bf16 %v12878_v27  ;;  %v12879_v43 = vunpack.i.l.bf16 %v12878_v27  ;;  %v4934_v5 = vld [vmem:[#allocation3 + $0x82] sm:$0xff] }
 0x369   : > { %7522 = vmatprep.mubr.bf16.mxu1 %v7005_v33  ;;  %v12895_v48 = vunpack.i.h.bf16 %v12893_v58  ;;  %v12894_v11 = vunpack.i.l.bf16 %v12893_v58 }
 0x36a   : > { %7523 = vmatmul.mubr.bf16.gmra.mxu1 %v7004_v15  ;;  %v6784_v1 = vsel %vm3739_vm3, %v16151_v7, %v12879_v43  ;;  %v6785_v31 = vsel %vm3739_vm3, %v16184_v44, %v12880_v25  ;;  %v6916_v44 = vpack.c.bf16 %v4929_v20, %v4928_v26  ;;  %v4931_v25 = vld [vmem:[#allocation3 + $0x52] sm:$0xff] }
 0x36b   : > { %v12883_v23 = vpop.permute.xlu0 %12882  ;;  %v6721_v2 = vsel %vm6657_vm7, %v6656_v32, %v12895_v48  ;;  %v6720_v45 = vsel %vm6657_vm7, %v6655_v6, %v12894_v11  ;;  %v4933_v43 = vld [vmem:[#allocation3 + $0x72] sm:$0xff]  ;;  %v4930_v11 = vld [vmem:[#allocation3 + $0x42] sm:$0xff] }
 0x36c   : > { %v16323_v37 = vpop.f32.mrf.mxu1  ;;  %v12885_v54 = vunpack.i.h.bf16 %v12883_v23  ;;  %v12884_v9 = vunpack.i.l.bf16 %v12883_v23  ;;  %v7007_v58 = vpack.c.bf16 %v6721_v2, %v6720_v45  ;;  %v4935_v6 = vld [vmem:[#allocation3 + $0x92] sm:$0xff]  ;;  %v4938_v45 = vld [vmem:[#allocation3 + $0xe2] sm:$0xff] }
 0x36d   : > { %v4937_v32 = vld [vmem:[#allocation3 + $0xd2] sm:$0xff] }
 0x36e   : > { %v7430_v36 = vpop.f32.mrf.mxu1  ;;  %v6848_v38 = vsel %vm6592_vm6, %v6784_v1, %v12884_v9  ;;  %v6849_v33 = vsel %vm6592_vm6, %v6785_v31, %v12885_v54  ;;  %v6919_v54 = vpack.c.bf16 %v4931_v25, %v4930_v11  ;;  %v4932_v9 = vld [vmem:[#allocation3 + $0x62] sm:$0xff]  ;;  %v4945_v26 = vld [vmem:[#allocation3 + $0x172] sm:$0xff] }
 0x36f   : > { %v12888_v35 = vpop.permute.xlu0 %12887  ;;  %v6922_v46 = vpack.c.bf16 %v4933_v43, %v4932_v9  ;;  %v4936_v1 = vld [vmem:[#allocation3 + $0xc2] sm:$0xff]  ;;  %v4947_v43 = vld [vmem:[#allocation3 + $0x192] sm:$0xff] }
 0x370   : > { %v16331_v19 = vpop.f32.mrf.mxu1  ;;  %v12890_v56 = vunpack.i.h.bf16 %v12888_v35  ;;  %v12889_v4 = vunpack.i.l.bf16 %v12888_v35  ;;  %v6925_v35 = vpack.c.bf16 %v4935_v6, %v4934_v5  ;;  %v6928_v31 = vpack.c.bf16 %v4937_v32, %v4936_v1  ;;  %v4949_v11 = vld [vmem:[#allocation3 + $0x1b2] sm:$0xff] }
 0x371   : > { %v13372_v6 = vld [vmem:[%s17711_s7 + $0xd8] sm:$0xff]  }
 0x372   : > { %v7433_v15 = vpop.f32.mrf.mxu1  ;;  %v6912_v27 = vsel %vm6657_vm7, %v6848_v38, %v12889_v4  ;;  %v6913_v10 = vsel %vm6657_vm7, %v6849_v33, %v12890_v56  ;;  %v4939_v56 = vld [vmem:[#allocation3 + $0xf2] sm:$0xff]  ;;  %v4940_v33 = vld [vmem:[#allocation3 + $0x102] sm:$0xff]  ;;  %11383 = vmatprep.subr.bf16.mxu0 %v13372_v6 }
 0x373   : > { %v7008_v7 = vpack.c.bf16 %v6913_v10, %v6912_v27  ;;  %v4941_v4 = vld [vmem:[#allocation3 + $0x112] sm:$0xff]  ;;  %v6931_v38 = vpack.c.bf16 %v4939_v56, %v4938_v45  ;;  %v4960_v6 = vld [vmem:[#allocation3 + $0x2a2] sm:$0xff] }
 0x374   : > { %v6934_v27 = vpack.c.bf16 %v4941_v4, %v4940_v33  ;;  %v13373_v32 = vld [vmem:[%s17711_s7 + $0x98] sm:$0xff]   ;;  %v4952_v33 = vld [vmem:[#allocation3 + $0x202] sm:$0xff] }
 0x375   : > { %7530 = vmatprep.mubr.bf16.mxu1 %v7008_v7  ;;  %v4942_v7 = vld [vmem:[#allocation3 + $0x122] sm:$0xff]  ;;  %v4951_v56 = vld [vmem:[#allocation3 + $0x1d2] sm:$0xff]  ;;  %11384 = vmatpush3.bf16.msra.mxu0 %v13373_v32 }
 0x376   : > { %7531 = vmatmul.mubr.bf16.gmra.mxu1 %v7007_v58  ;;  %v4943_v58 = vld [vmem:[#allocation3 + $0x132] sm:$0xff] }
 0x377   : > { %v16343_v8 = vpop.f32.mrf.mxu1  ;;  %11785 = vmatprep.mubr.msk.bf16.mxu1 %vm3739_vm3, %v6916_v44  ;;  %v6937_v44 = vpack.c.bf16 %v4943_v58, %v4942_v7  ;;  %v4953_v4 = vld [vmem:[#allocation3 + $0x212] sm:$0xff]  ;;  %v4954_v7 = vld [vmem:[#allocation3 + $0x222] sm:$0xff] }
 0x379   : > { %v7438_v23 = vpop.f32.mrf.mxu1 }
 0x37a   : > { %v4944_v23 = vld [vmem:[#allocation3 + $0x162] sm:$0xff] }
 0x37b   : > { %v16346_v48 = vpop.f32.mrf.mxu1  ;;  %v6940_v25 = vpack.c.bf16 %v4945_v26, %v4944_v23 }
 0x37d   : > { %v7441_v36 = vpop.f32.mrf.mxu1 }
 0x37e   : > { %11786 = vmatmul.mubr.msk.bf16.vlgmr.msra.gmra.mxu1 %vm3739_vm3, %v6919_v54  ;;  %v4946_v54 = vld [vmem:[#allocation3 + $0x182] sm:$0xff] }
 0x37f   : > { %11789 = vmatprep.mubr.msk.bf16.mxu1 %vm3739_vm3, %v6922_v46  ;;  %v6943_v9 = vpack.c.bf16 %v4947_v43, %v4946_v54  ;;  %v4948_v36 = vld [vmem:[#allocation3 + $0x1a2] sm:$0xff]  ;;  %v4959_v54 = vld [vmem:[#allocation3 + $0x272] sm:$0xff] }
 0x380   : > { %v6946_v5 = vpack.c.bf16 %v4949_v11, %v4948_v36  ;;  %v4958_v11 = vld [vmem:[#allocation3 + $0x262] sm:$0xff]  ;;  %v4961_v36 = vld [vmem:[#allocation3 + $0x2b2] sm:$0xff] }
 0x381   : > { %v6964_v32 = vpack.c.bf16 %v4961_v36, %v4960_v6 }
 0x386   : > { %11790 = vmatmul.mubr.msk.bf16.gmra.mxu1 %vm3739_vm3, %v6925_v35 }
 0x387   : > { %11793 = vmatprep.mubr.msk.bf16.mxu1 %vm3739_vm3, %v6928_v31  ;;  %v4950_v31 = vld [vmem:[#allocation3 + $0x1c2] sm:$0xff] }
 0x38b   : > { %v16352_v2 = vpop.f32.mrf.mxu1 }
 0x38d   : > { %v7446_v15 = vpop.f32.mrf.mxu1 }
 0x38e   : > { %11794 = vmatmul.mubr.msk.bf16.gmra.mxu1 %vm3739_vm3, %v6931_v38  ;;  %v6949_v38 = vpack.c.bf16 %v4951_v56, %v4950_v31  ;;  %v6952_v15 = vpack.c.bf16 %v4953_v4, %v4952_v33  ;;  %v4965_v56 = vld [vmem:[#allocation3 + $0x2f2] sm:$0xff]  ;;  %v4962_v4 = vld [vmem:[#allocation3 + $0x2c2] sm:$0xff] }
 0x38f   : > { %v16355_v10 = vpop.f32.mrf.mxu1  ;;  %11797 = vmatprep.mubr.msk.bf16.mxu1 %vm3739_vm3, %v6934_v27  ;;  %v4955_v27 = vld [vmem:[#allocation3 + $0x232] sm:$0xff]  ;;  %v4964_v33 = vld [vmem:[#allocation3 + $0x2e2] sm:$0xff] }
 0x390   : > { %v6955_v26 = vpack.c.bf16 %v4955_v27, %v4954_v7  ;;  %v4966_v7 = vld [vmem:[#allocation3 + $0x302] sm:$0xff] }
 0x391   : > { %v7449_v20 = vpop.f32.mrf.mxu1 }
 0x392   : > { %v4957_v20 = vld [vmem:[#allocation3 + $0x252] sm:$0xff] }
 0x396   : > { %11798 = vmatmul.mubr.msk.bf16.gmra.mxu1 %vm3739_vm3, %v6937_v44  ;;  %v4956_v44 = vld [vmem:[#allocation3 + $0x242] sm:$0xff] }
 0x397   : > { %11801 = vmatprep.mubr.msk.bf16.mxu1 %vm3739_vm3, %v6940_v25  ;;  %v6958_v23 = vpack.c.bf16 %v4957_v20, %v4956_v44  ;;  %v4969_v44 = vld [vmem:[#allocation3 + $0x352] sm:$0xff] }
 0x39d   : > { %v16360_v46 = vpop.f32.mrf.mxu1 }
 0x39e   : > { %11802 = vmatmul.mubr.msk.bf16.gmra.mxu1 %vm3739_vm3, %v6943_v9 }
 0x39f   : > { %v7454_v35 = vpop.f32.mrf.mxu1  ;;  %11805 = vmatprep.mubr.msk.bf16.mxu1 %vm3739_vm3, %v6946_v5  ;;  %v6961_v5 = vpack.c.bf16 %v4959_v54, %v4958_v11  ;;  %v4971_v54 = vld [vmem:[#allocation3 + $0x372] sm:$0xff] }
 0x3a0   : > { %v4963_v35 = vld [vmem:[#allocation3 + $0x2d2] sm:$0xff] }
 0x3a1   : > { %v16370_v1 = vpop.f32.mrf.mxu1 }
 0x3a3   : > { %v7457_v45 = vpop.f32.mrf.mxu1 }
 0x3a6   : > { %11806 = vmatmul.mubr.msk.bf16.gmra.mxu1 %vm3739_vm3, %v6949_v38  ;;  %v6967_v38 = vpack.c.bf16 %v4963_v35, %v4962_v4 }
 0x3a7   : > { %11809 = vmatprep.mubr.msk.bf16.mxu1 %vm3739_vm3, %v6952_v15  ;;  %v6970_v15 = vpack.c.bf16 %v4965_v56, %v4964_v33  ;;  %v4975_v33 = vld [vmem:[#allocation3 + $0x3b2] sm:$0xff] }
 0x3ac   : > { %v16374_v58 = vpop.f32.mrf.mxu1 }
 0x3ae   : > { %v7462_v25 = vpop.f32.mrf.mxu1  ;;  %11810 = vmatmul.mubr.msk.bf16.gmra.mxu1 %vm3739_vm3, %v6955_v26  ;;  %v4967_v26 = vld [vmem:[#allocation3 + $0x312] sm:$0xff] }
 0x3af   : > { %11813 = vmatprep.mubr.msk.bf16.mxu1 %vm3739_vm3, %v6958_v23  ;;  %v6973_v23 = vpack.c.bf16 %v4967_v26, %v4966_v7  ;;  %v4968_v25 = vld [vmem:[#allocation3 + $0x342] sm:$0xff] }
 0x3b0   : > { %v16378_v43 = vpop.f32.mrf.mxu1  ;;  %v6976_v11 = vpack.c.bf16 %v4969_v44, %v4968_v25  ;;  %v4976_v7 = vld [vmem:[#allocation3 + $0x3e2] sm:$0xff]  ;;  %v4981_v25 = vld [vmem:[#allocation3 + $0x432] sm:$0xff] }
 0x3b2   : > { %v7465_v9 = vpop.f32.mrf.mxu1 }
 0x3b3   : > { %v4973_v9 = vld [vmem:[#allocation3 + $0x392] sm:$0xff] }
 0x3b6   : > { %11814 = vmatmul.mubr.msk.bf16.gmra.mxu1 %vm3739_vm3, %v6961_v5  ;;  %v4970_v5 = vld [vmem:[#allocation3 + $0x362] sm:$0xff] }
 0x3b7   : > { %11817 = vmatprep.mubr.msk.bf16.mxu1 %vm3739_vm3, %v6964_v32  ;;  %v6979_v6 = vpack.c.bf16 %v4971_v54, %v4970_v5  ;;  %v4972_v32 = vld [vmem:[#allocation3 + $0x382] sm:$0xff] }
 0x3b8   : > { %v6982_v56 = vpack.c.bf16 %v4973_v9, %v4972_v32  ;;  %v4978_v54 = vld [vmem:[#allocation3 + $0x402] sm:$0xff] }
 0x3b9   : > { %v4980_v5 = vld [vmem:[#allocation3 + $0x422] sm:$0xff] }
 0x3ba   : > { %v16382_v31 = vpop.f32.mrf.mxu1  ;;  %v6994_v32 = vpack.c.bf16 %v4981_v25, %v4980_v5 }
 0x3bc   : > { %v7470_v45 = vpop.f32.mrf.mxu1 }
 0x3be   : > { %v16384_v27 = vpop.f32.mrf.mxu1  ;;  %11818 = vmatmul.mubr.msk.bf16.gmra.mxu1 %vm3739_vm3, %v6967_v38  ;;  %v4974_v38 = vld [vmem:[#allocation3 + $0x3a2] sm:$0xff] }
 0x3bf   : > { %11821 = vmatprep.mubr.msk.bf16.mxu1 %vm3739_vm3, %v6970_v15  ;;  %v4977_v15 = vld [vmem:[#allocation3 + $0x3f2] sm:$0xff] }
 0x3c0   : > { %v7473_v20 = vpop.f32.mrf.mxu1  ;;  %v6988_v26 = vpack.c.bf16 %v4977_v15, %v4976_v7  ;;  %v4984_v15 = vld [vmem:[#allocation3 + $0x482] sm:$0xff] }
 0x3c1   : > { %v6985_v20 = vpack.c.bf16 %v4975_v33, %v4974_v38  ;;  %v4985_v38 = vld [vmem:[#allocation3 + $0x492] sm:$0xff] }
 0x3c6   : > { %11822 = vmatmul.mubr.msk.bf16.gmra.mxu1 %vm3739_vm3, %v6973_v23  ;;  %v4979_v23 = vld [vmem:[#allocation3 + $0x412] sm:$0xff] }
 0x3c7   : > { %11825 = vmatprep.mubr.msk.bf16.mxu1 %vm3739_vm3, %v6976_v11  ;;  %v6991_v9 = vpack.c.bf16 %v4979_v23, %v4978_v54  ;;  %v4989_v23 = vld [vmem:[#allocation3 + $0x4d2] sm:$0xff] }
 0x3c9   : > { %v16390_v36 = vpop.f32.mrf.mxu1 }
 0x3cb   : > { %v7478_v35 = vpop.f32.mrf.mxu1 }
 0x3cd   : > { %v16393_v4 = vpop.f32.mrf.mxu1 }
 0x3ce   : > { %11826 = vmatmul.mubr.msk.bf16.gmra.mxu1 %vm3739_vm3, %v6979_v6  ;;  %17725 = vst [vmem:[#allocation10_spill] sm:$0xff] %v16393_v4 }
 0x3cf   : > { %11829 = vmatprep.mubr.msk.bf16.mxu1 %vm3739_vm3, %v6982_v56  ;;  %v7481_v45 = vpop.f32.mrf.mxu1  ;;  %v4982_v56 = vld [vmem:[#allocation3 + $0x442] sm:$0xff] }
 0x3d0   : > { %v4983_v45 = vld [vmem:[#allocation3 + $0x452] sm:$0xff] }
 0x3d1   : > { %v6997_v33 = vpack.c.bf16 %v4983_v45, %v4982_v56  ;;  %v13375_v56 = vld [vmem:[%s17711_s7 + $0xd0] sm:$0xff]   ;;  %v13376_v45 = vld [vmem:[%s17711_s7 + $0x38] sm:$0xff]  }
 0x3d2   : > { %11385 = vmatprep.subr.bf16.mxu0 %v13375_v56 }
 0x3d6   : > { %11830 = vmatmul.mubr.msk.bf16.gmra.mxu1 %vm3739_vm3, %v6985_v20  ;;  %v7000_v20 = vpack.c.bf16 %v4985_v38, %v4984_v15  ;;  %v4990_v15 = vld [vmem:[#allocation3 + $0x4e2] sm:$0xff] }
 0x3d7   : > { %11833 = vmatprep.mubr.msk.bf16.mxu1 %vm3739_vm3, %v6988_v26  ;;  %v4987_v26 = vld [vmem:[#allocation3 + $0x4b2] sm:$0xff] }
 0x3da   : > { %v16398_v44 = vpop.f32.mrf.mxu1 }
 0x3dc   : > { %v7486_v11 = vpop.f32.mrf.mxu1 }
 0x3dd   : > { %v4986_v11 = vld [vmem:[#allocation3 + $0x4a2] sm:$0xff] }
 0x3de   : > { %v16400_v6 = vpop.f32.mrf.mxu1  ;;  %11834 = vmatmul.mubr.msk.bf16.gmra.mxu1 %vm3739_vm3, %v6991_v9  ;;  %v7003_v54 = vpack.c.bf16 %v4987_v26, %v4986_v11  ;;  %v4988_v9 = vld [vmem:[#allocation3 + $0x4c2] sm:$0xff] }
 0x3df   : > { %17726 = vst [vmem:[#allocation11_spill] sm:$0xff] %v16400_v6  ;;  %11837 = vmatprep.mubr.msk.bf16.mxu1 %vm3739_vm3, %v6994_v32  ;;  %v7006_v32 = vpack.c.bf16 %v4989_v23, %v4988_v9  ;;  %v17729_v23 = vmov 0.0  }
 0x3e0   : > { %v7489_v35 = vpop.f32.mrf.mxu1  ;;  %8293 = vst.msk [vmem:[#allocation5 + $0x10] sm:$0x1] %vm8292_vm8, %v17729_v23  ;;  %8294 = vst.msk [vmem:[#allocation5 + $0x20] sm:$0x1] %vm8292_vm8, %v17729_v23 }
 0x3e1   : > { %v13374_v35 = vld [vmem:[%s17711_s7 + $0x78] sm:$0xff]   ;;  %8326 = vst.msk [vmem:[#allocation5 + $0x15] sm:$0x1f] %vm8325_vm9, %v17729_v23  ;;  %8327 = vst.msk [vmem:[#allocation5 + $0x25] sm:$0x1f] %vm8325_vm9, %v17729_v23 }
 0x3e2   : > { %11263 = vmatprep.subr.bf16.mxu1 %v13374_v35  ;;  %8295 = vst.msk [vmem:[#allocation5 + $0x30] sm:$0x1] %vm8292_vm8, %v17729_v23  ;;  %8296 = vst.msk [vmem:[#allocation5 + $0x40] sm:$0x1] %vm8292_vm8, %v17729_v23  ;;  %v13379_v35 = vld [vmem:[%s17711_s7 + $0x30] sm:$0xff]  }
 0x3e3   : > { %11264 = vmatpush3.bf16.msra.mxu1 %v13376_v45  ;;  %8297 = vst.msk [vmem:[#allocation5 + $0x70] sm:$0x1] %vm8292_vm8, %v17729_v23  ;;  %8298 = vst.msk [vmem:[#allocation5 + $0x80] sm:$0x1] %vm8292_vm8, %v17729_v23 }
 0x3e4   : > { %8299 = vst.msk [vmem:[#allocation5 + $0x90] sm:$0x1] %vm8292_vm8, %v17729_v23  ;;  %8300 = vst.msk [vmem:[#allocation5 + $0xa0] sm:$0x1] %vm8292_vm8, %v17729_v23 }
 0x3e5   : > { %8301 = vst.msk [vmem:[#allocation5 + $0xd0] sm:$0x1] %vm8292_vm8, %v17729_v23  ;;  %8302 = vst.msk [vmem:[#allocation5 + $0xe0] sm:$0x1] %vm8292_vm8, %v17729_v23 }
 0x3e6   : > { %11838 = vmatmul.mubr.msk.bf16.gmra.mxu1 %vm3739_vm3, %v6997_v33  ;;  %v13377_v33 = vld [vmem:[%s17711_s7 + $0x90] sm:$0xff]   ;;  %8303 = vst.msk [vmem:[#allocation5 + $0xf0] sm:$0x1] %vm8292_vm8, %v17729_v23  ;;  %8304 = vst.msk [vmem:[#allocation5 + $0x100] sm:$0x1] %vm8292_vm8, %v17729_v23 }
 0x3e7   : > { %11841 = vmatprep.mubr.msk.bf16.mxu1 %vm3739_vm3, %v7000_v20  ;;  %v4991_v20 = vld [vmem:[#allocation3 + $0x4f2] sm:$0xff]  ;;  %11386 = vmatpush3.bf16.msra.mxu0 %v13377_v33  ;;  %8305 = vst.msk [vmem:[#allocation5 + $0x130] sm:$0x1] %vm8292_vm8, %v17729_v23  ;;  %8306 = vst.msk [vmem:[#allocation5 + $0x140] sm:$0x1] %vm8292_vm8, %v17729_v23  ;;  %v13380_v33 = vld [vmem:[%s17711_s7 + $0x68] sm:$0xff]  }
 0x3e8   : > { %v7009_v26 = vpack.c.bf16 %v4991_v20, %v4990_v15  ;;  %8307 = vst.msk [vmem:[#allocation5 + $0x150] sm:$0x1] %vm8292_vm8, %v17729_v23  ;;  %8308 = vst.msk [vmem:[#allocation5 + $0x160] sm:$0x1] %vm8292_vm8, %v17729_v23  ;;  %v13381_v15 = vld [vmem:[%s17711_s7 + $0x28] sm:$0xff]  }
 0x3e9   : > { %8309 = vst.msk [vmem:[#allocation5 + $0x190] sm:$0x1] %vm8292_vm8, %v17729_v23  ;;  %8310 = vst.msk [vmem:[#allocation5 + $0x1a0] sm:$0x1] %vm8292_vm8, %v17729_v23 }
 0x3ea   : > { %v16406_v7 = vpop.f32.mrf.mxu1  ;;  %8311 = vst.msk [vmem:[#allocation5 + $0x1b0] sm:$0x1] %vm8292_vm8, %v17729_v23  ;;  %8312 = vst.msk [vmem:[#allocation5 + $0x1c0] sm:$0x1] %vm8292_vm8, %v17729_v23 }
 0x3eb   : > { %17727 = vst [vmem:[#allocation12_spill] sm:$0xff] %v16406_v7  ;;  %8313 = vst.msk [vmem:[#allocation5 + $0x1f0] sm:$0x1] %vm8292_vm8, %v17729_v23 }
 0x3ec   : > { %v7494_v25 = vpop.f32.mrf.mxu1  ;;  %8314 = vst.msk [vmem:[#allocation5 + $0x200] sm:$0x1] %vm8292_vm8, %v17729_v23  ;;  %8315 = vst.msk [vmem:[#allocation5 + $0x210] sm:$0x1] %vm8292_vm8, %v17729_v23 }
 0x3ed   : > { %8316 = vst.msk [vmem:[#allocation5 + $0x220] sm:$0x1] %vm8292_vm8, %v17729_v23  ;;  %8317 = vst.msk [vmem:[#allocation5 + $0x250] sm:$0x1] %vm8292_vm8, %v17729_v23 }
 0x3ee   : > { %v16408_v5 = vpop.f32.mrf.mxu1  ;;  %11842 = vmatmul.mubr.msk.bf16.gmra.mxu1 %vm3739_vm3, %v7003_v54  ;;  %8318 = vst.msk [vmem:[#allocation5 + $0x260] sm:$0x1] %vm8292_vm8, %v17729_v23  ;;  %8319 = vst.msk [vmem:[#allocation5 + $0x270] sm:$0x1] %vm8292_vm8, %v17729_v23 }
 0x3ef   : > { %17728 = vst [vmem:[#allocation13_spill] sm:$0xff] %v16408_v5  ;;  %11845 = vmatprep.mubr.msk.bf16.mxu1 %vm3739_vm3, %v7006_v32  ;;  %8320 = vst.msk [vmem:[#allocation5 + $0x280] sm:$0x1] %vm8292_vm8, %v17729_v23  ;;  %v13378_v32 = vld [vmem:[%s17711_s7 + $0x70] sm:$0xff]  }
 0x3f0   : > { %v7497_v38 = vpop.f32.mrf.mxu1  ;;  %8321 = vst.msk [vmem:[#allocation5 + $0x2b0] sm:$0x1] %vm8292_vm8, %v17729_v23  ;;  %8322 = vst.msk [vmem:[#allocation5 + $0x2c0] sm:$0x1] %vm8292_vm8, %v17729_v23  ;;  %11265 = vmatprep.subr.bf16.mxu1 %v13378_v32 }
 0x3f1   : > { %8323 = vst.msk [vmem:[#allocation5 + $0x2d0] sm:$0x1] %vm8292_vm8, %v17729_v23  ;;  %8324 = vst.msk [vmem:[#allocation5 + $0x2e0] sm:$0x1] %vm8292_vm8, %v17729_v23  ;;  %11266 = vmatpush3.bf16.msra.mxu1 %v13379_v35  ;;  %v13382_v35 = vld [vmem:[%s17711_s7 + $0x60] sm:$0xff]  }
 0x3f2   : > { %8328 = vst.msk [vmem:[#allocation5 + $0x35] sm:$0x1f] %vm8325_vm9, %v17729_v23  ;;  %8329 = vst.msk [vmem:[#allocation5 + $0x45] sm:$0x1f] %vm8325_vm9, %v17729_v23  ;;  %11267 = vmatprep.subr.bf16.mxu1 %v13380_v33 }
 0x3f3   : > { %8330 = vst.msk [vmem:[#allocation5 + $0x75] sm:$0x1f] %vm8325_vm9, %v17729_v23  ;;  %8331 = vst.msk [vmem:[#allocation5 + $0x85] sm:$0x1f] %vm8325_vm9, %v17729_v23 }
 0x3f4   : > { %8332 = vst.msk [vmem:[#allocation5 + $0x95] sm:$0x1f] %vm8325_vm9, %v17729_v23  ;;  %8333 = vst.msk [vmem:[#allocation5 + $0xa5] sm:$0x1f] %vm8325_vm9, %v17729_v23 }
 0x3f5   : > { %8334 = vst.msk [vmem:[#allocation5 + $0xd5] sm:$0x1f] %vm8325_vm9, %v17729_v23  ;;  %8335 = vst.msk [vmem:[#allocation5 + $0xe5] sm:$0x1f] %vm8325_vm9, %v17729_v23  ;;  %11268 = vmatpush3.bf16.msra.mxu1 %v13381_v15 }
 0x3f6   : > { %11846 = vmatmul.mubr.msk.bf16.gmra.mxu1 %vm3739_vm3, %v7009_v26  ;;  %8336 = vst.msk [vmem:[#allocation5 + $0xf5] sm:$0x1f] %vm8325_vm9, %v17729_v23  ;;  %8337 = vst.msk [vmem:[#allocation5 + $0x105] sm:$0x1f] %vm8325_vm9, %v17729_v23  ;;  %11269 = vmatprep.subr.bf16.mxu1 %v13382_v35  ;;  %v13387_v35 = vld [vmem:[%s17711_s7 + $0x88] sm:$0xff]   ;;  %vm10475_vm3 = vcmask 1046534  }
 0x3f7   : > { %8338 = vst.msk [vmem:[#allocation5 + $0x135] sm:$0x1f] %vm8325_vm9, %v17729_v23  ;;  %8339 = vst.msk [vmem:[#allocation5 + $0x145] sm:$0x1f] %vm8325_vm9, %v17729_v23  ;;  %v16553_v25 = vpop.f32.mrf.mxu1 }
 0x3f8   : > { %8340 = vst.msk [vmem:[#allocation5 + $0x155] sm:$0x1f] %vm8325_vm9, %v17729_v23  ;;  %8341 = vst.msk [vmem:[#allocation5 + $0x165] sm:$0x1f] %vm8325_vm9, %v17729_v23 }
 0x3f9   : > { %8342 = vst.msk [vmem:[#allocation5 + $0x195] sm:$0x1f] %vm8325_vm9, %v17729_v23  ;;  %8343 = vst.msk [vmem:[#allocation5 + $0x1a5] sm:$0x1f] %vm8325_vm9, %v17729_v23  ;;  %v7502_v11 = vpop.f32.mrf.mxu1 }
 0x3fa   : > { %8344 = vst.msk [vmem:[#allocation5 + $0x1b5] sm:$0x1f] %vm8325_vm9, %v17729_v23  ;;  %8345 = vst.msk [vmem:[#allocation5 + $0x1c5] sm:$0x1f] %vm8325_vm9, %v17729_v23 }
 0x3fb   : > { %8346 = vst.msk [vmem:[#allocation5 + $0x1f5] sm:$0x1f] %vm8325_vm9, %v17729_v23  ;;  %8347 = vst.msk [vmem:[#allocation5 + $0x205] sm:$0x1f] %vm8325_vm9, %v17729_v23  ;;  %v16587_v54 = vpop.f32.mrf.mxu1 }
 0x3fc   : > { %8348 = vst.msk [vmem:[#allocation5 + $0x215] sm:$0x1f] %vm8325_vm9, %v17729_v23  ;;  %8349 = vst.msk [vmem:[#allocation5 + $0x225] sm:$0x1f] %vm8325_vm9, %v17729_v23 }
 0x3fd   : > { %8350 = vst.msk [vmem:[#allocation5 + $0x255] sm:$0x1f] %vm8325_vm9, %v17729_v23  ;;  %8351 = vst.msk [vmem:[#allocation5 + $0x265] sm:$0x1f] %vm8325_vm9, %v17729_v23  ;;  %v7505_v9 = vpop.f32.mrf.mxu1 }
 0x3fe   : > { %8352 = vst.msk [vmem:[#allocation5 + $0x275] sm:$0x1f] %vm8325_vm9, %v17729_v23  ;;  %8353 = vst.msk [vmem:[#allocation5 + $0x285] sm:$0x1f] %vm8325_vm9, %v17729_v23 }
 0x3ff   : > { %8354 = vst.msk [vmem:[#allocation5 + $0x2b5] sm:$0x1f] %vm8325_vm9, %v17729_v23  ;;  %8355 = vst.msk [vmem:[#allocation5 + $0x2c5] sm:$0x1f] %vm8325_vm9, %v17729_v23 }
 0x400   : > { %8356 = vst.msk [vmem:[#allocation5 + $0x2d5] sm:$0x1f] %vm8325_vm9, %v17729_v23  ;;  %8357 = vst.msk [vmem:[#allocation5 + $0x2e5] sm:$0x1f] %vm8325_vm9, %v17729_v23 }
 0x401   : > { %17730 = vst [vmem:[#allocation14_spill] sm:$0xff] %v16553_v25  ;;  %8259 = vst.msk [vmem:[#allocation5 + $0x8] sm:$0x3] %vm8258_vm10, %v17729_v23 }
 0x402   : > { %8261 = vst.msk [vmem:[#allocation5 + $0x68] sm:$0x3] %vm8258_vm10, %v17729_v23  ;;  %8263 = vst.msk [vmem:[#allocation5 + $0xc8] sm:$0x3] %vm8258_vm10, %v17729_v23 }
 0x403   : > { %8265 = vst.msk [vmem:[#allocation5 + $0x128] sm:$0x3] %vm8258_vm10, %v17729_v23  ;;  %8267 = vst.msk [vmem:[#allocation5 + $0x188] sm:$0x3] %vm8258_vm10, %v17729_v23 }
 0x404   : > { %8269 = vst.msk [vmem:[#allocation5 + $0x1e8] sm:$0x3] %vm8258_vm10, %v17729_v23  ;;  %8271 = vst.msk [vmem:[#allocation5 + $0x248] sm:$0x3] %vm8258_vm10, %v17729_v23 }
 0x405   : > { %8273 = vst.msk [vmem:[#allocation5 + $0x2a8] sm:$0x3] %vm8258_vm10, %v17729_v23  ;;  %8276 = vst.msk [vmem:[#allocation5 + $0x58] sm:$0x3] %vm8258_vm10, %v17729_v23 }
 0x406   : > { %8278 = vst.msk [vmem:[#allocation5 + $0xb8] sm:$0x3] %vm8258_vm10, %v17729_v23  ;;  %8280 = vst.msk [vmem:[#allocation5 + $0x118] sm:$0x3] %vm8258_vm10, %v17729_v23 }
 0x407   : > { %8282 = vst.msk [vmem:[#allocation5 + $0x178] sm:$0x3] %vm8258_vm10, %v17729_v23  ;;  %8284 = vst.msk [vmem:[#allocation5 + $0x1d8] sm:$0x3] %vm8258_vm10, %v17729_v23 }
 0x408   : > { %8286 = vst.msk [vmem:[#allocation5 + $0x238] sm:$0x3] %vm8258_vm10, %v17729_v23  ;;  %8288 = vst.msk [vmem:[#allocation5 + $0x298] sm:$0x3] %vm8258_vm10, %v17729_v23 }
 0x409   : > { %8290 = vst.msk [vmem:[#allocation5 + $0x2f8] sm:$0x3] %vm8258_vm10, %v17729_v23  ;;  %17731 = vst [vmem:[#allocation15_spill] sm:$0xff] %v16587_v54 }
 0x40b   : > { %v16595_v56 = vpop.f32.mrf.mxu1 }
 0x40c   : > { %17732 = vst [vmem:[#allocation16_spill] sm:$0xff] %v16595_v56  ;;  %v16638_v56 = vld [vmem:[%s17709_s5] ss:$0 sm:$0xff] }
 0x40d   : > { %v7510_v45 = vpop.f32.mrf.mxu1 }
 0x40e   : > { %v13383_v45 = vld [vmem:[%s17711_s7 + $0x20] sm:$0xff]  }
 0x40f   : > { %v16597_v38 = vpop.f32.mrf.mxu1  ;;  %11270 = vmatpush3.bf16.msra.mxu1 %v13383_v45 }
 0x410   : > { %17733 = vst [vmem:[#allocation17_spill] sm:$0xff] %v16597_v38 }
 0x411   : > { %v7513_v20 = vpop.f32.mrf.mxu1 }
 0x41a   : > { %v16605_v26 = vpop.f32.mrf.mxu1 }
 0x41b   : > { %17734 = vst [vmem:[#allocation18_spill] sm:$0xff] %v16605_v26 }
 0x41c   : > { %v7518_v11 = vpop.f32.mrf.mxu1 }
 0x41d   : > { %v13384_v11 = vld [vmem:[%s17711_s7 + $0x58] sm:$0xff]  }
 0x41e   : > { %v16607_v9 = vpop.f32.mrf.mxu1  ;;  %11271 = vmatprep.subr.bf16.mxu1 %v13384_v11 }
 0x41f   : > { %17735 = vst [vmem:[#allocation19_spill] sm:$0xff] %v16607_v9  ;;  %v13386_v9 = vld [vmem:[%s17711_s7 + $0x18] sm:$0xff]  }
 0x420   : > { %v7521_v32 = vpop.f32.mrf.mxu1  ;;  %11272 = vmatpush3.bf16.msra.mxu1 %v13386_v9 }
 0x421   : > { %v13385_v32 = vld [vmem:[%s17711_s7 + $0xc8] sm:$0xff]  }
 0x422   : > { %11387 = vmatprep.subr.bf16.mxu0 %v13385_v32  ;;  %v16646_v32 = vld [vmem:[%s17710_s6] ss:$0 sm:$0xff] }
 0x423   : > { %11388 = vmatpush3.bf16.msra.mxu0 %v13387_v35 }
 0x42a   : > { %v16615_v38 = vpop.f32.mrf.mxu1 }
 0x42b   : > { %17736 = vst [vmem:[#allocation20_spill] sm:$0xff] %v16615_v38 }
 0x42c   : > { %v7526_v33 = vpop.f32.mrf.mxu1 }
 0x42e   : > { %v16617_v15 = vpop.f32.mrf.mxu1 }
 0x42f   : > { %17737 = vst [vmem:[#allocation21_spill] sm:$0xff] %v16617_v15 }
 0x430   : > { %v7529_v20 = vpop.f32.mrf.mxu1 }
 0x436   : > { %v16631_v45 = vpop.f32.mrf.mxu1 }
 0x437   : > { %17738 = vst [vmem:[#allocation22_spill] sm:$0xff] %v16631_v45 }
 0x438   : > { %v7534_v33 = vpop.f32.mrf.mxu1 }
 0x439   : > { %v13389_v33 = vld [vmem:[%s17711_s7 + $0x10] sm:$0xff]  }
 0x43a   : > { %v16633_v20 = vpop.f32.mrf.mxu1 }
 0x43b   : > { %17739 = vst [vmem:[#allocation23_spill] sm:$0xff] %v16633_v20 }
 0x43c   : > { %v7537_v15 = vpop.f32.mrf.mxu1 }
 0x43d   : > { %v13388_v15 = vld [vmem:[%s17711_s7 + $0x50] sm:$0xff]  }
 0x43e   : > { %v11787_v38 = vpop.f32.mrf.mxu1  ;;  %11273 = vmatprep.subr.bf16.mxu1 %v13388_v15 }
 0x43f   : > { %v7582_v26 = vadd.f32 %v11787_v38, %v15451_v49  ;;  %11274 = vmatpush3.bf16.msra.mxu1 %v13389_v33 }
 0x440   : > { %v7573_v5 = vpop.f32.mrf.mxu1 }
 0x441   : > { %v7837_v11 = vmul.f32 %v16638_v56, %v7582_v26  ;;  %v7574_v9 = vadd.f32 %v7573_v5, %v15384_v16 }
 0x442   : > { %v11788_v35 = vpop.f32.mrf.mxu1 }
 0x443   : > { %v7835_v49 = vmul.f32 %v16638_v56, %v7574_v9  ;;  %v7585_v38 = vadd.f32 %v11788_v35, %v15471_v57  ;;  %v7908_v16 = vadd.f32 %v16646_v32, %v7837_v11 }
 0x444   : > { %v7576_v26 = vpop.f32.mrf.mxu1 }
 0x445   : > { %v7838_v5 = vmul.f32 %v16638_v56, %v7585_v38  ;;  %v7577_v20 = vadd.f32 %v7576_v26, %v15401_v47  ;;  %v7906_v54 = vadd.f32 %v16646_v32, %v7835_v49  ;;  %v7972_v57 = vmax.f32 %v7908_v16, 0.0 }
 0x446   : > { %v11791_v45 = vpop.f32.mrf.mxu1 }
 0x447   : > { %v7909_v7 = vadd.f32 %v16646_v32, %v7838_v5  ;;  %v7836_v25 = vmul.f32 %v16638_v56, %v7577_v20  ;;  %v7598_v9 = vadd.f32 %v11791_v45, %v15585_v63  ;;  %v7970_v33 = vmax.f32 %v7906_v54, 0.0 }
 0x448   : > { %v7589_v4 = vpop.f32.mrf.mxu1 }
 0x449   : > { %v7973_v35 = vmax.f32 %v7909_v7, 0.0  ;;  %v7907_v15 = vadd.f32 %v16646_v32, %v7836_v25  ;;  %v7590_v11 = vadd.f32 %v7589_v4, %v15526_v62  ;;  %v7841_v38 = vmul.f32 %v16638_v56, %v7598_v9 }
 0x44a   : > { %v11792_v47 = vpop.f32.mrf.mxu1 }
 0x44b   : > { %v8035_v26 = vmax.f32 %v7972_v57, %v7973_v35  ;;  %v7971_v6 = vmax.f32 %v7907_v15, 0.0  ;;  %v7839_v49 = vmul.f32 %v16638_v56, %v7590_v11  ;;  %v7601_v5 = vadd.f32 %v11792_v47, %v15622_v41  ;;  %v13390_v57 = vld [vmem:[%s17711_s7 + $0x48] sm:$0xff]   ;;  %v13392_v47 = vld [vmem:[%s17711_s7 + $0x40] sm:$0xff]  }
 0x44c   : > { %v7592_v20 = vpop.f32.mrf.mxu1  ;;  %v7912_v25 = vadd.f32 %v16646_v32, %v7841_v38  ;;  %v13391_v35 = vld [vmem:[%s17711_s7 + $0x8] sm:$0xff]   ;;  %11275 = vmatprep.subr.bf16.mxu1 %v13390_v57 }
 0x44d   : > { %8067 = vst.msk [vmem:[#allocation4 + $0x8] sm:$0xff] %vm6592_vm6, %v8035_v26  ;;  %v8034_v63 = vmax.f32 %v7970_v33, %v7971_v6  ;;  %v7593_v7 = vadd.f32 %v7592_v20, %v15550_v12  ;;  %v7842_v62 = vmul.f32 %v16638_v56, %v7601_v5  ;;  %v7910_v54 = vadd.f32 %v16646_v32, %v7839_v49  ;;  %v13393_v49 = vld [vmem:[%s17711_s7] sm:$0xff]  }
 0x44e   : > { %v11795_v4 = vpop.f32.mrf.mxu1  ;;  %v7976_v15 = vmax.f32 %v7912_v25, 0.0  ;;  %11276 = vmatpush3.bf16.msra.mxu1 %v13391_v35 }
 0x44f   : > { %8066 = vst.msk [vmem:[#allocation4] sm:$0xff] %vm6592_vm6, %v8034_v63  ;;  %v7840_v45 = vmul.f32 %v16638_v56, %v7593_v7  ;;  %v7614_v16 = vadd.f32 %v11795_v4, %v15796_v3  ;;  %v7913_v41 = vadd.f32 %v16646_v32, %v7842_v62  ;;  %v7974_v33 = vmax.f32 %v7910_v54, 0.0  ;;  %11277 = vmatprep.subr.bf16.mxu1 %v13392_v47 }
 0x450   : > { %v7605_v9 = vpop.f32.mrf.mxu1 }
 0x451   : > { %v7911_v6 = vadd.f32 %v16646_v32, %v7840_v45  ;;  %v7606_v12 = vadd.f32 %v7605_v9, %v15717_v13  ;;  %v7977_v11 = vmax.f32 %v7913_v41, 0.0  ;;  %v7845_v38 = vmul.f32 %v16638_v56, %v7614_v16 }
 0x452   : > { %v11796_v3 = vpop.f32.mrf.mxu1  ;;  %11278 = vmatpush3.bf16.msra.mxu1 %v13393_v49 }
 0x453   : > { %v7975_v26 = vmax.f32 %v7911_v6, 0.0  ;;  %v7617_v13 = vadd.f32 %v11796_v3, %v15822_v55  ;;  %v8037_v63 = vmax.f32 %v7976_v15, %v7977_v11  ;;  %v7843_v7 = vmul.f32 %v16638_v56, %v7606_v12 }
 0x454   : > { %v8100_v5 = vld [vmem:[#allocation4 + $0x8] ss:$2 sm:$0xf]  ;;  %v8164_v20 = vld [vmem:[#allocation4 + $0x9] ss:$2 sm:$0xf]  ;;  %v7608_v25 = vpop.f32.mrf.mxu1  ;;  %v7916_v55 = vadd.f32 %v16646_v32, %v7845_v38 }
 0x455   : > { %v8226_v62 = vmax.f32 %v8100_v5, %v8164_v20  ;;  %v8036_v4 = vmax.f32 %v7974_v33, %v7975_v26  ;;  %8069 = vst.msk [vmem:[#allocation4 + $0x18] sm:$0xff] %vm6592_vm6, %v8037_v63  ;;  %v7846_v16 = vmul.f32 %v16638_v56, %v7617_v13  ;;  %v7609_v41 = vadd.f32 %v7608_v25, %v15745_v61 }
 0x456   : > { %v8098_v54 = vld [vmem:[#allocation4] ss:$2 sm:$0xf]  ;;  %v8162_v45 = vld [vmem:[#allocation4 + $0x1] ss:$2 sm:$0xf]  ;;  %v11799_v9 = vpop.f32.mrf.mxu1  ;;  %v7914_v57 = vadd.f32 %v16646_v32, %v7843_v7 }
 0x457   : > { %8068 = vst.msk [vmem:[#allocation4 + $0x10] sm:$0xff] %vm6592_vm6, %v8036_v4  ;;  %v7630_v6 = vadd.f32 %v11799_v9, %v15947_v0  ;;  %v8225_v12 = vmax.f32 %v8098_v54, %v8162_v45  ;;  %v7917_v35 = vadd.f32 %v16646_v32, %v7846_v16  ;;  %v7844_v15 = vmul.f32 %v16638_v56, %v7609_v41 }
 0x458   : > { %8360 = vst.msk [vmem:[#allocation5 + $0x21] sm:$0xf] %vm8358_vm11, %v8226_v62  ;;  %v7621_v11 = vpop.f32.mrf.mxu1  ;;  %v7980_v3 = vmax.f32 %v7916_v55, 0.0  ;;  %v7978_v5 = vmax.f32 %v7914_v57, 0.0 }
 0x459   : > { %v7849_v38 = vmul.f32 %v16638_v56, %v7630_v6  ;;  %v7622_v61 = vadd.f32 %v7621_v11, %v15894_v24  ;;  %8359 = vst.msk [vmem:[#allocation5 + $0x11] sm:$0xf] %vm8358_vm11, %v8225_v12  ;;  %v7981_v47 = vmax.f32 %v7917_v35, 0.0  ;;  %v7915_v0 = vadd.f32 %v16646_v32, %v7844_v15  ;;  %v8423_v12 = vld [vmem:[#allocation5 + $0x1] sm:$0xff] }
 0x45a   : > { %v11800_v33 = vpop.f32.mrf.mxu1 }
 0x45b   : > { %v7847_v26 = vmul.f32 %v16638_v56, %v7622_v61  ;;  %v7633_v13 = vadd.f32 %v11800_v33, %v15958_v29  ;;  %v8039_v20 = vmax.f32 %v7980_v3, %v7981_v47  ;;  %v7979_v63 = vmax.f32 %v7915_v0, 0.0 }
 0x45c   : > { %v7920_v49 = vadd.f32 %v16646_v32, %v7849_v38  ;;  %v7624_v7 = vpop.f32.mrf.mxu1  ;;  %v8104_v25 = vld [vmem:[#allocation4 + $0x18] ss:$2 sm:$0xf]  ;;  %v8168_v62 = vld [vmem:[#allocation4 + $0x19] ss:$2 sm:$0xf] }
 0x45d   : > { %v7850_v24 = vmul.f32 %v16638_v56, %v7633_v13  ;;  %v7625_v4 = vadd.f32 %v7624_v7, %v15916_v17  ;;  %v8228_v54 = vmax.f32 %v8104_v25, %v8168_v62  ;;  %8071 = vst.msk [vmem:[#allocation4 + $0x28] sm:$0xff] %vm6592_vm6, %v8039_v20  ;;  %v8038_v16 = vmax.f32 %v7978_v5, %v7979_v63  ;;  %v13395_v63 = vld [vmem:[%s17711_s7 + $0x118] sm:$0xff]  }
 0x45e   : > { %v8102_v45 = vld [vmem:[#allocation4 + $0x10] ss:$2 sm:$0xf]  ;;  %v8166_v55 = vld [vmem:[#allocation4 + $0x11] ss:$2 sm:$0xf]  ;;  %v7918_v29 = vadd.f32 %v16646_v32, %v7847_v26  ;;  %v11803_v41 = vpop.f32.mrf.mxu1  ;;  %11849 = vmatprep.subr.bf16.mxu1 %v13395_v63 }
 0x45f   : > { %v7921_v9 = vadd.f32 %v16646_v32, %v7850_v24  ;;  %v7848_v6 = vmul.f32 %v16638_v56, %v7625_v4  ;;  %8070 = vst.msk [vmem:[#allocation4 + $0x20] sm:$0xff] %vm6592_vm6, %v8038_v16  ;;  %v7984_v57 = vmax.f32 %v7920_v49, 0.0  ;;  %v7646_v35 = vadd.f32 %v11803_v41, %v16104_v60  ;;  %v8488_v11 = vld [vmem:[#allocation5 + $0x20] sm:$0xff] }
 0x460   : > { %v7637_v17 = vpop.f32.mrf.mxu1  ;;  %v8487_v15 = vld [vmem:[#allocation5 + $0x10] sm:$0xff]  ;;  %8362 = vst.msk [vmem:[#allocation5 + $0x41] sm:$0xf] %vm8358_vm11, %v8228_v54  ;;  %v8227_v61 = vmax.f32 %v8102_v45, %v8166_v55  ;;  %v7982_v26 = vmax.f32 %v7918_v29, 0.0  ;;  %v13394_v60 = vld [vmem:[%s17711_s7 + $0xc0] sm:$0xff]  }
 0x461   : > { %v8424_v38 = vld [vmem:[#allocation5 + $0x11] sm:$0xff]  ;;  %v7985_v3 = vmax.f32 %v7921_v9, 0.0  ;;  %v7919_v47 = vadd.f32 %v16646_v32, %v7848_v6  ;;  %v7638_v0 = vadd.f32 %v7637_v17, %v16026_v51  ;;  %v12896_v33 = vpack.i.bf16 %v8488_v11, %v8487_v15  ;;  %v13396_v51 = vld [vmem:[%s17711_s7 + $0x80] sm:$0xff]   ;;  %11389 = vmatprep.subr.bf16.mxu0 %v13394_v60 }
 0x462   : > { %v7853_v13 = vmul.f32 %v16638_v56, %v7646_v35  ;;  %v11804_v5 = vpop.f32.mrf.mxu1  ;;  %v12901_v20 = vpack.i.bf16 %v8424_v38, %v8423_v12  ;;  %8361 = vst.msk [vmem:[#allocation5 + $0x31] sm:$0xf] %vm8358_vm11, %v8227_v61  ;;  %11390 = vmatpush3.bf16.msra.mxu0 %v13396_v51  ;;  %v8425_v11 = vld [vmem:[#allocation5 + $0x21] sm:$0xff] }
 0x463   : > { %v8041_v49 = vmax.f32 %v7984_v57, %v7985_v3  ;;  %v7983_v7 = vmax.f32 %v7919_v47, 0.0  ;;  %v7851_v25 = vmul.f32 %v16638_v56, %v7638_v0  ;;  %v7649_v62 = vadd.f32 %v11804_v5, %v16119_v39  ;;  %12897 = vrot.lane.b32.xlu0 %v12896_v33, %s13439_s16  ;;  %11909 = vmatprep.subr.bf16.mxu0 %v17729_v23 }
 0x464   : > { %v7924_v24 = vadd.f32 %v16646_v32, %v7853_v13  ;;  %12902 = vrot.lane.b32.xlu1 %v12901_v20, %s13439_s16  ;;  %v7640_v4 = vpop.f32.mrf.mxu1  ;;  %v8108_v54 = vld [vmem:[#allocation4 + $0x28] ss:$2 sm:$0xf]  ;;  %v8172_v45 = vld [vmem:[#allocation4 + $0x29] ss:$2 sm:$0xf] }
 0x465   : > { %8073 = vst.msk [vmem:[#allocation4 + $0x38] sm:$0xff] %vm6592_vm6, %v8041_v49  ;;  %v8040_v55 = vmax.f32 %v7982_v26, %v7983_v7  ;;  %v7854_v16 = vmul.f32 %v16638_v56, %v7649_v62  ;;  %v7641_v29 = vadd.f32 %v7640_v4, %v16047_v21  ;;  %v8230_v41 = vmax.f32 %v8108_v54, %v8172_v45 }
 0x466   : > { %v11807_v39 = vpop.f32.mrf.mxu1  ;;  %v8106_v9 = vld [vmem:[#allocation4 + $0x20] ss:$2 sm:$0xf]  ;;  %v8170_v6 = vld [vmem:[#allocation4 + $0x21] ss:$2 sm:$0xf]  ;;  %v7922_v12 = vadd.f32 %v16646_v32, %v7851_v25 }
 0x467   : > { %8072 = vst.msk [vmem:[#allocation4 + $0x30] sm:$0xff] %vm6592_vm6, %v8040_v55  ;;  %v7925_v57 = vadd.f32 %v16646_v32, %v7854_v16  ;;  %v7852_v35 = vmul.f32 %v16638_v56, %v7641_v29  ;;  %v7662_v17 = vadd.f32 %v11807_v39, %v16187_v22  ;;  %v7988_v15 = vmax.f32 %v7924_v24, 0.0  ;;  %v8490_v26 = vld [vmem:[#allocation5 + $0x40] sm:$0xff] }
 0x468   : > { %8364 = vst.msk [vmem:[#allocation5 + $0x81] sm:$0xf] %vm8358_vm11, %v8230_v41  ;;  %v7653_v21 = vpop.f32.mrf.mxu1  ;;  %v8229_v38 = vmax.f32 %v8106_v9, %v8170_v6  ;;  %v7986_v60 = vmax.f32 %v7922_v12, 0.0  ;;  %v17740_v41 = vld [vmem:[#allocation8_spill] sm:$0xff]  ;;  %v8427_v9 = vld [vmem:[#allocation5 + $0x61] sm:$0xff] }
 0x469   : > { %v7989_v61 = vmax.f32 %v7925_v57, 0.0  ;;  %v7923_v3 = vadd.f32 %v16646_v32, %v7852_v35  ;;  %v7857_v47 = vmul.f32 %v16638_v56, %v7662_v17  ;;  %v7654_v0 = vadd.f32 %v7653_v21, %v16162_v30  ;;  %v8489_v33 = vld [vmem:[#allocation5 + $0x30] sm:$0xff] }
 0x46a   : > { %v8426_v13 = vld [vmem:[#allocation5 + $0x31] sm:$0xff]  ;;  %v11808_v5 = vpop.f32.mrf.mxu1  ;;  %v12906_v22 = vpack.i.bf16 %v8490_v26, %v8489_v33  ;;  %8363 = vst.msk [vmem:[#allocation5 + $0x71] sm:$0xf] %vm8358_vm11, %v8229_v38 }
 0x46b   : > { %v16751_v20 = vpack.i.bf16 %v8426_v13, %v8425_v11  ;;  %v8043_v63 = vmax.f32 %v7988_v15, %v7989_v61  ;;  %v7987_v51 = vmax.f32 %v7923_v3, 0.0  ;;  %v7665_v25 = vadd.f32 %v11808_v5, %v16191_v52 }
 0x46c   : > { %v8112_v49 = vld [vmem:[#allocation4 + $0x38] ss:$2 sm:$0xf]  ;;  %v8176_v7 = vld [vmem:[#allocation4 + $0x39] ss:$2 sm:$0xf]  ;;  %12907 = vrot.lane.b32.xlu0 %v12906_v22, %s13439_s16  ;;  %v7656_v30 = vpop.f32.mrf.mxu1  ;;  %v7928_v4 = vadd.f32 %v16646_v32, %v7857_v47  ;;  %v7855_v54 = vmul.f32 %v16638_v56, %v7654_v0 }
 0x46d   : > { %12912 = vrot.lane.b32.xlu1 %v16751_v20, %s13439_s16  ;;  %v8232_v62 = vmax.f32 %v8112_v49, %v8176_v7  ;;  %8075 = vst.msk [vmem:[#allocation4 + $0x48] sm:$0xff] %vm6592_vm6, %v8043_v63  ;;  %v8042_v24 = vmax.f32 %v7986_v60, %v7987_v51  ;;  %v7858_v16 = vmul.f32 %v16638_v56, %v7665_v25 }
 0x46e   : > { %v8110_v45 = vld [vmem:[#allocation4 + $0x30] ss:$2 sm:$0xf]  ;;  %v8174_v55 = vld [vmem:[#allocation4 + $0x31] ss:$2 sm:$0xf]  ;;  %v7657_v52 = vadd.f32 %v7656_v30, %v16171_v34  ;;  %v11811_v29 = vpop.f32.mrf.mxu1  ;;  %v7926_v15 = vadd.f32 %v16646_v32, %v7855_v54 }
 0x46f   : > { %8366 = vst.msk [vmem:[#allocation5 + $0xa1] sm:$0xf] %vm8358_vm11, %v8232_v62  ;;  %v7678_v39 = vadd.f32 %v11811_v29, %v17740_v41  ;;  %v8231_v6 = vmax.f32 %v8110_v45, %v8174_v55  ;;  %v7929_v12 = vadd.f32 %v16646_v32, %v7858_v16  ;;  %v7992_v17 = vmax.f32 %v7928_v4, 0.0  ;;  %v17741_v34 = vld [vmem:[#allocation6_spill] sm:$0xff]  ;;  %v17742_v54 = vld [vmem:[#allocation7_spill] sm:$0xff] }
 0x470   : > { %8074 = vst.msk [vmem:[#allocation4 + $0x40] sm:$0xff] %vm6592_vm6, %v8042_v24  ;;  %v7856_v57 = vmul.f32 %v16638_v56, %v7657_v52  ;;  %v7669_v35 = vpop.f32.mrf.mxu1  ;;  %v8492_v61 = vld [vmem:[#allocation5 + $0x80] sm:$0xff]  ;;  %v7990_v25 = vmax.f32 %v7926_v15, 0.0 }
 0x471   : > { %v7861_v21 = vmul.f32 %v16638_v56, %v7678_v39  ;;  %v7670_v11 = vadd.f32 %v7669_v35, %v17741_v34  ;;  %v8491_v38 = vld [vmem:[#allocation5 + $0x70] sm:$0xff]  ;;  %8365 = vst.msk [vmem:[#allocation5 + $0x91] sm:$0xf] %vm8358_vm11, %v8231_v6  ;;  %v7993_v47 = vmax.f32 %v7929_v12, 0.0  ;;  %v8429_v29 = vld [vmem:[#allocation5 + $0x81] sm:$0xff] }
 0x472   : > { %v8428_v3 = vld [vmem:[#allocation5 + $0x71] sm:$0xff]  ;;  %v7927_v0 = vadd.f32 %v16646_v32, %v7856_v57  ;;  %v11812_v33 = vpop.f32.mrf.mxu1  ;;  %v12916_v26 = vpack.i.bf16 %v8492_v61, %v8491_v38 }
 0x473   : > { %v12921_v13 = vpack.i.bf16 %v8428_v3, %v8427_v9  ;;  %v7681_v5 = vadd.f32 %v11812_v33, %v16235_v14  ;;  %v8045_v63 = vmax.f32 %v7992_v17, %v7993_v47  ;;  %v7859_v51 = vmul.f32 %v16638_v56, %v7670_v11 }
 0x474   : > { %v8116_v22 = vld [vmem:[#allocation4 + $0x48] ss:$2 sm:$0xf]  ;;  %v8180_v60 = vld [vmem:[#allocation4 + $0x49] ss:$2 sm:$0xf]  ;;  %12917 = vrot.lane.b32.xlu0 %v12916_v26, %s13439_s16  ;;  %v7672_v49 = vpop.f32.mrf.mxu1  ;;  %v7932_v4 = vadd.f32 %v16646_v32, %v7861_v21 }
 0x475   : > { %12922 = vrot.lane.b32.xlu1 %v12921_v13, %s13439_s16  ;;  %v8234_v7 = vmax.f32 %v8116_v22, %v8180_v60  ;;  %v7991_v30 = vmax.f32 %v7927_v0, 0.0  ;;  %8077 = vst.msk [vmem:[#allocation4 + $0x58] sm:$0xff] %vm6592_vm6, %v8045_v63  ;;  %v7862_v14 = vmul.f32 %v16638_v56, %v7681_v5  ;;  %v7673_v45 = vadd.f32 %v7672_v49, %v17742_v54 }
 0x476   : > { %v11815_v55 = vpop.f32.mrf.mxu1  ;;  %v7930_v39 = vadd.f32 %v16646_v32, %v7859_v51  ;;  %v8494_v35 = vld [vmem:[#allocation5 + $0xa0] sm:$0xff]  ;;  %v7996_v11 = vmax.f32 %v7932_v4, 0.0  ;;  %v17743_v51 = vld [vmem:[#allocation9_spill] sm:$0xff] }
 0x477   : > { %v8114_v62 = vld [vmem:[#allocation4 + $0x40] ss:$2 sm:$0xf]  ;;  %v8178_v24 = vld [vmem:[#allocation4 + $0x41] ss:$2 sm:$0xf]  ;;  %v8044_v16 = vmax.f32 %v7990_v25, %v7991_v30  ;;  %v7694_v52 = vadd.f32 %v11815_v55, %v16260_v42  ;;  %v7933_v9 = vadd.f32 %v16646_v32, %v7862_v14  ;;  %v7860_v6 = vmul.f32 %v16638_v56, %v7673_v45 }
 0x478   : > { %8368 = vst.msk [vmem:[#allocation5 + $0xe1] sm:$0xf] %vm8358_vm11, %v8234_v7  ;;  %v8233_v41 = vmax.f32 %v8114_v62, %v8178_v24  ;;  %v7685_v12 = vpop.f32.mrf.mxu1  ;;  %v8493_v57 = vld [vmem:[#allocation5 + $0x90] sm:$0xff]  ;;  %v8431_v14 = vld [vmem:[#allocation5 + $0xc1] sm:$0xff] }
 0x479   : > { %v8430_v17 = vld [vmem:[#allocation5 + $0x91] sm:$0xff]  ;;  %8076 = vst.msk [vmem:[#allocation4 + $0x50] sm:$0xff] %vm6592_vm6, %v8044_v16  ;;  %v7865_v15 = vmul.f32 %v16638_v56, %v7694_v52  ;;  %v7686_v21 = vadd.f32 %v7685_v12, %v16245_v18  ;;  %v12926_v34 = vpack.i.bf16 %v8494_v35, %v8493_v57  ;;  %v7997_v38 = vmax.f32 %v7933_v9, 0.0 }
 0x47a   : > { %v16789_v42 = vpack.i.bf16 %v8430_v17, %v8429_v29  ;;  %8367 = vst.msk [vmem:[#allocation5 + $0xd1] sm:$0xf] %vm8358_vm11, %v8233_v41  ;;  %v7931_v61 = vadd.f32 %v16646_v32, %v7860_v6  ;;  %v11816_v3 = vpop.f32.mrf.mxu1  ;;  %v7994_v18 = vmax.f32 %v7930_v39, 0.0 }
 0x47b   : > { %v7863_v47 = vmul.f32 %v16638_v56, %v7686_v21  ;;  %v7697_v0 = vadd.f32 %v11816_v3, %v16262_v59  ;;  %12927 = vrot.lane.b32.xlu0 %v12926_v34, %s13439_s16  ;;  %v8047_v33 = vmax.f32 %v7996_v11, %v7997_v38  ;;  %v7936_v60 = vadd.f32 %v16646_v32, %v7865_v15 }
 0x47c   : > { %12932 = vrot.lane.b32.xlu1 %v16789_v42, %s13439_s16  ;;  %v7995_v26 = vmax.f32 %v7931_v61, 0.0  ;;  %v7688_v13 = vpop.f32.mrf.mxu1  ;;  %v8120_v5 = vld [vmem:[#allocation4 + $0x58] ss:$2 sm:$0xf] }
 0x47d   : > { %v8184_v22 = vld [vmem:[#allocation4 + $0x59] ss:$2 sm:$0xf]  ;;  %v7866_v63 = vmul.f32 %v16638_v56, %v7697_v0  ;;  %v7689_v49 = vadd.f32 %v7688_v13, %v17743_v51  ;;  %8079 = vst.msk [vmem:[#allocation4 + $0x68] sm:$0xff] %vm6592_vm6, %v8047_v33  ;;  %v7934_v30 = vadd.f32 %v16646_v32, %v7863_v47  ;;  %v8000_v16 = vmax.f32 %v7936_v60, 0.0 }
 0x47e   : > { %v8236_v7 = vmax.f32 %v8120_v5, %v8184_v22  ;;  %v8046_v59 = vmax.f32 %v7994_v18, %v7995_v26  ;;  %v11819_v25 = vpop.f32.mrf.mxu1 }
 0x47f   : > { %v7937_v62 = vadd.f32 %v16646_v32, %v7866_v63  ;;  %v7864_v24 = vmul.f32 %v16638_v56, %v7689_v49  ;;  %v7710_v4 = vadd.f32 %v11819_v25, %v16297_v53  ;;  %v8496_v9 = vld [vmem:[#allocation5 + $0xe0] sm:$0xff]  ;;  %v7998_v15 = vmax.f32 %v7934_v30, 0.0 }
 0x480   : > { %8370 = vst.msk [vmem:[#allocation5 + $0x101] sm:$0xf] %vm8358_vm11, %v8236_v7  ;;  %v8118_v54 = vld [vmem:[#allocation4 + $0x50] ss:$2 sm:$0xf]  ;;  %v7701_v55 = vpop.f32.mrf.mxu1 }
 0x481   : > { %v8182_v45 = vld [vmem:[#allocation4 + $0x51] ss:$2 sm:$0xf]  ;;  %8078 = vst.msk [vmem:[#allocation4 + $0x60] sm:$0xff] %vm6592_vm6, %v8046_v59  ;;  %v8001_v52 = vmax.f32 %v7937_v62, 0.0  ;;  %v7935_v29 = vadd.f32 %v16646_v32, %v7864_v24  ;;  %v7702_v41 = vadd.f32 %v7701_v55, %v16278_v40  ;;  %v7869_v12 = vmul.f32 %v16638_v56, %v7710_v4  ;;  %v8433_v4 = vld [vmem:[#allocation5 + $0xe1] sm:$0xff] }
 0x482   : > { %v8495_v39 = vld [vmem:[#allocation5 + $0xd0] sm:$0xff]  ;;  %v11820_v53 = vpop.f32.mrf.mxu1  ;;  %v8235_v17 = vmax.f32 %v8118_v54, %v8182_v45 }
 0x483   : > { %v8432_v6 = vld [vmem:[#allocation5 + $0xd1] sm:$0xff]  ;;  %v12936_v57 = vpack.i.bf16 %v8496_v9, %v8495_v39  ;;  %v8049_v21 = vmax.f32 %v8000_v16, %v8001_v52  ;;  %v7999_v34 = vmax.f32 %v7935_v29, 0.0  ;;  %v7867_v11 = vmul.f32 %v16638_v56, %v7702_v41 }
 0x484   : > { %v12941_v35 = vpack.i.bf16 %v8432_v6, %v8431_v14  ;;  %v7713_v38 = vadd.f32 %v11820_v53, %v16309_v50  ;;  %v7704_v40 = vpop.f32.mrf.mxu1  ;;  %8369 = vst.msk [vmem:[#allocation5 + $0xf1] sm:$0xf] %vm8358_vm11, %v8235_v17  ;;  %v8124_v61 = vld [vmem:[#allocation4 + $0x68] ss:$2 sm:$0xf]  ;;  %v7940_v33 = vadd.f32 %v16646_v32, %v7869_v12 }
 0x485   : > { %12937 = vrot.lane.b32.xlu0 %v12936_v57, %s13439_s16  ;;  %v8188_v3 = vld [vmem:[#allocation4 + $0x69] ss:$2 sm:$0xf]  ;;  %8081 = vst.msk [vmem:[#allocation4 + $0x78] sm:$0xff] %vm6592_vm6, %v8049_v21  ;;  %v8048_v47 = vmax.f32 %v7998_v15, %v7999_v34  ;;  %v7705_v0 = vadd.f32 %v7704_v40, %v16283_v28  ;;  %v7938_v22 = vadd.f32 %v16646_v32, %v7867_v11  ;;  %v8435_v11 = vld [vmem:[#allocation5 + $0x121] sm:$0xff] }
 0x486   : > { %12942 = vrot.lane.b32.xlu1 %v12941_v35, %s13439_s16  ;;  %v8238_v18 = vmax.f32 %v8124_v61, %v8188_v3  ;;  %v7870_v26 = vmul.f32 %v16638_v56, %v7713_v38  ;;  %v11823_v50 = vpop.f32.mrf.mxu1  ;;  %v8004_v30 = vmax.f32 %v7940_v33, 0.0 }
 0x487   : > { %8080 = vst.msk [vmem:[#allocation4 + $0x70] sm:$0xff] %vm6592_vm6, %v8048_v47  ;;  %v7868_v60 = vmul.f32 %v16638_v56, %v7705_v0  ;;  %v7726_v63 = vadd.f32 %v11823_v50, %v16343_v8  ;;  %v8002_v14 = vmax.f32 %v7938_v22, 0.0  ;;  %v8498_v55 = vld [vmem:[#allocation5 + $0x100] sm:$0xff] }
 0x488   : > { %v8122_v13 = vld [vmem:[#allocation4 + $0x60] ss:$2 sm:$0xf]  ;;  %v8186_v5 = vld [vmem:[#allocation4 + $0x61] ss:$2 sm:$0xf]  ;;  %v7941_v28 = vadd.f32 %v16646_v32, %v7870_v26  ;;  %v7717_v51 = vpop.f32.mrf.mxu1 }
 0x489   : > { %8372 = vst.msk [vmem:[#allocation5 + $0x141] sm:$0xf] %vm8358_vm11, %v8238_v18  ;;  %v8237_v49 = vmax.f32 %v8122_v13, %v8186_v5  ;;  %v7939_v7 = vadd.f32 %v16646_v32, %v7868_v60  ;;  %v7873_v59 = vmul.f32 %v16638_v56, %v7726_v63  ;;  %v7718_v25 = vadd.f32 %v7717_v51, %v16323_v37 }
 0x48a   : > { %v8005_v62 = vmax.f32 %v7941_v28, 0.0  ;;  %v11824_v24 = vpop.f32.mrf.mxu1 }
 0x48b   : > { %8371 = vst.msk [vmem:[#allocation5 + $0x131] sm:$0xf] %vm8358_vm11, %v8237_v49  ;;  %v8003_v8 = vmax.f32 %v7939_v7, 0.0  ;;  %v7729_v54 = vadd.f32 %v11824_v24, %v16346_v48  ;;  %v8497_v45 = vld [vmem:[#allocation5 + $0xf0] sm:$0xff]  ;;  %v7871_v39 = vmul.f32 %v16638_v56, %v7718_v25  ;;  %v7944_v57 = vadd.f32 %v16646_v32, %v7873_v59 }
 0x48c   : > { %v8434_v16 = vld [vmem:[#allocation5 + $0xf1] sm:$0xff]  ;;  %v8192_v29 = vld [vmem:[#allocation4 + $0x79] ss:$2 sm:$0xf]  ;;  %v8051_v41 = vmax.f32 %v8004_v30, %v8005_v62  ;;  %v12946_v9 = vpack.i.bf16 %v8498_v55, %v8497_v45  ;;  %v7720_v6 = vpop.f32.mrf.mxu1 }
 0x48d   : > { %v8128_v52 = vld [vmem:[#allocation4 + $0x78] ss:$2 sm:$0xf]  ;;  %v16832_v37 = vpack.i.bf16 %v8434_v16, %v8433_v4  ;;  %v8050_v53 = vmax.f32 %v8002_v14, %v8003_v8  ;;  %v7874_v48 = vmul.f32 %v16638_v56, %v7729_v54  ;;  %v7721_v15 = vadd.f32 %v7720_v6, %v16331_v19 }
 0x48e   : > { %v8240_v12 = vmax.f32 %v8128_v52, %v8192_v29  ;;  %v8126_v35 = vld [vmem:[#allocation4 + $0x70] ss:$2 sm:$0xf]  ;;  %v8190_v17 = vld [vmem:[#allocation4 + $0x71] ss:$2 sm:$0xf]  ;;  %12947 = vrot.lane.b32.xlu0 %v12946_v9, %s13439_s16  ;;  %v11827_v21 = vpop.f32.mrf.mxu1  ;;  %v7942_v40 = vadd.f32 %v16646_v32, %v7871_v39 }
 0x48f   : > { %8083 = vst.msk [vmem:[#allocation4 + $0x88] sm:$0xff] %vm6592_vm6, %v8051_v41  ;;  %12952 = vrot.lane.b32.xlu1 %v16832_v37, %s13439_s16  ;;  %8082 = vst.msk [vmem:[#allocation4 + $0x80] sm:$0xff] %vm6592_vm6, %v8050_v53  ;;  %v7742_v34 = vadd.f32 %v11827_v21, %v16360_v46  ;;  %v8239_v38 = vmax.f32 %v8126_v35, %v8190_v17  ;;  %v7945_v61 = vadd.f32 %v16646_v32, %v7874_v48 }
 0x490   : > { %8374 = vst.msk [vmem:[#allocation5 + $0x161] sm:$0xf] %vm8358_vm11, %v8240_v12  ;;  %v7872_v3 = vmul.f32 %v16638_v56, %v7721_v15  ;;  %v7733_v47 = vpop.f32.mrf.mxu1  ;;  %v8008_v0 = vmax.f32 %v7944_v57, 0.0  ;;  %v8500_v26 = vld [vmem:[#allocation5 + $0x140] sm:$0xff]  ;;  %v8006_v51 = vmax.f32 %v7942_v40, 0.0 }
 0x491   : > { %v7877_v18 = vmul.f32 %v16638_v56, %v7742_v34  ;;  %v7734_v19 = vadd.f32 %v7733_v47, %v16352_v2  ;;  %8373 = vst.msk [vmem:[#allocation5 + $0x151] sm:$0xf] %vm8358_vm11, %v8239_v38  ;;  %v8009_v46 = vmax.f32 %v7945_v61, 0.0  ;;  %v8437_v17 = vld [vmem:[#allocation5 + $0x141] sm:$0xff] }
 0x492   : > { %v8499_v33 = vld [vmem:[#allocation5 + $0x130] sm:$0xff]  ;;  %v7943_v13 = vadd.f32 %v16646_v32, %v7872_v3  ;;  %v11828_v5 = vpop.f32.mrf.mxu1 }
 0x493   : > { %v8436_v50 = vld [vmem:[#allocation5 + $0x131] sm:$0xff]  ;;  %v12956_v22 = vpack.i.bf16 %v8500_v26, %v8499_v33  ;;  %v7875_v63 = vmul.f32 %v16638_v56, %v7734_v19  ;;  %v7745_v28 = vadd.f32 %v11828_v5, %v16370_v1  ;;  %v8053_v49 = vmax.f32 %v8008_v0, %v8009_v46 }
 0x494   : > { %v12961_v60 = vpack.i.bf16 %v8436_v50, %v8435_v11  ;;  %v8007_v7 = vmax.f32 %v7943_v13, 0.0  ;;  %v7948_v2 = vadd.f32 %v16646_v32, %v7877_v18  ;;  %v7736_v59 = vpop.f32.mrf.mxu1 }
 0x495   : > { %12957 = vrot.lane.b32.xlu0 %v12956_v22, %s13439_s16  ;;  %v7878_v62 = vmul.f32 %v16638_v56, %v7745_v28  ;;  %v7737_v24 = vadd.f32 %v7736_v59, %v16355_v10  ;;  %8085 = vst.msk [vmem:[#allocation4 + $0x98] sm:$0xff] %vm6592_vm6, %v8053_v49  ;;  %v7946_v54 = vadd.f32 %v16646_v32, %v7875_v63 }
 0x496   : > { %12962 = vrot.lane.b32.xlu1 %v12961_v60, %s13439_s16  ;;  %v8132_v25 = vld [vmem:[#allocation4 + $0x88] ss:$2 sm:$0xf]  ;;  %v8196_v30 = vld [vmem:[#allocation4 + $0x89] ss:$2 sm:$0xf]  ;;  %v8052_v1 = vmax.f32 %v8006_v51, %v8007_v7  ;;  %v11831_v45 = vpop.f32.mrf.mxu1 }
 0x497   : > { %v8242_v4 = vmax.f32 %v8132_v25, %v8196_v30  ;;  %v8130_v14 = vld [vmem:[#allocation4 + $0x80] ss:$2 sm:$0xf]  ;;  %v8194_v8 = vld [vmem:[#allocation4 + $0x81] ss:$2 sm:$0xf]  ;;  %v7949_v55 = vadd.f32 %v16646_v32, %v7878_v62  ;;  %v7876_v16 = vmul.f32 %v16638_v56, %v7737_v24  ;;  %v7758_v10 = vadd.f32 %v11831_v45, %v16382_v31 }
 0x498   : > { %8084 = vst.msk [vmem:[#allocation4 + $0x90] sm:$0xff] %vm6592_vm6, %v8052_v1  ;;  %v8012_v52 = vmax.f32 %v7948_v2, 0.0  ;;  %v7749_v29 = vpop.f32.mrf.mxu1  ;;  %v8501_v41 = vld [vmem:[#allocation5 + $0x150] sm:$0xff]  ;;  %v8502_v39 = vld [vmem:[#allocation5 + $0x160] sm:$0xff]  ;;  %v8241_v6 = vmax.f32 %v8130_v14, %v8194_v8  ;;  %v8010_v48 = vmax.f32 %v7946_v54, 0.0 }
 0x499   : > { %8376 = vst.msk [vmem:[#allocation5 + $0x1a1] sm:$0xf] %vm8358_vm11, %v8242_v4  ;;  %v8438_v9 = vld [vmem:[#allocation5 + $0x151] sm:$0xff]  ;;  %v8013_v12 = vmax.f32 %v7949_v55, 0.0  ;;  %v7947_v53 = vadd.f32 %v16646_v32, %v7876_v16  ;;  %v7750_v57 = vadd.f32 %v7749_v29, %v16374_v58  ;;  %v12966_v35 = vpack.i.bf16 %v8502_v39, %v8501_v41  ;;  %v16895_v30 = vld [vmem:[#allocation5 + $0x22] sm:$0xff] }
 0x49a   : > { %v7881_v15 = vmul.f32 %v16638_v56, %v7758_v10  ;;  %v11832_v21 = vpop.f32.mrf.mxu1  ;;  %v16868_v34 = vpack.i.bf16 %v8438_v9, %v8437_v17  ;;  %8375 = vst.msk [vmem:[#allocation5 + $0x191] sm:$0xf] %vm8358_vm11, %v8241_v6  ;;  %v8439_v24 = vld [vmem:[#allocation5 + $0x181] sm:$0xff]  ;;  %v16909_v6 = vld [vmem:[#allocation5 + $0x32] sm:$0xff] }
 0x49b   : > { %v8055_v31 = vmax.f32 %v8012_v52, %v8013_v12  ;;  %v8011_v11 = vmax.f32 %v7947_v53, 0.0  ;;  %v7879_v38 = vmul.f32 %v16638_v56, %v7750_v57  ;;  %v7761_v40 = vadd.f32 %v11832_v21, %v16384_v27  ;;  %12967 = vrot.lane.b32.xlu0 %v12966_v35, %s13439_s16  ;;  %v16880_v27 = vld [vmem:[#allocation5 + $0x12] sm:$0xff]  ;;  %v16901_v54 = vld [vmem:[#allocation5 + $0x41] sm:$0xff] }
 0x49c   : > { %v7952_v58 = vadd.f32 %v16646_v32, %v7881_v15  ;;  %12972 = vrot.lane.b32.xlu1 %v16868_v34, %s13439_s16  ;;  %v7752_v61 = vpop.f32.mrf.mxu1  ;;  %v8136_v3 = vld [vmem:[#allocation4 + $0x98] ss:$2 sm:$0xf]  ;;  %v8200_v47 = vld [vmem:[#allocation4 + $0x99] ss:$2 sm:$0xf] }
 0x49d   : > { %8087 = vst.msk [vmem:[#allocation4 + $0xa8] sm:$0xff] %vm6592_vm6, %v8055_v31  ;;  %v8054_v0 = vmax.f32 %v8010_v48, %v8011_v11  ;;  %v7882_v18 = vmul.f32 %v16638_v56, %v7761_v40  ;;  %v7753_v19 = vadd.f32 %v7752_v61, %v16378_v43  ;;  %v8244_v33 = vmax.f32 %v8136_v3, %v8200_v47  ;;  %v17744_v16 = vld [vmem:[#allocation11_spill] sm:$0xff]  ;;  %v17745_v35 = vld [vmem:[#allocation10_spill] sm:$0xff] }
 0x49e   : > { %v11835_v26 = vpop.f32.mrf.mxu1  ;;  %v7950_v13 = vadd.f32 %v16646_v32, %v7879_v38  ;;  %v8016_v63 = vmax.f32 %v7952_v58, 0.0  ;;  %v17746_v31 = vld [vmem:[#allocation14_spill] sm:$0xff] }
 0x49f   : > { %v8134_v50 = vld [vmem:[#allocation4 + $0x90] ss:$2 sm:$0xf]  ;;  %v8198_v46 = vld [vmem:[#allocation4 + $0x91] ss:$2 sm:$0xf]  ;;  %v7953_v5 = vadd.f32 %v16646_v32, %v7882_v18  ;;  %v7880_v22 = vmul.f32 %v16638_v56, %v7753_v19  ;;  %v7774_v60 = vadd.f32 %v11835_v26, %v16398_v44 }
 0x4a0   : > { %8086 = vst.msk [vmem:[#allocation4 + $0xa0] sm:$0xff] %vm6592_vm6, %v8054_v0  ;;  %12977 = vrot.lane.b32.xlu1 %v16751_v20, %s13439_s16  ;;  %v7765_v43 = vpop.f32.mrf.mxu1  ;;  %v8243_v28 = vmax.f32 %v8134_v50, %v8198_v46  ;;  %v8504_v25 = vld [vmem:[#allocation5 + $0x1a0] sm:$0xff]  ;;  %v12981_v20 = vpack.i.bf16 %v16895_v30, %v16880_v27  ;;  %v8014_v4 = vmax.f32 %v7950_v13, 0.0  ;;  %v17747_v18 = vld [vmem:[#allocation12_spill] sm:$0xff] }
 0x4a1   : > { %8378 = vst.msk [vmem:[#allocation5 + $0x1c1] sm:$0xf] %vm8358_vm11, %v8244_v33  ;;  %v8017_v51 = vmax.f32 %v7953_v5, 0.0  ;;  %v7951_v49 = vadd.f32 %v16646_v32, %v7880_v22  ;;  %v7885_v7 = vmul.f32 %v16638_v56, %v7774_v60  ;;  %v7766_v2 = vadd.f32 %v7765_v43, %v16390_v36  ;;  %v16893_v59 = vld [vmem:[#allocation5 + $0x190] sm:$0xff]  ;;  %v8554_v3 = vld [vmem:[#allocation5 + $0x42] sm:$0xff] }
 0x4a2   : > { %v11836_v44 = vpop.f32.mrf.mxu1  ;;  %v13051_v62 = vpack.i.bf16 %v8504_v25, %v16893_v59  ;;  %8377 = vst.msk [vmem:[#allocation5 + $0x1b1] sm:$0xf] %vm8358_vm11, %v8243_v28  ;;  %v8440_v1 = vld [vmem:[#allocation5 + $0x191] sm:$0xff]  ;;  %v12991_v50 = vpack.i.bf16 %v8554_v3, %v16909_v6  ;;  %v8443_v3 = vld [vmem:[#allocation5 + $0x1e1] sm:$0xff] }
 0x4a3   : > { %v8057_v14 = vmax.f32 %v8016_v63, %v8017_v51  ;;  %v8015_v8 = vmax.f32 %v7951_v49, 0.0  ;;  %v8619_v36 = vld [vmem:[#allocation5 + $0x51] sm:$0xff]  ;;  %v7777_v52 = vadd.f32 %v11836_v44, %v17744_v16  ;;  %v7956_v39 = vadd.f32 %v16646_v32, %v7885_v7  ;;  %v17748_v63 = vld [vmem:[#allocation15_spill] sm:$0xff] }
 0x4a4   : > { %v8140_v45 = vld [vmem:[#allocation4 + $0xa8] ss:$2 sm:$0xf]  ;;  %v8204_v55 = vld [vmem:[#allocation4 + $0xa9] ss:$2 sm:$0xf]  ;;  %13052 = vrot.lane.b32.xlu0 %v13051_v62, %s13439_s16  ;;  %12982 = vrot.lane.b32.xlu1 %v12981_v20, %s13439_s16  ;;  %v7768_v10 = vpop.f32.mrf.mxu1  ;;  %v7883_v9 = vmul.f32 %v16638_v56, %v7766_v2  ;;  %v13056_v15 = vpack.i.bf16 %v8440_v1, %v8439_v24  ;;  %v12986_v21 = vpack.i.bf16 %v8619_v36, %v16901_v54 }
 0x4a5   : > { %v8246_v29 = vmax.f32 %v8140_v45, %v8204_v55  ;;  %8089 = vst.msk [vmem:[#allocation4 + $0xb8] sm:$0xff] %vm6592_vm6, %v8057_v14  ;;  %v8056_v41 = vmax.f32 %v8014_v4, %v8015_v8  ;;  %v7886_v57 = vmul.f32 %v16638_v56, %v7777_v52  ;;  %v7769_v17 = vadd.f32 %v7768_v10, %v17745_v35  ;;  %v16934_v2 = vld [vmem:[%s17709_s5] ss:$0 sm:$0xff]  ;;  %v8441_v20 = vld [vmem:[#allocation5 + $0x1a1] sm:$0xff]  ;;  %v17749_v36 = vld [vmem:[#allocation13_spill] sm:$0xff] }
 0x4a6   : > { %v11839_v48 = vpop.f32.mrf.mxu1  ;;  %v8020_v47 = vmax.f32 %v7956_v39, 0.0  ;;  %v7954_v0 = vadd.f32 %v16646_v32, %v7883_v9  ;;  %v16943_v14 = vld [vmem:[%s17710_s6] ss:$0 sm:$0xff] }
 0x4a7   : > { %v8138_v12 = vld [vmem:[#allocation4 + $0xa0] ss:$2 sm:$0xf]  ;;  %v8202_v53 = vld [vmem:[#allocation4 + $0xa1] ss:$2 sm:$0xf]  ;;  %v7790_v11 = vadd.f32 %v11839_v48, %v17746_v31  ;;  %v7957_v40 = vadd.f32 %v16646_v32, %v7886_v57  ;;  %v7884_v58 = vmul.f32 %v16638_v56, %v7769_v17 }
 0x4a8   : > { %8380 = vst.msk [vmem:[#allocation5 + $0x201] sm:$0xf] %vm8358_vm11, %v8246_v29  ;;  %v8245_v38 = vmax.f32 %v8138_v12, %v8202_v53  ;;  %13057 = vrot.lane.b32.xlu0 %v13056_v15, %s13439_s16  ;;  %12987 = vrot.lane.b32.xlu1 %v12986_v21, %s13439_s16  ;;  %v7781_v61 = vpop.f32.mrf.mxu1  ;;  %v8506_v26 = vld [vmem:[#allocation5 + $0x1c0] sm:$0xff]  ;;  %v8018_v44 = vmax.f32 %v7954_v0, 0.0  ;;  %v17751_v15 = vld [vmem:[#allocation16_spill] sm:$0xff]  ;;  %v17752_v0 = vld [vmem:[#allocation19_spill] sm:$0xff] }
 0x4a9   : > { %8088 = vst.msk [vmem:[#allocation4 + $0xb0] sm:$0xff] %vm6592_vm6, %v8056_v41  ;;  %v7782_v19 = vadd.f32 %v7781_v61, %v17747_v18  ;;  %v16923_v33 = vld [vmem:[#allocation5 + $0x1b0] sm:$0xff]  ;;  %v8021_v46 = vmax.f32 %v7957_v40, 0.0  ;;  %v7955_v13 = vadd.f32 %v16646_v32, %v7884_v58  ;;  %v7889_v5 = vmul.f32 %v16638_v56, %v7790_v11  ;;  %v17750_v10 = vld [vmem:[#allocation18_spill] sm:$0xff] }
 0x4aa   : > { %8379 = vst.msk [vmem:[#allocation5 + $0x1f1] sm:$0xf] %vm8358_vm11, %v8245_v38  ;;  %v11840_v22 = vpop.f32.mrf.mxu1  ;;  %v13061_v60 = vpack.i.bf16 %v8506_v26, %v16923_v33  ;;  %v8442_v28 = vld [vmem:[#allocation5 + $0x1b1] sm:$0xff]  ;;  %v16967_v11 = vld [vmem:[#allocation5 + $0x82] sm:$0xff] }
 0x4ab   : > { %v7793_v43 = vadd.f32 %v11840_v22, %v17748_v63  ;;  %v8059_v7 = vmax.f32 %v8020_v47, %v8021_v46  ;;  %v7887_v25 = vmul.f32 %v16934_v2, %v7782_v19  ;;  %v8019_v62 = vmax.f32 %v7955_v13, 0.0  ;;  %v16952_v41 = vld [vmem:[#allocation5 + $0x72] sm:$0xff]  ;;  %v16975_v26 = vld [vmem:[#allocation5 + $0xa1] sm:$0xff] }
 0x4ac   : > { %v8144_v51 = vld [vmem:[#allocation4 + $0xb8] ss:$2 sm:$0xf]  ;;  %v8208_v49 = vld [vmem:[#allocation4 + $0xb9] ss:$2 sm:$0xf]  ;;  %13062 = vrot.lane.b32.xlu0 %v13061_v60, %s13439_s16  ;;  %12992 = vrot.lane.b32.xlu1 %v12991_v50, %s13439_s16  ;;  %v7784_v56 = vpop.f32.mrf.mxu1  ;;  %v7960_v8 = vadd.f32 %v16943_v14, %v7889_v5  ;;  %v16948_v16 = vpack.i.bf16 %v8442_v28, %v8441_v20  ;;  %v13001_v61 = vpack.i.bf16 %v16967_v11, %v16952_v41 }
 0x4ad   : > { %v8248_v32 = vmax.f32 %v8144_v51, %v8208_v49  ;;  %8091 = vst.msk [vmem:[#allocation4 + $0xc8] sm:$0xff] %vm6592_vm6, %v8059_v7  ;;  %v7890_v1 = vmul.f32 %v16934_v2, %v7793_v43  ;;  %v7785_v45 = vadd.f32 %v7784_v56, %v17749_v36  ;;  %v8058_v52 = vmax.f32 %v8018_v44, %v8019_v62  ;;  %v8623_v50 = vld [vmem:[#allocation5 + $0xb1] sm:$0xff] }
 0x4ae   : > { %v11843_v55 = vpop.f32.mrf.mxu1  ;;  %v7958_v9 = vadd.f32 %v16943_v14, %v7887_v25  ;;  %v8024_v38 = vmax.f32 %v7960_v8, 0.0  ;;  %v17753_v51 = vld [vmem:[#allocation17_spill] sm:$0xff]  ;;  %v13006_v44 = vpack.i.bf16 %v8623_v50, %v16975_v26 }
 0x4af   : > { %8382 = vst.msk [vmem:[#allocation5 + $0x221] sm:$0xf] %vm8358_vm11, %v8248_v32  ;;  %v7806_v29 = vadd.f32 %v11843_v55, %v17750_v10  ;;  %v7961_v12 = vadd.f32 %v16943_v14, %v7890_v1  ;;  %v7888_v53 = vmul.f32 %v16934_v2, %v7785_v45  ;;  %v8508_v17 = vld [vmem:[#allocation5 + $0x200] sm:$0xff]  ;;  %v16988_v1 = vld [vmem:[#allocation5 + $0x92] sm:$0xff] }
 0x4b0   : > { %v8142_v24 = vld [vmem:[#allocation4 + $0xb0] ss:$2 sm:$0xf]  ;;  %v8206_v4 = vld [vmem:[#allocation4 + $0xb1] ss:$2 sm:$0xf]  ;;  %13067 = vrot.lane.b32.xlu0 %v16948_v16, %s13439_s16  ;;  %12997 = vrot.lane.b32.xlu1 %v16789_v42, %s13439_s16  ;;  %v7797_v57 = vpop.f32.mrf.mxu1 }
 0x4b1   : > { %v8247_v39 = vmax.f32 %v8142_v24, %v8206_v4  ;;  %v16961_v35 = vld [vmem:[#allocation5 + $0x1f0] sm:$0xff]  ;;  %8090 = vst.msk [vmem:[#allocation4 + $0xc0] sm:$0xff] %vm6592_vm6, %v8058_v52  ;;  %v7893_v48 = vmul.f32 %v16934_v2, %v7806_v29  ;;  %v7798_v21 = vadd.f32 %v7797_v57, %v17751_v15  ;;  %v8025_v40 = vmax.f32 %v7961_v12, 0.0  ;;  %v17754_v4 = vld [vmem:[#allocation22_spill] sm:$0xff] }
 0x4b2   : > { %v13071_v31 = vpack.i.bf16 %v8508_v17, %v16961_v35  ;;  %v7959_v42 = vadd.f32 %v16943_v14, %v7888_v53  ;;  %v11844_v58 = vpop.f32.mrf.mxu1  ;;  %v8444_v19 = vld [vmem:[#allocation5 + $0x1f1] sm:$0xff]  ;;  %v8022_v46 = vmax.f32 %v7958_v9, 0.0  ;;  %v8558_v57 = vld [vmem:[#allocation5 + $0xa2] sm:$0xff] }
 0x4b3   : > { %8381 = vst.msk [vmem:[#allocation5 + $0x211] sm:$0xf] %vm8358_vm11, %v8247_v39  ;;  %v7891_v47 = vmul.f32 %v16934_v2, %v7798_v21  ;;  %v7809_v18 = vadd.f32 %v11844_v58, %v17752_v0  ;;  %v8061_v13 = vmax.f32 %v8024_v38, %v8025_v40  ;;  %v7964_v43 = vadd.f32 %v16943_v14, %v7893_v48  ;;  %v17755_v39 = vld [vmem:[#allocation20_spill] sm:$0xff] }
 0x4b4   : > { %v8023_v5 = vmax.f32 %v7959_v42, 0.0  ;;  %13072 = vrot.lane.b32.xlu0 %v13071_v31, %s13439_s16  ;;  %13002 = vrot.lane.b32.xlu1 %v13001_v61, %s13439_s16  ;;  %v7800_v22 = vpop.f32.mrf.mxu1  ;;  %v8148_v60 = vld [vmem:[#allocation4 + $0xc8] ss:$2 sm:$0xf]  ;;  %v13076_v32 = vpack.i.bf16 %v8444_v19, %v8443_v3  ;;  %v13011_v21 = vpack.i.bf16 %v8558_v57, %v16988_v1 }
 0x4b5   : > { %v8212_v63 = vld [vmem:[#allocation4 + $0xc9] ss:$2 sm:$0xf]  ;;  %v7894_v28 = vmul.f32 %v16934_v2, %v7809_v18  ;;  %v7801_v49 = vadd.f32 %v7800_v22, %v17753_v51  ;;  %8093 = vst.msk [vmem:[#allocation4 + $0xd8] sm:$0xff] %vm6592_vm6, %v8061_v13  ;;  %v7962_v62 = vadd.f32 %v16943_v14, %v7891_v47  ;;  %v8028_v52 = vmax.f32 %v7964_v43, 0.0  ;;  %v8445_v18 = vld [vmem:[#allocation5 + $0x201] sm:$0xff] }
 0x4b6   : > { %v8250_v7 = vmax.f32 %v8148_v60, %v8212_v63  ;;  %v8060_v25 = vmax.f32 %v8022_v46, %v8023_v5  ;;  %v11847_v56 = vpop.f32.mrf.mxu1  ;;  %v8510_v53 = vld [vmem:[#allocation5 + $0x220] sm:$0xff]  ;;  %v17756_v3 = vld [vmem:[#allocation23_spill] sm:$0xff]  ;;  %v17757_v13 = vld [vmem:[#allocation21_spill] sm:$0xff] }
 0x4b7   : > { %v7965_v20 = vadd.f32 %v16943_v14, %v7894_v28  ;;  %v7892_v24 = vmul.f32 %v16934_v2, %v7801_v49  ;;  %v7822_v8 = vadd.f32 %v11847_v56, %v17754_v4  ;;  %v8026_v38 = vmax.f32 %v7962_v62, 0.0  ;;  %v17012_v28 = vld [vmem:[#allocation5 + $0xd2] sm:$0xff]  ;;  %v17024_v62 = vld [vmem:[#allocation5 + $0xe2] sm:$0xff] }
 0x4b8   : > { %8384 = vst.msk [vmem:[#allocation5 + $0x261] sm:$0xf] %vm8358_vm11, %v8250_v7  ;;  %v8146_v36 = vld [vmem:[#allocation4 + $0xc0] ss:$2 sm:$0xf]  ;;  %13077 = vrot.lane.b32.xlu0 %v13076_v32, %s13439_s16  ;;  %13007 = vrot.lane.b32.xlu1 %v13006_v44, %s13439_s16  ;;  %v7813_v55 = vpop.f32.mrf.mxu1  ;;  %v8627_v4 = vld [vmem:[#allocation5 + $0x111] sm:$0xff] }
 0x4b9   : > { %v8210_v45 = vld [vmem:[#allocation4 + $0xc1] ss:$2 sm:$0xf]  ;;  %8092 = vst.msk [vmem:[#allocation4 + $0xd0] sm:$0xff] %vm6592_vm6, %v8060_v25  ;;  %v8029_v10 = vmax.f32 %v7965_v20, 0.0  ;;  %v7963_v29 = vadd.f32 %v16943_v14, %v7892_v24  ;;  %v7814_v9 = vadd.f32 %v7813_v55, %v17755_v39  ;;  %v7897_v17 = vmul.f32 %v16934_v2, %v7822_v8 }
 0x4ba   : > { %v16996_v12 = vld [vmem:[#allocation5 + $0x210] sm:$0xff]  ;;  %v11848_v48 = vpop.f32.mrf.mxu1  ;;  %v8249_v31 = vmax.f32 %v8146_v36, %v8210_v45 }
 0x4bb   : > { %v13081_v15 = vpack.i.bf16 %v8510_v53, %v16996_v12  ;;  %v8063_v40 = vmax.f32 %v8028_v52, %v8029_v10  ;;  %v8027_v42 = vmax.f32 %v7963_v29, 0.0  ;;  %v7895_v58 = vmul.f32 %v16934_v2, %v7814_v9  ;;  %v8446_v61 = vld [vmem:[#allocation5 + $0x211] sm:$0xff]  ;;  %v17033_v52 = vld [vmem:[#allocation5 + $0x101] sm:$0xff] }
 0x4bc   : > { %v7825_v47 = vadd.f32 %v11848_v48, %v17756_v3  ;;  %13012 = vrot.lane.b32.xlu1 %v13011_v21, %s13439_s16  ;;  %v7816_v0 = vpop.f32.mrf.mxu1  ;;  %8383 = vst.msk [vmem:[#allocation5 + $0x251] sm:$0xf] %vm8358_vm11, %v8249_v31  ;;  %v8152_v19 = vld [vmem:[#allocation4 + $0xd8] ss:$2 sm:$0xf]  ;;  %v7968_v60 = vadd.f32 %v16943_v14, %v7897_v17  ;;  %v17010_v43 = vpack.i.bf16 %v8446_v61, %v8445_v18  ;;  %v8447_v53 = vld [vmem:[#allocation5 + $0x241] sm:$0xff] }
 0x4bd   : > { %13082 = vrot.lane.b32.xlu0 %v13081_v15, %s13439_s16  ;;  %v8216_v50 = vld [vmem:[#allocation4 + $0xd9] ss:$2 sm:$0xf]  ;;  %8095 = vst.msk [vmem:[#allocation4 + $0xe8] sm:$0xff] %vm6592_vm6, %v8063_v40  ;;  %v8062_v46 = vmax.f32 %v8026_v38, %v8027_v42  ;;  %v7817_v5 = vadd.f32 %v7816_v0, %v17757_v13  ;;  %v7966_v7 = vadd.f32 %v16943_v14, %v7895_v58  ;;  %v8562_v58 = vld [vmem:[#allocation5 + $0x102] sm:$0xff] }
 0x4be   : > { %v8252_v22 = vmax.f32 %v8152_v19, %v8216_v50  ;;  %v7898_v63 = vmul.f32 %v16934_v2, %v7825_v47  ;;  %v8032_v20 = vmax.f32 %v7968_v60, 0.0  ;;  %v13026_v15 = vpack.i.bf16 %v8627_v4, %v17033_v52  ;;  %v17043_v31 = vld [vmem:[#allocation5 + $0xf2] sm:$0xff] }
 0x4bf   : > { %8094 = vst.msk [vmem:[#allocation4 + $0xe0] sm:$0xff] %vm6592_vm6, %v8062_v46  ;;  %v7896_v25 = vmul.f32 %v16934_v2, %v7817_v5  ;;  %v13021_v2 = vpack.i.bf16 %v17024_v62, %v17012_v28  ;;  %v8030_v8 = vmax.f32 %v7966_v7, 0.0  ;;  %v17031_v55 = vld [vmem:[#allocation5 + $0x260] sm:$0xff]  ;;  %v13031_v3 = vpack.i.bf16 %v8562_v58, %v17043_v31 }
 0x4c0   : > { %v8150_v51 = vld [vmem:[#allocation4 + $0xd0] ss:$2 sm:$0xf]  ;;  %v8214_v49 = vld [vmem:[#allocation4 + $0xd1] ss:$2 sm:$0xf]  ;;  %v7969_v32 = vadd.f32 %v16943_v14, %v7898_v63  ;;  %13017 = vrot.lane.b32.xlu1 %v16832_v37, %s13439_s16 }
 0x4c1   : > { %8386 = vst.msk [vmem:[#allocation5 + $0x281] sm:$0xf] %vm8358_vm11, %v8252_v22  ;;  %v8251_v56 = vmax.f32 %v8150_v51, %v8214_v49  ;;  %13087 = vrot.lane.b32.xlu0 %v17010_v43, %s13439_s16  ;;  %v7967_v44 = vadd.f32 %v16943_v14, %v7896_v25  ;;  %v8449_v5 = vld [vmem:[#allocation5 + $0x261] sm:$0xff]  ;;  %v17054_v22 = vld [vmem:[#allocation5 + $0x132] sm:$0xff] }
 0x4c2   : > { %v8033_v24 = vmax.f32 %v7969_v32, 0.0  ;;  %v17064_v49 = vld [vmem:[#allocation5 + $0x142] sm:$0xff]  ;;  %v8631_v32 = vld [vmem:[#allocation5 + $0x171] sm:$0xff] }
 0x4c3   : > { %8385 = vst.msk [vmem:[#allocation5 + $0x271] sm:$0xf] %vm8358_vm11, %v8251_v56  ;;  %v8031_v36 = vmax.f32 %v7967_v44, 0.0  ;;  %v17029_v45 = vld [vmem:[#allocation5 + $0x250] sm:$0xff]  ;;  %v13041_v25 = vpack.i.bf16 %v17064_v49, %v17054_v22  ;;  %v17071_v56 = vld [vmem:[#allocation5 + $0x161] sm:$0xff] }
 0x4c4   : > { %v8156_v37 = vld [vmem:[#allocation4 + $0xe8] ss:$2 sm:$0xf]  ;;  %v8220_v14 = vld [vmem:[#allocation4 + $0xe9] ss:$2 sm:$0xf]  ;;  %v8065_v10 = vmax.f32 %v8032_v20, %v8033_v24  ;;  %v13091_v29 = vpack.i.bf16 %v17031_v55, %v17029_v45  ;;  %13022 = vrot.lane.b32.xlu1 %v13021_v2, %s13439_s16 }
 0x4c5   : > { %v8254_v39 = vmax.f32 %v8156_v37, %v8220_v14  ;;  %v8064_v9 = vmax.f32 %v8030_v8, %v8031_v36  ;;  %v8448_v57 = vld [vmem:[#allocation5 + $0x251] sm:$0xff]  ;;  %v8451_v44 = vld [vmem:[#allocation5 + $0x2a1] sm:$0xff]  ;;  %v13046_v37 = vpack.i.bf16 %v8631_v32, %v17071_v56 }
 0x4c6   : > { %v8154_v17 = vld [vmem:[#allocation4 + $0xe0] ss:$2 sm:$0xf]  ;;  %v8218_v48 = vld [vmem:[#allocation4 + $0xe1] ss:$2 sm:$0xf]  ;;  %13092 = vrot.lane.b32.xlu0 %v13091_v29, %s13439_s16  ;;  %v13096_v38 = vpack.i.bf16 %v8448_v57, %v8447_v53 }
 0x4c7   : > { %8097 = vst.msk [vmem:[#allocation4 + $0xf8] sm:$0xff] %vm6592_vm6, %v8065_v10  ;;  %v8253_v21 = vmax.f32 %v8154_v17, %v8218_v48  ;;  %8096 = vst.msk [vmem:[#allocation4 + $0xf0] sm:$0xff] %vm6592_vm6, %v8064_v9  ;;  %v8455_v24 = vld [vmem:[#allocation5 + $0x2] sm:$0xff]  ;;  %v17076_v29 = vld [vmem:[#allocation5 + $0x152] sm:$0xff] }
 0x4c8   : > { %8388 = vst.msk [vmem:[#allocation5 + $0x2c1] sm:$0xf] %vm8358_vm11, %v8254_v39  ;;  %13027 = vrot.lane.b32.xlu1 %v13026_v15, %s13439_s16  ;;  %v8514_v42 = vld [vmem:[#allocation5 + $0x280] sm:$0xff]  ;;  %v8392_v39 = vld [vmem:[#allocation5 + $0x10] sm:$0xff] }
 0x4c9   : > { %8387 = vst.msk [vmem:[#allocation5 + $0x2b1] sm:$0xf] %vm8358_vm11, %v8253_v21  ;;  %v8391_v8 = vld [vmem:[#allocation5] sm:$0xff] }
 0x4ca   : > { %v17047_v40 = vld [vmem:[#allocation5 + $0x270] sm:$0xff]  ;;  %13097 = vrot.lane.b32.xlu0 %v13096_v38, %s13439_s16 }
 0x4cb   : > { %v13101_v61 = vpack.i.bf16 %v8514_v42, %v17047_v40  ;;  %v8450_v47 = vld [vmem:[#allocation5 + $0x271] sm:$0xff]  ;;  %v8566_v42 = vld [vmem:[#allocation5 + $0x162] sm:$0xff] }
 0x4cc   : > { %13032 = vrot.lane.b32.xlu1 %v13031_v3, %s13439_s16  ;;  %v17057_v60 = vpack.i.bf16 %v8450_v47, %v8449_v5  ;;  %v13131_v3 = vpack.i.bf16 %v8566_v42, %v17076_v29  ;;  %v13397_v47 = vld [vmem:[%s17711_s7 + $0x110] sm:$0xff]   ;;  %v13398_v5 = vld [vmem:[%s17711_s7 + $0x108] sm:$0xff]  }
 0x4ce   : > { %v8160_v0 = vld [vmem:[#allocation4 + $0xf8] ss:$2 sm:$0xf]  ;;  %v8224_v18 = vld [vmem:[#allocation4 + $0xf9] ss:$2 sm:$0xf]  ;;  %13102 = vrot.lane.b32.xlu0 %v13101_v61, %s13439_s16 }
 0x4cf   : > { %v8256_v19 = vmax.f32 %v8160_v0, %v8224_v18  ;;  %v8158_v50 = vld [vmem:[#allocation4 + $0xf0] ss:$2 sm:$0xf]  ;;  %v8222_v46 = vld [vmem:[#allocation4 + $0xf1] ss:$2 sm:$0xf] }
 0x4d0   : > { %v8255_v13 = vmax.f32 %v8158_v50, %v8222_v46  ;;  %13037 = vrot.lane.b32.xlu1 %v16868_v34, %s13439_s16  ;;  %v17061_v63 = vld [vmem:[#allocation5 + $0x2b0] sm:$0xff]  ;;  %v8516_v51 = vld [vmem:[#allocation5 + $0x2c0] sm:$0xff] }
 0x4d1   : > { %8390 = vst.msk [vmem:[#allocation5 + $0x2e1] sm:$0xf] %vm8358_vm11, %v8256_v19  ;;  %v13111_v7 = vpack.i.bf16 %v8516_v51, %v17061_v63  ;;  %v8452_v20 = vld [vmem:[#allocation5 + $0x2b1] sm:$0xff]  ;;  %v17095_v18 = vld [vmem:[#allocation5 + $0x1a2] sm:$0xff] }
 0x4d2   : > { %8389 = vst.msk [vmem:[#allocation5 + $0x2d1] sm:$0xf] %vm8358_vm11, %v8255_v13  ;;  %13107 = vrot.lane.b32.xlu0 %v17057_v60, %s13439_s16  ;;  %v13116_v9 = vpack.i.bf16 %v8452_v20, %v8451_v44  ;;  %v13427_v19 = vld [vmem:[%s17711_s7 + $0x118] sm:$0xff]   ;;  %v17108_v20 = vld [vmem:[#allocation5 + $0x20] sm:$0xff] }
 0x4d3   : > { %v17106_v44 = vld [vmem:[#allocation5 + $0x1b2] sm:$0xff] }
 0x4d4   : > { %13042 = vrot.lane.b32.xlu1 %v13041_v25, %s13439_s16 }
 0x4d5   : > { %v12898_v34 = vpop.permute.xlu0 %12897 }
 0x4d6   : > { %13112 = vrot.lane.b32.xlu0 %v13111_v7, %s13439_s16  ;;  %v12900_v2 = vunpack.i.h.bf16 %v12898_v34  ;;  %v12899_v4 = vunpack.i.l.bf16 %v12898_v34  ;;  %v12903_v36 = vpop.permute.xlu1 %12902  ;;  %v8453_v34 = vld [vmem:[#allocation5 + $0x2c1] sm:$0xff] }
 0x4d7   : > { %v12905_v14 = vunpack.i.h.bf16 %v12903_v36  ;;  %v12904_v10 = vunpack.i.l.bf16 %v12903_v36  ;;  %v8570_v36 = vld [vmem:[#allocation5 + $0x1c2] sm:$0xff] }
 0x4d8   : > { %13047 = vrot.lane.b32.xlu1 %v13046_v37, %s13439_s16  ;;  %v9224_v57 = vsel %vm6592_vm6, %v8455_v24, %v12899_v4  ;;  %v9225_v17 = vsel %vm6592_vm6, %v16880_v27, %v12900_v2  ;;  %v8518_v21 = vld [vmem:[#allocation5 + $0x2e0] sm:$0xff]  ;;  %v17092_v27 = vld [vmem:[#allocation5 + $0x192] sm:$0xff] }
 0x4d9   : > { %v17079_v53 = vld [vmem:[#allocation5 + $0x2d0] sm:$0xff]  ;;  %v9192_v48 = vsel %vm6592_vm6, %v8391_v8, %v12904_v10  ;;  %v9193_v15 = vsel %vm6592_vm6, %v8392_v39, %v12905_v14  ;;  %v9321_v38 = vpack.c.bf16 %v9225_v17, %v9224_v57  ;;  %v13141_v13 = vpack.i.bf16 %v17095_v18, %v17092_v27  ;;  %v13399_v17 = vld [vmem:[%s17711_s7 + $0x100] sm:$0xff]  }
 0x4da   : > { %v9320_v58 = vpack.c.bf16 %v9193_v15, %v9192_v48  ;;  %13117 = vrot.lane.b32.xlu0 %v13116_v9, %s13439_s16  ;;  %v13121_v61 = vpack.i.bf16 %v8518_v21, %v17079_v53  ;;  %v8454_v0 = vld [vmem:[#allocation5 + $0x2d1] sm:$0xff]  ;;  %v13151_v39 = vpack.i.bf16 %v8570_v36, %v17106_v44  ;;  %v17134_v48 = vld [vmem:[#allocation5 + $0x202] sm:$0xff] }
 0x4db   : > { %9768 = vmatprep.mubr.bf16.mxu1 %v9321_v38  ;;  %v17110_v24 = vld [vmem:[#allocation5 + $0x30] sm:$0xff]  ;;  %v17112_v2 = vpack.i.bf16 %v8454_v0, %v8453_v34  ;;  %v8395_v21 = vld [vmem:[#allocation5 + $0x60] sm:$0xff] }
 0x4dc   : > { %13132 = vrot.lane.b32.xlu1 %v13131_v3, %s13439_s16  ;;  %9769 = vmatmul.mubr.bf16.vlgmr.msra.gmra.mxu1 %v9320_v58  ;;  %v17126_v57 = vld [vmem:[#allocation5 + $0x1f2] sm:$0xff]  ;;  %v8459_v58 = vld [vmem:[#allocation5 + $0x62] sm:$0xff] }
 0x4dd   : > { %11850 = vmatpush3.bf16.msra.mxu1 %v13427_v19  ;;  %v13161_v42 = vpack.i.bf16 %v17134_v48, %v17126_v57  ;;  %v17140_v19 = vld [vmem:[#allocation5 + $0x212] sm:$0xff] }
 0x4de   : > { %13122 = vrot.lane.b32.xlu0 %v13121_v61, %s13439_s16  ;;  %v12908_v50 = vpop.permute.xlu0 %12907  ;;  %11851 = vmatprep.subr.bf16.mxu1 %v13397_v47  ;;  %v8639_v36 = vld [vmem:[#allocation5 + $0x231] sm:$0xff] }
 0x4df   : > { %v12913_v46 = vpop.permute.xlu1 %12912  ;;  %v12910_v51 = vunpack.i.h.bf16 %v12908_v50  ;;  %v12909_v7 = vunpack.i.l.bf16 %v12908_v50  ;;  %v8396_v50 = vld [vmem:[#allocation5 + $0x70] sm:$0xff] }
 0x4e0   : > { %v12915_v25 = vunpack.i.h.bf16 %v12913_v46  ;;  %v12914_v32 = vunpack.i.l.bf16 %v12913_v46  ;;  %13142 = vrot.lane.b32.xlu1 %v13141_v13, %s13439_s16 }
 0x4e1   : > { %v9226_v37 = vsel %vm6592_vm6, %v16895_v30, %v12909_v7  ;;  %v9227_v14 = vsel %vm6592_vm6, %v16909_v6, %v12910_v51  ;;  %11852 = vmatpush3.bf16.msra.mxu1 %v13397_v47  ;;  %v17132_v30 = vld [vmem:[#allocation5 + $0x1c1] sm:$0xff]  ;;  %v8635_v6 = vld [vmem:[#allocation5 + $0x1d1] sm:$0xff] }
 0x4e2   : > { %v9195_v4 = vsel %vm6592_vm6, %v17110_v24, %v12915_v25  ;;  %v9194_v8 = vsel %vm6592_vm6, %v17108_v20, %v12914_v32  ;;  %13127 = vrot.lane.b32.xlu0 %v17112_v2, %s13439_s16  ;;  %v9326_v9 = vpack.c.bf16 %v9227_v14, %v9226_v37  ;;  %11853 = vmatprep.subr.bf16.mxu1 %v13398_v5  ;;  %v8574_v51 = vld [vmem:[#allocation5 + $0x222] sm:$0xff] }
 0x4e3   : > { %v9325_v10 = vpack.c.bf16 %v9195_v4, %v9194_v8  ;;  %v13146_v46 = vpack.i.bf16 %v8635_v6, %v17132_v30  ;;  %v13171_v32 = vpack.i.bf16 %v8574_v51, %v17140_v19  ;;  %v17151_v4 = vld [vmem:[#allocation5 + $0x252] sm:$0xff]  ;;  %v17155_v8 = vld [vmem:[#allocation5 + $0x221] sm:$0xff] }
 0x4e4   : > { %13152 = vrot.lane.b32.xlu1 %v13151_v39, %s13439_s16  ;;  %9776 = vmatprep.mubr.bf16.mxu1 %v9326_v9  ;;  %v17157_v37 = vld [vmem:[#allocation5 + $0x262] sm:$0xff]  ;;  %v8643_v51 = vld [vmem:[#allocation5 + $0x291] sm:$0xff] }
 0x4e5   : > { %9777 = vmatmul.mubr.bf16.gmra.mxu1 %v9325_v10  ;;  %v13181_v10 = vpack.i.bf16 %v17157_v37, %v17151_v4 }
 0x4e6   : > { %13137 = vrot.lane.b32.xlu0 %v16948_v16, %s13439_s16  ;;  %v12918_v15 = vpop.permute.xlu0 %12917  ;;  %11854 = vmatpush3.bf16.msra.mxu1 %v13398_v5 }
 0x4e7   : > { %v12923_v38 = vpop.permute.xlu1 %12922  ;;  %v12920_v61 = vunpack.i.h.bf16 %v12918_v15  ;;  %v12919_v3 = vunpack.i.l.bf16 %v12918_v15  ;;  %11855 = vmatprep.subr.bf16.mxu1 %v13399_v17  ;;  %v17163_v15 = vld [vmem:[#allocation5 + $0x80] sm:$0xff] }
 0x4e8   : > { %v12925_v47 = vunpack.i.h.bf16 %v12923_v38  ;;  %v12924_v0 = vunpack.i.l.bf16 %v12923_v38  ;;  %13162 = vrot.lane.b32.xlu1 %v13161_v42, %s13439_s16  ;;  %v13166_v38 = vpack.i.bf16 %v8639_v36, %v17155_v8  ;;  %v17168_v42 = vld [vmem:[#allocation5 + $0x272] sm:$0xff] }
 0x4e9   : > { %v9228_v7 = vsel %vm6592_vm6, %v8459_v58, %v12919_v3  ;;  %v9229_v5 = vsel %vm6592_vm6, %v16952_v41, %v12920_v61 }
 0x4ea   : > { %v9197_v16 = vsel %vm6592_vm6, %v8396_v50, %v12925_v47  ;;  %v9196_v13 = vsel %vm6592_vm6, %v8395_v21, %v12924_v0  ;;  %13147 = vrot.lane.b32.xlu0 %v13146_v46, %s13439_s16  ;;  %v9331_v34 = vpack.c.bf16 %v9229_v5, %v9228_v7  ;;  %11856 = vmatpush3.bf16.msra.mxu1 %v13399_v17  ;;  %v17165_v21 = vld [vmem:[#allocation5 + $0x90] sm:$0xff]  ;;  %v8578_v0 = vld [vmem:[#allocation5 + $0x282] sm:$0xff] }
 0x4eb   : > { %v9330_v25 = vpack.c.bf16 %v9197_v16, %v9196_v13  ;;  %11889 = vmatprep.subr.bf16.mxu1 %v17729_v23  ;;  %v13191_v46 = vpack.i.bf16 %v8578_v0, %v17168_v42  ;;  %v17181_v16 = vld [vmem:[#allocation5 + $0x2b2] sm:$0xff]  ;;  %v17184_v13 = vld [vmem:[#allocation5 + $0x281] sm:$0xff] }
 0x4ec   : > { %13172 = vrot.lane.b32.xlu1 %v13171_v32, %s13439_s16  ;;  %9784 = vmatprep.mubr.bf16.mxu1 %v9331_v34  ;;  %v8399_v7 = vld [vmem:[#allocation5 + $0xc0] sm:$0xff]  ;;  %v8647_v0 = vld [vmem:[#allocation5 + $0x2f1] sm:$0xff] }
 0x4ed   : > { %9785 = vmatmul.mubr.bf16.gmra.mxu1 %v9330_v25  ;;  %v12928_v41 = vpop.permute.xlu0 %12927  ;;  %v8463_v32 = vld [vmem:[#allocation5 + $0xc2] sm:$0xff] }
 0x4ee   : > { %v12933_v14 = vpop.permute.xlu1 %12932  ;;  %13157 = vrot.lane.b32.xlu0 %v17010_v43, %s13439_s16  ;;  %v12930_v39 = vunpack.i.h.bf16 %v12928_v41  ;;  %v12929_v9 = vunpack.i.l.bf16 %v12928_v41 }
 0x4ef   : > { %v12935_v17 = vunpack.i.h.bf16 %v12933_v14  ;;  %v12934_v6 = vunpack.i.l.bf16 %v12933_v14 }
 0x4f0   : > { %13182 = vrot.lane.b32.xlu1 %v13181_v10, %s13439_s16  ;;  %v9230_v43 = vsel %vm6592_vm6, %v16967_v11, %v12929_v9  ;;  %v9231_v3 = vsel %vm6592_vm6, %v16988_v1, %v12930_v39  ;;  %v17186_v11 = vld [vmem:[#allocation5 + $0x2c2] sm:$0xff]  ;;  %v17192_v10 = vld [vmem:[#allocation5 + $0x2d2] sm:$0xff]  ;;  %v13186_v9 = vpack.i.bf16 %v8643_v51, %v17184_v13 }
 0x4f1   : > { %v9199_v58 = vsel %vm6592_vm6, %v17165_v21, %v12935_v17  ;;  %v9198_v61 = vsel %vm6592_vm6, %v17163_v15, %v12934_v6  ;;  %v9336_v50 = vpack.c.bf16 %v9231_v3, %v9230_v43  ;;  %v13201_v25 = vpack.i.bf16 %v17186_v11, %v17181_v16  ;;  %v8400_v39 = vld [vmem:[#allocation5 + $0xd0] sm:$0xff]  ;;  %v8582_v6 = vld [vmem:[#allocation5 + $0x2e2] sm:$0xff] }
 0x4f2   : > { %v9335_v47 = vpack.c.bf16 %v9199_v58, %v9198_v61  ;;  %13167 = vrot.lane.b32.xlu0 %v13166_v38, %s13439_s16  ;;  %v13211_v43 = vpack.i.bf16 %v8582_v6, %v17192_v10  ;;  %v8467_v6 = vld [vmem:[#allocation5 + $0x122] sm:$0xff] }
 0x4f3   : > { %9792 = vmatprep.mubr.bf16.mxu1 %v9336_v50 }
 0x4f4   : > { %13192 = vrot.lane.b32.xlu1 %v13191_v46, %s13439_s16 }
 0x4f5   : > { %9793 = vmatmul.mubr.bf16.gmra.mxu1 %v9335_v47  ;;  %v17204_v47 = vld [vmem:[#allocation5 + $0x2e1] sm:$0xff] }
 0x4f6   : > { %13177 = vrot.lane.b32.xlu0 %v17057_v60, %s13439_s16 }
 0x4f7   : > { %v12938_v1 = vpop.permute.xlu0 %12937 }
 0x4f8   : > { %v12943_v5 = vpop.permute.xlu1 %12942  ;;  %v12940_v34 = vunpack.i.h.bf16 %v12938_v1  ;;  %v12939_v36 = vunpack.i.l.bf16 %v12938_v1  ;;  %13202 = vrot.lane.b32.xlu1 %v13201_v25, %s13439_s16  ;;  %v17209_v25 = vld [vmem:[#allocation5 + $0xe0] sm:$0xff] }
 0x4f9   : > { %v12945_v41 = vunpack.i.h.bf16 %v12943_v5  ;;  %v12944_v14 = vunpack.i.l.bf16 %v12943_v5 }
 0x4fa   : > { %v9232_v38 = vsel %vm6592_vm6, %v8463_v32, %v12939_v36  ;;  %v9233_v58 = vsel %vm6592_vm6, %v17012_v28, %v12940_v34  ;;  %13187 = vrot.lane.b32.xlu0 %v13186_v9, %s13439_s16  ;;  %v13206_v28 = vpack.i.bf16 %v8647_v0, %v17204_v47  ;;  %v17211_v32 = vld [vmem:[#allocation5 + $0xf0] sm:$0xff] }
 0x4fb   : > { %v9201_v60 = vsel %vm6592_vm6, %v8400_v39, %v12945_v41  ;;  %v9200_v17 = vsel %vm6592_vm6, %v8399_v7, %v12944_v14  ;;  %v9341_v3 = vpack.c.bf16 %v9233_v58, %v9232_v38 }
 0x4fc   : > { %v9340_v61 = vpack.c.bf16 %v9201_v60, %v9200_v17  ;;  %13212 = vrot.lane.b32.xlu1 %v13211_v43, %s13439_s16  ;;  %v8403_v60 = vld [vmem:[#allocation5 + $0x120] sm:$0xff] }
 0x4fd   : > { %9800 = vmatprep.mubr.bf16.mxu1 %v9341_v3  ;;  %v8404_v3 = vld [vmem:[#allocation5 + $0x130] sm:$0xff] }
 0x4fe   : > { %9801 = vmatmul.mubr.bf16.gmra.mxu1 %v9340_v61  ;;  %13197 = vrot.lane.b32.xlu0 %v17112_v2, %s13439_s16 }
 0x500   : > { %v12948_v50 = vpop.permute.xlu0 %12947 }
 0x501   : > { %v12953_v46 = vpop.permute.xlu1 %12952  ;;  %v12950_v51 = vunpack.i.h.bf16 %v12948_v50  ;;  %v12949_v1 = vunpack.i.l.bf16 %v12948_v50 }
 0x502   : > { %v12955_v7 = vunpack.i.h.bf16 %v12953_v46  ;;  %v12954_v5 = vunpack.i.l.bf16 %v12953_v46  ;;  %13207 = vrot.lane.b32.xlu0 %v13206_v28, %s13439_s16 }
 0x503   : > { %v9234_v36 = vsel %vm6592_vm6, %v17024_v62, %v12949_v1  ;;  %v9235_v41 = vsel %vm6592_vm6, %v17043_v31, %v12950_v51 }
 0x504   : > { %v9203_v34 = vsel %vm6592_vm6, %v17211_v32, %v12955_v7  ;;  %v9202_v2 = vsel %vm6592_vm6, %v17209_v25, %v12954_v5  ;;  %v9346_v39 = vpack.c.bf16 %v9235_v41, %v9234_v36  ;;  %v17227_v36 = vld [vmem:[#allocation5 + $0x140] sm:$0xff]  ;;  %v17229_v41 = vld [vmem:[#allocation5 + $0x150] sm:$0xff] }
 0x505   : > { %v9345_v14 = vpack.c.bf16 %v9203_v34, %v9202_v2 }
 0x506   : > { %9808 = vmatprep.mubr.bf16.mxu1 %v9346_v39 }
 0x507   : > { %v12958_v9 = vpop.permute.xlu0 %12957  ;;  %9809 = vmatmul.mubr.bf16.gmra.mxu1 %v9345_v14 }
 0x508   : > { %v12963_v17 = vpop.permute.xlu1 %12962  ;;  %v12960_v38 = vunpack.i.h.bf16 %v12958_v9  ;;  %v12959_v58 = vunpack.i.l.bf16 %v12958_v9 }
 0x509   : > { %v12965_v61 = vunpack.i.h.bf16 %v12963_v17  ;;  %v12964_v43 = vunpack.i.l.bf16 %v12963_v17 }
 0x50a   : > { %v9236_v50 = vsel %vm6592_vm6, %v8467_v6, %v12959_v58  ;;  %v9237_v31 = vsel %vm6592_vm6, %v17054_v22, %v12960_v38 }
 0x50b   : > { %v9205_v0 = vsel %vm6592_vm6, %v8404_v3, %v12965_v61  ;;  %v9204_v62 = vsel %vm6592_vm6, %v8403_v60, %v12964_v43  ;;  %v9351_v46 = vpack.c.bf16 %v9237_v31, %v9236_v50 }
 0x50c   : > { %v9350_v28 = vpack.c.bf16 %v9205_v0, %v9204_v62  ;;  %v8471_v0 = vld [vmem:[#allocation5 + $0x182] sm:$0xff] }
 0x50d   : > { %9816 = vmatprep.mubr.bf16.mxu1 %v9351_v46  ;;  %v12968_v51 = vpop.permute.xlu0 %12967 }
 0x50e   : > { %v12970_v1 = vunpack.i.h.bf16 %v12968_v51  ;;  %v12969_v7 = vunpack.i.l.bf16 %v12968_v51  ;;  %v12973_v5 = vpop.permute.xlu1 %12972  ;;  %v8520_v51 = vld [vmem:[#allocation5 + $0x21] sm:$0xff] }
 0x50f   : > { %9817 = vmatmul.mubr.bf16.gmra.mxu1 %v9350_v28  ;;  %v12975_v34 = vunpack.i.h.bf16 %v12973_v5  ;;  %v12974_v2 = vunpack.i.l.bf16 %v12973_v5  ;;  %v8519_v28 = vld [vmem:[#allocation5 + $0x11] sm:$0xff] }
 0x510   : > { %v9238_v14 = vsel %vm6592_vm6, %v17064_v49, %v12969_v7  ;;  %v9239_v22 = vsel %vm6592_vm6, %v17076_v29, %v12970_v1 }
 0x511   : > { %v9207_v39 = vsel %vm6592_vm6, %v17229_v41, %v12975_v34  ;;  %v9206_v9 = vsel %vm6592_vm6, %v17227_v36, %v12974_v2  ;;  %v9356_v60 = vpack.c.bf16 %v9239_v22, %v9238_v14  ;;  %v8407_v34 = vld [vmem:[#allocation5 + $0x180] sm:$0xff] }
 0x512   : > { %v12978_v17 = vpop.permute.xlu1 %12977  ;;  %v9355_v6 = vpack.c.bf16 %v9207_v39, %v9206_v9  ;;  %v8587_v39 = vld [vmem:[#allocation5 + $0x50] sm:$0xff] }
 0x513   : > { %v12980_v38 = vunpack.i.h.bf16 %v12978_v17  ;;  %v12979_v58 = vunpack.i.l.bf16 %v12978_v17  ;;  %9824 = vmatprep.mubr.bf16.mxu1 %v9356_v60 }
 0x515   : > { %v9288_v61 = vsel %vm6592_vm6, %v17108_v20, %v12979_v58  ;;  %v9289_v49 = vsel %vm6592_vm6, %v17110_v24, %v12980_v38  ;;  %v8586_v38 = vld [vmem:[#allocation5 + $0x40] sm:$0xff] }
 0x516   : > { %v13053_v43 = vpop.permute.xlu0 %13052  ;;  %v12983_v29 = vpop.permute.xlu1 %12982  ;;  %v9323_v3 = vpack.c.bf16 %v9289_v49, %v9288_v61 }
 0x517   : > { %9825 = vmatmul.mubr.bf16.gmra.mxu1 %v9355_v6  ;;  %v13055_v62 = vunpack.i.h.bf16 %v13053_v43  ;;  %v13054_v50 = vunpack.i.l.bf16 %v13053_v43  ;;  %v12985_v31 = vunpack.i.h.bf16 %v12983_v29  ;;  %v12984_v46 = vunpack.i.l.bf16 %v12983_v29 }
 0x518   : > { %9929 = vmatprep.mubr.bf16.mxu0 %v9323_v3 }
 0x519   : > { %v9257_v1 = vsel %vm6592_vm6, %v8520_v51, %v12985_v31  ;;  %v9256_v7 = vsel %vm6592_vm6, %v8519_v28, %v12984_v46  ;;  %v9240_v20 = vsel %vm6592_vm6, %v8471_v0, %v13054_v50  ;;  %v9241_v24 = vsel %vm6592_vm6, %v17092_v27, %v13055_v62  ;;  %v8521_v28 = vld [vmem:[#allocation5 + $0x31] sm:$0xff] }
 0x51a   : > { %v9322_v5 = vpack.c.bf16 %v9257_v1, %v9256_v7  ;;  %v13058_v2 = vpop.permute.xlu0 %13057  ;;  %v12988_v14 = vpop.permute.xlu1 %12987  ;;  %v9361_v22 = vpack.c.bf16 %v9241_v24, %v9240_v20 }
 0x51b   : > { %v13060_v9 = vunpack.i.h.bf16 %v13058_v2  ;;  %v13059_v60 = vunpack.i.l.bf16 %v13058_v2  ;;  %v12990_v17 = vunpack.i.h.bf16 %v12988_v14  ;;  %v12989_v6 = vunpack.i.l.bf16 %v12988_v14 }
 0x51c   : > { %9832 = vmatprep.mubr.bf16.mxu1 %v9361_v22  ;;  %9930 = vmatmul.mubr.bf16.vlgmr.msra.gmra.mxu0 %v9322_v5 }
 0x51d   : > { %v9209_v58 = vsel %vm6592_vm6, %v16893_v59, %v13060_v9  ;;  %v9208_v61 = vsel %vm6592_vm6, %v8407_v34, %v13059_v60  ;;  %v9290_v27 = vsel %vm6592_vm6, %v8586_v38, %v12989_v6  ;;  %v9291_v49 = vsel %vm6592_vm6, %v8587_v39, %v12990_v17  ;;  %v17260_v9 = vld [vmem:[#allocation5 + $0x1a0] sm:$0xff] }
 0x51e   : > { %v9360_v43 = vpack.c.bf16 %v9209_v58, %v9208_v61  ;;  %v13063_v29 = vpop.permute.xlu0 %13062  ;;  %v12993_v3 = vpop.permute.xlu1 %12992  ;;  %v9328_v0 = vpack.c.bf16 %v9291_v49, %v9290_v27  ;;  %v8475_v61 = vld [vmem:[#allocation5 + $0x1e2] sm:$0xff] }
 0x51f   : > { %v13065_v62 = vunpack.i.h.bf16 %v13063_v29  ;;  %v13064_v50 = vunpack.i.l.bf16 %v13063_v29  ;;  %v12995_v31 = vunpack.i.h.bf16 %v12993_v3  ;;  %v12994_v46 = vunpack.i.l.bf16 %v12993_v3  ;;  %v8523_v3 = vld [vmem:[#allocation5 + $0x71] sm:$0xff] }
 0x520   : > { %9833 = vmatmul.mubr.bf16.gmra.mxu1 %v9360_v43  ;;  %9937 = vmatprep.mubr.bf16.mxu0 %v9328_v0 }
 0x521   : > { %v9259_v59 = vsel %vm6592_vm6, %v16901_v54, %v12995_v31  ;;  %v9258_v51 = vsel %vm6592_vm6, %v8521_v28, %v12994_v46  ;;  %v9242_v1 = vsel %vm6592_vm6, %v17095_v18, %v13064_v50  ;;  %v9243_v7 = vsel %vm6592_vm6, %v17106_v44, %v13065_v62  ;;  %v8411_v31 = vld [vmem:[#allocation5 + $0x1e0] sm:$0xff] }
 0x522   : > { %v9327_v20 = vpack.c.bf16 %v9259_v59, %v9258_v51  ;;  %v13068_v24 = vpop.permute.xlu0 %13067  ;;  %v12998_v5 = vpop.permute.xlu1 %12997  ;;  %v9366_v34 = vpack.c.bf16 %v9243_v7, %v9242_v1  ;;  %v8591_v51 = vld [vmem:[#allocation5 + $0xb0] sm:$0xff] }
 0x523   : > { %v13070_v2 = vunpack.i.h.bf16 %v13068_v24  ;;  %v13069_v14 = vunpack.i.l.bf16 %v13068_v24  ;;  %v13000_v22 = vunpack.i.h.bf16 %v12998_v5  ;;  %v12999_v39 = vunpack.i.l.bf16 %v12998_v5  ;;  %v8590_v5 = vld [vmem:[#allocation5 + $0xa0] sm:$0xff] }
 0x524   : > { %9840 = vmatprep.mubr.bf16.mxu1 %v9366_v34  ;;  %9938 = vmatmul.mubr.bf16.gmra.mxu0 %v9327_v20 }
 0x525   : > { %v9211_v54 = vsel %vm6592_vm6, %v16923_v33, %v13070_v2  ;;  %v9210_v18 = vsel %vm6592_vm6, %v17260_v9, %v13069_v14  ;;  %v9292_v44 = vsel %vm6592_vm6, %v17163_v15, %v12999_v39  ;;  %v9293_v60 = vsel %vm6592_vm6, %v17165_v21, %v13000_v22  ;;  %v8524_v33 = vld [vmem:[#allocation5 + $0x81] sm:$0xff] }
 0x526   : > { %v9365_v17 = vpack.c.bf16 %v9211_v54, %v9210_v18  ;;  %v13073_v6 = vpop.permute.xlu0 %13072  ;;  %v13003_v38 = vpop.permute.xlu1 %13002  ;;  %v9333_v58 = vpack.c.bf16 %v9293_v60, %v9292_v44 }
 0x527   : > { %v13075_v27 = vunpack.i.h.bf16 %v13073_v6  ;;  %v13074_v49 = vunpack.i.l.bf16 %v13073_v6  ;;  %v13005_v43 = vunpack.i.h.bf16 %v13003_v38  ;;  %v13004_v29 = vunpack.i.l.bf16 %v13003_v38  ;;  %v8525_v38 = vld [vmem:[#allocation5 + $0x91] sm:$0xff] }
 0x528   : > { %9841 = vmatmul.mubr.bf16.gmra.mxu1 %v9365_v17  ;;  %9945 = vmatprep.mubr.bf16.mxu0 %v9333_v58 }
 0x529   : > { %v9261_v0 = vsel %vm6592_vm6, %v8524_v33, %v13005_v43  ;;  %v9260_v15 = vsel %vm6592_vm6, %v8523_v3, %v13004_v29  ;;  %v9244_v62 = vsel %vm6592_vm6, %v8475_v61, %v13074_v49  ;;  %v9245_v21 = vsel %vm6592_vm6, %v17126_v57, %v13075_v27 }
 0x52a   : > { %v9332_v50 = vpack.c.bf16 %v9261_v0, %v9260_v15  ;;  %v13078_v46 = vpop.permute.xlu0 %13077  ;;  %v13008_v28 = vpop.permute.xlu1 %13007  ;;  %v9371_v59 = vpack.c.bf16 %v9245_v21, %v9244_v62  ;;  %v17287_v21 = vld [vmem:[#allocation5 + $0x200] sm:$0xff] }
 0x52b   : > { %v13080_v1 = vunpack.i.h.bf16 %v13078_v46  ;;  %v13079_v7 = vunpack.i.l.bf16 %v13078_v46  ;;  %v13010_v20 = vunpack.i.h.bf16 %v13008_v28  ;;  %v13009_v24 = vunpack.i.l.bf16 %v13008_v28 }
 0x52c   : > { %9848 = vmatprep.mubr.bf16.mxu1 %v9371_v59  ;;  %9946 = vmatmul.mubr.bf16.gmra.mxu0 %v9332_v50 }
 0x52d   : > { %v9213_v34 = vsel %vm6592_vm6, %v16961_v35, %v13080_v1  ;;  %v9212_v2 = vsel %vm6592_vm6, %v8411_v31, %v13079_v7  ;;  %v9294_v57 = vsel %vm6592_vm6, %v8590_v5, %v13009_v24  ;;  %v9295_v14 = vsel %vm6592_vm6, %v8591_v51, %v13010_v20  ;;  %v8527_v7 = vld [vmem:[#allocation5 + $0xd1] sm:$0xff]  ;;  %v8528_v20 = vld [vmem:[#allocation5 + $0xe1] sm:$0xff] }
 0x52e   : > { %v9370_v22 = vpack.c.bf16 %v9213_v34, %v9212_v2  ;;  %v13013_v54 = vpop.permute.xlu1 %13012  ;;  %v9338_v18 = vpack.c.bf16 %v9295_v14, %v9294_v57 }
 0x52f   : > { %v13083_v39 = vpop.permute.xlu0 %13082  ;;  %v13015_v17 = vunpack.i.h.bf16 %v13013_v54  ;;  %v13014_v6 = vunpack.i.l.bf16 %v13013_v54 }
 0x530   : > { %v13085_v44 = vunpack.i.h.bf16 %v13083_v39  ;;  %v13084_v60 = vunpack.i.l.bf16 %v13083_v39  ;;  %9849 = vmatmul.mubr.bf16.gmra.mxu1 %v9370_v22  ;;  %9953 = vmatprep.mubr.bf16.mxu0 %v9338_v18  ;;  %v8415_v18 = vld [vmem:[#allocation5 + $0x240] sm:$0xff] }
 0x531   : > { %v9263_v35 = vsel %vm6592_vm6, %v16975_v26, %v13015_v17  ;;  %v9262_v58 = vsel %vm6592_vm6, %v8525_v38, %v13014_v6  ;;  %v8594_v17 = vld [vmem:[#allocation5 + $0x100] sm:$0xff] }
 0x532   : > { %v9246_v61 = vsel %vm6592_vm6, %v17134_v48, %v13084_v60  ;;  %v9247_v27 = vsel %vm6592_vm6, %v17140_v19, %v13085_v44  ;;  %v9337_v49 = vpack.c.bf16 %v9263_v35, %v9262_v58  ;;  %v13018_v29 = vpop.permute.xlu1 %13017 }
 0x533   : > { %v13088_v43 = vpop.permute.xlu0 %13087  ;;  %v9376_v3 = vpack.c.bf16 %v9247_v27, %v9246_v61  ;;  %v13020_v15 = vunpack.i.h.bf16 %v13018_v29  ;;  %v13019_v62 = vunpack.i.l.bf16 %v13018_v29 }
 0x534   : > { %v13090_v33 = vunpack.i.h.bf16 %v13088_v43  ;;  %v13089_v0 = vunpack.i.l.bf16 %v13088_v43  ;;  %9954 = vmatmul.mubr.bf16.gmra.mxu0 %v9337_v49 }
 0x535   : > { %9856 = vmatprep.mubr.bf16.mxu1 %v9376_v3  ;;  %v9296_v19 = vsel %vm6592_vm6, %v17209_v25, %v13019_v62  ;;  %v9297_v50 = vsel %vm6592_vm6, %v17211_v32, %v13020_v15  ;;  %v8595_v32 = vld [vmem:[#allocation5 + $0x110] sm:$0xff] }
 0x536   : > { %v9215_v26 = vsel %vm6592_vm6, %v16996_v12, %v13090_v33  ;;  %v9214_v48 = vsel %vm6592_vm6, %v17287_v21, %v13089_v0  ;;  %v13023_v46 = vpop.permute.xlu1 %13022  ;;  %v9343_v28 = vpack.c.bf16 %v9297_v50, %v9296_v19  ;;  %v8479_v12 = vld [vmem:[#allocation5 + $0x242] sm:$0xff]  ;;  %v8529_v0 = vld [vmem:[#allocation5 + $0xf1] sm:$0xff] }
 0x537   : > { %v9375_v31 = vpack.c.bf16 %v9215_v26, %v9214_v48  ;;  %v13025_v59 = vunpack.i.h.bf16 %v13023_v46  ;;  %v13024_v51 = vunpack.i.l.bf16 %v13023_v46 }
 0x538   : > { %v13093_v1 = vpop.permute.xlu0 %13092  ;;  %9961 = vmatprep.mubr.bf16.mxu0 %v9343_v28 }
 0x539   : > { %9857 = vmatmul.mubr.bf16.gmra.mxu1 %v9375_v31  ;;  %v13095_v24 = vunpack.i.h.bf16 %v13093_v1  ;;  %v13094_v5 = vunpack.i.l.bf16 %v13093_v1  ;;  %v9265_v34 = vsel %vm6592_vm6, %v8528_v20, %v13025_v59  ;;  %v9264_v25 = vsel %vm6592_vm6, %v8527_v7, %v13024_v51 }
 0x53a   : > { %v9342_v2 = vpack.c.bf16 %v9265_v34, %v9264_v25  ;;  %v13028_v57 = vpop.permute.xlu1 %13027 }
 0x53b   : > { %v13030_v14 = vunpack.i.h.bf16 %v13028_v57  ;;  %v13029_v22 = vunpack.i.l.bf16 %v13028_v57  ;;  %v9248_v39 = vsel %vm6592_vm6, %v8479_v12, %v13094_v5  ;;  %v9249_v54 = vsel %vm6592_vm6, %v17151_v4, %v13095_v24  ;;  %v8531_v57 = vld [vmem:[#allocation5 + $0x131] sm:$0xff] }
 0x53c   : > { %v13098_v44 = vpop.permute.xlu0 %13097  ;;  %v9381_v60 = vpack.c.bf16 %v9249_v54, %v9248_v39  ;;  %9962 = vmatmul.mubr.bf16.gmra.mxu0 %v9342_v2 }
 0x53d   : > { %v13100_v6 = vunpack.i.h.bf16 %v13098_v44  ;;  %v13099_v38 = vunpack.i.l.bf16 %v13098_v44  ;;  %v9298_v35 = vsel %vm6592_vm6, %v8594_v17, %v13029_v22  ;;  %v9299_v58 = vsel %vm6592_vm6, %v8595_v32, %v13030_v14  ;;  %v8532_v32 = vld [vmem:[#allocation5 + $0x141] sm:$0xff] }
 0x53e   : > { %9864 = vmatprep.mubr.bf16.mxu1 %v9381_v60  ;;  %v13033_v61 = vpop.permute.xlu1 %13032  ;;  %v9348_v27 = vpack.c.bf16 %v9299_v58, %v9298_v35  ;;  %v8598_v58 = vld [vmem:[#allocation5 + $0x160] sm:$0xff] }
 0x53f   : > { %v9217_v49 = vsel %vm6592_vm6, %v17029_v45, %v13100_v6  ;;  %v9216_v43 = vsel %vm6592_vm6, %v8415_v18, %v13099_v38  ;;  %v13035_v4 = vunpack.i.h.bf16 %v13033_v61  ;;  %v13034_v29 = vunpack.i.l.bf16 %v13033_v61  ;;  %v8599_v18 = vld [vmem:[#allocation5 + $0x170] sm:$0xff]  ;;  %v8419_v6 = vld [vmem:[#allocation5 + $0x2a0] sm:$0xff] }
 0x540   : > { %v9380_v3 = vpack.c.bf16 %v9217_v49, %v9216_v43  ;;  %v13103_v33 = vpop.permute.xlu0 %13102  ;;  %9969 = vmatprep.mubr.bf16.mxu0 %v9348_v27 }
 0x541   : > { %v13105_v15 = vunpack.i.h.bf16 %v13103_v33  ;;  %v13104_v62 = vunpack.i.l.bf16 %v13103_v33  ;;  %v9267_v26 = vsel %vm6592_vm6, %v17033_v52, %v13035_v4  ;;  %v9266_v48 = vsel %vm6592_vm6, %v8529_v0, %v13034_v29 }
 0x542   : > { %v9347_v19 = vpack.c.bf16 %v9267_v26, %v9266_v48  ;;  %9865 = vmatmul.mubr.bf16.gmra.mxu1 %v9380_v3  ;;  %v13038_v50 = vpop.permute.xlu1 %13037  ;;  %v8533_v26 = vld [vmem:[#allocation5 + $0x151] sm:$0xff] }
 0x543   : > { %v13040_v31 = vunpack.i.h.bf16 %v13038_v50  ;;  %v13039_v45 = vunpack.i.l.bf16 %v13038_v50  ;;  %v9250_v46 = vsel %vm6592_vm6, %v17157_v37, %v13104_v62  ;;  %v9251_v28 = vsel %vm6592_vm6, %v17168_v42, %v13105_v15 }
 0x544   : > { %v13108_v59 = vpop.permute.xlu0 %13107  ;;  %v9386_v51 = vpack.c.bf16 %v9251_v28, %v9250_v46  ;;  %9970 = vmatmul.mubr.bf16.gmra.mxu0 %v9347_v19 }
 0x545   : > { %v13110_v1 = vunpack.i.h.bf16 %v13108_v59  ;;  %v13109_v7 = vunpack.i.l.bf16 %v13108_v59  ;;  %v9300_v52 = vsel %vm6592_vm6, %v17227_v36, %v13039_v45  ;;  %v9301_v20 = vsel %vm6592_vm6, %v17229_v41, %v13040_v31  ;;  %v8483_v36 = vld [vmem:[#allocation5 + $0x2a2] sm:$0xff] }
 0x546   : > { %9872 = vmatprep.mubr.bf16.mxu1 %v9386_v51  ;;  %v13043_v12 = vpop.permute.xlu1 %13042  ;;  %v9353_v24 = vpack.c.bf16 %v9301_v20, %v9300_v52  ;;  %v17339_v52 = vld [vmem:[#allocation5 + $0x2c0] sm:$0xff] }
 0x547   : > { %v9219_v37 = vsel %vm6592_vm6, %v17047_v40, %v13110_v1  ;;  %v9218_v42 = vsel %vm6592_vm6, %v17031_v55, %v13109_v7  ;;  %v13045_v5 = vunpack.i.h.bf16 %v13043_v12  ;;  %v13044_v34 = vunpack.i.l.bf16 %v13043_v12  ;;  %v8649_v12 = vld [vmem:[#allocation5 + $0x32] sm:$0xff] }
 0x548   : > { %v9385_v25 = vpack.c.bf16 %v9219_v37, %v9218_v42  ;;  %v13113_v2 = vpop.permute.xlu0 %13112  ;;  %9977 = vmatprep.mubr.bf16.mxu0 %v9353_v24 }
 0x549   : > { %v13115_v14 = vunpack.i.h.bf16 %v13113_v2  ;;  %v13114_v22 = vunpack.i.l.bf16 %v13113_v2  ;;  %v9269_v41 = vsel %vm6592_vm6, %v8532_v32, %v13045_v5  ;;  %v9268_v39 = vsel %vm6592_vm6, %v8531_v57, %v13044_v34  ;;  %v8535_v5 = vld [vmem:[#allocation5 + $0x191] sm:$0xff]  ;;  %v8536_v34 = vld [vmem:[#allocation5 + $0x1a1] sm:$0xff] }
 0x54a   : > { %v9352_v54 = vpack.c.bf16 %v9269_v41, %v9268_v39  ;;  %9873 = vmatmul.mubr.bf16.gmra.mxu1 %v9385_v25  ;;  %v13048_v40 = vpop.permute.xlu1 %13047 }
 0x54b   : > { %v13050_v44 = vunpack.i.h.bf16 %v13048_v40  ;;  %v13049_v55 = vunpack.i.l.bf16 %v13048_v40  ;;  %v9252_v60 = vsel %vm6592_vm6, %v8483_v36, %v13114_v22  ;;  %v9253_v17 = vsel %vm6592_vm6, %v17181_v16, %v13115_v14  ;;  %v8601_v14 = vld [vmem:[#allocation5 + $0x1b0] sm:$0xff] }
 0x54c   : > { %v13118_v38 = vpop.permute.xlu0 %13117  ;;  %v9391_v35 = vpack.c.bf16 %v9253_v17, %v9252_v60  ;;  %9978 = vmatmul.mubr.bf16.gmra.mxu0 %v9352_v54  ;;  %v8603_v40 = vld [vmem:[#allocation5 + $0x1d0] sm:$0xff]  ;;  %v8650_v60 = vld [vmem:[#allocation5 + $0x42] sm:$0xff] }
 0x54d   : > { %v13120_v61 = vunpack.i.h.bf16 %v13118_v38  ;;  %v13119_v27 = vunpack.i.l.bf16 %v13118_v38  ;;  %v9302_v49 = vsel %vm6592_vm6, %v8598_v58, %v13049_v55  ;;  %v9303_v43 = vsel %vm6592_vm6, %v8599_v18, %v13050_v44  ;;  %v8651_v17 = vld [vmem:[#allocation5 + $0x52] sm:$0xff] }
 0x54e   : > { %9880 = vmatprep.mubr.bf16.mxu1 %v9391_v35  ;;  %v13133_v4 = vpop.permute.xlu1 %13132  ;;  %v9358_v29 = vpack.c.bf16 %v9303_v43, %v9302_v49  ;;  %v8602_v35 = vld [vmem:[#allocation5 + $0x1c0] sm:$0xff]  ;;  %v8653_v58 = vld [vmem:[#allocation5 + $0x92] sm:$0xff]  ;;  %v9329_v43 = vpack.c.bf16 %v8651_v17, %v8650_v60 }
 0x54f   : > { %v9221_v3 = vsel %vm6592_vm6, %v17061_v63, %v13120_v61  ;;  %v9220_v33 = vsel %vm6592_vm6, %v8419_v6, %v13119_v27  ;;  %v13135_v16 = vunpack.i.h.bf16 %v13133_v4  ;;  %v13134_v0 = vunpack.i.l.bf16 %v13133_v4  ;;  %v8652_v4 = vld [vmem:[#allocation5 + $0x82] sm:$0xff] }
 0x550   : > { %v9390_v15 = vpack.c.bf16 %v9221_v3, %v9220_v33  ;;  %v13123_v62 = vpop.permute.xlu0 %13122  ;;  %9985 = vmatprep.mubr.bf16.mxu0 %v9358_v29  ;;  %v8537_v29 = vld [vmem:[#allocation5 + $0x1b1] sm:$0xff]  ;;  %v8608_v17 = vld [vmem:[#allocation5 + $0x260] sm:$0xff] }
 0x551   : > { %v13125_v48 = vunpack.i.h.bf16 %v13123_v62  ;;  %v13124_v19 = vunpack.i.l.bf16 %v13123_v62  ;;  %v9271_v50 = vsel %vm6592_vm6, %v17071_v56, %v13135_v16  ;;  %v9270_v31 = vsel %vm6592_vm6, %v8533_v26, %v13134_v0  ;;  %v8605_v62 = vld [vmem:[#allocation5 + $0x210] sm:$0xff] }
 0x552   : > { %v9357_v45 = vpack.c.bf16 %v9271_v50, %v9270_v31  ;;  %9881 = vmatmul.mubr.bf16.gmra.mxu1 %v9390_v15  ;;  %v13143_v46 = vpop.permute.xlu1 %13142  ;;  %v9334_v16 = vpack.c.bf16 %v8653_v58, %v8652_v4 }
 0x553   : > { %v9254_v63 = vsel %vm6592_vm6, %v17186_v11, %v13124_v19  ;;  %v9255_v28 = vsel %vm6592_vm6, %v17192_v10, %v13125_v48  ;;  %v13145_v20 = vunpack.i.h.bf16 %v13143_v46  ;;  %v13144_v56 = vunpack.i.l.bf16 %v13143_v46  ;;  %v8648_v10 = vld [vmem:[#allocation5 + $0x22] sm:$0xff]  ;;  %v8655_v46 = vld [vmem:[#allocation5 + $0xb2] sm:$0xff] }
 0x554   : > { %v13128_v59 = vpop.permute.xlu0 %13127  ;;  %v9396_v51 = vpack.c.bf16 %v9255_v28, %v9254_v63  ;;  %9986 = vmatmul.mubr.bf16.gmra.mxu0 %v9357_v45  ;;  %v9324_v57 = vpack.c.bf16 %v8649_v12, %v8648_v10  ;;  %v8654_v45 = vld [vmem:[#allocation5 + $0xa2] sm:$0xff]  ;;  %v8539_v12 = vld [vmem:[#allocation5 + $0x1f1] sm:$0xff] }
 0x555   : > { %v13130_v1 = vunpack.i.h.bf16 %v13128_v59  ;;  %v13129_v7 = vunpack.i.l.bf16 %v13128_v59  ;;  %v9273_v32 = vsel %vm6592_vm6, %v8536_v34, %v13145_v20  ;;  %v9272_v36 = vsel %vm6592_vm6, %v8535_v5, %v13144_v56  ;;  %v8657_v59 = vld [vmem:[#allocation5 + $0xf2] sm:$0xff]  ;;  %v8656_v20 = vld [vmem:[#allocation5 + $0xe2] sm:$0xff] }
 0x556   : > { %9888 = vmatprep.mubr.bf16.mxu1 %v9396_v51  ;;  %v13153_v22 = vpop.permute.xlu1 %13152  ;;  %v9362_v18 = vpack.c.bf16 %v9273_v32, %v9272_v36  ;;  %v8607_v56 = vld [vmem:[#allocation5 + $0x230] sm:$0xff] }
 0x557   : > { %v9223_v24 = vsel %vm6592_vm6, %v17079_v53, %v13130_v1  ;;  %v9222_v11 = vsel %vm6592_vm6, %v17339_v52, %v13129_v7  ;;  %v13155_v6 = vunpack.i.h.bf16 %v13153_v22  ;;  %v13154_v38 = vunpack.i.l.bf16 %v13153_v22  ;;  %v8659_v32 = vld [vmem:[#allocation5 + $0x112] sm:$0xff] }
 0x558   : > { %v9395_v37 = vpack.c.bf16 %v9223_v24, %v9222_v11  ;;  %v13138_v42 = vpop.permute.xlu0 %13137  ;;  %v9339_v7 = vpack.c.bf16 %v8655_v46, %v8654_v45  ;;  %v8540_v24 = vld [vmem:[#allocation5 + $0x201] sm:$0xff] }
 0x559   : > { %v13140_v25 = vunpack.i.h.bf16 %v13138_v42  ;;  %v13139_v2 = vunpack.i.l.bf16 %v13138_v42  ;;  %v9275_v0 = vsel %vm6592_vm6, %v17132_v30, %v13155_v6  ;;  %v9274_v15 = vsel %vm6592_vm6, %v8537_v29, %v13154_v38  ;;  %v8606_v42 = vld [vmem:[#allocation5 + $0x220] sm:$0xff]  ;;  %v8609_v6 = vld [vmem:[#allocation5 + $0x270] sm:$0xff] }
 0x55a   : > { %9889 = vmatmul.mubr.bf16.gmra.mxu1 %v9395_v37  ;;  %v13163_v26 = vpop.permute.xlu1 %13162  ;;  %v9367_v31 = vpack.c.bf16 %v9275_v0, %v9274_v15  ;;  %v8665_v29 = vld [vmem:[#allocation5 + $0x1b2] sm:$0xff]  ;;  %v8664_v0 = vld [vmem:[#allocation5 + $0x1a2] sm:$0xff] }
 0x55b   : > { %11857 = vmatprep.mubr.msk.bf16.mxu1 %vm6592_vm6, %v9324_v57  ;;  %v9304_v53 = vsel %vm6592_vm6, %v17260_v9, %v13139_v2  ;;  %v9305_v41 = vsel %vm6592_vm6, %v8601_v14, %v13140_v25  ;;  %v13165_v63 = vunpack.i.h.bf16 %v13163_v26  ;;  %v13164_v30 = vunpack.i.l.bf16 %v13163_v26  ;;  %v8658_v57 = vld [vmem:[#allocation5 + $0x102] sm:$0xff]  ;;  %v8611_v15 = vld [vmem:[#allocation5 + $0x290] sm:$0xff] }
 0x55c   : > { %v13148_v39 = vpop.permute.xlu0 %13147  ;;  %v9363_v54 = vpack.c.bf16 %v9305_v41, %v9304_v53  ;;  %v8661_v53 = vld [vmem:[#allocation5 + $0x152] sm:$0xff]  ;;  %v8544_v26 = vld [vmem:[#allocation5 + $0x261] sm:$0xff] }
 0x55d   : > { %v13150_v44 = vunpack.i.h.bf16 %v13148_v39  ;;  %v13149_v55 = vunpack.i.l.bf16 %v13148_v39  ;;  %v9277_v11 = vsel %vm6592_vm6, %v8540_v24, %v13165_v63  ;;  %v9276_v37 = vsel %vm6592_vm6, %v8539_v12, %v13164_v30 }
 0x55e   : > { %9993 = vmatprep.mubr.bf16.mxu0 %v9363_v54  ;;  %v13173_v10 = vpop.permute.xlu1 %13172  ;;  %v9372_v2 = vpack.c.bf16 %v9277_v11, %v9276_v37  ;;  %v9349_v54 = vpack.c.bf16 %v8659_v32, %v8658_v57  ;;  %v8668_v11 = vld [vmem:[#allocation5 + $0x202] sm:$0xff]  ;;  %v8545_v37 = vld [vmem:[#allocation5 + $0x271] sm:$0xff] }
 0x55f   : > { %9994 = vmatmul.mubr.bf16.gmra.mxu0 %v9362_v18  ;;  %v9306_v61 = vsel %vm6592_vm6, %v8602_v35, %v13149_v55  ;;  %v9307_v9 = vsel %vm6592_vm6, %v8603_v40, %v13150_v44  ;;  %v13175_v36 = vunpack.i.h.bf16 %v13173_v10  ;;  %v13174_v14 = vunpack.i.l.bf16 %v13173_v10  ;;  %v8660_v40 = vld [vmem:[#allocation5 + $0x142] sm:$0xff]  ;;  %v8541_v18 = vld [vmem:[#allocation5 + $0x211] sm:$0xff] }
 0x560   : > { %v13158_v27 = vpop.permute.xlu0 %13157  ;;  %v9368_v49 = vpack.c.bf16 %v9307_v9, %v9306_v61  ;;  %v9354_v44 = vpack.c.bf16 %v8661_v53, %v8660_v40 }
 0x561   : > { %v13160_v3 = vunpack.i.h.bf16 %v13158_v27  ;;  %v13159_v33 = vunpack.i.l.bf16 %v13158_v27  ;;  %v9279_v55 = vsel %vm6592_vm6, %v17155_v8, %v13175_v36  ;;  %v9278_v60 = vsel %vm6592_vm6, %v8541_v18, %v13174_v14  ;;  %v8662_v27 = vld [vmem:[#allocation5 + $0x162] sm:$0xff] }
 0x562   : > { %10001 = vmatprep.mubr.bf16.mxu0 %v9368_v49  ;;  %11858 = vmatmul.mubr.msk.bf16.vlgmr.msra.gmra.mxu1 %vm6592_vm6, %v9329_v43  ;;  %v13183_v38 = vpop.permute.xlu1 %13182  ;;  %v9377_v9 = vpack.c.bf16 %v9279_v55, %v9278_v60  ;;  %v8663_v49 = vld [vmem:[#allocation5 + $0x172] sm:$0xff]  ;;  %v8670_v14 = vld [vmem:[#allocation5 + $0x222] sm:$0xff] }
 0x563   : > { %11861 = vmatprep.mubr.msk.bf16.mxu1 %vm6592_vm6, %v9334_v16  ;;  %v9308_v48 = vsel %vm6592_vm6, %v17287_v21, %v13159_v33  ;;  %v9309_v19 = vsel %vm6592_vm6, %v8605_v62, %v13160_v3  ;;  %v9344_v21 = vpack.c.bf16 %v8657_v59, %v8656_v20  ;;  %v13185_v43 = vunpack.i.h.bf16 %v13183_v38  ;;  %v8543_v62 = vld [vmem:[#allocation5 + $0x251] sm:$0xff]  ;;  %v8666_v59 = vld [vmem:[#allocation5 + $0x1c2] sm:$0xff] }
 0x564   : > { %v13168_v50 = vpop.permute.xlu0 %13167  ;;  %v9373_v28 = vpack.c.bf16 %v9309_v19, %v9308_v48  ;;  %v13184_v4 = vunpack.i.l.bf16 %v13183_v38  ;;  %v9359_v16 = vpack.c.bf16 %v8663_v49, %v8662_v27  ;;  %v9364_v48 = vpack.c.bf16 %v8665_v29, %v8664_v0  ;;  %v8615_v55 = vld [vmem:[#allocation5 + $0x2f0] sm:$0xff]  ;;  %v8674_v49 = vld [vmem:[#allocation5 + $0x282] sm:$0xff] }
 0x565   : > { %v13170_v51 = vunpack.i.h.bf16 %v13168_v50  ;;  %v13169_v1 = vunpack.i.l.bf16 %v13168_v50  ;;  %v9281_v19 = vsel %vm6592_vm6, %v8544_v26, %v13185_v43  ;;  %v8547_v60 = vld [vmem:[#allocation5 + $0x2b1] sm:$0xff] }
 0x566   : > { %v9280_v50 = vsel %vm6592_vm6, %v8543_v62, %v13184_v4  ;;  %v13193_v45 = vpop.permute.xlu1 %13192  ;;  %v8675_v43 = vld [vmem:[#allocation5 + $0x292] sm:$0xff] }
 0x567   : > { %10002 = vmatmul.mubr.bf16.gmra.mxu0 %v9367_v31  ;;  %v9310_v5 = vsel %vm6592_vm6, %v8606_v42, %v13169_v1  ;;  %v9311_v34 = vsel %vm6592_vm6, %v8607_v56, %v13170_v51  ;;  %v8610_v31 = vld [vmem:[#allocation5 + $0x280] sm:$0xff]  ;;  %v8667_v51 = vld [vmem:[#allocation5 + $0x1d2] sm:$0xff]  ;;  %v13195_v1 = vunpack.i.h.bf16 %v13193_v45 }
 0x568   : > { %10009 = vmatprep.mubr.bf16.mxu0 %v9373_v28  ;;  %v13178_v25 = vpop.permute.xlu0 %13177  ;;  %v9378_v22 = vpack.c.bf16 %v9311_v34, %v9310_v5  ;;  %v9382_v28 = vpack.c.bf16 %v9281_v19, %v9280_v50  ;;  %v8669_v56 = vld [vmem:[#allocation5 + $0x212] sm:$0xff]  ;;  %v8678_v19 = vld [vmem:[#allocation5 + $0x2e2] sm:$0xff] }
 0x569   : > { %v13180_v41 = vunpack.i.h.bf16 %v13178_v25  ;;  %v13179_v39 = vunpack.i.l.bf16 %v13178_v25  ;;  %v9374_v42 = vpack.c.bf16 %v8669_v56, %v8668_v11  ;;  %v9283_v10 = vsel %vm6592_vm6, %v17184_v13, %v13195_v1  ;;  %v8613_v34 = vld [vmem:[#allocation5 + $0x2d0] sm:$0xff] }
 0x56a   : > { %11862 = vmatmul.mubr.msk.bf16.gmra.mxu1 %vm6592_vm6, %v9339_v7  ;;  %v13194_v7 = vunpack.i.l.bf16 %v13193_v45  ;;  %v13203_v25 = vpop.permute.xlu1 %13202  ;;  %v8549_v0 = vld [vmem:[#allocation5 + $0x2d1] sm:$0xff] }
 0x56b   : > { %11865 = vmatprep.mubr.msk.bf16.mxu1 %vm6592_vm6, %v9344_v21  ;;  %v9312_v35 = vsel %vm6592_vm6, %v8608_v17, %v13179_v39  ;;  %v9313_v58 = vsel %vm6592_vm6, %v8609_v6, %v13180_v41  ;;  %v9369_v21 = vpack.c.bf16 %v8667_v51, %v8666_v59  ;;  %v13205_v53 = vunpack.i.h.bf16 %v13203_v25  ;;  %v8673_v39 = vld [vmem:[#allocation5 + $0x272] sm:$0xff]  ;;  %v8548_v17 = vld [vmem:[#allocation5 + $0x2c1] sm:$0xff] }
 0x56c   : > { %v13188_v61 = vpop.permute.xlu0 %13187  ;;  %v9383_v8 = vpack.c.bf16 %v9313_v58, %v9312_v35  ;;  %v9282_v5 = vsel %vm6592_vm6, %v8545_v37, %v13194_v7  ;;  %v13204_v41 = vunpack.i.l.bf16 %v13203_v25  ;;  %v8614_v35 = vld [vmem:[#allocation5 + $0x2e0] sm:$0xff]  ;;  %v8679_v50 = vld [vmem:[#allocation5 + $0x2f2] sm:$0xff] }
 0x56d   : > { %v13190_v3 = vunpack.i.h.bf16 %v13188_v61  ;;  %v13189_v33 = vunpack.i.l.bf16 %v13188_v61  ;;  %v9387_v36 = vpack.c.bf16 %v9283_v10, %v9282_v5  ;;  %v9285_v6 = vsel %vm6592_vm6, %v8548_v17, %v13205_v53 }
 0x56e   : > { %v9284_v38 = vsel %vm6592_vm6, %v8547_v60, %v13204_v41  ;;  %v13213_v58 = vpop.permute.xlu1 %13212 }
 0x56f   : > { %10010 = vmatmul.mubr.bf16.gmra.mxu0 %v9372_v2  ;;  %v9314_v46 = vsel %vm6592_vm6, %v8610_v31, %v13189_v33  ;;  %v9315_v63 = vsel %vm6592_vm6, %v8611_v15, %v13190_v3  ;;  %v9392_v27 = vpack.c.bf16 %v9285_v6, %v9284_v38  ;;  %v13215_v4 = vunpack.i.h.bf16 %v13213_v58  ;;  %v8677_v3 = vld [vmem:[#allocation5 + $0x2d2] sm:$0xff] }
 0x570   : > { %10017 = vmatprep.mubr.bf16.mxu0 %v9378_v22  ;;  %v13198_v30 = vpop.permute.xlu0 %13197  ;;  %v9388_v20 = vpack.c.bf16 %v9315_v63, %v9314_v46  ;;  %v8671_v22 = vld [vmem:[#allocation5 + $0x232] sm:$0xff]  ;;  %v9389_v33 = vpack.c.bf16 %v8675_v43, %v8674_v49  ;;  %v9399_v31 = vpack.c.bf16 %v8679_v50, %v8678_v19 }
 0x571   : > { %v13200_v12 = vunpack.i.h.bf16 %v13198_v30  ;;  %v13199_v24 = vunpack.i.l.bf16 %v13198_v30  ;;  %v9379_v18 = vpack.c.bf16 %v8671_v22, %v8670_v14  ;;  %v9287_v62 = vsel %vm6592_vm6, %v17204_v47, %v13215_v4 }
 0x572   : > { %11866 = vmatmul.mubr.msk.bf16.gmra.mxu1 %vm6592_vm6, %v9349_v54 }
 0x573   : > { %11869 = vmatprep.mubr.msk.bf16.mxu1 %vm6592_vm6, %v9354_v44  ;;  %v9316_v2 = vsel %vm6592_vm6, %v17339_v52, %v13199_v24  ;;  %v9317_v57 = vsel %vm6592_vm6, %v8613_v34, %v13200_v12  ;;  %v8672_v44 = vld [vmem:[#allocation5 + $0x262] sm:$0xff] }
 0x574   : > { %v13208_v32 = vpop.permute.xlu0 %13207  ;;  %v9393_v13 = vpack.c.bf16 %v9317_v57, %v9316_v2  ;;  %v9384_v52 = vpack.c.bf16 %v8673_v39, %v8672_v44 }
 0x575   : > { %v13210_v54 = vunpack.i.h.bf16 %v13208_v32  ;;  %v13209_v40 = vunpack.i.l.bf16 %v13208_v32 }
 0x577   : > { %10018 = vmatmul.mubr.bf16.gmra.mxu0 %v9377_v9  ;;  %v9318_v61 = vsel %vm6592_vm6, %v8614_v35, %v13209_v40  ;;  %v9319_v9 = vsel %vm6592_vm6, %v8615_v55, %v13210_v54 }
 0x578   : > { %10025 = vmatprep.mubr.bf16.mxu0 %v9383_v8  ;;  %v13214_v8 = vunpack.i.l.bf16 %v13213_v58  ;;  %v9398_v29 = vpack.c.bf16 %v9319_v9, %v9318_v61 }
 0x57a   : > { %11870 = vmatmul.mubr.msk.bf16.gmra.mxu1 %vm6592_vm6, %v9359_v16  ;;  %v8676_v16 = vld [vmem:[#allocation5 + $0x2c2] sm:$0xff]  ;;  %v9286_v26 = vsel %vm6592_vm6, %v8549_v0, %v13214_v8 }
 0x57b   : > { %11873 = vmatprep.mubr.msk.bf16.mxu1 %vm6592_vm6, %v9364_v48  ;;  %v9394_v15 = vpack.c.bf16 %v8677_v3, %v8676_v16  ;;  %v9397_v48 = vpack.c.bf16 %v9287_v62, %v9286_v26  ;;  %v13400_v26 = vld [vmem:[%s17714_s10 + $0x38] sm:$0xff]  }
 0x57c   : > { %11890 = vmatpush3.bf16.msra.mxu1 %v13400_v26 }
 0x57d   : > { %11891 = vmatprep.subr.bf16.mxu1 %v17729_v23 }
 0x57f   : > { %10026 = vmatmul.mubr.bf16.gmra.mxu0 %v9382_v28 }
 0x580   : > { %10033 = vmatprep.mubr.bf16.mxu0 %v9388_v20 }
 0x582   : > { %11874 = vmatmul.mubr.msk.bf16.gmra.mxu1 %vm6592_vm6, %v9369_v21 }
 0x583   : > { %11877 = vmatprep.mubr.msk.bf16.mxu1 %vm6592_vm6, %v9374_v42 }
 0x587   : > { %10034 = vmatmul.mubr.bf16.gmra.mxu0 %v9387_v36 }
 0x588   : > { %10041 = vmatprep.mubr.bf16.mxu0 %v9393_v13 }
 0x58a   : > { %11878 = vmatmul.mubr.msk.bf16.gmra.mxu1 %vm6592_vm6, %v9379_v18 }
 0x58b   : > { %11881 = vmatprep.mubr.msk.bf16.mxu1 %vm6592_vm6, %v9384_v52 }
 0x58f   : > { %10042 = vmatmul.mubr.bf16.gmra.mxu0 %v9392_v27 }
 0x590   : > { %10049 = vmatprep.mubr.bf16.mxu0 %v9398_v29 }
 0x592   : > { %11882 = vmatmul.mubr.msk.bf16.gmra.mxu1 %vm6592_vm6, %v9389_v33 }
 0x593   : > { %11885 = vmatprep.mubr.msk.bf16.mxu1 %vm6592_vm6, %v9394_v15 }
 0x597   : > { %10050 = vmatmul.mubr.bf16.gmra.mxu0 %v9397_v48 }
 0x598   : > { %11917 = vmatprep.mubr.msk.bf16.mxu0 %vm13442_vm12, %v17729_v23 }
 0x59a   : > { %11886 = vmatmul.mubr.msk.bf16.gmra.mxu1 %vm6592_vm6, %v9399_v31 }
 0x59b   : > { %11905 = vmatprep.mubr.msk.bf16.mxu1 %vm13442_vm12, %v17729_v23 }
 0x59c   : > { %v11279_v45 = vpop.f32.mrf.mxu1 }
 0x59e   : > { %v11280_v46 = vpop.f32.mrf.mxu1 }
 0x59f   : > { %v11281_v63 = vadd.f32 %v11280_v46, %v11279_v45 }
 0x5a0   : > { %v11282_v30 = vpop.f32.mrf.mxu1 }
 0x5a2   : > { %v11283_v28 = vpop.f32.mrf.mxu1 }
 0x5a3   : > { %v11284_v59 = vadd.f32 %v11283_v28, %v11282_v30 }
 0x5a5   : > { %v11285_v47 = vpop.f32.mrf.mxu1 }
 0x5a7   : > { %v11286_v51 = vpop.f32.mrf.mxu1 }
 0x5a8   : > { %v11287_v1 = vadd.f32 %v11286_v51, %v11285_v47 }
 0x5a9   : > { %v11288_v7 = vpop.f32.mrf.mxu1 }
 0x5ab   : > { %v11289_v20 = vpop.f32.mrf.mxu1 }
 0x5ac   : > { %v17400_v56 = vadd.f32 %v11289_v20, %v11288_v7  ;;  %v13401_v20 = vld [vmem:[%s17714_s10 + $0x30] sm:$0xff]  }
 0x5ad   : > { %v11291_v12 = vpop.f32.mrf.mxu1  ;;  %11892 = vmatpush3.bf16.msra.mxu1 %v13401_v20 }
 0x5ae   : > { %11893 = vmatprep.subr.bf16.mxu1 %v17729_v23 }
 0x5af   : > { %v11292_v24 = vpop.f32.mrf.mxu1 }
 0x5b0   : > { %v17402_v21 = vadd.f32 %v11292_v24, %v11291_v12 }
 0x5b1   : > { %v11294_v11 = vpop.f32.mrf.mxu1 }
 0x5b3   : > { %v11295_v37 = vpop.f32.mrf.mxu1 }
 0x5b4   : > { %v17404_v42 = vadd.f32 %v11295_v37, %v11294_v11 }
 0x5b5   : > { %v11297_v10 = vpop.f32.mrf.mxu1 }
 0x5b7   : > { %v11298_v5 = vpop.f32.mrf.mxu1 }
 0x5b8   : > { %v17406_v34 = vadd.f32 %v11298_v5, %v11297_v10 }
 0x5b9   : > { %v11300_v25 = vpop.f32.mrf.mxu1 }
 0x5bb   : > { %v11301_v2 = vpop.f32.mrf.mxu1 }
 0x5bc   : > { %v17408_v57 = vadd.f32 %v11301_v2, %v11300_v25 }
 0x5be   : > { %v11303_v32 = vpop.f32.mrf.mxu1 }
 0x5c0   : > { %v11304_v36 = vpop.f32.mrf.mxu1 }
 0x5c1   : > { %v17410_v14 = vadd.f32 %v11304_v36, %v11303_v32 }
 0x5c2   : > { %v11306_v22 = vpop.f32.mrf.mxu1 }
 0x5c4   : > { %v11307_v53 = vpop.f32.mrf.mxu1 }
 0x5c5   : > { %v17412_v41 = vadd.f32 %v11307_v53, %v11306_v22  ;;  %v13402_v22 = vld [vmem:[%s17714_s10 + $0x28] sm:$0xff]  }
 0x5c6   : > { %11894 = vmatpush3.bf16.msra.mxu1 %v13402_v22 }
 0x5c7   : > { %v11309_v13 = vpop.f32.mrf.mxu1  ;;  %11895 = vmatprep.subr.bf16.mxu1 %v17729_v23 }
 0x5c9   : > { %v11310_v39 = vpop.f32.mrf.mxu1 }
 0x5ca   : > { %v17414_v54 = vadd.f32 %v11310_v39, %v11309_v13 }
 0x5cb   : > { %v11312_v40 = vpop.f32.mrf.mxu1 }
 0x5cd   : > { %v11313_v18 = vpop.f32.mrf.mxu1 }
 0x5ce   : > { %v17416_v44 = vadd.f32 %v11313_v18, %v11312_v40 }
 0x5cf   : > { %v11315_v55 = vpop.f32.mrf.mxu1 }
 0x5d1   : > { %v11316_v60 = vpop.f32.mrf.mxu1 }
 0x5d2   : > { %v17418_v17 = vadd.f32 %v11316_v60, %v11315_v55 }
 0x5d3   : > { %v11318_v52 = vpop.f32.mrf.mxu1 }
 0x5d5   : > { %v11319_v6 = vpop.f32.mrf.mxu1 }
 0x5d6   : > { %v17420_v38 = vadd.f32 %v11319_v6, %v11318_v52 }
 0x5d7   : > { %v11321_v35 = vpop.f32.mrf.mxu1 }
 0x5d9   : > { %v11322_v58 = vpop.f32.mrf.mxu1 }
 0x5da   : > { %v17422_v61 = vadd.f32 %v11322_v58, %v11321_v35 }
 0x5db   : > { %v11324_v9 = vpop.f32.mrf.mxu1 }
 0x5dc   : > { %v11391_v27 = vpop.f32.mrf.mxu0 }
 0x5dd   : > { %v11325_v49 = vpop.f32.mrf.mxu1 }
 0x5de   : > { %v17424_v43 = vadd.f32 %v11325_v49, %v11324_v9  ;;  %v11392_v4 = vpop.f32.mrf.mxu0 }
 0x5df   : > { %v11393_v8 = vadd.f32 %v11392_v4, %v11391_v27  ;;  %v13403_v4 = vld [vmem:[%s17714_s10 + $0x20] sm:$0xff]  }
 0x5e0   : > { %v11327_v29 = vpop.f32.mrf.mxu1  ;;  %v11394_v3 = vpop.f32.mrf.mxu0  ;;  %11896 = vmatpush3.bf16.msra.mxu1 %v13403_v4  ;;  %v13411_v4 = vld [vmem:[%s17716_s12] sm:$0xff]  }
 0x5e1   : > { %v17426_v33 = vadd.f32 %v11393_v8, %v11281_v63  ;;  %11897 = vmatprep.subr.bf16.mxu1 %v17729_v23 }
 0x5e2   : > { %v11328_v16 = vpop.f32.mrf.mxu1  ;;  %v11395_v0 = vpop.f32.mrf.mxu0 }
 0x5e3   : > { %v17428_v15 = vadd.f32 %v11328_v16, %v11327_v29  ;;  %v11396_v62 = vadd.f32 %v11395_v0, %v11394_v3 }
 0x5e4   : > { %v11330_v48 = vpop.f32.mrf.mxu1  ;;  %v11397_v19 = vpop.f32.mrf.mxu0 }
 0x5e5   : > { %v17433_v50 = vadd.f32 %v11396_v62, %v11284_v59 }
 0x5e6   : > { %v11331_v31 = vpop.f32.mrf.mxu1  ;;  %v11398_v45 = vpop.f32.mrf.mxu0 }
 0x5e7   : > { %v17436_v46 = vadd.f32 %v11331_v31, %v11330_v48  ;;  %v11399_v63 = vadd.f32 %v11398_v45, %v11397_v19  ;;  %v13404_v31 = vld [vmem:[%s17714_s10 + $0x18] sm:$0xff]  }
 0x5e8   : > { %v11333_v30 = vpop.f32.mrf.mxu1  ;;  %v11400_v28 = vpop.f32.mrf.mxu0  ;;  %11898 = vmatpush3.bf16.msra.mxu1 %v13404_v31 }
 0x5e9   : > { %v17438_v47 = vadd.f32 %v11399_v63, %v11287_v1  ;;  %11899 = vmatprep.subr.bf16.mxu1 %v17729_v23 }
 0x5ea   : > { %v11334_v51 = vpop.f32.mrf.mxu1  ;;  %v11401_v7 = vpop.f32.mrf.mxu0 }
 0x5eb   : > { %v17443_v59 = vadd.f32 %v11334_v51, %v11333_v30  ;;  %v11402_v12 = vadd.f32 %v11401_v7, %v11400_v28  ;;  %v13405_v30 = vld [vmem:[%s17714_s10 + $0x10] sm:$0xff]  }
 0x5ec   : > { %v11336_v24 = vpop.f32.mrf.mxu1  ;;  %v11403_v11 = vpop.f32.mrf.mxu0  ;;  %11900 = vmatpush3.bf16.msra.mxu1 %v13405_v30 }
 0x5ed   : > { %v17446_v37 = vadd.f32 %v11402_v12, %v17400_v56  ;;  %11901 = vmatprep.subr.bf16.mxu1 %v17729_v23 }
 0x5ee   : > { %v11337_v10 = vpop.f32.mrf.mxu1  ;;  %v11404_v1 = vpop.f32.mrf.mxu0 }
 0x5ef   : > { %v17449_v5 = vadd.f32 %v11337_v10, %v11336_v24  ;;  %v11405_v25 = vadd.f32 %v11404_v1, %v11403_v11  ;;  %v13408_v24 = vld [vmem:[%s17716_s12 + $0x18] sm:$0xff]   ;;  %v13406_v10 = vld [vmem:[%s17714_s10 + $0x8] sm:$0xff]  }
 0x5f0   : > { %v11339_v2 = vpop.f32.mrf.mxu1  ;;  %v11406_v32 = vpop.f32.mrf.mxu0  ;;  %11910 = vmatpush3.bf16.msra.mxu0 %v13408_v24  ;;  %11902 = vmatpush3.bf16.msra.mxu1 %v13406_v10 }
 0x5f1   : > { %v17452_v36 = vadd.f32 %v11405_v25, %v17402_v21  ;;  %11911 = vmatprep.subr.bf16.mxu0 %v17729_v23  ;;  %11903 = vmatprep.subr.bf16.mxu1 %v17729_v23 }
 0x5f2   : > { %v11340_v53 = vpop.f32.mrf.mxu1  ;;  %v11407_v13 = vpop.f32.mrf.mxu0 }
 0x5f3   : > { %v17457_v56 = vadd.f32 %v11340_v53, %v11339_v2  ;;  %v11408_v39 = vadd.f32 %v11407_v13, %v11406_v32 }
 0x5f4   : > { %v11342_v40 = vpop.f32.mrf.mxu1  ;;  %v11409_v18 = vpop.f32.mrf.mxu0 }
 0x5f5   : > { %v17461_v55 = vadd.f32 %v11408_v39, %v17404_v42  ;;  %v13407_v39 = vld [vmem:[%s17714_s10] sm:$0xff]  }
 0x5f6   : > { %v11343_v60 = vpop.f32.mrf.mxu1  ;;  %v11410_v21 = vpop.f32.mrf.mxu0  ;;  %11904 = vmatpush3.bf16.msra.mxu1 %v13407_v39 }
 0x5f7   : > { %v17463_v52 = vadd.f32 %v11343_v60, %v11342_v40  ;;  %v11411_v6 = vadd.f32 %v11410_v21, %v11409_v18 }
 0x5f8   : > { %v11412_v58 = vpop.f32.mrf.mxu0 }
 0x5f9   : > { %v11345_v35 = vpop.f32.mrf.mxu1  ;;  %v17466_v9 = vadd.f32 %v11411_v6, %v17406_v34 }
 0x5fa   : > { %v11413_v49 = vpop.f32.mrf.mxu0 }
 0x5fb   : > { %v11346_v27 = vpop.f32.mrf.mxu1  ;;  %v11414_v42 = vadd.f32 %v11413_v49, %v11412_v58 }
 0x5fc   : > { %v17471_v8 = vadd.f32 %v11346_v27, %v11345_v35  ;;  %v11415_v3 = vpop.f32.mrf.mxu0 }
 0x5fd   : > { %v11348_v29 = vpop.f32.mrf.mxu1  ;;  %v17474_v16 = vadd.f32 %v11414_v42, %v17408_v57 }
 0x5fe   : > { %v11416_v34 = vpop.f32.mrf.mxu0 }
 0x5ff   : > { %v11349_v0 = vpop.f32.mrf.mxu1  ;;  %v11417_v26 = vadd.f32 %v11416_v34, %v11415_v3 }
 0x600   : > { %v17477_v62 = vadd.f32 %v11349_v0, %v11348_v29  ;;  %v11418_v48 = vpop.f32.mrf.mxu0 }
 0x601   : > { %v17480_v19 = vadd.f32 %v11417_v26, %v17410_v14 }
 0x602   : > { %v11351_v45 = vpop.f32.mrf.mxu1  ;;  %v11419_v63 = vpop.f32.mrf.mxu0 }
 0x603   : > { %v11420_v57 = vadd.f32 %v11419_v63, %v11418_v48 }
 0x604   : > { %v11352_v28 = vpop.f32.mrf.mxu1  ;;  %v11421_v14 = vpop.f32.mrf.mxu0 }
 0x605   : > { %v17491_v51 = vadd.f32 %v11352_v28, %v11351_v45  ;;  %v17494_v7 = vadd.f32 %v11420_v57, %v17412_v41  ;;  %v13409_v41 = vld [vmem:[%s17716_s12 + $0x10] sm:$0xff]  }
 0x606   : > { %v11354_v20 = vpop.f32.mrf.mxu1  ;;  %v11422_v12 = vpop.f32.mrf.mxu0  ;;  %11912 = vmatpush3.bf16.msra.mxu0 %v13409_v41 }
 0x607   : > { %v11423_v11 = vadd.f32 %v11422_v12, %v11421_v14  ;;  %11913 = vmatprep.subr.bf16.mxu0 %v17729_v23 }
 0x608   : > { %v11355_v1 = vpop.f32.mrf.mxu1  ;;  %v11424_v25 = vpop.f32.mrf.mxu0 }
 0x609   : > { %v17506_v2 = vadd.f32 %v11355_v1, %v11354_v20  ;;  %v17509_v32 = vadd.f32 %v11423_v11, %v17414_v54  ;;  %v13410_v54 = vld [vmem:[%s17716_s12 + $0x8] sm:$0xff]  }
 0x60a   : > { %v11357_v22 = vpop.f32.mrf.mxu1  ;;  %v11425_v53 = vpop.f32.mrf.mxu0  ;;  %11914 = vmatpush3.bf16.msra.mxu0 %v13410_v54 }
 0x60b   : > { %v11426_v13 = vadd.f32 %v11425_v53, %v11424_v25  ;;  %11915 = vmatprep.subr.bf16.mxu0 %v17729_v23 }
 0x60c   : > { %v11358_v40 = vpop.f32.mrf.mxu1  ;;  %v11427_v18 = vpop.f32.mrf.mxu0 }
 0x60d   : > { %v17519_v60 = vadd.f32 %v11358_v40, %v11357_v22  ;;  %v17522_v21 = vadd.f32 %v11426_v13, %v17416_v44  ;;  %v17553_v40 = vld [vmem:[%s17712_s8] ss:$0 sm:$0xff] }
 0x60e   : > { %v11360_v6 = vpop.f32.mrf.mxu1  ;;  %v11428_v35 = vpop.f32.mrf.mxu0  ;;  %11916 = vmatpush3.bf16.msra.mxu0 %v13411_v4 }
 0x60f   : > { %v11429_v58 = vadd.f32 %v11428_v35, %v11427_v18 }
 0x610   : > { %v11361_v27 = vpop.f32.mrf.mxu1  ;;  %v11430_v49 = vpop.f32.mrf.mxu0 }
 0x611   : > { %v17528_v42 = vadd.f32 %v11361_v27, %v11360_v6  ;;  %v17531_v29 = vadd.f32 %v11429_v58, %v17418_v17 }
 0x612   : > { %v11363_v44 = vpop.f32.mrf.mxu1  ;;  %v11431_v3 = vpop.f32.mrf.mxu0 }
 0x613   : > { %v11432_v0 = vadd.f32 %v11431_v3, %v11430_v49 }
 0x614   : > { %v11364_v34 = vpop.f32.mrf.mxu1  ;;  %v11433_v26 = vpop.f32.mrf.mxu0 }
 0x615   : > { %v17534_v48 = vadd.f32 %v11364_v34, %v11363_v44  ;;  %v17537_v31 = vadd.f32 %v11432_v0, %v17420_v38 }
 0x616   : > { %v11366_v45 = vpop.f32.mrf.mxu1  ;;  %v11434_v63 = vpop.f32.mrf.mxu0 }
 0x617   : > { %v11435_v57 = vadd.f32 %v11434_v63, %v11433_v26 }
 0x618   : > { %v11367_v30 = vpop.f32.mrf.mxu1  ;;  %v11436_v28 = vpop.f32.mrf.mxu0 }
 0x619   : > { %v17539_v17 = vadd.f32 %v11367_v30, %v11366_v45  ;;  %v17542_v23 = vadd.f32 %v11435_v57, %v17422_v61 }
 0x61a   : > { %v11369_v14 = vpop.f32.mrf.mxu1  ;;  %v11437_v20 = vpop.f32.mrf.mxu0 }
 0x61c   : > { %v11370_v12 = vpop.f32.mrf.mxu1 }
 0x61d   : > { %v17544_v24 = vadd.f32 %v11370_v12, %v11369_v14  ;;  %v11438_v14 = vadd.f32 %v11437_v20, %v11436_v28 }
 0x61e   : > { %v11372_v11 = vpop.f32.mrf.mxu1 }
 0x61f   : > { %v11439_v10 = vpop.f32.mrf.mxu0 }
 0x620   : > { %v11373_v1 = vpop.f32.mrf.mxu1 }
 0x621   : > { %v17546_v38 = vadd.f32 %v11373_v1, %v11372_v11  ;;  %v11440_v25 = vpop.f32.mrf.mxu0 }
 0x622   : > { %v11859_v41 = vpop.f32.mrf.mxu1 }
 0x623   : > { %v11442_v22 = vpop.f32.mrf.mxu0  ;;  %v10101_v13 = vadd.f32 %v11859_v41, %v17438_v47 }
 0x624   : > { %v10092_v53 = vpop.f32.mrf.mxu1 }
 0x625   : > { %v10093_v39 = vadd.f32 %v10092_v53, %v17426_v33  ;;  %v11443_v61 = vpop.f32.mrf.mxu0  ;;  %v10228_v27 = vmul.f32 %v17553_v40, %v10101_v13  ;;  %v17562_v33 = vld [vmem:[%s17713_s9] ss:$0 sm:$0xff]  ;;  %v11441_v53 = vadd.f32 %v11440_v25, %v11439_v10 }
 0x626   : > { %v11860_v18 = vpop.f32.mrf.mxu1 }
 0x627   : > { %v10226_v54 = vmul.f32 %v17553_v40, %v10093_v39  ;;  %v10104_v6 = vadd.f32 %v11860_v18, %v17446_v37  ;;  %v11445_v35 = vpop.f32.mrf.mxu0  ;;  %v10267_v26 = vadd.f32 %v17562_v33, %v10228_v27 }
 0x628   : > { %v10095_v58 = vpop.f32.mrf.mxu1 }
 0x629   : > { %v10096_v49 = vadd.f32 %v10095_v58, %v17433_v50  ;;  %v11446_v47 = vpop.f32.mrf.mxu0  ;;  %v10265_v44 = vadd.f32 %v17562_v33, %v10226_v54  ;;  %v10229_v3 = vmul.f32 %v17553_v40, %v10104_v6  ;;  %v10299_v54 = vmax.f32 %v10267_v26, 0.0 }
 0x62a   : > { %v11863_v4 = vpop.f32.mrf.mxu1  ;;  %v11447_v27 = vadd.f32 %v11446_v47, %v11445_v35 }
 0x62b   : > { %v10227_v0 = vmul.f32 %v17553_v40, %v10096_v49  ;;  %v11448_v37 = vpop.f32.mrf.mxu0  ;;  %v10117_v50 = vadd.f32 %v11863_v4, %v17466_v9  ;;  %v10297_v12 = vmax.f32 %v10265_v44, 0.0  ;;  %v10268_v11 = vadd.f32 %v17562_v33, %v10229_v3 }
 0x62c   : > { %v10108_v34 = vpop.f32.mrf.mxu1  ;;  %v9991_v44 = vadd.f32 %v11438_v14, %v17424_v43 }
 0x62d   : > { %v10266_v45 = vadd.f32 %v17562_v33, %v10227_v0  ;;  %v10109_v63 = vadd.f32 %v10108_v34, %v17452_v36  ;;  %v11449_v57 = vpop.f32.mrf.mxu0  ;;  %v10232_v9 = vmul.f32 %v17553_v40, %v10117_v50  ;;  %v11444_v36 = vadd.f32 %v11443_v61, %v11442_v22 }
 0x62e   : > { %v11864_v30 = vpop.f32.mrf.mxu1  ;;  %v10300_v49 = vmax.f32 %v10268_v11, 0.0  ;;  %v17582_v22 = vadd.f32 %v11441_v53, %v17428_v15  ;;  %v11450_v35 = vadd.f32 %v11449_v57, %v11448_v37  ;;  %v17589_v50 = vadd.f32 %v11447_v27, %v17443_v59 }
 0x62f   : > { %v10298_v1 = vmax.f32 %v10266_v45, 0.0  ;;  %v11451_v41 = vpop.f32.mrf.mxu0  ;;  %v10230_v13 = vmul.f32 %v17553_v40, %v10109_v63  ;;  %v10120_v39 = vadd.f32 %v11864_v30, %v17474_v16  ;;  %v17592_v63 = vadd.f32 %v11444_v36, %v17436_v46 }
 0x630   : > { %v10111_v18 = vpop.f32.mrf.mxu1 }
 0x631   : > { %v10329_v6 = vadd.f32 %v10298_v1, %v10297_v12  ;;  %v11452_v58 = vpop.f32.mrf.mxu0  ;;  %v10112_v28 = vadd.f32 %v10111_v18, %v17461_v55  ;;  %v10269_v16 = vadd.f32 %v17562_v33, %v10230_v13  ;;  %v10233_v3 = vmul.f32 %v17553_v40, %v10120_v39 }
 0x632   : > { %v11867_v20 = vpop.f32.mrf.mxu1  ;;  %v10271_v55 = vadd.f32 %v17562_v33, %v10232_v9  ;;  %v11453_v30 = vadd.f32 %v11452_v58, %v11451_v41  ;;  %v17600_v18 = vadd.f32 %v11450_v35, %v17449_v5 }
 0x633   : > { %v10337_v4 = vadd.f32 %v10329_v6, %v10299_v54  ;;  %v10133_v10 = vadd.f32 %v11867_v20, %v17509_v32  ;;  %v11454_v25 = vpop.f32.mrf.mxu0  ;;  %v10231_v0 = vmul.f32 %v17553_v40, %v10112_v28  ;;  %v10301_v12 = vmax.f32 %v10269_v16, 0.0 }
 0x634   : > { %v10124_v34 = vpop.f32.mrf.mxu1  ;;  %v10272_v11 = vadd.f32 %v17562_v33, %v10233_v3  ;;  %v10303_v13 = vmax.f32 %v10271_v55, 0.0 }
 0x635   : > { %v10345_v61 = vadd.f32 %v10337_v4, %v10300_v49  ;;  %v10125_v47 = vadd.f32 %v10124_v34, %v17480_v19  ;;  %v11455_v32 = vpop.f32.mrf.mxu0  ;;  %v10270_v26 = vadd.f32 %v17562_v33, %v10231_v0  ;;  %v10236_v43 = vmul.f32 %v17553_v40, %v10133_v10 }
 0x636   : > { %v11868_v45 = vpop.f32.mrf.mxu1  ;;  %v11456_v59 = vadd.f32 %v11455_v32, %v11454_v25  ;;  %v10304_v5 = vmax.f32 %v10272_v11, 0.0 }
 0x637   : > { %v10354_v15 = vsel %vm10353_vm13, %v10345_v61, 0.0  ;;  %v10234_v14 = vmul.f32 %v17553_v40, %v10125_v47  ;;  %v10136_v37 = vadd.f32 %v11868_v45, %v17522_v21  ;;  %v11457_v19 = vpop.f32.mrf.mxu0  ;;  %v10302_v1 = vmax.f32 %v10270_v26, 0.0 }
 0x638   : > { %v10355_v57 = vrot.slane %v10354_v15, 4  ;;  %v10127_v53 = vpop.f32.mrf.mxu1  ;;  %v10275_v6 = vadd.f32 %v17562_v33, %v10236_v43  ;;  %v17614_v34 = vadd.f32 %v11456_v59, %v17463_v52 }
 0x639   : > { %v10128_v39 = vadd.f32 %v10127_v53, %v17494_v7  ;;  %v11458_v46 = vpop.f32.mrf.mxu0  ;;  %v10330_v54 = vadd.f32 %v10302_v1, %v10301_v12  ;;  %v10273_v21 = vadd.f32 %v17562_v33, %v10234_v14  ;;  %v10237_v58 = vmul.f32 %v17553_v40, %v10136_v37 }
 0x63a   : > { %v10356_v41 = vadd.f32 %v10355_v57, %v10354_v15  ;;  %v11871_v9 = vpop.f32.mrf.mxu1  ;;  %v17608_v7 = vadd.f32 %v11453_v30, %v17457_v56  ;;  %v11459_v4 = vadd.f32 %v11458_v46, %v11457_v19  ;;  %v10307_v55 = vmax.f32 %v10275_v6, 0.0 }
 0x63b   : > { %v10235_v36 = vmul.f32 %v17553_v40, %v10128_v39  ;;  %v10149_v27 = vadd.f32 %v11871_v9, %v17542_v23  ;;  %v11460_v28 = vpop.f32.mrf.mxu0  ;;  %v10338_v49 = vadd.f32 %v10330_v54, %v10303_v13  ;;  %v10305_v56 = vmax.f32 %v10273_v21, 0.0 }
 0x63c   : > { %v10357_v20 = vrot.slane %v10356_v41, 2  ;;  %v10140_v10 = vpop.f32.mrf.mxu1  ;;  %v10276_v47 = vadd.f32 %v17562_v33, %v10237_v58  ;;  %v10020_v52 = vadd.f32 %v11459_v4, %v17471_v8 }
 0x63d   : > { %v10274_v25 = vadd.f32 %v17562_v33, %v10235_v36  ;;  %v10240_v16 = vmul.f32 %v17553_v40, %v10149_v27  ;;  %v10141_v3 = vadd.f32 %v10140_v10, %v17531_v29  ;;  %v11461_v0 = vpop.f32.mrf.mxu0  ;;  %v10346_v61 = vadd.f32 %v10338_v49, %v10304_v5 }
 0x63e   : > { %v10358_v23 = vadd.f32 %v10357_v20, %v10356_v41  ;;  %v11872_v35 = vpop.f32.mrf.mxu1  ;;  %v11462_v29 = vadd.f32 %v11461_v0, %v11460_v28  ;;  %v10308_v46 = vmax.f32 %v10276_v47, 0.0 }
 0x63f   : > { %v10306_v32 = vmax.f32 %v10274_v25, 0.0  ;;  %v10238_v26 = vmul.f32 %v17553_v40, %v10141_v3  ;;  %v10152_v43 = vadd.f32 %v11872_v35, %v9991_v44  ;;  %v11463_v45 = vpop.f32.mrf.mxu0  ;;  %v10361_v30 = vsel %vm10353_vm13, %v10346_v61, 0.0 }
 0x640   : > { %v10359_v15 = vrot.slane %v10358_v23, 1  ;;  %v10143_v14 = vpop.f32.mrf.mxu1  ;;  %v10362_v37 = vrot.slane %v10361_v30, 4  ;;  %v10279_v57 = vadd.f32 %v17562_v33, %v10240_v16  ;;  %v10023_v36 = vadd.f32 %v11462_v29, %v17477_v62 }
 0x641   : > { %v10331_v19 = vadd.f32 %v10306_v32, %v10305_v56  ;;  %v10277_v12 = vadd.f32 %v17562_v33, %v10238_v26  ;;  %v11464_v11 = vpop.f32.mrf.mxu0  ;;  %v10241_v53 = vmul.f32 %v17553_v40, %v10152_v43  ;;  %v10144_v44 = vadd.f32 %v10143_v14, %v17537_v31 }
 0x642   : > { %v10360_v1 = vadd.f32 %v10359_v15, %v10358_v23  ;;  %v11465_v13 = vadd.f32 %v11464_v11, %v11463_v45  ;;  %v11875_v59 = vpop.f32.mrf.mxu1  ;;  %v10363_v39 = vadd.f32 %v10362_v37, %v10361_v30  ;;  %v10311_v49 = vmax.f32 %v10279_v57, 0.0 }
 0x643   : > { %v10339_v41 = vadd.f32 %v10331_v19, %v10307_v55  ;;  %v10165_v54 = vadd.f32 %v11875_v59, %v17589_v50  ;;  %v11466_v8 = vpop.f32.mrf.mxu0  ;;  %v10280_v21 = vadd.f32 %v17562_v33, %v10241_v53  ;;  %v10239_v9 = vmul.f32 %v17553_v40, %v10144_v44 }
 0x644   : > { %v10410_v6 = vmul.f32 0.0625, %v10360_v1  ;;  %v10156_v58 = vpop.f32.mrf.mxu1  ;;  %v10364_v27 = vrot.slane %v10363_v39, 2  ;;  %v10309_v4 = vmax.f32 %v10277_v12, 0.0  ;;  %v17632_v25 = vadd.f32 %v11465_v13, %v17491_v51 }
 0x645   : > { %v10347_v28 = vadd.f32 %v10339_v41, %v10308_v46  ;;  %v10244_v31 = vmul.f32 %v17553_v40, %v10165_v54  ;;  %v10157_v20 = vadd.f32 %v10156_v58, %v17582_v22  ;;  %v11467_v5 = vpop.f32.mrf.mxu0  ;;  %v10278_v50 = vadd.f32 %v17562_v33, %v10239_v9 }
 0x646   : > { %v11876_v10 = vpop.f32.mrf.mxu1  ;;  %v10418_v16 = vpack.c.bf16 %v10410_v6, %v10410_v6  ;;  %v10365_v3 = vadd.f32 %v10364_v27, %v10363_v39  ;;  %v10312_v32 = vmax.f32 %v10280_v21, 0.0  ;;  %v17638_v26 = vadd.f32 %v11467_v5, %v11466_v8 }
 0x647   : > { %v10368_v0 = vsel %vm10353_vm13, %v10347_v28, 0.0  ;;  %v10242_v62 = vmul.f32 %v17553_v40, %v10157_v20  ;;  %v11469_v23 = vpop.f32.mrf.mxu0  ;;  %v10310_v55 = vmax.f32 %v10278_v50, 0.0  ;;  %v10283_v22 = vadd.f32 %v17562_v33, %v10244_v31 }
 0x648   : > { %v10369_v61 = vrot.slane %v10368_v0, 4  ;;  %v10168_v56 = vadd.f32 %v11876_v10, %v17600_v18  ;;  %v10159_v35 = vpop.f32.mrf.mxu1  ;;  %v10366_v47 = vrot.slane %v10365_v3, 1  ;;  %v10457_v37 = vunpack.c.l.b16 %v10418_v16 }
 0x649   : > { %v10160_v51 = vadd.f32 %v10159_v35, %v17592_v63  ;;  %v11470_v43 = vpop.f32.mrf.mxu0  ;;  %v10332_v15 = vadd.f32 %v10310_v55, %v10309_v4  ;;  %v10281_v30 = vadd.f32 %v17562_v33, %v10242_v62  ;;  %v10315_v53 = vmax.f32 %v10283_v22, 0.0 }
 0x64a   : > { %v10370_v45 = vadd.f32 %v10369_v61, %v10368_v0  ;;  %v10245_v29 = vmul.f32 %v17553_v40, %v10168_v56  ;;  %v11879_v14 = vpop.f32.mrf.mxu1  ;;  %v10367_v19 = vadd.f32 %v10366_v47, %v10365_v3  ;;  %v11471_v44 = vadd.f32 %v11470_v43, %v11469_v23 }
 0x64b   : > { %v10243_v57 = vmul.f32 %v17553_v40, %v10160_v51  ;;  %v10181_v18 = vadd.f32 %v11879_v14, %v10020_v52  ;;  %v11472_v12 = vpop.f32.mrf.mxu0  ;;  %v10340_v1 = vadd.f32 %v10332_v15, %v10311_v49  ;;  %v10313_v6 = vmax.f32 %v10281_v30, 0.0 }
 0x64c   : > { %v10371_v11 = vrot.slane %v10370_v45, 2  ;;  %v10172_v13 = vpop.f32.mrf.mxu1  ;;  %v10411_v63 = vmul.f32 0.0625, %v10367_v19  ;;  %v10284_v21 = vadd.f32 %v17562_v33, %v10245_v29  ;;  %v10036_v0 = vadd.f32 %v11471_v44, %v17519_v60 }
 0x64d   : > { %v10282_v59 = vadd.f32 %v17562_v33, %v10243_v57  ;;  %v10248_v39 = vmul.f32 %v17553_v40, %v10181_v18  ;;  %v10173_v46 = vadd.f32 %v10172_v13, %v17608_v7  ;;  %v11473_v41 = vpop.f32.mrf.mxu0  ;;  %v10348_v8 = vadd.f32 %v10340_v1, %v10312_v32 }
 0x64e   : > { %v10372_v54 = vadd.f32 %v10371_v11, %v10370_v45  ;;  %v11880_v52 = vpop.f32.mrf.mxu1  ;;  %v10419_v9 = vpack.c.bf16 %v10411_v63, %v10411_v63  ;;  %v11474_v28 = vadd.f32 %v11473_v41, %v11472_v12  ;;  %v10316_v47 = vmax.f32 %v10284_v21, 0.0 }
 0x64f   : > { %v10314_v58 = vmax.f32 %v10282_v59, 0.0  ;;  %v10246_v27 = vmul.f32 %v17553_v40, %v10173_v46  ;;  %v11475_v31 = vpop.f32.mrf.mxu0  ;;  %v10375_v5 = vsel %vm10353_vm13, %v10348_v8, 0.0  ;;  %v10287_v49 = vadd.f32 %v17562_v33, %v10248_v39 }
 0x650   : > { %v10373_v20 = vrot.slane %v10372_v54, 1  ;;  %v10184_v7 = vadd.f32 %v11880_v52, %v10023_v36  ;;  %v10175_v4 = vpop.f32.mrf.mxu1  ;;  %v10458_v50 = vunpack.c.l.b16 %v10419_v9  ;;  %v10376_v10 = vrot.slane %v10375_v5, 4 }
 0x651   : > { %v10333_v16 = vadd.f32 %v10314_v58, %v10313_v6  ;;  %v11476_v3 = vpop.f32.mrf.mxu0  ;;  %v10285_v23 = vadd.f32 %v17562_v33, %v10246_v27  ;;  %v10176_v55 = vadd.f32 %v10175_v4, %v17614_v34  ;;  %v10319_v43 = vmax.f32 %v10287_v49, 0.0 }
 0x652   : > { %v10374_v62 = vadd.f32 %v10373_v20, %v10372_v54  ;;  %v10249_v61 = vmul.f32 %v17553_v40, %v10184_v7  ;;  %v11883_v22 = vpop.f32.mrf.mxu1  ;;  %v10466_v56 = vsel %vm10465_vm14, %v10458_v50, %v10457_v37  ;;  %v10377_v35 = vadd.f32 %v10376_v10, %v10375_v5 }
 0x653   : > { %v10341_v36 = vadd.f32 %v10333_v16, %v10315_v53  ;;  %v11478_v32 = vpop.f32.mrf.mxu0  ;;  %v10247_v45 = vmul.f32 %v17553_v40, %v10176_v55  ;;  %v10039_v60 = vadd.f32 %v11474_v28, %v17528_v42  ;;  %v10197_v14 = vadd.f32 %v11883_v22, %v10036_v0 }
 0x654   : > { %v10412_v51 = vmul.f32 0.0625, %v10374_v62  ;;  %v10188_v15 = vpop.f32.mrf.mxu1  ;;  %v10378_v30 = vrot.slane %v10377_v35, 2  ;;  %v10317_v18 = vmax.f32 %v10285_v23, 0.0  ;;  %v10288_v37 = vadd.f32 %v17562_v33, %v10249_v61 }
 0x655   : > { %v10349_v29 = vadd.f32 %v10341_v36, %v10316_v47  ;;  %v10189_v19 = vadd.f32 %v10188_v15, %v17632_v25  ;;  %v11479_v34 = vpop.f32.mrf.mxu0  ;;  %v10286_v12 = vadd.f32 %v17562_v33, %v10247_v45  ;;  %v10252_v44 = vmul.f32 %v17553_v40, %v10197_v14 }
 0x656   : > { %v10420_v57 = vpack.c.bf16 %v10412_v51, %v10412_v51  ;;  %v11884_v11 = vpop.f32.mrf.mxu1  ;;  %v10379_v1 = vadd.f32 %v10378_v30, %v10377_v35  ;;  %v11477_v54 = vadd.f32 %v11476_v3, %v11475_v31  ;;  %v10031_v6 = vadd.f32 %v17638_v26, %v17506_v2 }
 0x657   : > { %v10382_v53 = vsel %vm10353_vm13, %v10349_v29, 0.0  ;;  %v10250_v42 = vmul.f32 %v17553_v40, %v10189_v19  ;;  %v11481_v13 = vpop.f32.mrf.mxu0  ;;  %v10318_v25 = vmax.f32 %v10286_v12, 0.0  ;;  %v10200_v39 = vadd.f32 %v11884_v11, %v10039_v60 }
 0x658   : > { %v10459_v63 = vunpack.c.l.b16 %v10420_v57  ;;  %v10383_v59 = vrot.slane %v10382_v53, 4  ;;  %v10191_v46 = vpop.f32.mrf.mxu1  ;;  %v10380_v41 = vrot.slane %v10379_v1, 1  ;;  %v10320_v5 = vmax.f32 %v10288_v37, 0.0 }
 0x659   : > { %v10289_v8 = vadd.f32 %v17562_v33, %v10250_v42  ;;  %v11482_v21 = vpop.f32.mrf.mxu0  ;;  %v10334_v58 = vadd.f32 %v10318_v25, %v10317_v18  ;;  %v10253_v27 = vmul.f32 %v17553_v40, %v10200_v39  ;;  %v11480_v49 = vadd.f32 %v11479_v34, %v11478_v32 }
 0x65a   : > { %v10468_v52 = vsel %vm10467_vm15, %v10459_v63, %v10466_v56  ;;  %v10384_v9 = vadd.f32 %v10383_v59, %v10382_v53  ;;  %v11887_v28 = vpop.f32.mrf.mxu1  ;;  %v10381_v20 = vadd.f32 %v10380_v41, %v10379_v1  ;;  %v10192_v7 = vadd.f32 %v10191_v46, %v10031_v6 }
 0x65b   : > { %v11484_v4 = vpop.f32.mrf.mxu0  ;;  %v10342_v31 = vadd.f32 %v10334_v58, %v10319_v43  ;;  %v10291_v10 = vadd.f32 %v17562_v33, %v10252_v44  ;;  %v11483_v16 = vadd.f32 %v11482_v21, %v11481_v13  ;;  %v10321_v26 = vmax.f32 %v10289_v8, 0.0 }
 0x65c   : > { %v10385_v50 = vrot.slane %v10384_v9, 2  ;;  %v10204_v3 = vpop.f32.mrf.mxu1  ;;  %v10413_v2 = vmul.f32 0.0625, %v10381_v20  ;;  %v10251_v0 = vmul.f32 %v17553_v40, %v10192_v7  ;;  %v10044_v62 = vadd.f32 %v11477_v54, %v17534_v48 }
 0x65d   : > { %v11485_v23 = vpop.f32.mrf.mxu0  ;;  %v10350_v55 = vadd.f32 %v10342_v31, %v10320_v5  ;;  %v10292_v22 = vadd.f32 %v17562_v33, %v10253_v27  ;;  %v10052_v56 = vadd.f32 %v11483_v16, %v17544_v24  ;;  %v10047_v60 = vadd.f32 %v11480_v49, %v17539_v17 }
 0x65e   : > { %v10386_v61 = vadd.f32 %v10385_v50, %v10384_v9  ;;  %v11888_v35 = vpop.f32.mrf.mxu1  ;;  %v10421_v47 = vpack.c.bf16 %v10413_v2, %v10413_v2  ;;  %v10290_v36 = vadd.f32 %v17562_v33, %v10251_v0  ;;  %v10205_v32 = vadd.f32 %v10204_v3, %v10044_v62 }
 0x65f   : > { %v11486_v51 = vadd.f32 %v11485_v23, %v11484_v4  ;;  %v10389_v45 = vsel %vm10353_vm13, %v10350_v55, 0.0  ;;  %v10213_v15 = vadd.f32 %v11887_v28, %v10052_v56  ;;  %v10323_v11 = vmax.f32 %v10291_v10, 0.0 }
 0x660   : > { %v10387_v43 = vrot.slane %v10386_v61, 1  ;;  %v10207_v48 = vpop.f32.mrf.mxu1  ;;  %v10460_v30 = vunpack.c.l.b16 %v10421_v47  ;;  %v10390_v29 = vrot.slane %v10389_v45, 4  ;;  %v10322_v14 = vmax.f32 %v10290_v36, 0.0 }
 0x661   : > { %v10254_v19 = vmul.f32 %v17553_v40, %v10205_v32  ;;  %v10256_v24 = vmul.f32 %v17553_v40, %v10213_v15  ;;  %v10055_v57 = vadd.f32 %v11486_v51, %v17546_v38  ;;  %v10208_v18 = vadd.f32 %v10207_v48, %v10047_v60 }
 0x662   : > { %v10388_v34 = vadd.f32 %v10387_v43, %v10386_v61  ;;  %v10470_v37 = vsel %vm10469_vm0, %v10460_v30, %v10468_v52  ;;  %v10391_v12 = vadd.f32 %v10390_v29, %v10389_v45  ;;  %v10335_v1 = vadd.f32 %v10322_v14, %v10321_v26  ;;  %v11082_v30 = vld [vmem:[%s17715_s11] ss:$0 sm:$0xff] }
 0x663   : > { %v10293_v17 = vadd.f32 %v17562_v33, %v10254_v19  ;;  %v10216_v44 = vadd.f32 %v11888_v35, %v10055_v57  ;;  %v10255_v42 = vmul.f32 %v17553_v40, %v10208_v18  ;;  %v10324_v63 = vmax.f32 %v10292_v22, 0.0 }
 0x664   : > { %v10414_v53 = vmul.f32 0.0625, %v10388_v34  ;;  %v10392_v13 = vrot.slane %v10391_v12, 2  ;;  %v10343_v59 = vadd.f32 %v10335_v1, %v10323_v11  ;;  %v10295_v39 = vadd.f32 %v17562_v33, %v10256_v24 }
 0x665   : > { %v10257_v38 = vmul.f32 %v17553_v40, %v10216_v44  ;;  %v10294_v46 = vadd.f32 %v17562_v33, %v10255_v42  ;;  %v10325_v6 = vmax.f32 %v10293_v17, 0.0 }
 0x666   : > { %v10422_v25 = vpack.c.bf16 %v10414_v53, %v10414_v53  ;;  %v10393_v41 = vadd.f32 %v10392_v13, %v10391_v12  ;;  %v10351_v54 = vadd.f32 %v10343_v59, %v10324_v63  ;;  %v10327_v20 = vmax.f32 %v10295_v39, 0.0 }
 0x667   : > { %v10296_v21 = vadd.f32 %v17562_v33, %v10257_v38  ;;  %v10326_v52 = vmax.f32 %v10294_v46, 0.0 }
 0x668   : > { %v10461_v8 = vunpack.c.l.b16 %v10422_v25  ;;  %v10394_v9 = vrot.slane %v10393_v41, 1  ;;  %v10396_v58 = vsel %vm10353_vm13, %v10351_v54, 0.0 }
 0x669   : > { %v10397_v28 = vrot.slane %v10396_v58, 4  ;;  %v10336_v5 = vadd.f32 %v10326_v52, %v10325_v6  ;;  %v10328_v40 = vmax.f32 %v10296_v21, 0.0 }
 0x66a   : > { %v10472_v27 = vsel %vm10471_vm1, %v10461_v8, %v10470_v37  ;;  %v10395_v49 = vadd.f32 %v10394_v9, %v10393_v41  ;;  %v11091_v37 = vld [vmem:[%s17717_s13] ss:$0 sm:$0xff] }
 0x66b   : > { %v10398_v7 = vadd.f32 %v10397_v28, %v10396_v58  ;;  %v10344_v4 = vadd.f32 %v10336_v5, %v10327_v20 }
 0x66c   : > { %v10415_v50 = vmul.f32 0.0625, %v10395_v49 }
 0x66d   : > { %v10399_v31 = vrot.slane %v10398_v7, 2  ;;  %v10352_v10 = vadd.f32 %v10344_v4, %v10328_v40 }
 0x66e   : > { %v10423_v16 = vpack.c.bf16 %v10415_v50, %v10415_v50 }
 0x66f   : > { %v10400_v3 = vadd.f32 %v10399_v31, %v10398_v7  ;;  %v10403_v2 = vsel %vm10353_vm13, %v10352_v10, 0.0 }
 0x670   : > { %v10462_v33 = vunpack.c.l.b16 %v10423_v16  ;;  %v10404_v26 = vrot.slane %v10403_v2, 4 }
 0x671   : > { %v10401_v0 = vrot.slane %v10400_v3, 1 }
 0x672   : > { %v10405_v62 = vadd.f32 %v10404_v26, %v10403_v2  ;;  %v10474_v23 = vsel %vm10473_vm2, %v10462_v33, %v10472_v27 }
 0x673   : > { %v10402_v61 = vadd.f32 %v10401_v0, %v10400_v3 }
 0x674   : > { %v10406_v55 = vrot.slane %v10405_v62, 2 }
 0x675   : > { %v10416_v22 = vmul.f32 0.0625, %v10402_v61 }
 0x676   : > { %v10407_v56 = vadd.f32 %v10406_v55, %v10405_v62 }
 0x677   : > { %v10424_v35 = vpack.c.bf16 %v10416_v22, %v10416_v22 }
 0x678   : > { %v10408_v47 = vrot.slane %v10407_v56, 1 }
 0x679   : > { %v10463_v36 = vunpack.c.l.b16 %v10424_v35 }
 0x67a   : > { %v10409_v32 = vadd.f32 %v10408_v47, %v10407_v56 }
 0x67b   : > { %v10476_v51 = vsel %vm10475_vm3, %v10463_v36, %v10474_v23 }
 0x67c   : > { %v10417_v43 = vmul.f32 0.0625, %v10409_v32 }
 0x67e   : > { %v10425_v45 = vpack.c.bf16 %v10417_v43, %v10417_v43 }
 0x680   : > { %v10464_v15 = vunpack.c.l.b16 %v10425_v45 }
 0x682   : > { %v10478_v60 = vsel %vm10477_vm4, %v10464_v15, %v10476_v51 }
 0x683   : > { %v10479_v48 = vpack.c.b16 %v10478_v60, %v10478_v60 }
 0x685   : > { %11906 = vmatmul.mubr.bf16.vlgmr.msra.gmra.mxu1 %v10479_v48 }
 0x745   : > { %v10563_v29 = vpop.f32.mrf.mxu1 }
 0x746   : > { %v10564_v14 = vadd.f32 %v11082_v30, %v10563_v29 }
 0x747   : > { %v11907_v19 = vpop.f32.mrf.mxu1 }
 0x748   : > { %v10569_v34 = vmax.f32 %v10564_v14, 0.0 }
 0x749   : > { %v10566_v24 = vpop.f32.mrf.mxu1 }
 0x74a   : > { %v10570_v57 = vpack.c.bf16 %v10569_v34, %v10569_v34 }
 0x74b   : > { %v11908_v18 = vpop.f32.mrf.mxu1 }
 0x74c   : > { %11918 = vmatmul.mubr.msk.bf16.vlgmr.msra.gmra.mxu0 %vm6592_vm6, %v10570_v57 }
 0x80c   : > { %v10647_v12 = vpop.f32.mrf.mxu0 }
 0x80d   : > { %v10648_v11 = vadd.f32 %v11091_v37, %v10647_v12 }
 0x80e   : > { %v11919_v1 = vpop.f32.mrf.mxu0 }
 0x80f   : > { %10654 = vst.msk [vmem:[%s467_s23] sm:$0xff] %vm10653_vm5, %v10648_v11 }
 0x810   : > { %v10650_v53 = vpop.f32.mrf.mxu0 }
 0x812   : > { %v11920_v17 = vpop.f32.mrf.mxu0 }
 0x813 PF: > { %s24_s29 = sadd.s32 1, %s13434_s29  }
 0x814   : > { %p21_p5 = scmp.ge.s32.totalorder %s24_s29, 4  }
 0x816   :  { %23 = sbr.rel (!%p21_p5) target bundleno = 1 (0x1), region = 302 }

</bundles_post_ra>
